<compile_context>
chip_gen: v7x
topology: tpu7x:2x2x1
jax: 0.10.0
libtpu: 0.0.40
codegen_flags: <defaults>
</compile_context>

<pallas_src>
import functools

import jax
import jax.numpy as jnp
from jax.experimental import pallas as pl
from jax.experimental.pallas import tpu as pltpu

M_HIDDEN = 512


@functools.lru_cache(maxsize=1)
def _device_kind() -> str:
    try:
        return jax.devices()[0].device_kind.lower()
    except Exception:
        return ""


@functools.lru_cache(maxsize=1)
def _compute_dtype():
    # v6e / v7x VALUs have packed bf16 FMA -> ~2x less VALU work and half the
    # VMEM footprint of the [512, tb] intermediate.  v5e (and unknown chips)
    # stay f32: the v5e VPU has no bf16, bf16 would only add conversions.
    kind = _device_kind()
    if ("v6" in kind) or ("v7" in kind):
        return jnp.bfloat16
    return jnp.float32


def _round_up(x: int, m: int) -> int:
    return ((x + m - 1) // m) * m


def _choose_tile(batch: int) -> int:
    """Batch-tile (lane) size: multiple of 128, sized per TPU generation."""
    # Cap the [512, tb] layer-1 intermediate at ~4 MiB so it stays well inside
    # v7x's 32 MiB scoped VMEM (and trivially inside v5e/v6e's 128 MiB).
    cap = 4096 if _compute_dtype() == jnp.bfloat16 else 2048
    b128 = _round_up(max(batch, 1), 128)
    if b128 <= cap:
        tb = b128
        # v7x has two TensorCores: give the "parallel" batch axis >= 2 steps.
        if "v7" in _device_kind() and b128 >= 256:
            tb = _round_up((b128 + 1) // 2, 128)
    else:
        tb = cap
    return tb


def mlp_kernel(x_ref, w1b1_ref, w2t_ref, b2_ref, o_ref):
    # x_ref:    [2, TB]   f32, batch on the lane axis
    # w1b1_ref: [512, 3]  compute dtype; columns = (w1[:,0], w1[:,1], b1)
    # w2t_ref:  [1, 512]  compute dtype, pre-scaled by 1/m (MXU LHS layout)
    # b2_ref:   [1, 1]    f32 scalar in SMEM, pre-scaled by 1/m
    # o_ref:    [1, TB]   f32
    cdt = w1b1_ref.dtype
    x0 = x_ref[0:1, :].astype(cdt)          # [1, TB]
    x1 = x_ref[1:2, :].astype(cdt)          # [1, TB]
    w1c0 = w1b1_ref[:, 0:1]                 # [512, 1]
    w1c1 = w1b1_ref[:, 1:2]                 # [512, 1]
    b1 = w1b1_ref[:, 2:3]                   # [512, 1]

    # Layer 1 + ReLU as broadcast FMAs on the VPU (a K=2 matmul would waste
    # the MXU and pad 2 -> 128 lanes).
    h = jnp.maximum(w1c0 * x0 + w1c1 * x1 + b1, 0)                     # [512, TB]

    # Layer 2 (N=1 contraction over 512 hidden units) on the otherwise idle
    # MXU; accumulate in f32.  h is already [K, N] with N on lanes and w2t is
    # [M, K] with K on lanes, so no XLU transpose is required.
    y = jnp.dot(w2t_ref[...], h, preferred_element_type=jnp.float32)  # [1, TB]
    o_ref[...] = (y + b2_ref[0, 0]).astype(o_ref.dtype)


def prepare_params(w1, b1, w2, b2):
    """One-time host-side repack of PyTorch-layout params (+ fold the 1/m scale).

    Inputs: w1 [512, 2], b1 [512], w2 [1, 512], b2 [1]  (nn.Linear layout).
    """
    cdt = _compute_dtype()
    inv_m = 1.0 / M_HIDDEN
    w1 = jnp.asarray(w1, jnp.float32).reshape(M_HIDDEN, 2)
    b1 = jnp.asarray(b1, jnp.float32).reshape(M_HIDDEN, 1)
    w1b1 = jnp.concatenate([w1, b1], axis=1).astype(cdt)                   # [512, 3]
    w2t = (jnp.asarray(w2, jnp.float32) * inv_m).reshape(1, M_HIDDEN).astype(cdt)
    b2s = (jnp.asarray(b2, jnp.float32) * inv_m).reshape(1, 1)             # f32
    return w1b1, w2t, b2s


@functools.partial(jax.jit, static_argnames=("tb", "b_pad"))
def _net_forward_jit(x, w1b1, w2t, b2s, *, tb, b_pad):
    B = x.shape[0]
    # Lane-dense plumbing: batch on the lane (last) axis.  Kept inside the
    # same jit as the pallas_call so transpose + pad fuse into one HBM pass.
    # TODO(synk): if the producer can emit x as [2, B] directly, drop this.
    x_t = jnp.transpose(x)                                    # [2, B]
    if b_pad != B:
        x_t = jnp.pad(x_t, ((0, 0), (0, b_pad - B)))          # [2, B_pad]

    out_pad = pl.pallas_call(
        mlp_kernel,
        out_shape=jax.ShapeDtypeStruct((1, b_pad), jnp.float32),
        grid=(pl.cdiv(b_pad, tb),),
        in_specs=[
            pl.BlockSpec((2, tb), lambda i: (0, i)),            # x tile (pipelined)
            pl.BlockSpec((M_HIDDEN, 3), lambda i: (0, 0)),      # resident packed w1/b1
            pl.BlockSpec((1, M_HIDDEN), lambda i: (0, 0)),      # resident w2^T
            pl.BlockSpec(memory_space=pltpu.MemorySpace.SMEM),  # b2 scalar
        ],
        out_specs=pl.BlockSpec((1, tb), lambda i: (0, i)),      # lane-dense output
        compiler_params=pltpu.CompilerParams(
            dimension_semantics=("parallel",),   # shards batch tiles across TCs (v7x)
            vmem_limit_bytes=32 * 1024 * 1024,
        ),
    )(x_t, w1b1, w2t, b2s)

    return out_pad[:, :B].reshape(B, 1)


def net_forward(x, w1b1, w2t, b2s):
    """x: [B, 2] float32, params from prepare_params(). Returns [B, 1] float32."""
    B = x.shape[0]
    tb = _choose_tile(B)
    return _net_forward_jit(x, w1b1, w2t, b2s, tb=tb, b_pad=_round_up(B, tb))


def init_params(key):
    # PyTorch-layout params mirroring nn.Linear's U(-1/sqrt(fan_in), +) init.
    k1, k2, k3, k4 = jax.random.split(key, 4)
    bound1 = 1.0 / jnp.sqrt(2.0)
    bound2 = 1.0 / jnp.sqrt(float(M_HIDDEN))
    w1 = jax.random.uniform(k1, (M_HIDDEN, 2), jnp.float32, -bound1, bound1)
    b1 = jax.random.uniform(k2, (M_HIDDEN,), jnp.float32, -bound1, bound1)
    w2 = jax.random.uniform(k3, (1, M_HIDDEN), jnp.float32, -bound2, bound2)
    b2 = jax.random.uniform(k4, (1,), jnp.float32, -bound2, bound2)
    return w1, b1, w2, b2


if __name__ == "__main__":
    key = jax.random.PRNGKey(0)
    kx, kp = jax.random.split(key)
    w1, b1, w2, b2 = init_params(kp)              # PyTorch layout
    kparams = prepare_params(w1, b1, w2, b2)      # one-time fold / repack

    # The f32 path matches the f32 reference to ~1e-5; the bf16 layer-1 path
    # (v6e/v7x) rounds the [512, tb] intermediate to bf16, so use bf16-level
    # tolerance there (layer-2 accumulation stays f32 on the MXU).
    if _compute_dtype() == jnp.bfloat16:
        atol, rtol = 2e-3, 2e-2
    else:
        atol, rtol = 1e-5, 1e-5

    for batch in (1024, 300):                     # 300 exercises the pad path
        x = jax.random.normal(jax.random.fold_in(kx, batch), (batch, 2), jnp.float32)
        out = net_forward(x, *kparams)
        jax.block_until_ready(out)

        # Pure-JAX reference with the original (unfolded) params / semantics.
        ref = (jnp.maximum(x @ w1.T + b1, 0.0) @ w2.T + b2) / M_HIDDEN
        assert out.shape == (batch, 1)
        err = float(jnp.max(jnp.abs(out - ref)))
        assert jnp.allclose(out, ref, atol=atol, rtol=rtol), (batch, err)

    print("KERNEL_OK")
</pallas_src>

<mosaic_0001>
module attributes {stable_mosaic.version = 11 : i64} {
  func.func @mlp_kernel(%arg0: i32, %arg1: memref<2x1024xf32, #tpu.memory_space<vmem>>, %arg2: memref<512x3xf32, #tpu.memory_space<vmem>>, %arg3: memref<1x512xf32, #tpu.memory_space<vmem>>, %arg4: memref<1x1xf32, #tpu.memory_space<smem>>, %arg5: memref<1x1024xf32, #tpu.memory_space<vmem>>) attributes {dimension_semantics = [#tpu.dimension_semantics<parallel>], iteration_bounds = array<i64: 1>, scalar_prefetch = 0 : i64, scratch_operands = 0 : i64, tpu.core_type = #tpu.core_type<tc>, window_params = [{transform_indices = @transform_0, window_bounds = array<i64: 2, 1024>}, {pipeline_mode = #tpu.pipeline_mode<synchronous>, transform_indices = @transform_1, window_bounds = array<i64: 512, 3>}, {pipeline_mode = #tpu.pipeline_mode<synchronous>, transform_indices = @transform_2, window_bounds = array<i64: 1, 512>}, {transform_indices = @transform_3, window_bounds = array<i64: 1, 1>}, {transform_indices = @transform_4, window_bounds = array<i64: 1, 1024>}]} {
    %c0 = arith.constant 0 : index
    %c0_0 = arith.constant 0 : index
    %0 = vector.load %arg1[%c0, %c0_0] : memref<2x1024xf32, #tpu.memory_space<vmem>>, vector<1x1024xf32>
    %c1 = arith.constant 1 : index
    %c0_1 = arith.constant 0 : index
    %1 = vector.load %arg1[%c1, %c0_1] : memref<2x1024xf32, #tpu.memory_space<vmem>>, vector<1x1024xf32>
    %c0_2 = arith.constant 0 : index
    %c0_3 = arith.constant 0 : index
    %2 = vector.load %arg2[%c0_2, %c0_3] : memref<512x3xf32, #tpu.memory_space<vmem>>, vector<512x1xf32>
    %c0_4 = arith.constant 0 : index
    %c1_5 = arith.constant 1 : index
    %3 = vector.load %arg2[%c0_4, %c1_5] : memref<512x3xf32, #tpu.memory_space<vmem>>, vector<512x1xf32>
    %c0_6 = arith.constant 0 : index
    %c2 = arith.constant 2 : index
    %4 = vector.load %arg2[%c0_6, %c2] : memref<512x3xf32, #tpu.memory_space<vmem>>, vector<512x1xf32>
    %5 = vector.broadcast %2 : vector<512x1xf32> to vector<512x1024xf32>
    %6 = vector.broadcast %0 : vector<1x1024xf32> to vector<512x1024xf32>
    %7 = arith.mulf %5, %6 : vector<512x1024xf32>
    %8 = vector.broadcast %3 : vector<512x1xf32> to vector<512x1024xf32>
    %9 = vector.broadcast %1 : vector<1x1024xf32> to vector<512x1024xf32>
    %10 = arith.mulf %8, %9 : vector<512x1024xf32>
    %11 = arith.addf %7, %10 : vector<512x1024xf32>
    %12 = vector.broadcast %4 : vector<512x1xf32> to vector<512x1024xf32>
    %13 = arith.addf %11, %12 : vector<512x1024xf32>
    %cst = arith.constant 0.000000e+00 : f32
    %14 = vector.broadcast %cst : f32 to vector<512x1024xf32>
    %15 = arith.maximumf %13, %14 : vector<512x1024xf32>
    %c0_7 = arith.constant 0 : index
    %c0_8 = arith.constant 0 : index
    %16 = vector.load %arg3[%c0_7, %c0_8] : memref<1x512xf32, #tpu.memory_space<vmem>>, vector<1x512xf32>
    %cst_9 = arith.constant dense<0.000000e+00> : vector<1x1024xf32>
    %17 = tpu.matmul %16, %15, %cst_9 {dimension_numbers = #tpu.dot_dimension_numbers<[1], [0], [0], [1], [0, 0, 1, 1], [], []>} : vector<1x512xf32>, vector<512x1024xf32>, vector<1x1024xf32> -> vector<1x1024xf32>
    %c0_10 = arith.constant 0 : index
    %c0_11 = arith.constant 0 : index
    %18 = memref.load %arg4[%c0_10, %c0_11] : memref<1x1xf32, #tpu.memory_space<smem>>
    %19 = vector.broadcast %18 : f32 to vector<1x1024xf32>
    %20 = arith.addf %17, %19 : vector<1x1024xf32>
    %c0_12 = arith.constant 0 : index
    %c0_13 = arith.constant 0 : index
    %21 = vector.load %arg5[%c0_12, %c0_13] : memref<1x1024xf32, #tpu.memory_space<vmem>>, vector<1x1024xf32>
    tpu.vector_store %arg5[%c0_12, %c0_13], %20 {strides = array<i32>} : memref<1x1024xf32, #tpu.memory_space<vmem>>, vector<1x1024xf32>,
    return
  }
  func.func @transform_0(%arg0: i32) -> (i32, i32) {
    %c0_i32 = arith.constant 0 : i32
    %c0_i32_0 = arith.constant 0 : i32
    return %c0_i32, %arg0 : i32, i32
  }
  func.func @transform_1(%arg0: i32) -> (i32, i32) {
    %c0_i32 = arith.constant 0 : i32
    %c0_i32_0 = arith.constant 0 : i32
    %c0_i32_1 = arith.constant 0 : i32
    return %c0_i32, %c0_i32_0 : i32, i32
  }
  func.func @transform_2(%arg0: i32) -> (i32, i32) {
    %c0_i32 = arith.constant 0 : i32
    %c0_i32_0 = arith.constant 0 : i32
    %c0_i32_1 = arith.constant 0 : i32
    return %c0_i32, %c0_i32_0 : i32, i32
  }
  func.func @transform_3(%arg0: i32) -> (i32, i32) {
    %c0_i32 = arith.constant 0 : i32
    %c0_i32_0 = arith.constant 0 : i32
    %c0_i32_1 = arith.constant 0 : i32
    return %c0_i32, %c0_i32_0 : i32, i32
  }
  func.func @transform_4(%arg0: i32) -> (i32, i32) {
    %c0_i32 = arith.constant 0 : i32
    %c0_i32_0 = arith.constant 0 : i32
    return %c0_i32, %arg0 : i32, i32
  }
}

</mosaic_0001>

<bundles_post_ra>
// kernel: _net_forward_jit.1
= control target key start
LH: loop header
LB: loop body
LE: loop exit
PB: predicated region body
PF: predicated region fallthrough
CT: control target
= control target key end

     0   :  { %v10043_v2 = vmov 0   ;;  %s10038_s0 = inlined_call_operand.vmem [shape: f32[2,1024], index: 0, kind: input, shape index: {}]   ;;  %s10039_s1 = inlined_call_operand.vmem [shape: f32[512,3], index: 1, kind: input, shape index: {}]   ;;  %s10040_s2 = inlined_call_operand.vmem [shape: f32[1,512], index: 2, kind: input, shape index: {}]   ;;  %s10041_s3 = inlined_call_operand.<no memory space> [shape: f32[1,1], index: 3, kind: input, shape index: {}]   ;;  %s10042_s4 = inlined_call_operand.hbm [shape: f32[1,1024], index: 4, kind: output, shape index: {}]  }
   0x1   :  { %v4928_v0 = vld [vmem:[%s10039_s1 + $0x10] sm:$0xff]  ;;  %v4933_v1 = vld [vmem:[%s10039_s1] sm:$0xff]  ;;  %4760 = vset.pattern.permute.xlu1 %v10043_v2  ;;  %4759 = vset.pattern.permute.xlu0 %v10043_v2  ;;  %v4942_v3 = vld [vmem:[%s10039_s1 + $0x18] sm:$0xff] }
   0x2   :  { %98 = vperm.xlu1 %4760, %v4928_v0   ;;  %88 = vperm.xlu0 %4759, %v4933_v1   ;;  %v4947_v4 = vld [vmem:[%s10039_s1 + $0x8] sm:$0xff]  ;;  %v4959_v6 = vld [vmem:[%s10039_s1 + $0x20] sm:$0xff]  ;;  %v4966_v7 = vld [vmem:[%s10039_s1 + $0x38] sm:$0xff] }
   0x3   :  { %v4954_v5 = vld [vmem:[%s10039_s1 + $0x28] sm:$0xff]  ;;  %v4971_v8 = vld [vmem:[%s10039_s1 + $0x30] sm:$0xff]  ;;  %v4983_v10 = vld [vmem:[%s10039_s1 + $0x40] sm:$0xff] }
   0x4   :  { %v4978_v9 = vld [vmem:[%s10039_s1 + $0x48] sm:$0xff] }
   0x6   :  { %103 = vperm.xlu1 %4760, %v4942_v3   ;;  %93 = vperm.xlu0 %4759, %v4947_v4  }
   0xa   :  { %113 = vperm.xlu1 %4760, %v4954_v5   ;;  %108 = vperm.xlu0 %4759, %v4959_v6  }
   0xe   :  { %123 = vperm.xlu1 %4760, %v4966_v7   ;;  %118 = vperm.xlu0 %4759, %v4971_v8  }
  0x12   :  { %133 = vperm.xlu1 %4760, %v4978_v9   ;;  %128 = vperm.xlu0 %4759, %v4983_v10  }
  0x13   :  { %10 = vsyncpa [#allocation4], 0  ;;  %v4990_v11 = vld [vmem:[%s10039_s1 + $0x58] sm:$0xff]  ;;  %v4995_v12 = vld [vmem:[%s10039_s1 + $0x50] sm:$0xff]  ;;  %v10053_v54 = vmov 1   ;;  %v10049_v55 = vmov 2  }
  0x14   :  { %v5002_v13 = vld [vmem:[%s10039_s1 + $0x68] sm:$0xff]  ;;  %v5007_v14 = vld [vmem:[%s10039_s1 + $0x60] sm:$0xff]  ;;  %v5014_v15 = vld [vmem:[%s10039_s1 + $0x78] sm:$0xff] }
  0x15   :  { %v5019_v16 = vld [vmem:[%s10039_s1 + $0x70] sm:$0xff]  ;;  %v5026_v17 = vld [vmem:[%s10039_s1 + $0x88] sm:$0xff]  ;;  %v5031_v18 = vld [vmem:[%s10039_s1 + $0x80] sm:$0xff] }
  0x16   :  { %143 = vperm.xlu1 %4760, %v4990_v11   ;;  %138 = vperm.xlu0 %4759, %v4995_v12   ;;  %v5038_v19 = vld [vmem:[%s10039_s1 + $0x98] sm:$0xff]  ;;  %v5043_v20 = vld [vmem:[%s10039_s1 + $0x90] sm:$0xff]  ;;  %v5050_v21 = vld [vmem:[%s10039_s1 + $0xa8] sm:$0xff] }
  0x17   :  { %v5055_v22 = vld [vmem:[%s10039_s1 + $0xa0] sm:$0xff]  ;;  %v5062_v23 = vld [vmem:[%s10039_s1 + $0xb8] sm:$0xff]  ;;  %v5067_v24 = vld [vmem:[%s10039_s1 + $0xb0] sm:$0xff] }
  0x18   :  { %10473 = vst [vmem:[#allocation6_spill] sm:$0xff] %v5067_v24  ;;  %v5074_v25 = vld [vmem:[%s10039_s1 + $0xc8] sm:$0xff]  ;;  %v5079_v26 = vld [vmem:[%s10039_s1 + $0xc0] sm:$0xff]  ;;  %v5086_v27 = vld [vmem:[%s10039_s1 + $0xd8] sm:$0xff] }
  0x19   :  { %10474 = vst [vmem:[#allocation7_spill] sm:$0xff] %v5074_v25  ;;  %10475 = vst [vmem:[#allocation8_spill] sm:$0xff] %v5079_v26  ;;  %v5091_v28 = vld [vmem:[%s10039_s1 + $0xd0] sm:$0xff]  ;;  %v5098_v29 = vld [vmem:[%s10039_s1 + $0xe8] sm:$0xff] }
  0x1a   :  { %153 = vperm.xlu1 %4760, %v5002_v13   ;;  %148 = vperm.xlu0 %4759, %v5007_v14   ;;  %10476 = vst [vmem:[#allocation9_spill] sm:$0xff] %v5086_v27  ;;  %10477 = vst [vmem:[#allocation10_spill] sm:$0xff] %v5091_v28  ;;  %v5103_v30 = vld [vmem:[%s10039_s1 + $0xe0] sm:$0xff]  ;;  %v53_v31 = vld [vmem:[%s10039_s1 + $0xf8] sm:$0xff] }
  0x1b   :  { %10478 = vst [vmem:[#allocation11_spill] sm:$0xff] %v5103_v30  ;;  %v5113_v32 = vld [vmem:[%s10039_s1 + $0xf0] sm:$0xff]  ;;  %v5119_v33 = vld [vmem:[%s10039_s1 + $0x108] sm:$0xff]  ;;  %v5124_v34 = vld [vmem:[%s10039_s1 + $0x100] sm:$0xff] }
  0x1c   :  { %v57_v35 = vld [vmem:[%s10039_s1 + $0x118] sm:$0xff]  ;;  %v5134_v36 = vld [vmem:[%s10039_s1 + $0x110] sm:$0xff]  ;;  %v5140_v37 = vld [vmem:[%s10039_s1 + $0x128] sm:$0xff] }
  0x1d   :  { %v5145_v38 = vld [vmem:[%s10039_s1 + $0x120] sm:$0xff]  ;;  %v61_v39 = vld [vmem:[%s10039_s1 + $0x138] sm:$0xff]  ;;  %v5155_v40 = vld [vmem:[%s10039_s1 + $0x130] sm:$0xff] }
  0x1e   :  { %163 = vperm.xlu1 %4760, %v5014_v15   ;;  %158 = vperm.xlu0 %4759, %v5019_v16   ;;  %v5161_v41 = vld [vmem:[%s10039_s1 + $0x148] sm:$0xff]  ;;  %v5166_v42 = vld [vmem:[%s10039_s1 + $0x140] sm:$0xff]  ;;  %v65_v43 = vld [vmem:[%s10039_s1 + $0x158] sm:$0xff] }
  0x1f   :  { %v5176_v44 = vld [vmem:[%s10039_s1 + $0x150] sm:$0xff]  ;;  %v5182_v45 = vld [vmem:[%s10039_s1 + $0x168] sm:$0xff]  ;;  %v5187_v46 = vld [vmem:[%s10039_s1 + $0x160] sm:$0xff] }
  0x20   :  { %v69_v47 = vld [vmem:[%s10039_s1 + $0x178] sm:$0xff]  ;;  %v5197_v48 = vld [vmem:[%s10039_s1 + $0x170] sm:$0xff]  ;;  %v5203_v49 = vld [vmem:[%s10039_s1 + $0x188] sm:$0xff] }
  0x21   :  { %10479 = vst [vmem:[#allocation12_spill] sm:$0xff] %v5197_v48  ;;  %10480 = vst [vmem:[#allocation13_spill] sm:$0xff] %v5203_v49  ;;  %v70_v50 = vld [vmem:[%s10039_s1 + $0x180] sm:$0xff]  ;;  %v73_v51 = vld [vmem:[%s10039_s1 + $0x198] sm:$0xff] }
  0x22   :  { %173 = vperm.xlu1 %4760, %v5026_v17   ;;  %168 = vperm.xlu0 %4759, %v5031_v18   ;;  %v5215_v52 = vld [vmem:[%s10039_s1 + $0x190] sm:$0xff]  ;;  %v5221_v53 = vld [vmem:[%s10039_s1 + $0x1a0] sm:$0xff] }
  0x23   :  { %10481 = vst [vmem:[#allocation14_spill] sm:$0xff] %v5215_v52  ;;  %10482 = vst [vmem:[#allocation15_spill] sm:$0xff] %v5221_v53 }
  0x26   :  { %183 = vperm.xlu1 %4760, %v5038_v19   ;;  %178 = vperm.xlu0 %4759, %v5043_v20  }
  0x2a   :  { %193 = vperm.xlu1 %4760, %v5050_v21   ;;  %188 = vperm.xlu0 %4759, %v5055_v22  }
  0x2e   :  { %203 = vperm.xlu1 %4760, %v5062_v23   ;;  %198 = vperm.xlu0 %4759, %v5067_v24  }
  0x32   :  { %213 = vperm.xlu1 %4760, %v5074_v25   ;;  %208 = vperm.xlu0 %4759, %v5079_v26  }
  0x36   :  { %223 = vperm.xlu1 %4760, %v5086_v27   ;;  %218 = vperm.xlu0 %4759, %v5091_v28  }
  0x3a   :  { %233 = vperm.xlu1 %4760, %v5098_v29   ;;  %228 = vperm.xlu0 %4759, %v5103_v30  }
  0x3e   :  { %243 = vperm.xlu1 %4760, %v53_v31   ;;  %238 = vperm.xlu0 %4759, %v5113_v32  }
  0x42   :  { %253 = vperm.xlu1 %4760, %v5119_v33   ;;  %248 = vperm.xlu0 %4759, %v5124_v34  }
  0x46   :  { %263 = vperm.xlu1 %4760, %v57_v35   ;;  %258 = vperm.xlu0 %4759, %v5134_v36  }
  0x4a   :  { %273 = vperm.xlu1 %4760, %v5140_v37   ;;  %268 = vperm.xlu0 %4759, %v5145_v38  }
  0x4e   :  { %283 = vperm.xlu1 %4760, %v61_v39   ;;  %278 = vperm.xlu0 %4759, %v5155_v40  }
  0x52   :  { %293 = vperm.xlu1 %4760, %v5161_v41   ;;  %288 = vperm.xlu0 %4759, %v5166_v42  }
  0x56   :  { %303 = vperm.xlu1 %4760, %v65_v43   ;;  %298 = vperm.xlu0 %4759, %v5176_v44  }
  0x5a   :  { %313 = vperm.xlu1 %4760, %v5182_v45   ;;  %308 = vperm.xlu0 %4759, %v5187_v46  }
  0x5e   :  { %323 = vperm.xlu1 %4760, %v69_v47   ;;  %318 = vperm.xlu0 %4759, %v5197_v48  }
  0x62   :  { %333 = vperm.xlu1 %4760, %v5203_v49   ;;  %328 = vperm.xlu0 %4759, %v70_v50  }
  0x66   :  { %343 = vperm.xlu1 %4760, %v73_v51   ;;  %338 = vperm.xlu0 %4759, %v5215_v52  }
  0x6a   :  { %4761 = vset.pattern.permute.xlu1 %v10053_v54  ;;  %348 = vperm.xlu0 %4759, %v5221_v53  }
  0x6b   :  { %960 = vperm.xlu1 %4761, %v4933_v1  }
  0x6e   :  { %4762 = vset.pattern.permute.xlu0 %v10049_v55 }
  0x6f   :  { %968 = vperm.xlu1 %4761, %v4928_v0   ;;  %2281 = vperm.xlu0 %4762, %v4933_v1  }
  0x73   :  { %972 = vperm.xlu1 %4761, %v4942_v3   ;;  %2297 = vperm.xlu0 %4762, %v4959_v6  }
  0x77   :  { %4763 = vset.pattern.permute.xlu1 %v10049_v55  ;;  %2313 = vperm.xlu0 %4762, %v4983_v10  }
  0x78   :  { %2285 = vperm.xlu1 %4763, %v4947_v4  }
  0x7b   :  { %2329 = vperm.xlu0 %4762, %v5007_v14  }
  0x7c   :  { %4764 = vset.pattern.permute.xlu1 %v10053_v54 }
  0x7d   :  { %976 = vperm.xlu1 %4764, %v4959_v6  }
  0x7f   :  { %2345 = vperm.xlu0 %4762, %v5031_v18  }
  0x81   :  { %v5238_v56 = vpop.permute.xlu1 %98  ;;  %4765 = vset.pattern.permute.xlu1 %v10049_v55  ;;  %v5241_v57 = vpop.permute.xlu0 %88 }
  0x82   :  { %10483 = vst [vmem:[#allocation16_spill] sm:$0xff] %v5238_v56  ;;  %10484 = vst [vmem:[#allocation17_spill] sm:$0xff] %v5241_v57  ;;  %2289 = vperm.xlu1 %4765, %v4928_v0  }
  0x83   :  { %2361 = vperm.xlu0 %4762, %v5055_v22  }
  0x85   :  { %v5245_v58 = vpop.permute.xlu1 %103  ;;  %v5247_v59 = vpop.permute.xlu0 %93 }
  0x86   :  { %10485 = vst [vmem:[#allocation18_spill] sm:$0xff] %v5245_v58  ;;  %10486 = vst [vmem:[#allocation19_spill] sm:$0xff] %v5247_v59  ;;  %2293 = vperm.xlu1 %4765, %v4942_v3  }
  0x87   :  { %2377 = vperm.xlu0 %4762, %v5079_v26  }
  0x89   :  { %v5251_v60 = vpop.permute.xlu1 %113  ;;  %v5253_v61 = vpop.permute.xlu0 %108 }
  0x8a   :  { %10487 = vst [vmem:[#allocation20_spill] sm:$0xff] %v5251_v60  ;;  %10488 = vst [vmem:[#allocation21_spill] sm:$0xff] %v5253_v61  ;;  %4766 = vset.pattern.permute.xlu1 %v10053_v54 }
  0x8b   :  { %988 = vperm.xlu1 %4766, %v4966_v7   ;;  %2393 = vperm.xlu0 %4762, %v5103_v30  }
  0x8d   :  { %v5258_v62 = vpop.permute.xlu1 %123  ;;  %v5260_v63 = vpop.permute.xlu0 %118 }
  0x8e   :  { %10489 = vst [vmem:[#allocation22_spill] sm:$0xff] %v5258_v62  ;;  %10490 = vst [vmem:[#allocation23_spill] sm:$0xff] %v5260_v63 }
  0x8f   :  { %4767 = vset.pattern.permute.xlu1 %v10049_v55  ;;  %2409 = vperm.xlu0 %4762, %v5124_v34  }
  0x90   :  { %2301 = vperm.xlu1 %4767, %v4954_v5  }
  0x91   :  { %v5265_v0 = vpop.permute.xlu1 %133  ;;  %v5267_v1 = vpop.permute.xlu0 %128 }
  0x92   :  { %10491 = vst [vmem:[#allocation24_spill] sm:$0xff] %v5265_v0  ;;  %10492 = vst [vmem:[#allocation25_spill] sm:$0xff] %v5267_v1 }
  0x93   :  { %2425 = vperm.xlu0 %4762, %v5145_v38  }
  0x94   :  { %4768 = vset.pattern.permute.xlu1 %v10053_v54 }
  0x95   :  { %v5271_v3 = vpop.permute.xlu1 %143  ;;  %992 = vperm.xlu1 %4768, %v4983_v10   ;;  %v5274_v6 = vpop.permute.xlu0 %138 }
  0x96   :  { %10493 = vst [vmem:[#allocation26_spill] sm:$0xff] %v5271_v3  ;;  %10494 = vst [vmem:[#allocation27_spill] sm:$0xff] %v5274_v6 }
  0x97   :  { %2441 = vperm.xlu0 %4762, %v5166_v42  }
  0x99   :  { %v5277_v31 = vpop.permute.xlu1 %153  ;;  %4769 = vset.pattern.permute.xlu1 %v10049_v55  ;;  %v5280_v34 = vpop.permute.xlu0 %148 }
  0x9a   :  { %10495 = vst [vmem:[#allocation28_spill] sm:$0xff] %v5277_v31  ;;  %10496 = vst [vmem:[#allocation29_spill] sm:$0xff] %v5280_v34  ;;  %2305 = vperm.xlu1 %4769, %v4971_v8  }
  0x9b   :  { %2457 = vperm.xlu0 %4762, %v5187_v46  }
  0x9d   :  { %v5284_v35 = vpop.permute.xlu1 %163  ;;  %v5286_v38 = vpop.permute.xlu0 %158 }
  0x9e   :  { %10497 = vst [vmem:[#allocation30_spill] sm:$0xff] %v5284_v35  ;;  %10498 = vst [vmem:[#allocation31_spill] sm:$0xff] %v5286_v38  ;;  %2309 = vperm.xlu1 %4769, %v4966_v7  }
  0x9f   :  { %4807 = vset.pattern.permute.xlu0 %v10053_v54 }
  0xa0   :  { %964 = vperm.xlu0 %4807, %v4947_v4  }
  0xa1   :  { %v5291_v10 = vpop.permute.xlu1 %173  ;;  %v5293_v39 = vpop.permute.xlu0 %168 }
  0xa2   :  { %10499 = vst [vmem:[#allocation32_spill] sm:$0xff] %v5291_v10  ;;  %10500 = vst [vmem:[#allocation33_spill] sm:$0xff] %v5293_v39  ;;  %4770 = vset.pattern.permute.xlu1 %v10053_v54 }
  0xa3   :  { %1004 = vperm.xlu1 %4770, %v4990_v11  }
  0xa4   :  { %980 = vperm.xlu0 %4807, %v4954_v5  }
  0xa5   :  { %v5298_v42 = vpop.permute.xlu1 %183  ;;  %v5300_v43 = vpop.permute.xlu0 %178 }
  0xa6   :  { %10501 = vst [vmem:[#allocation34_spill] sm:$0xff] %v5298_v42  ;;  %10502 = vst [vmem:[#allocation35_spill] sm:$0xff] %v5300_v43 }
  0xa7   :  { %4771 = vset.pattern.permute.xlu1 %v10049_v55 }
  0xa8   :  { %2317 = vperm.xlu1 %4771, %v4978_v9   ;;  %984 = vperm.xlu0 %4807, %v4971_v8  }
  0xa9   :  { %v5305_v4 = vpop.permute.xlu1 %193  ;;  %v5307_v7 = vpop.permute.xlu0 %188 }
  0xaa   :  { %10503 = vst [vmem:[#allocation36_spill] sm:$0xff] %v5305_v4  ;;  %10504 = vst [vmem:[#allocation37_spill] sm:$0xff] %v5307_v7 }
  0xac   :  { %4772 = vset.pattern.permute.xlu1 %v10053_v54  ;;  %996 = vperm.xlu0 %4807, %v4978_v9  }
  0xad   :  { %v5311_v46 = vpop.permute.xlu1 %203  ;;  %1008 = vperm.xlu1 %4772, %v5007_v14   ;;  %v5314_v5 = vpop.permute.xlu0 %198 }
  0xae   :  { %10505 = vst [vmem:[#allocation38_spill] sm:$0xff] %v5311_v46  ;;  %10506 = vst [vmem:[#allocation39_spill] sm:$0xff] %v5314_v5 }
  0xb0   :  { %1000 = vperm.xlu0 %4807, %v4995_v12  }
  0xb1   :  { %v5317_v47 = vpop.permute.xlu1 %213  ;;  %4773 = vset.pattern.permute.xlu1 %v10049_v55  ;;  %v5320_v8 = vpop.permute.xlu0 %208 }
  0xb2   :  { %10507 = vst [vmem:[#allocation40_spill] sm:$0xff] %v5317_v47  ;;  %10508 = vst [vmem:[#allocation41_spill] sm:$0xff] %v5320_v8  ;;  %2321 = vperm.xlu1 %4773, %v4995_v12   ;;  %v10521_v8 = vmov 2  }
  0xb4   :  { %1012 = vperm.xlu0 %4807, %v5002_v13  }
  0xb5   :  { %v5324_v50 = vpop.permute.xlu1 %223  ;;  %v5326_v9 = vpop.permute.xlu0 %218 }
  0xb6   :  { %10509 = vst [vmem:[#allocation42_spill] sm:$0xff] %v5324_v50  ;;  %10510 = vst [vmem:[#allocation43_spill] sm:$0xff] %v5326_v9  ;;  %2325 = vperm.xlu1 %4773, %v4990_v11  }
  0xb8   :  { %1016 = vperm.xlu0 %4807, %v5019_v16  }
  0xb9   :  { %v5330_v14 = vpop.permute.xlu1 %233  ;;  %v5332_v51 = vpop.permute.xlu0 %228 }
  0xba   :  { %10511 = vst [vmem:[#allocation44_spill] sm:$0xff] %v5330_v14  ;;  %10512 = vst [vmem:[#allocation45_spill] sm:$0xff] %v5332_v51  ;;  %4774 = vset.pattern.permute.xlu1 %v10053_v54  ;;  %v407_v51 = vlaneseq }
  0xbb   :  { %1020 = vperm.xlu1 %4774, %v5014_v15  }
  0xbc   :  { %1028 = vperm.xlu0 %4807, %v5026_v17  }
  0xbd   :  { %v5337_v12 = vpop.permute.xlu1 %243  ;;  %v5339_v2 = vpop.permute.xlu0 %238 }
  0xbe   :  { %10513 = vst [vmem:[#allocation46_spill] sm:$0xff] %v5337_v12  ;;  %10514 = vst [vmem:[#allocation47_spill] sm:$0xff] %v5339_v2 }
  0xbf   :  { %4775 = vset.pattern.permute.xlu1 %v10049_v55 }
  0xc0   :  { %2333 = vperm.xlu1 %4775, %v5002_v13   ;;  %1032 = vperm.xlu0 %4807, %v5043_v20   ;;  %v5356_v13 = vshrl.u32 %v407_v51, 7  ;;  %v5375_v51 = vld [vmem:[%s10038_s0] ss:$2 sm:$0xff] }
  0xc1   :  { %v5344_v11 = vpop.permute.xlu1 %253  ;;  %v5346_v30 = vpop.permute.xlu0 %248  ;;  %10526 = vst [vmem:[#allocation58_spill] sm:$0xff] %v5375_v51 }
  0xc2   :  { %10515 = vst [vmem:[#allocation48_spill] sm:$0xff] %v5344_v11  ;;  %10516 = vst [vmem:[#allocation49_spill] sm:$0xff] %v5346_v30  ;;  %v5378_v5 = vsub.s32 3, %v5356_v13 }
  0xc3   :  { %10519 = vst [vmem:[#allocation52_spill] sm:$0xff] %v5356_v13 }
  0xc4   :  { %4776 = vset.pattern.permute.xlu1 %v10053_v54  ;;  %1044 = vperm.xlu0 %4807, %v5050_v21   ;;  %v5366_v54 = vsub.s32 1, %v5356_v13  ;;  %10527 = vst [vmem:[#allocation59_spill] sm:$0xff] %v5378_v5 }
  0xc5   :  { %v5350_v9 = vpop.permute.xlu1 %263  ;;  %1024 = vperm.xlu1 %4776, %v5031_v18   ;;  %v5353_v2 = vpop.permute.xlu0 %258 }
  0xc6   :  { %10517 = vst [vmem:[#allocation50_spill] sm:$0xff] %v5350_v9  ;;  %10518 = vst [vmem:[#allocation51_spill] sm:$0xff] %v5353_v2  ;;  %v5396_v53 = vrot.slane %v5375_v51, %v5366_v54 }
  0xc7   :  { %10523 = vst [vmem:[#allocation55_spill] sm:$0xff] %v5366_v54 }
  0xc8   :  { %1048 = vperm.xlu0 %4807, %v5067_v24   ;;  %10530 = vst [vmem:[#allocation62_spill] sm:$0xff] %v5396_v53  ;;  %v5427_v24 = vmul.f32 %v5396_v53, %v5241_v57 }
  0xc9   :  { %v5358_v55 = vpop.permute.xlu1 %273  ;;  %4777 = vset.pattern.permute.xlu1 %v10521_v8  ;;  %v5361_v30 = vpop.permute.xlu0 %268 }
  0xca   :  { %10520 = vst [vmem:[#allocation53_spill] sm:$0xff] %v5358_v55  ;;  %10522 = vst [vmem:[#allocation54_spill] sm:$0xff] %v5361_v30  ;;  %2337 = vperm.xlu1 %4777, %v5019_v16   ;;  %v5381_v30 = vsub.s32 0, %v5356_v13  ;;  %v5384_v16 = vsub.s32 2, %v5356_v13 }
  0xcc   :  { %1060 = vperm.xlu0 %4807, %v5074_v25   ;;  %10528 = vst [vmem:[#allocation60_spill] sm:$0xff] %v5381_v30  ;;  %10529 = vst [vmem:[#allocation61_spill] sm:$0xff] %v5384_v16  ;;  %v5408_v25 = vrot.slane %v5375_v51, %v5381_v30  ;;  %v5412_v52 = vrot.slane %v5375_v51, %v5384_v16 }
  0xcd   :  { %v5368_v18 = vpop.permute.xlu1 %283  ;;  %v5370_v2 = vpop.permute.xlu0 %278 }
  0xce   :  { %10524 = vst [vmem:[#allocation56_spill] sm:$0xff] %v5368_v18  ;;  %10525 = vst [vmem:[#allocation57_spill] sm:$0xff] %v5370_v2  ;;  %2341 = vperm.xlu1 %4777, %v5014_v15   ;;  %v5391_v2 = vld [vmem:[%s10038_s0 + $0x1] ss:$2 sm:$0xff]  ;;  %v5404_v15 = vrot.slane %v5375_v51, %v5378_v5 }
  0xcf   :  { %10534 = vst [vmem:[#allocation66_spill] sm:$0xff] %v5408_v25  ;;  %10535 = vst [vmem:[#allocation67_spill] sm:$0xff] %v5412_v52  ;;  %v5417_v49 = vrot.slane %v5391_v2, %v5366_v54  ;;  %v5431_v48 = vrot.slane %v5391_v2, %v5378_v5  ;;  %v5435_v26 = vrot.slane %v5391_v2, %v5381_v30 }
  0xd0   :  { %1064 = vperm.xlu0 %4807, %v5091_v28   ;;  %10533 = vst [vmem:[#allocation65_spill] sm:$0xff] %v5404_v15  ;;  %v10536_v28 = vmov 1   ;;  %v5439_v54 = vrot.slane %v5391_v2, %v5384_v16  ;;  %v5452_v5 = vmul.f32 %v5412_v52, %v5241_v57  ;;  %v5456_v30 = vmul.f32 %v5396_v53, %v5238_v56 }
  0xd1   :  { %v5398_v27 = vpop.permute.xlu1 %293  ;;  %v5400_v7 = vpop.permute.xlu0 %288 }
  0xd2   :  { %10531 = vst [vmem:[#allocation63_spill] sm:$0xff] %v5398_v27  ;;  %10532 = vst [vmem:[#allocation64_spill] sm:$0xff] %v5400_v7  ;;  %4778 = vset.pattern.permute.xlu1 %v10536_v28  ;;  %v10537_v7 = vsub.s32 5, %v5356_v13 }
  0xd3   :  { %1036 = vperm.xlu1 %4778, %v5038_v19   ;;  %10539 = vst [vmem:[#allocation69_spill] sm:$0xff] %v5439_v54  ;;  %10542 = vst [vmem:[#allocation72_spill] sm:$0xff] %v5452_v5  ;;  %v5476_v5 = vmul.f32 %v5412_v52, %v5238_v56 }
  0xd4   :  { %v5422_v43 = vrot.slane %v5375_v51, %v10537_v7  ;;  %1076 = vperm.xlu0 %4807, %v5098_v29   ;;  %v5444_v7 = vmul.f32 %v5404_v15, %v5241_v57  ;;  %v5448_v51 = vmul.f32 %v5408_v25, %v5241_v57  ;;  %10543 = vst [vmem:[#allocation73_spill] sm:$0xff] %v5456_v30 }
  0xd5   :  { %v5458_v16 = vpop.permute.xlu1 %303  ;;  %v5460_v54 = vpop.permute.xlu0 %298  ;;  %v5464_v29 = vmul.f32 %v5396_v53, %v5245_v58  ;;  %v5480_v30 = vmul.f32 %v5404_v15, %v5245_v58 }
  0xd6   :  { %10538 = vst [vmem:[#allocation68_spill] sm:$0xff] %v5422_v43  ;;  %10540 = vst [vmem:[#allocation70_spill] sm:$0xff] %v5444_v7  ;;  %v5468_v7 = vmul.f32 %v5404_v15, %v5238_v56 }
  0xd7   :  { %10541 = vst [vmem:[#allocation71_spill] sm:$0xff] %v5448_v51  ;;  %10544 = vst [vmem:[#allocation74_spill] sm:$0xff] %v5458_v16  ;;  %v5472_v51 = vmul.f32 %v5408_v25, %v5238_v56  ;;  %4779 = vset.pattern.permute.xlu1 %v10521_v8  ;;  %v5497_v56 = vmul.f32 %v5396_v53, %v5251_v60 }
  0xd8   :  { %10545 = vst [vmem:[#allocation75_spill] sm:$0xff] %v5460_v54  ;;  %10546 = vst [vmem:[#allocation76_spill] sm:$0xff] %v5464_v29  ;;  %v5484_v54 = vmul.f32 %v5408_v25, %v5245_v58  ;;  %v5488_v29 = vmul.f32 %v5412_v52, %v5245_v58  ;;  %v5509_v58 = vmul.f32 %v5408_v25, %v5253_v61  ;;  %2349 = vperm.xlu1 %4779, %v5026_v17  }
  0xd9   :  { %10547 = vst [vmem:[#allocation77_spill] sm:$0xff] %v5468_v7  ;;  %10548 = vst [vmem:[#allocation78_spill] sm:$0xff] %v5480_v30  ;;  %v5492_v7 = vmul.f32 %v5396_v53, %v5253_v61  ;;  %v5501_v30 = vmul.f32 %v5404_v15, %v5253_v61  ;;  %1080 = vperm.xlu0 %4807, %v5113_v32   ;;  %v5531_v17 = vmul.f32 %v5396_v53, %v5258_v62 }
  0xda   :  { %10549 = vst [vmem:[#allocation79_spill] sm:$0xff] %v5484_v54  ;;  %10550 = vst [vmem:[#allocation80_spill] sm:$0xff] %v5488_v29  ;;  %v5505_v54 = vmul.f32 %v5404_v15, %v5251_v60  ;;  %v5527_v29 = vpop.permute.xlu0 %308  ;;  %v5535_v32 = vmul.f32 %v5404_v15, %v5258_v62 }
  0xdb   :  { %10551 = vst [vmem:[#allocation81_spill] sm:$0xff] %v5492_v7  ;;  %10552 = vst [vmem:[#allocation82_spill] sm:$0xff] %v5497_v56  ;;  %v5515_v7 = vmul.f32 %v5408_v25, %v5251_v60  ;;  %v5519_v56 = vmul.f32 %v5412_v52, %v5253_v61  ;;  %v5539_v61 = vmul.f32 %v5408_v25, %v5258_v62 }
  0xdc   :  { %10553 = vst [vmem:[#allocation83_spill] sm:$0xff] %v5501_v30  ;;  %10554 = vst [vmem:[#allocation84_spill] sm:$0xff] %v5505_v54  ;;  %v5523_v30 = vmul.f32 %v5412_v52, %v5251_v60  ;;  %v5525_v54 = vpop.permute.xlu1 %313  ;;  %v5543_v60 = vmul.f32 %v5412_v52, %v5258_v62  ;;  %v5563_v62 = vmul.f32 %v5396_v53, %v5271_v3  ;;  %4780 = vset.pattern.permute.xlu1 %v10536_v28 }
  0xdd   :  { %10555 = vst [vmem:[#allocation85_spill] sm:$0xff] %v5515_v7  ;;  %10557 = vst [vmem:[#allocation87_spill] sm:$0xff] %v5525_v54  ;;  %v5551_v7 = vmul.f32 %v5404_v15, %v5265_v0  ;;  %1092 = vperm.xlu0 %4807, %v5119_v33   ;;  %1040 = vperm.xlu1 %4780, %v5055_v22   ;;  %v5598_v33 = vmul.f32 %v5396_v53, %v5267_v1 }
  0xde   :  { %10556 = vst [vmem:[#allocation86_spill] sm:$0xff] %v5523_v30  ;;  %10558 = vst [vmem:[#allocation88_spill] sm:$0xff] %v5527_v29  ;;  %v5547_v30 = vmul.f32 %v5396_v53, %v5265_v0  ;;  %v5555_v29 = vmul.f32 %v5408_v25, %v5265_v0  ;;  %v5614_v22 = vmul.f32 %v5412_v52, %v5267_v1 }
  0xdf   :  { %10559 = vst [vmem:[#allocation89_spill] sm:$0xff] %v5535_v32  ;;  %10560 = vst [vmem:[#allocation90_spill] sm:$0xff] %v5543_v60  ;;  %v5559_v32 = vmul.f32 %v5412_v52, %v5265_v0  ;;  %v5567_v60 = vmul.f32 %v5404_v15, %v5271_v3  ;;  %v5581_v0 = vmul.f32 %v5396_v53, %v5277_v31 }
  0xe0   :  { %10561 = vst [vmem:[#allocation91_spill] sm:$0xff] %v5547_v30  ;;  %10562 = vst [vmem:[#allocation92_spill] sm:$0xff] %v5551_v7  ;;  %v5571_v30 = vmul.f32 %v5408_v25, %v5271_v3  ;;  %v5575_v7 = vmul.f32 %v5412_v52, %v5271_v3  ;;  %v5594_v3 = vpop.permute.xlu0 %318 }
  0xe1   :  { %10563 = vst [vmem:[#allocation93_spill] sm:$0xff] %v5555_v29  ;;  %10564 = vst [vmem:[#allocation94_spill] sm:$0xff] %v5559_v32  ;;  %v5622_v32 = vmul.f32 %v5404_v15, %v5284_v35  ;;  %v5626_v29 = vmul.f32 %v5408_v25, %v5284_v35  ;;  %1096 = vperm.xlu0 %4807, %v5134_v36   ;;  %4781 = vset.pattern.permute.xlu1 %v10521_v8 }
  0xe2   :  { %10565 = vst [vmem:[#allocation95_spill] sm:$0xff] %v5563_v62  ;;  %10566 = vst [vmem:[#allocation96_spill] sm:$0xff] %v5567_v60  ;;  %v5585_v62 = vmul.f32 %v5404_v15, %v5277_v31  ;;  %v5589_v60 = vmul.f32 %v5408_v25, %v5277_v31  ;;  %2353 = vperm.xlu1 %4781, %v5043_v20   ;;  %v5702_v20 = vmul.f32 %v5396_v53, %v5260_v63 }
  0xe3   :  { %10567 = vst [vmem:[#allocation97_spill] sm:$0xff] %v5571_v30  ;;  %10568 = vst [vmem:[#allocation98_spill] sm:$0xff] %v5575_v7  ;;  %v5591_v30 = vpop.permute.xlu1 %323  ;;  %v5618_v7 = vmul.f32 %v5396_v53, %v5284_v35 }
  0xe4   :  { %10569 = vst [vmem:[#allocation99_spill] sm:$0xff] %v5581_v0  ;;  %10570 = vst [vmem:[#allocation100_spill] sm:$0xff] %v5585_v62  ;;  %v5602_v0 = vmul.f32 %v5404_v15, %v5267_v1  ;;  %v5606_v62 = vmul.f32 %v5408_v25, %v5267_v1  ;;  %v5634_v1 = vmul.f32 %v5404_v15, %v5247_v59  ;;  %v5664_v36 = vpop.permute.xlu0 %328 }
  0xe5   :  { %10571 = vst [vmem:[#allocation101_spill] sm:$0xff] %v5589_v60  ;;  %10572 = vst [vmem:[#allocation102_spill] sm:$0xff] %v5591_v30  ;;  %v5610_v60 = vmul.f32 %v5412_v52, %v5277_v31  ;;  %v5630_v31 = vmul.f32 %v5396_v53, %v5247_v59  ;;  %1108 = vperm.xlu0 %4807, %v5140_v37   ;;  %v5739_v37 = vmul.f32 %v5404_v15, %v5311_v46 }
  0xe6   :  { %10573 = vst [vmem:[#allocation103_spill] sm:$0xff] %v5594_v3  ;;  %10575 = vst [vmem:[#allocation105_spill] sm:$0xff] %v5618_v7  ;;  %v5642_v7 = vmul.f32 %v5412_v52, %v5284_v35  ;;  %2357 = vperm.xlu1 %4781, %v5038_v19   ;;  %v5776_v19 = vmul.f32 %v5404_v15, %v5324_v50 }
  0xe7   :  { %10574 = vst [vmem:[#allocation104_spill] sm:$0xff] %v5610_v60  ;;  %10576 = vst [vmem:[#allocation106_spill] sm:$0xff] %v5622_v32  ;;  %v5638_v60 = vmul.f32 %v5408_v25, %v5247_v59  ;;  %v5651_v32 = vmul.f32 %v5396_v53, %v5291_v10  ;;  %v5661_v35 = vpop.permute.xlu1 %333 }
  0xe8   :  { %10577 = vst [vmem:[#allocation107_spill] sm:$0xff] %v5626_v29  ;;  %10578 = vst [vmem:[#allocation108_spill] sm:$0xff] %v5634_v1  ;;  %v5647_v29 = vmul.f32 %v5412_v52, %v5247_v59  ;;  %v5655_v1 = vmul.f32 %v5404_v15, %v5291_v10 }
  0xe9   :  { %10579 = vst [vmem:[#allocation109_spill] sm:$0xff] %v5638_v60  ;;  %10580 = vst [vmem:[#allocation110_spill] sm:$0xff] %v5642_v7  ;;  %v5659_v60 = vmul.f32 %v5408_v25, %v5291_v10  ;;  %v5668_v7 = vmul.f32 %v5412_v52, %v5291_v10  ;;  %v5689_v10 = vmul.f32 %v5396_v53, %v5305_v4  ;;  %1112 = vperm.xlu0 %4807, %v5155_v40  }
  0xea   :  { %10581 = vst [vmem:[#allocation111_spill] sm:$0xff] %v5651_v32  ;;  %10582 = vst [vmem:[#allocation112_spill] sm:$0xff] %v5655_v1  ;;  %v5672_v32 = vmul.f32 %v5396_v53, %v5298_v42  ;;  %v5676_v1 = vmul.f32 %v5404_v15, %v5298_v42  ;;  %v5807_v40 = vmul.f32 %v5404_v15, %v5274_v6  ;;  %4782 = vset.pattern.permute.xlu1 %v10536_v28 }
  0xeb   :  { %10583 = vst [vmem:[#allocation113_spill] sm:$0xff] %v5659_v60  ;;  %10584 = vst [vmem:[#allocation114_spill] sm:$0xff] %v5661_v35  ;;  %v5680_v60 = vmul.f32 %v5408_v25, %v5298_v42  ;;  %1052 = vperm.xlu1 %4782, %v5062_v23  }
  0xec   :  { %10585 = vst [vmem:[#allocation115_spill] sm:$0xff] %v5664_v36  ;;  %10586 = vst [vmem:[#allocation116_spill] sm:$0xff] %v5668_v7  ;;  %v5685_v36 = vmul.f32 %v5412_v52, %v5298_v42  ;;  %v5706_v42 = vmul.f32 %v5404_v15, %v5260_v63 }
  0xed   :  { %10587 = vst [vmem:[#allocation117_spill] sm:$0xff] %v5672_v32  ;;  %10588 = vst [vmem:[#allocation118_spill] sm:$0xff] %v5676_v1  ;;  %v5693_v32 = vmul.f32 %v5404_v15, %v5305_v4  ;;  %v10593_v1 = vsub.s32 5, %v5356_v13  ;;  %1124 = vperm.xlu0 %4807, %v5161_v41   ;;  %v5880_v41 = vmul.f32 %v5408_v25, %v5350_v9 }
  0xee   :  { %10589 = vst [vmem:[#allocation119_spill] sm:$0xff] %v5680_v60  ;;  %10590 = vst [vmem:[#allocation120_spill] sm:$0xff] %v5685_v36  ;;  %v5727_v36 = vmul.f32 %v5396_v53, %v5311_v46  ;;  %v5747_v60 = vmul.f32 %v5412_v52, %v5311_v46 }
  0xef   :  { %10591 = vst [vmem:[#allocation121_spill] sm:$0xff] %v5689_v10  ;;  %10592 = vst [vmem:[#allocation122_spill] sm:$0xff] %v5693_v32  ;;  %v5698_v7 = vrot.slane %v5391_v2, %v10593_v1  ;;  %v5710_v10 = vmul.f32 %v5408_v25, %v5305_v4  ;;  %v5714_v32 = vmul.f32 %v5412_v52, %v5305_v4  ;;  %v5733_v4 = vpop.permute.xlu1 %343  ;;  %4783 = vset.pattern.permute.xlu1 %v10521_v8 }
  0xf0   :  { %v5719_v2 = vmul.f32 %v5408_v25, %v5260_v63  ;;  %v5723_v1 = vmul.f32 %v5412_v52, %v5260_v63  ;;  %10597 = vst [vmem:[#allocation126_spill] sm:$0xff] %v5727_v36  ;;  %10599 = vst [vmem:[#allocation128_spill] sm:$0xff] %v5733_v4  ;;  %v5743_v63 = vmul.f32 %v5408_v25, %v5311_v46  ;;  %2365 = vperm.xlu1 %4783, %v5050_v21  }
  0xf1   :  { %10594 = vst [vmem:[#allocation123_spill] sm:$0xff] %v5698_v7  ;;  %10595 = vst [vmem:[#allocation124_spill] sm:$0xff] %v5710_v10  ;;  %v5731_v10 = vmul.f32 %v5422_v43, %v5241_v57  ;;  %v5751_v57 = vmul.f32 %v5396_v53, %v5317_v47  ;;  %v5756_v36 = vmul.f32 %v5396_v53, %v5274_v6  ;;  %1128 = vperm.xlu0 %4807, %v5176_v44  }
  0xf2   :  { %10596 = vst [vmem:[#allocation125_spill] sm:$0xff] %v5714_v32  ;;  %v5735_v32 = vpop.permute.xlu0 %338  ;;  %10601 = vst [vmem:[#allocation130_spill] sm:$0xff] %v5739_v37  ;;  %v5760_v37 = vmul.f32 %v5404_v15, %v5317_v47  ;;  %v5768_v46 = vmul.f32 %v5412_v52, %v5317_v47  ;;  %v5947_v21 = vmul.f32 %v5404_v15, %v5286_v38 }
  0xf3   :  { %10598 = vst [vmem:[#allocation127_spill] sm:$0xff] %v5731_v10  ;;  %10600 = vst [vmem:[#allocation129_spill] sm:$0xff] %v5735_v32  ;;  %v5855_v10 = vmul.f32 %v5396_v53, %v5344_v11  ;;  %v5951_v44 = vmul.f32 %v5408_v25, %v5286_v38  ;;  %v6033_v32 = vmul.f32 %v5404_v15, %v5591_v30 }
  0xf4   :  { %10602 = vst [vmem:[#allocation131_spill] sm:$0xff] %v5743_v63  ;;  %10603 = vst [vmem:[#allocation132_spill] sm:$0xff] %v5747_v60  ;;  %v5764_v63 = vmul.f32 %v5408_v25, %v5317_v47  ;;  %v5780_v60 = vmul.f32 %v5408_v25, %v5324_v50  ;;  %v5789_v47 = vmul.f32 %v5396_v53, %v5330_v14  ;;  %4784 = vset.pattern.permute.xlu1 %v10536_v28 }
  0xf5   :  { %10604 = vst [vmem:[#allocation133_spill] sm:$0xff] %v5751_v57  ;;  %10605 = vst [vmem:[#allocation134_spill] sm:$0xff] %v5760_v37  ;;  %v5772_v57 = vmul.f32 %v5396_v53, %v5324_v50  ;;  %v5784_v37 = vmul.f32 %v5412_v52, %v5324_v50  ;;  %1140 = vperm.xlu0 %4807, %v5182_v45   ;;  %v6008_v45 = vmul.f32 %v5404_v15, %v5293_v39 }
  0xf6   :  { %10606 = vst [vmem:[#allocation135_spill] sm:$0xff] %v5764_v63  ;;  %10607 = vst [vmem:[#allocation136_spill] sm:$0xff] %v5768_v46  ;;  %v5803_v50 = vpop.permute.xlu0 %348  ;;  %v5847_v46 = vmul.f32 %v5408_v25, %v5280_v34  ;;  %v5851_v63 = vmul.f32 %v5412_v52, %v5280_v34 }
  0xf7   :  { %10608 = vst [vmem:[#allocation137_spill] sm:$0xff] %v5772_v57  ;;  %10609 = vst [vmem:[#allocation138_spill] sm:$0xff] %v5776_v19  ;;  %v5793_v57 = vmul.f32 %v5404_v15, %v5330_v14  ;;  %v5797_v19 = vmul.f32 %v5408_v25, %v5330_v14 }
  0xf8   :  { %10610 = vst [vmem:[#allocation139_spill] sm:$0xff] %v5780_v60  ;;  %10611 = vst [vmem:[#allocation140_spill] sm:$0xff] %v5784_v37  ;;  %v5801_v60 = vmul.f32 %v5412_v52, %v5330_v14  ;;  %v5811_v37 = vmul.f32 %v5396_v53, %v5337_v12  ;;  %v5822_v14 = vpop.permute.xlu1 %960 }
  0xf9   :  { %10612 = vst [vmem:[#allocation141_spill] sm:$0xff] %v5789_v47  ;;  %10613 = vst [vmem:[#allocation142_spill] sm:$0xff] %v5793_v57  ;;  %v5815_v57 = vmul.f32 %v5404_v15, %v5337_v12  ;;  %v5830_v47 = vmul.f32 %v5396_v53, %v5280_v34 }
  0xfa   :  { %10614 = vst [vmem:[#allocation143_spill] sm:$0xff] %v5797_v19  ;;  %10615 = vst [vmem:[#allocation144_spill] sm:$0xff] %v5801_v60  ;;  %v5819_v19 = vmul.f32 %v5408_v25, %v5337_v12  ;;  %v5826_v60 = vmul.f32 %v5408_v25, %v5274_v6 }
  0xfb   :  { %10616 = vst [vmem:[#allocation145_spill] sm:$0xff] %v5803_v50  ;;  %10617 = vst [vmem:[#allocation146_spill] sm:$0xff] %v5811_v37  ;;  %v5834_v37 = vmul.f32 %v5404_v15, %v5280_v34  ;;  %v5872_v34 = vmul.f32 %v5396_v53, %v5350_v9  ;;  %v5983_v50 = vmul.f32 %v5396_v53, %v5525_v54 }
  0xfc   :  { %10618 = vst [vmem:[#allocation147_spill] sm:$0xff] %v5815_v57  ;;  %10619 = vst [vmem:[#allocation148_spill] sm:$0xff] %v5819_v19  ;;  %v5838_v57 = vmul.f32 %v5412_v52, %v5337_v12  ;;  %v5843_v19 = vmul.f32 %v5412_v52, %v5274_v6  ;;  %v5860_v12 = vmul.f32 %v5404_v15, %v5344_v11 }
  0xfd   :  { %10620 = vst [vmem:[#allocation149_spill] sm:$0xff] %v5822_v14  ;;  %10621 = vst [vmem:[#allocation150_spill] sm:$0xff] %v5826_v60  ;;  %v5864_v6 = vmul.f32 %v5408_v25, %v5344_v11 }
  0xfe   :  { %10622 = vst [vmem:[#allocation151_spill] sm:$0xff] %v5830_v47  ;;  %10623 = vst [vmem:[#allocation152_spill] sm:$0xff] %v5834_v37  ;;  %v10713_v37 = vld [vmem:[#allocation78_spill] sm:$0xff] }
  0xff   :  { %10624 = vst [vmem:[#allocation153_spill] sm:$0xff] %v5838_v57  ;;  %10625 = vst [vmem:[#allocation154_spill] sm:$0xff] %v5843_v19  ;;  %v5868_v57 = vmul.f32 %v5412_v52, %v5344_v11  ;;  %v5888_v11 = vmul.f32 %v5396_v53, %v5358_v55  ;;  %v10715_v19 = vld [vmem:[#allocation80_spill] sm:$0xff] }
 0x100   :  { %10626 = vst [vmem:[#allocation155_spill] sm:$0xff] %v5847_v46  ;;  %10627 = vst [vmem:[#allocation156_spill] sm:$0xff] %v5851_v63  ;;  %v10712_v46 = vld [vmem:[#allocation9_spill] sm:$0xff] }
 0x101   :  { %10628 = vst [vmem:[#allocation157_spill] sm:$0xff] %v5855_v10  ;;  %10629 = vst [vmem:[#allocation158_spill] sm:$0xff] %v5860_v12  ;;  %v5876_v10 = vmul.f32 %v5404_v15, %v5350_v9  ;;  %v5884_v12 = vmul.f32 %v5412_v52, %v5350_v9  ;;  %v5904_v9 = vmul.f32 %v5412_v52, %v5358_v55 }
 0x102   :  { %10630 = vst [vmem:[#allocation159_spill] sm:$0xff] %v5864_v6  ;;  %10631 = vst [vmem:[#allocation160_spill] sm:$0xff] %v5868_v57  ;;  %v5890_v57 = vpop.permute.xlu1 %968  ;;  %v5892_v6 = vpop.permute.xlu0 %2281 }
 0x103   :  { %10632 = vst [vmem:[#allocation161_spill] sm:$0xff] %v5872_v34  ;;  %10633 = vst [vmem:[#allocation162_spill] sm:$0xff] %v5876_v10  ;;  %v5896_v34 = vmul.f32 %v5404_v15, %v5358_v55  ;;  %v5900_v10 = vmul.f32 %v5408_v25, %v5358_v55  ;;  %v5925_v55 = vmul.f32 %v5396_v53, %v5398_v27 }
 0x104   :  { %10634 = vst [vmem:[#allocation163_spill] sm:$0xff] %v5880_v41  ;;  %10635 = vst [vmem:[#allocation164_spill] sm:$0xff] %v5884_v12  ;;  %v5908_v12 = vmul.f32 %v5396_v53, %v5368_v18  ;;  %v5913_v41 = vmul.f32 %v5404_v15, %v5368_v18 }
 0x105   :  { %10636 = vst [vmem:[#allocation165_spill] sm:$0xff] %v5888_v11  ;;  %10637 = vst [vmem:[#allocation166_spill] sm:$0xff] %v5890_v57  ;;  %v5979_v11 = vmul.f32 %v5412_v52, %v5458_v16 }
 0x106   :  { %10638 = vst [vmem:[#allocation167_spill] sm:$0xff] %v5892_v6  ;;  %10639 = vst [vmem:[#allocation168_spill] sm:$0xff] %v5896_v34  ;;  %v5917_v34 = vmul.f32 %v5408_v25, %v5368_v18 }
 0x107   :  { %10640 = vst [vmem:[#allocation169_spill] sm:$0xff] %v5900_v10  ;;  %10641 = vst [vmem:[#allocation170_spill] sm:$0xff] %v5904_v9  ;;  %v5921_v10 = vmul.f32 %v5412_v52, %v5368_v18  ;;  %v5939_v18 = vmul.f32 %v5412_v52, %v5398_v27  ;;  %v5973_v9 = vmul.f32 %v5408_v25, %v5458_v16 }
 0x108   :  { %10642 = vst [vmem:[#allocation171_spill] sm:$0xff] %v5908_v12  ;;  %10643 = vst [vmem:[#allocation172_spill] sm:$0xff] %v5913_v41  ;;  %v5931_v12 = vmul.f32 %v5404_v15, %v5398_v27  ;;  %v5935_v41 = vmul.f32 %v5408_v25, %v5398_v27  ;;  %v5959_v27 = vpop.permute.xlu0 %2297 }
 0x109   :  { %10644 = vst [vmem:[#allocation173_spill] sm:$0xff] %v5917_v34  ;;  %10645 = vst [vmem:[#allocation174_spill] sm:$0xff] %v5921_v10  ;;  %v5943_v10 = vmul.f32 %v5396_v53, %v5286_v38  ;;  %v5955_v34 = vmul.f32 %v5412_v52, %v5286_v38  ;;  %v1259_v38 = vmul.f32 %v5431_v48, %v5822_v14 }
 0x10a   :  { %10646 = vst [vmem:[#allocation175_spill] sm:$0xff] %v5925_v55  ;;  %10647 = vst [vmem:[#allocation176_spill] sm:$0xff] %v5931_v12  ;;  %v5965_v12 = vmul.f32 %v5396_v53, %v5458_v16  ;;  %v5969_v55 = vmul.f32 %v5404_v15, %v5458_v16  ;;  %v5997_v16 = vmul.f32 %v5408_v25, %v5525_v54 }
 0x10b   :  { %10648 = vst [vmem:[#allocation177_spill] sm:$0xff] %v5935_v41  ;;  %10649 = vst [vmem:[#allocation178_spill] sm:$0xff] %v5939_v18  ;;  %v5957_v41 = vpop.permute.xlu1 %972  ;;  %v1257_v18 = vmul.f32 %v5417_v49, %v5822_v14 }
 0x10c   :  { %10650 = vst [vmem:[#allocation179_spill] sm:$0xff] %v5943_v10  ;;  %10651 = vst [vmem:[#allocation180_spill] sm:$0xff] %v5947_v21 }
 0x10d   :  { %10652 = vst [vmem:[#allocation181_spill] sm:$0xff] %v5951_v44  ;;  %10653 = vst [vmem:[#allocation182_spill] sm:$0xff] %v5955_v34 }
 0x10e   :  { %10654 = vst [vmem:[#allocation183_spill] sm:$0xff] %v5957_v41  ;;  %10655 = vst [vmem:[#allocation184_spill] sm:$0xff] %v5959_v27 }
 0x10f   :  { %10656 = vst [vmem:[#allocation185_spill] sm:$0xff] %v5965_v12  ;;  %10657 = vst [vmem:[#allocation186_spill] sm:$0xff] %v5969_v55  ;;  %v5987_v12 = vmul.f32 %v5404_v15, %v5525_v54  ;;  %v10665_v55 = vld [vmem:[#allocation8_spill] sm:$0xff]  ;;  %v6028_v34 = vpop.permute.xlu1 %2285 }
 0x110   :  { %10658 = vst [vmem:[#allocation187_spill] sm:$0xff] %v5973_v9  ;;  %10659 = vst [vmem:[#allocation188_spill] sm:$0xff] %v5979_v11  ;;  %v5993_v9 = vmul.f32 %v5396_v53, %v5293_v39  ;;  %v6001_v11 = vmul.f32 %v5412_v52, %v5525_v54  ;;  %1056 = vperm.xlu1 %4784, %v10665_v55   ;;  %v1769_v54 = vadd.f32 %v1257_v18, %v5427_v24 }
 0x111   :  { %10660 = vst [vmem:[#allocation189_spill] sm:$0xff] %v5983_v50  ;;  %10661 = vst [vmem:[#allocation190_spill] sm:$0xff] %v5987_v12  ;;  %v1256_v12 = vmul.f32 %v5435_v26, %v5822_v14  ;;  %v6012_v50 = vmul.f32 %v5408_v25, %v5293_v39  ;;  %v6037_v24 = vmul.f32 %v5408_v25, %v5591_v30 }
 0x112   :  { %10662 = vst [vmem:[#allocation191_spill] sm:$0xff] %v5993_v9  ;;  %10663 = vst [vmem:[#allocation192_spill] sm:$0xff] %v5997_v16  ;;  %v6015_v16 = vpop.permute.xlu0 %2313  ;;  %v6022_v9 = vmul.f32 %v5412_v52, %v5293_v39  ;;  %v6041_v18 = vmul.f32 %v5412_v52, %v5591_v30  ;;  %v10677_v39 = vld [vmem:[#allocation12_spill] sm:$0xff] }
 0x113   :  { %10664 = vst [vmem:[#allocation193_spill] sm:$0xff] %v6001_v11  ;;  %10666 = vst [vmem:[#allocation8_spill] sm:$0xff] %v6008_v45  ;;  %v10669_v11 = vld [vmem:[#allocation69_spill] sm:$0xff]  ;;  %v6026_v45 = vmul.f32 %v5396_v53, %v5591_v30  ;;  %1144 = vperm.xlu0 %4807, %v10677_v39   ;;  %v10682_v30 = vld [vmem:[#allocation71_spill] sm:$0xff] }
 0x114   :  { %10667 = vst [vmem:[#allocation194_spill] sm:$0xff] %v6012_v50  ;;  %10668 = vst [vmem:[#allocation195_spill] sm:$0xff] %v6015_v16  ;;  %v1258_v55 = vmul.f32 %v10669_v11, %v5822_v14  ;;  %v10673_v50 = vld [vmem:[#allocation70_spill] sm:$0xff]  ;;  %4785 = vset.pattern.permute.xlu1 %v10521_v8  ;;  %v1768_v39 = vadd.f32 %v1256_v12, %v10682_v30  ;;  %v10690_v30 = vld [vmem:[#allocation72_spill] sm:$0xff] }
 0x115   :  { %10670 = vst [vmem:[#allocation69_spill] sm:$0xff] %v6022_v9  ;;  %10671 = vst [vmem:[#allocation196_spill] sm:$0xff] %v6026_v45  ;;  %v1771_v44 = vadd.f32 %v1259_v38, %v10673_v50  ;;  %v6046_v45 = vmul.f32 %v5396_v53, %v5661_v35  ;;  %v6050_v38 = vmul.f32 %v5404_v15, %v5661_v35  ;;  %v10688_v9 = vld [vmem:[#allocation6_spill] sm:$0xff] }
 0x116   :  { %10672 = vst [vmem:[#allocation197_spill] sm:$0xff] %v6028_v34  ;;  %10674 = vst [vmem:[#allocation70_spill] sm:$0xff] %v6033_v32  ;;  %v6054_v50 = vmul.f32 %v5408_v25, %v5661_v35  ;;  %v6068_v32 = vmul.f32 %v5396_v53, %v5733_v4  ;;  %2369 = vperm.xlu1 %4785, %v10688_v9   ;;  %v1770_v12 = vadd.f32 %v1258_v55, %v10690_v30  ;;  %v6105_v30 = vpop.permute.xlu1 %976 }
 0x117   :  { %10675 = vst [vmem:[#allocation198_spill] sm:$0xff] %v6037_v24  ;;  %10676 = vst [vmem:[#allocation199_spill] sm:$0xff] %v6041_v18  ;;  %v6058_v24 = vmul.f32 %v5422_v43, %v5247_v59  ;;  %v6064_v18 = vmul.f32 %v5412_v52, %v5661_v35  ;;  %v6076_v59 = vpop.permute.xlu0 %2329  ;;  %v6084_v35 = vmul.f32 %v5404_v15, %v5733_v4 }
 0x118   :  { %10678 = vst [vmem:[#allocation12_spill] sm:$0xff] %v6046_v45  ;;  %10679 = vst [vmem:[#allocation200_spill] sm:$0xff] %v6050_v38  ;;  %v10685_v38 = vsub.s32 7, %v5356_v13  ;;  %v10686_v45 = vld [vmem:[#allocation58_spill] sm:$0xff]  ;;  %v6103_v55 = vmul.f32 %v5412_v52, %v5733_v4  ;;  %v6116_v43 = vmul.f32 %v5698_v7, %v5822_v14  ;;  %v6135_v7 = vadd.f32 %v5892_v6, %v1770_v12  ;;  %v10704_v12 = vld [vmem:[#allocation73_spill] sm:$0xff] }
 0x119   :  { %10680 = vst [vmem:[#allocation201_spill] sm:$0xff] %v6054_v50  ;;  %10681 = vst [vmem:[#allocation202_spill] sm:$0xff] %v6058_v24  ;;  %v6079_v24 = vadd.f32 %v5892_v6, %v1769_v54  ;;  %v1282_v14 = vmul.f32 %v10669_v11, %v5957_v41  ;;  %v1289_v10 = vmul.f32 %v5417_v49, %v6105_v30 }
 0x11a   :  { %10683 = vst [vmem:[#allocation71_spill] sm:$0xff] %v6064_v18  ;;  %10684 = vst [vmem:[#allocation203_spill] sm:$0xff] %v6068_v32  ;;  %v6073_v50 = vrot.slane %v10686_v45, %v10685_v38  ;;  %v6088_v32 = vmul.f32 %v5408_v25, %v5733_v4  ;;  %v6091_v38 = vadd.f32 %v5892_v6, %v1771_v44  ;;  %v10693_v18 = vld [vmem:[#allocation35_spill] sm:$0xff]  ;;  %2373 = vperm.xlu1 %4785, %v5062_v23  }
 0x11b   :  { %10689 = vst [vmem:[#allocation6_spill] sm:$0xff] %v6076_v59  ;;  %10691 = vst [vmem:[#allocation72_spill] sm:$0xff] %v6084_v35  ;;  %v6095_v9 = vmul.f32 %v5396_v53, %v10693_v18  ;;  %v6099_v54 = vmul.f32 %v5404_v15, %v10693_v18  ;;  %v10698_v35 = vld [vmem:[#allocation13_spill] sm:$0xff]  ;;  %v1273_v44 = vmul.f32 %v5417_v49, %v5890_v57  ;;  %v10714_v59 = vld [vmem:[#allocation79_spill] sm:$0xff] }
 0x11c   :  { %10687 = vst [vmem:[#allocation58_spill] sm:$0xff] %v6073_v50  ;;  %10692 = vst [vmem:[#allocation204_spill] sm:$0xff] %v6088_v32  ;;  %1156 = vperm.xlu0 %4807, %v10698_v35   ;;  %v1275_v32 = vmul.f32 %v5431_v48, %v5890_v57  ;;  %v1272_v50 = vmul.f32 %v5435_v26, %v5890_v57  ;;  %v6119_v4 = vadd.f32 %v5892_v6, %v1768_v39 }
 0x11d   :  { %10694 = vst [vmem:[#allocation205_spill] sm:$0xff] %v6095_v9  ;;  %10695 = vst [vmem:[#allocation206_spill] sm:$0xff] %v6099_v54  ;;  %v6127_v35 = vmul.f32 %v5412_v52, %v10693_v18  ;;  %v6131_v9 = vpop.permute.xlu0 %2345  ;;  %v1281_v39 = vmul.f32 %v5417_v49, %v5957_v41  ;;  %v1283_v54 = vmul.f32 %v5431_v48, %v5957_v41 }
 0x11e   :  { %10696 = vst [vmem:[#allocation207_spill] sm:$0xff] %v6103_v55  ;;  %10697 = vst [vmem:[#allocation208_spill] sm:$0xff] %v6105_v30  ;;  %v6123_v55 = vmul.f32 %v5408_v25, %v10693_v18  ;;  %v1280_v23 = vmul.f32 %v5435_v26, %v5957_v41  ;;  %v1785_v6 = vadd.f32 %v1273_v44, %v10704_v12  ;;  %v6153_v18 = vpop.permute.xlu1 %2289  ;;  %4786 = vset.pattern.permute.xlu1 %v10536_v28 }
 0x11f   :  { %10699 = vst [vmem:[#allocation13_spill] sm:$0xff] %v6116_v43  ;;  %10701 = vst [vmem:[#allocation210_spill] sm:$0xff] %v6127_v35  ;;  %v1274_v43 = vmul.f32 %v10669_v11, %v5890_v57  ;;  %v10703_v35 = vld [vmem:[#allocation14_spill] sm:$0xff]  ;;  %v1784_v21 = vadd.f32 %v1272_v50, %v5472_v51  ;;  %v1291_v63 = vmul.f32 %v5431_v48, %v6105_v30  ;;  %v10708_v51 = vld [vmem:[#allocation76_spill] sm:$0xff]  ;;  %1068 = vperm.xlu1 %4786, %v10712_v46  }
 0x120   :  { %10700 = vst [vmem:[#allocation209_spill] sm:$0xff] %v6123_v55  ;;  %10702 = vst [vmem:[#allocation211_spill] sm:$0xff] %v6131_v9  ;;  %1160 = vperm.xlu0 %4807, %v10703_v35   ;;  %v10705_v55 = vld [vmem:[#allocation77_spill] sm:$0xff]  ;;  %v1288_v41 = vmul.f32 %v5435_v26, %v6105_v30  ;;  %v1290_v44 = vmul.f32 %v10669_v11, %v6105_v30  ;;  %v1793_v50 = vadd.f32 %v1281_v39, %v10708_v51  ;;  %v10719_v51 = vld [vmem:[#allocation39_spill] sm:$0xff] }
 0x121   :  { %v1787_v9 = vadd.f32 %v1275_v32, %v10705_v55  ;;  %10706 = vst [vmem:[#allocation14_spill] sm:$0xff] %v6153_v18  ;;  %v6164_v32 = vpop.permute.xlu0 %2361  ;;  %v1786_v55 = vadd.f32 %v1274_v43, %v5476_v5  ;;  %v10709_v35 = vld [vmem:[#allocation37_spill] sm:$0xff]  ;;  %v1795_v30 = vadd.f32 %v1283_v54, %v10713_v37  ;;  %v1792_v47 = vadd.f32 %v1280_v23, %v10714_v59  ;;  %v10717_v43 = vld [vmem:[#allocation15_spill] sm:$0xff] }
 0x122   :  { %10707 = vst [vmem:[#allocation73_spill] sm:$0xff] %v6164_v32  ;;  %v6170_v12 = vmul.f32 %v5396_v53, %v10709_v35  ;;  %v6174_v57 = vmul.f32 %v5404_v15, %v10709_v35  ;;  %v1794_v32 = vadd.f32 %v1282_v14, %v10715_v19  ;;  %v6182_v39 = vmul.f32 %v5408_v25, %v10709_v35  ;;  %v6203_v19 = vpop.permute.xlu1 %2293  ;;  %v10726_v54 = vld [vmem:[#allocation81_spill] sm:$0xff] }
 0x123   :  { %v6187_v5 = vmul.f32 %v5412_v52, %v10709_v35  ;;  %v10721_v46 = vsub.s32 4, %v5356_v13  ;;  %v10723_v14 = vsub.s32 6, %v5356_v13  ;;  %10725 = vst [vmem:[#allocation212_spill] sm:$0xff] %v6203_v19  ;;  %v1801_v23 = vadd.f32 %v1289_v10, %v10726_v54  ;;  %4787 = vset.pattern.permute.xlu1 %v10521_v8  ;;  %v10737_v54 = vld [vmem:[#allocation43_spill] sm:$0xff] }
 0x124   :  { %10710 = vst [vmem:[#allocation77_spill] sm:$0xff] %v6170_v12  ;;  %10711 = vst [vmem:[#allocation76_spill] sm:$0xff] %v6174_v57  ;;  %1168 = vperm.xlu0 %4807, %v10717_v43   ;;  %v6191_v57 = vmul.f32 %v5396_v53, %v10719_v51  ;;  %v10727_v43 = vld [vmem:[#allocation83_spill] sm:$0xff]  ;;  %v10813_v12 = vld [vmem:[#allocation84_spill] sm:$0xff] }
 0x125   :  { %10716 = vst [vmem:[#allocation9_spill] sm:$0xff] %v6182_v39  ;;  %10718 = vst [vmem:[#allocation78_spill] sm:$0xff] %v6187_v5  ;;  %v6196_v59 = vrot.slane %v10686_v45, %v10721_v46  ;;  %v6201_v37 = vrot.slane %v10686_v45, %v10723_v14  ;;  %v1803_v35 = vadd.f32 %v1291_v63, %v10727_v43  ;;  %v76_v46 = vld [vmem:[%s10039_s1 + $0x1b0] sm:$0xff] }
 0x126   :  { %10720 = vst [vmem:[#allocation79_spill] sm:$0xff] %v6191_v57  ;;  %v1800_v5 = vadd.f32 %v1288_v41, %v5509_v58  ;;  %v1802_v57 = vadd.f32 %v1290_v44, %v5519_v56  ;;  %v6216_v45 = vmul.f32 %v5404_v15, %v10719_v51  ;;  %v6220_v14 = vmul.f32 %v5408_v25, %v10719_v51  ;;  %v10732_v58 = vld [vmem:[#allocation41_spill] sm:$0xff] }
 0x127   :  { %10722 = vst [vmem:[#allocation80_spill] sm:$0xff] %v6196_v59  ;;  %10724 = vst [vmem:[#allocation15_spill] sm:$0xff] %v6201_v37  ;;  %v6212_v59 = vpop.permute.xlu0 %2377  ;;  %v6224_v63 = vmul.f32 %v5412_v52, %v10719_v51  ;;  %v6228_v56 = vmul.f32 %v5396_v53, %v10732_v58  ;;  %v6233_v10 = vmul.f32 %v5404_v15, %v10732_v58  ;;  %v10739_v51 = vld [vmem:[#allocation7_spill] sm:$0xff]  ;;  %v10777_v37 = vld [vmem:[#allocation90_spill] sm:$0xff] }
 0x128   :  { %10728 = vst [vmem:[#allocation81_spill] sm:$0xff] %v6212_v59  ;;  %10729 = vst [vmem:[#allocation83_spill] sm:$0xff] %v6216_v45  ;;  %v6237_v41 = vmul.f32 %v5408_v25, %v10732_v58  ;;  %v6241_v44 = vmul.f32 %v5412_v52, %v10732_v58  ;;  %v6245_v43 = vmul.f32 %v5396_v53, %v10737_v54  ;;  %2381 = vperm.xlu1 %4787, %v10739_v51  }
 0x129   :  { %10730 = vst [vmem:[#allocation213_spill] sm:$0xff] %v6220_v14  ;;  %10731 = vst [vmem:[#allocation214_spill] sm:$0xff] %v6224_v63  ;;  %1176 = vperm.xlu0 %4807, %v76_v46   ;;  %v6251_v59 = vmul.f32 %v5404_v15, %v10737_v54  ;;  %v6259_v58 = vmul.f32 %v5412_v52, %v10737_v54  ;;  %v6265_v51 = vadd.f32 %v5959_v27, %v1803_v35 }
 0x12a   :  { %10733 = vst [vmem:[#allocation215_spill] sm:$0xff] %v6228_v56  ;;  %10734 = vst [vmem:[#allocation216_spill] sm:$0xff] %v6233_v10  ;;  %v6268_v46 = vadd.f32 %v5959_v27, %v1800_v5  ;;  %v6271_v13 = vadd.f32 %v5959_v27, %v1802_v57  ;;  %v2552_v35 = vadd.f32 %v6153_v18, %v1784_v21 }
 0x12b   :  { %10735 = vst [vmem:[#allocation217_spill] sm:$0xff] %v6237_v41  ;;  %10736 = vst [vmem:[#allocation218_spill] sm:$0xff] %v6241_v44  ;;  %v6255_v41 = vmul.f32 %v5408_v25, %v10737_v54  ;;  %v6262_v44 = vadd.f32 %v5959_v27, %v1801_v23  ;;  %v6278_v54 = vpop.permute.xlu0 %2393  ;;  %v2553_v23 = vadd.f32 %v6153_v18, %v1785_v6 }
 0x12c   :  { %10738 = vst [vmem:[#allocation219_spill] sm:$0xff] %v6245_v43  ;;  %10740 = vst [vmem:[#allocation7_spill] sm:$0xff] %v6251_v59  ;;  %v6276_v59 = vpop.permute.xlu1 %988  ;;  %v10745_v43 = vld [vmem:[#allocation45_spill] sm:$0xff]  ;;  %v2561_v57 = vadd.f32 %v6203_v19, %v1793_v50  ;;  %v2563_v27 = vadd.f32 %v6203_v19, %v1795_v30  ;;  %v2560_v10 = vadd.f32 %v6203_v19, %v1792_v47  ;;  %4788 = vset.pattern.permute.xlu1 %v10536_v28  ;;  %v10750_v47 = vld [vmem:[#allocation11_spill] sm:$0xff] }
 0x12d   :  { %10741 = vst [vmem:[#allocation220_spill] sm:$0xff] %v6255_v41  ;;  %10742 = vst [vmem:[#allocation221_spill] sm:$0xff] %v6259_v58  ;;  %v78_v41 = vld [vmem:[%s10039_s1 + $0x1c0] sm:$0xff]  ;;  %v2555_v58 = vadd.f32 %v6153_v18, %v1787_v9  ;;  %v6285_v5 = vmul.f32 %v5396_v53, %v10745_v43  ;;  %v2554_v56 = vadd.f32 %v6153_v18, %v1786_v55  ;;  %1072 = vperm.xlu1 %4788, %v10750_v47   ;;  %v80_v18 = vld [vmem:[%s10039_s1 + $0x1d0] sm:$0xff] }
 0x12e   :  { %10743 = vst [vmem:[#allocation222_spill] sm:$0xff] %v6276_v59  ;;  %10744 = vst [vmem:[#allocation223_spill] sm:$0xff] %v6278_v54  ;;  %1184 = vperm.xlu0 %4807, %v78_v41   ;;  %v6295_v21 = vmul.f32 %v5404_v15, %v10745_v43  ;;  %v6299_v9 = vmul.f32 %v5408_v25, %v10745_v43  ;;  %v6303_v30 = vmul.f32 %v5412_v52, %v10745_v43  ;;  %v10753_v41 = vld [vmem:[#allocation47_spill] sm:$0xff] }
 0x12f   :  { %10746 = vst [vmem:[#allocation224_spill] sm:$0xff] %v6285_v5  ;;  %v6313_v54 = vpop.permute.xlu0 %2409  ;;  %v3064_v43 = vmax.f32 %v2552_v35, 0.0  ;;  %v3073_v50 = vmax.f32 %v2561_v57, 0.0  ;;  %v3075_v5 = vmax.f32 %v2563_v27, 0.0  ;;  %v3072_v55 = vmax.f32 %v2560_v10, 0.0  ;;  %v82_v27 = vld [vmem:[%s10039_s1 + $0x1e0] sm:$0xff] }
 0x130   :  { %10747 = vst [vmem:[#allocation225_spill] sm:$0xff] %v6295_v21  ;;  %10748 = vst [vmem:[#allocation226_spill] sm:$0xff] %v6299_v9  ;;  %v3065_v9 = vmax.f32 %v2553_v23, 0.0  ;;  %v3067_v21 = vmax.f32 %v2555_v58, 0.0  ;;  %v6316_v47 = vpop.permute.xlu1 %2301  ;;  %v3066_v63 = vmax.f32 %v2554_v56, 0.0  ;;  %v6320_v6 = vmul.f32 %v5396_v53, %v10753_v41  ;;  %v10763_v57 = vld [vmem:[#allocation10_spill] sm:$0xff] }
 0x131   :  { %10749 = vst [vmem:[#allocation227_spill] sm:$0xff] %v6303_v30  ;;  %10751 = vst [vmem:[#allocation11_spill] sm:$0xff] %v6313_v54  ;;  %v2562_v30 = vadd.f32 %v6203_v19, %v1794_v32  ;;  %v6324_v14 = vmul.f32 %v5404_v15, %v10753_v41  ;;  %v6328_v58 = vmul.f32 %v5408_v25, %v10753_v41  ;;  %4789 = vset.pattern.permute.xlu1 %v10521_v8  ;;  %v10765_v54 = vld [vmem:[#allocation51_spill] sm:$0xff] }
 0x132   :  { %10752 = vst [vmem:[#allocation228_spill] sm:$0xff] %v6316_v47  ;;  %1192 = vperm.xlu0 %4807, %v80_v18   ;;  %10754 = vst [vmem:[#allocation229_spill] sm:$0xff] %v6320_v6  ;;  %v6332_v32 = vmul.f32 %v5412_v52, %v10753_v41  ;;  %v10758_v18 = vld [vmem:[#allocation49_spill] sm:$0xff]  ;;  %2385 = vperm.xlu1 %4789, %v10763_v57   ;;  %v6373_v57 = vpack.c.bf16 %v3072_v55, %v3064_v43 }
 0x133   :  { %10755 = vst [vmem:[#allocation230_spill] sm:$0xff] %v6324_v14  ;;  %10756 = vst [vmem:[#allocation231_spill] sm:$0xff] %v6328_v58  ;;  %v6340_v56 = vmul.f32 %v5396_v53, %v10758_v18  ;;  %v6344_v10 = vmul.f32 %v5404_v15, %v10758_v18  ;;  %v6348_v23 = vmul.f32 %v5408_v25, %v10758_v18  ;;  %v6355_v41 = vpop.permute.xlu0 %2425  ;;  %v3074_v19 = vmax.f32 %v2562_v30, 0.0  ;;  %v10776_v6 = vld [vmem:[#allocation89_spill] sm:$0xff] }
 0x134   :  { %10757 = vst [vmem:[#allocation232_spill] sm:$0xff] %v6332_v32  ;;  %v6352_v35 = vmul.f32 %v5412_v52, %v10758_v18  ;;  %10764 = vst [vmem:[#allocation10_spill] sm:$0xff] %v6355_v41  ;;  %v6369_v32 = vpack.c.bf16 %v3073_v50, %v3065_v9  ;;  %v6371_v18 = vpack.c.bf16 %v3075_v5, %v3067_v21  ;;  %v6379_v41 = vpop.permute.xlu1 %992 }
 0x135   :  { %10759 = vst [vmem:[#allocation233_spill] sm:$0xff] %v6340_v56  ;;  %10760 = vst [vmem:[#allocation234_spill] sm:$0xff] %v6344_v10  ;;  %v6359_v56 = vmul.f32 %v5396_v53, %v10765_v54  ;;  %v6363_v10 = vmul.f32 %v5404_v15, %v10765_v54  ;;  %v6377_v30 = vmul.f32 %v5412_v52, %v10765_v54 }
 0x136   :  { %10761 = vst [vmem:[#allocation235_spill] sm:$0xff] %v6348_v23  ;;  %10762 = vst [vmem:[#allocation236_spill] sm:$0xff] %v6352_v35  ;;  %v6367_v23 = vmul.f32 %v5408_v25, %v10765_v54  ;;  %v1313_v35 = vmul.f32 %v5417_v49, %v6276_v59  ;;  %v1312_v9 = vmul.f32 %v5435_v26, %v6276_v59  ;;  %1200 = vperm.xlu0 %4807, %v82_v27   ;;  %v84_v54 = vld [vmem:[%s10039_s1 + $0x1f0] sm:$0xff]  ;;  %v4832_v27 = vld [vmem:[%s10039_s1 + $0xd8] sm:$0xff] }
 0x137   :  { %10766 = vst [vmem:[#allocation237_spill] sm:$0xff] %v6359_v56  ;;  %10767 = vst [vmem:[#allocation238_spill] sm:$0xff] %v6363_v10  ;;  %v1315_v10 = vmul.f32 %v5431_v48, %v6276_v59  ;;  %v1314_v5 = vmul.f32 %v10669_v11, %v6276_v59  ;;  %v1321_v43 = vmul.f32 %v5417_v49, %v6379_v41  ;;  %2389 = vperm.xlu1 %4789, %v4832_v27   ;;  %v6403_v59 = vpop.permute.xlu0 %2441 }
 0x138   :  { %10768 = vst [vmem:[#allocation239_spill] sm:$0xff] %v6367_v23  ;;  %10769 = vst [vmem:[#allocation240_spill] sm:$0xff] %v6377_v30  ;;  %v1323_v21 = vmul.f32 %v5431_v48, %v6379_v41  ;;  %v1320_v50 = vmul.f32 %v5435_v26, %v6379_v41  ;;  %v1322_v55 = vmul.f32 %v10669_v11, %v6379_v41  ;;  %v10772_v23 = vld [vmem:[#allocation54_spill] sm:$0xff]  ;;  %v6427_v39 = vpop.permute.xlu1 %2305 }
 0x139   :  { %10770 = vst [vmem:[#allocation241_spill] sm:$0xff] %v6379_v41  ;;  %10771 = vst [vmem:[#allocation242_spill] sm:$0xff] %v6403_v59  ;;  %v6405_v30 = vpack.c.bf16 %v3074_v19, %v3066_v63  ;;  %v6409_v56 = vmul.f32 %v5396_v53, %v10772_v23  ;;  %v6413_v41 = vmul.f32 %v5404_v15, %v10772_v23 }
 0x13a   :  { %v6417_v58 = vmul.f32 %v5408_v25, %v10772_v23  ;;  %v1833_v14 = vadd.f32 %v1321_v43, %v5598_v33  ;;  %v1835_v27 = vadd.f32 %v1323_v21, %v5602_v0  ;;  %v1832_v59 = vadd.f32 %v1320_v50, %v5606_v62  ;;  %1208 = vperm.xlu0 %4807, %v84_v54   ;;  %v10780_v0 = vld [vmem:[#allocation57_spill] sm:$0xff]  ;;  %v10786_v54 = vld [vmem:[#allocation64_spill] sm:$0xff] }
 0x13b   :  { %10773 = vst [vmem:[#allocation243_spill] sm:$0xff] %v6409_v56  ;;  %10774 = vst [vmem:[#allocation244_spill] sm:$0xff] %v6413_v41  ;;  %v1834_v19 = vadd.f32 %v1322_v55, %v5614_v22  ;;  %v1825_v63 = vadd.f32 %v1313_v35, %v5531_v17  ;;  %v1827_v56 = vadd.f32 %v1315_v10, %v10776_v6  ;;  %4790 = vset.pattern.permute.xlu1 %v10536_v28  ;;  %v6446_v22 = vpop.permute.xlu0 %2457 }
 0x13c   :  { %10775 = vst [vmem:[#allocation245_spill] sm:$0xff] %v6417_v58  ;;  %v1824_v45 = vadd.f32 %v1312_v9, %v5539_v61  ;;  %v1826_v41 = vadd.f32 %v1314_v5, %v10777_v37  ;;  %10778 = vst [vmem:[#allocation89_spill] sm:$0xff] %v6427_v39  ;;  %v6431_v33 = vmul.f32 %v5412_v52, %v10772_v23  ;;  %v6467_v9 = vld [vmem:[%s10039_s1 + $0xf8] sm:$0xff] }
 0x13d   :  { %v6435_v62 = vmul.f32 %v5396_v53, %v10780_v0  ;;  %v6439_v17 = vmul.f32 %v5404_v15, %v10780_v0  ;;  %v6443_v61 = vmul.f32 %v5408_v25, %v10780_v0  ;;  %10784 = vst [vmem:[#allocation249_spill] sm:$0xff] %v6446_v22  ;;  %v6450_v37 = vmul.f32 %v5412_v52, %v10780_v0  ;;  %v10791_v0 = vld [vmem:[#allocation75_spill] sm:$0xff] }
 0x13e   :  { %10779 = vst [vmem:[#allocation90_spill] sm:$0xff] %v6431_v33  ;;  %v6454_v6 = vmul.f32 %v5396_v53, %v10786_v54  ;;  %v6458_v10 = vmul.f32 %v5404_v15, %v10786_v54  ;;  %v6462_v35 = vmul.f32 %v5408_v25, %v10786_v54  ;;  %1084 = vperm.xlu1 %4790, %v6467_v9  }
 0x13f   :  { %10781 = vst [vmem:[#allocation246_spill] sm:$0xff] %v6435_v62  ;;  %10782 = vst [vmem:[#allocation247_spill] sm:$0xff] %v6439_v17  ;;  %v6471_v5 = vadd.f32 %v6015_v16, %v1833_v14  ;;  %v6474_v43 = vadd.f32 %v6015_v16, %v1835_v27  ;;  %v6477_v21 = vadd.f32 %v6015_v16, %v1832_v59  ;;  %4829 = vset.pattern.permute.xlu0 %v10521_v8  ;;  %v6499_v27 = vpop.permute.xlu1 %2309  ;;  %v10812_v17 = vld [vmem:[#allocation82_spill] sm:$0xff] }
 0x140   :  { %10783 = vst [vmem:[#allocation248_spill] sm:$0xff] %v6443_v61  ;;  %10785 = vst [vmem:[#allocation250_spill] sm:$0xff] %v6450_v37  ;;  %v6480_v50 = vadd.f32 %v6015_v16, %v1834_v19  ;;  %v6485_v55 = vmul.f32 %v5412_v52, %v10786_v54  ;;  %v6489_v23 = vmul.f32 %v5396_v53, %v10791_v0  ;;  %v4834_v19 = vld [vmem:[%s10039_s1 + $0x180] sm:$0xff]  ;;  %v10797_v16 = vld [vmem:[#allocation88_spill] sm:$0xff] }
 0x141   :  { %10787 = vst [vmem:[#allocation251_spill] sm:$0xff] %v6454_v6  ;;  %10788 = vst [vmem:[#allocation252_spill] sm:$0xff] %v6458_v10  ;;  %v6493_v14 = vmul.f32 %v5404_v15, %v10791_v0  ;;  %v6497_v59 = vmul.f32 %v5408_v25, %v10791_v0  ;;  %2473 = vperm.xlu0 %4829, %v4834_v19   ;;  %v6506_v54 = vmul.f32 %v5412_v52, %v10791_v0 }
 0x142   :  { %10789 = vst [vmem:[#allocation253_spill] sm:$0xff] %v6462_v35  ;;  %10790 = vst [vmem:[#allocation254_spill] sm:$0xff] %v6485_v55  ;;  %v6510_v22 = vmul.f32 %v5396_v53, %v10797_v16  ;;  %v6514_v55 = vmul.f32 %v5404_v15, %v10797_v16  ;;  %v6518_v35 = vmul.f32 %v5408_v25, %v10797_v16  ;;  %4791 = vset.pattern.permute.xlu1 %v10521_v8 }
 0x143   :  { %10792 = vst [vmem:[#allocation255_spill] sm:$0xff] %v6489_v23  ;;  %10793 = vst [vmem:[#allocation256_spill] sm:$0xff] %v6493_v14  ;;  %v6521_v10 = vadd.f32 %v6499_v27, %v1825_v63  ;;  %v6525_v19 = vmul.f32 %v5412_v52, %v10797_v16  ;;  %v6529_v0 = vmul.f32 %v5396_v53, %v5594_v3  ;;  %v10807_v14 = vld [vmem:[#allocation109_spill] sm:$0xff] }
 0x144   :  { %10794 = vst [vmem:[#allocation257_spill] sm:$0xff] %v6497_v59  ;;  %10795 = vst [vmem:[#allocation258_spill] sm:$0xff] %v6499_v27  ;;  %v6555_v16 = vadd.f32 %v6499_v27, %v1827_v56  ;;  %v10806_v59 = vld [vmem:[#allocation108_spill] sm:$0xff]  ;;  %v10814_v53 = vld [vmem:[#allocation85_spill] sm:$0xff] }
 0x145   :  { %10796 = vst [vmem:[#allocation259_spill] sm:$0xff] %v6506_v54  ;;  %10798 = vst [vmem:[#allocation260_spill] sm:$0xff] %v6510_v22  ;;  %v6533_v22 = vmul.f32 %v5404_v15, %v5594_v3  ;;  %v6566_v54 = vpop.permute.xlu1 %1004  ;;  %v10816_v3 = vmax.f32 %v6079_v24, 0.0 }
 0x146   :  { %10799 = vst [vmem:[#allocation261_spill] sm:$0xff] %v6514_v55  ;;  %10800 = vst [vmem:[#allocation262_spill] sm:$0xff] %v6518_v35  ;;  %v6536_v55 = vpop.permute.xlu0 %964 }
 0x147   :  { %10801 = vst [vmem:[#allocation263_spill] sm:$0xff] %v6525_v19  ;;  %10802 = vst [vmem:[#allocation264_spill] sm:$0xff] %v6529_v0  ;;  %v4835_v19 = vld [vmem:[%s10039_s1 + $0xe8] sm:$0xff]  ;;  %v1265_v33 = vmul.f32 %v5417_v49, %v6536_v55  ;;  %v1267_v58 = vmul.f32 %v5431_v48, %v6536_v55  ;;  %v1264_v35 = vmul.f32 %v5435_v26, %v6536_v55  ;;  %v4836_v0 = vld [vmem:[%s10039_s1 + $0x198] sm:$0xff] }
 0x148   :  { %10803 = vst [vmem:[#allocation265_spill] sm:$0xff] %v6533_v22  ;;  %10804 = vst [vmem:[#allocation266_spill] sm:$0xff] %v6536_v55  ;;  %2397 = vperm.xlu1 %4791, %v4835_v19   ;;  %v1266_v63 = vmul.f32 %v10669_v11, %v6536_v55  ;;  %v6558_v22 = vadd.f32 %v6499_v27, %v1824_v45  ;;  %v6561_v19 = vadd.f32 %v6499_v27, %v1826_v41 }
 0x149   :  { %2485 = vperm.xlu0 %4829, %v4836_v0   ;;  %10805 = vst [vmem:[#allocation267_spill] sm:$0xff] %v6566_v54  ;;  %v1777_v55 = vadd.f32 %v1265_v33, %v5630_v31  ;;  %v1779_v6 = vadd.f32 %v1267_v58, %v10806_v59  ;;  %v1776_v56 = vadd.f32 %v1264_v35, %v10807_v14  ;;  %v4837_v14 = vld [vmem:[%s10039_s1 + $0x100] sm:$0xff]  ;;  %v6609_v37 = vpop.permute.xlu1 %2317 }
 0x14a   :  { %v1778_v23 = vadd.f32 %v1266_v63, %v5647_v29  ;;  %v6572_v45 = vpop.permute.xlu0 %980  ;;  %v6576_v41 = vmul.f32 %v5417_v49, %v6566_v54  ;;  %v6580_v27 = vmul.f32 %v5431_v48, %v6566_v54  ;;  %v6584_v0 = vmul.f32 %v5435_v26, %v6566_v54  ;;  %10810 = vst [vmem:[#allocation268_spill] sm:$0xff] %v6609_v37 }
 0x14b   :  { %10808 = vst [vmem:[#allocation108_spill] sm:$0xff] %v6572_v45  ;;  %v6588_v31 = vmul.f32 %v10669_v11, %v6566_v54  ;;  %v2545_v29 = vadd.f32 %v6028_v34, %v1777_v55  ;;  %v2547_v58 = vadd.f32 %v6028_v34, %v1779_v6  ;;  %v2544_v33 = vadd.f32 %v6028_v34, %v1776_v56 }
 0x14c   :  { %4792 = vset.pattern.permute.xlu1 %v10536_v28  ;;  %v2546_v35 = vadd.f32 %v6028_v34, %v1778_v23  ;;  %v1297_v59 = vmul.f32 %v5417_v49, %v6572_v45  ;;  %v1299_v63 = vmul.f32 %v5431_v48, %v6572_v45  ;;  %v1296_v55 = vmul.f32 %v5435_v26, %v6572_v45  ;;  %v75_v23 = vld [vmem:[%s10039_s1 + $0x1a8] sm:$0xff] }
 0x14d   :  { %10809 = vst [vmem:[#allocation109_spill] sm:$0xff] %v6588_v31  ;;  %1088 = vperm.xlu1 %4792, %v4837_v14   ;;  %v1298_v6 = vmul.f32 %v10669_v11, %v6572_v45  ;;  %v3057_v56 = vmax.f32 %v2545_v29, 0.0  ;;  %v3059_v54 = vmax.f32 %v2547_v58, 0.0  ;;  %v3056_v34 = vmax.f32 %v2544_v33, 0.0  ;;  %2493 = vperm.xlu0 %4829, %v75_v23   ;;  %v10815_v45 = vld [vmem:[#allocation86_spill] sm:$0xff] }
 0x14e   :  { %v3058_v14 = vmax.f32 %v2546_v35, 0.0  ;;  %v6611_v61 = vpop.permute.xlu0 %984  ;;  %v1809_v62 = vadd.f32 %v1297_v59, %v10812_v17  ;;  %v1811_v15 = vadd.f32 %v1299_v63, %v10813_v12  ;;  %v1808_v52 = vadd.f32 %v1296_v55, %v10814_v53 }
 0x14f   :  { %10811 = vst [vmem:[#allocation269_spill] sm:$0xff] %v6611_v61  ;;  %v1810_v25 = vadd.f32 %v1298_v6, %v10815_v45  ;;  %v4226_v60 = vpack.c.bf16 %v3057_v56, %v10816_v3  ;;  %v10817_v29 = vmax.f32 %v6091_v38, 0.0  ;;  %v10818_v33 = vmax.f32 %v6119_v4, 0.0  ;;  %v4838_v3 = vld [vmem:[%s10039_s1 + $0xf0] sm:$0xff] }
 0x150   :  { %v10819_v23 = vmax.f32 %v6135_v7, 0.0  ;;  %v2577_v12 = vadd.f32 %v6316_v47, %v1809_v62  ;;  %v2579_v53 = vadd.f32 %v6316_v47, %v1811_v15  ;;  %v2576_v17 = vadd.f32 %v6316_v47, %v1808_v52 }
 0x151   :  { %v4354_v58 = vpack.c.bf16 %v3059_v54, %v10817_v29  ;;  %v4228_v35 = vpack.c.bf16 %v3056_v34, %v10818_v33  ;;  %4793 = vset.pattern.permute.xlu1 %v10521_v8  ;;  %v2578_v24 = vadd.f32 %v6316_v47, %v1810_v25  ;;  %4227 = vmatprep.subr.bf16.mxu0 %v4226_v60  ;;  %v3107_v7 = vmax.f32 %v6555_v16, 0.0  ;;  %v6642_v60 = vpop.permute.xlu1 %1008 }
 0x152   :  { %v4356_v31 = vpack.c.bf16 %v3058_v14, %v10819_v23  ;;  %2401 = vperm.xlu1 %4793, %v4838_v3   ;;  %v1305_v34 = vmul.f32 %v5417_v49, %v6611_v61  ;;  %v1307_v4 = vmul.f32 %v5431_v48, %v6611_v61  ;;  %v1304_v15 = vmul.f32 %v5435_v26, %v6611_v61  ;;  %v6640_v52 = vpop.permute.xlu0 %996  ;;  %v10830_v3 = vld [vmem:[#allocation93_spill] sm:$0xff] }
 0x153   :  { %4355 = vmatprep.subr.bf16.mxu1 %v4354_v58  ;;  %10820 = vst [vmem:[#allocation82_spill] sm:$0xff] %v6640_v52  ;;  %4229 = vmatpush1.bf16.msra.mxu0 %v4228_v35  ;;  %v3089_v25 = vmax.f32 %v2577_v12, 0.0  ;;  %v3091_v38 = vmax.f32 %v2579_v53, 0.0  ;;  %v3088_v62 = vmax.f32 %v2576_v17, 0.0  ;;  %v3090_v54 = vmax.f32 %v2578_v24, 0.0  ;;  %10821 = vst [vmem:[#allocation84_spill] sm:$0xff] %v6642_v60 }
 0x154   :  { %4357 = vmatpush1.bf16.msra.mxu1 %v4356_v31  ;;  %4231 = vmatprep.subr.bf16.mxu0 %v6369_v32  ;;  %v1817_v45 = vadd.f32 %v1305_v34, %v5702_v20  ;;  %v1819_v16 = vadd.f32 %v1307_v4, %v5706_v42  ;;  %v1816_v59 = vadd.f32 %v1304_v15, %v5719_v2  ;;  %v3104_v63 = vmax.f32 %v6558_v22, 0.0  ;;  %v10828_v12 = vld [vmem:[#allocation91_spill] sm:$0xff]  ;;  %v10829_v17 = vld [vmem:[#allocation92_spill] sm:$0xff]  ;;  %v10831_v4 = vld [vmem:[#allocation94_spill] sm:$0xff] }
 0x155   :  { %4359 = vmatprep.subr.bf16.mxu1 %v6371_v18  ;;  %v10822_v55 = vmax.f32 %v6262_v44, 0.0  ;;  %v10823_v56 = vmax.f32 %v6265_v51, 0.0  ;;  %v10824_v14 = vmax.f32 %v6268_v46, 0.0  ;;  %v10825_v32 = vmax.f32 %v6271_v13, 0.0  ;;  %v6677_v23 = vpop.permute.xlu1 %2321 }
 0x156   :  { %2405 = vperm.xlu1 %4793, %v6467_v9   ;;  %v2585_v42 = vadd.f32 %v6427_v39, %v1817_v45  ;;  %v2587_v2 = vadd.f32 %v6427_v39, %v1819_v16  ;;  %v2584_v18 = vadd.f32 %v6427_v39, %v1816_v59  ;;  %v1306_v44 = vmul.f32 %v10669_v11, %v6611_v61  ;;  %v6675_v35 = vpop.permute.xlu0 %1000 }
 0x157   :  { %v4234_v6 = vpack.c.bf16 %v3089_v25, %v10822_v55  ;;  %v4362_v31 = vpack.c.bf16 %v3091_v38, %v10823_v56  ;;  %v4236_v29 = vpack.c.bf16 %v3088_v62, %v10824_v14  ;;  %v4364_v20 = vpack.c.bf16 %v3090_v54, %v10825_v32  ;;  %4233 = vmatpush1.bf16.msra.mxu0 %v6373_v57  ;;  %v6690_v54 = vld [vmem:[%s10039_s1 + $0x118] sm:$0xff] }
 0x158   :  { %v1329_v51 = vmul.f32 %v5417_v49, %v6640_v52  ;;  %v1331_v13 = vmul.f32 %v5431_v48, %v6640_v52  ;;  %v1328_v46 = vmul.f32 %v5435_v26, %v6640_v52  ;;  %v1330_v22 = vmul.f32 %v10669_v11, %v6640_v52  ;;  %4361 = vmatpush1.bf16.msra.mxu1 %v6405_v30  ;;  %v10931_v52 = vld [vmem:[#allocation80_spill] sm:$0xff] }
 0x159   :  { %4235 = vmatprep.subr.bf16.mxu0 %v4234_v6  ;;  %v3097_v9 = vmax.f32 %v2585_v42, 0.0  ;;  %v3099_v58 = vmax.f32 %v2587_v2, 0.0  ;;  %v3096_v33 = vmax.f32 %v2584_v18, 0.0  ;;  %v1818_v57 = vadd.f32 %v1306_v44, %v5723_v1  ;;  %10826 = vst [vmem:[#allocation85_spill] sm:$0xff] %v6675_v35  ;;  %4363 = vmatprep.subr.bf16.mxu1 %v4362_v31  ;;  %10827 = vst [vmem:[#allocation86_spill] sm:$0xff] %v6677_v23  ;;  %v10833_v6 = vld [vmem:[#allocation95_spill] sm:$0xff]  ;;  %v6705_v31 = vpop.permute.xlu1 %2325 }
 0x15a   :  { %v1841_v53 = vadd.f32 %v1329_v51, %v10828_v12  ;;  %v1843_v24 = vadd.f32 %v1331_v13, %v10829_v17  ;;  %v1840_v34 = vadd.f32 %v1328_v46, %v10830_v3  ;;  %v1842_v15 = vadd.f32 %v1330_v22, %v10831_v4  ;;  %4794 = vset.pattern.permute.xlu1 %v10536_v28  ;;  %v10840_v17 = vld [vmem:[#allocation97_spill] sm:$0xff]  ;;  %v6731_v3 = vpop.permute.xlu0 %1012 }
 0x15b   :  { %v10832_v30 = vmax.f32 %v6521_v10, 0.0  ;;  %v4366_v38 = vpack.c.bf16 %v3107_v7, %v3099_v58  ;;  %v4240_v1 = vpack.c.bf16 %v3104_v63, %v3096_v33  ;;  %v2586_v62 = vadd.f32 %v6427_v39, %v1818_v57  ;;  %1100 = vperm.xlu1 %4794, %v6690_v54   ;;  %4237 = vmatpush1.bf16.msra.mxu0 %v4236_v29  ;;  %v4840_v58 = vld [vmem:[%s10039_s1 + $0x108] sm:$0xff]  ;;  %v10939_v39 = vld [vmem:[#allocation20_spill] sm:$0xff] }
 0x15c   :  { %v3106_v45 = vmax.f32 %v6561_v19, 0.0  ;;  %v2609_v16 = vadd.f32 %v6609_v37, %v1841_v53  ;;  %v2611_v59 = vadd.f32 %v6609_v37, %v1843_v24  ;;  %v2608_v10 = vadd.f32 %v6609_v37, %v1840_v34  ;;  %4365 = vmatpush1.bf16.msra.mxu1 %v4364_v20  ;;  %v77_v19 = vld [vmem:[%s10039_s1 + $0x1b8] sm:$0xff]  ;;  %10834 = vst [vmem:[#allocation91_spill] sm:$0xff] %v6705_v31 }
 0x15d   :  { %v4238_v25 = vpack.c.bf16 %v10832_v30, %v3097_v9  ;;  %v3098_v7 = vmax.f32 %v2586_v62, 0.0  ;;  %v2610_v63 = vadd.f32 %v6609_v37, %v1842_v15  ;;  %v1337_v55 = vmul.f32 %v5417_v49, %v6675_v35  ;;  %4367 = vmatprep.subr.bf16.mxu1 %v4366_v38  ;;  %2501 = vperm.xlu0 %4829, %v77_v19   ;;  %v10843_v15 = vld [vmem:[#allocation98_spill] sm:$0xff]  ;;  %v10844_v30 = vld [vmem:[#allocation109_spill] sm:$0xff] }
 0x15e   :  { %v1857_v56 = vadd.f32 %v6576_v41, %v10833_v6  ;;  %v3121_v14 = vmax.f32 %v2609_v16, 0.0  ;;  %v3123_v29 = vmax.f32 %v2611_v59, 0.0  ;;  %v3120_v32 = vmax.f32 %v2608_v10, 0.0  ;;  %10841 = vst [vmem:[#allocation92_spill] sm:$0xff] %v6731_v3  ;;  %v10845_v38 = vld [vmem:[#allocation150_spill] sm:$0xff] }
 0x15f   :  { %4239 = vmatprep.subr.bf16.mxu0 %v4238_v25  ;;  %v1339_v20 = vmul.f32 %v5431_v48, %v6675_v35  ;;  %v4368_v42 = vpack.c.bf16 %v3106_v45, %v3098_v7  ;;  %v3122_v2 = vmax.f32 %v2610_v63, 0.0  ;;  %v1849_v18 = vadd.f32 %v1337_v55, %v5756_v36  ;;  %4795 = vset.pattern.permute.xlu1 %v10521_v8  ;;  %v10846_v59 = vld [vmem:[#allocation154_spill] sm:$0xff]  ;;  %v4841_v55 = vld [vmem:[%s10039_s1 + $0x120] sm:$0xff] }
 0x160   :  { %v2625_v41 = vadd.f32 %v6705_v31, %v1857_v56  ;;  %4241 = vmatpush1.bf16.msra.mxu0 %v4240_v1  ;;  %v10835_v44 = vmax.f32 %v6471_v5, 0.0  ;;  %v10836_v13 = vmax.f32 %v6474_v43, 0.0  ;;  %v10837_v22 = vmax.f32 %v6477_v21, 0.0  ;;  %2413 = vperm.xlu1 %4795, %v4840_v58   ;;  %v10839_v43 = vld [vmem:[#allocation96_spill] sm:$0xff] }
 0x161   :  { %4369 = vmatpush1.bf16.msra.mxu1 %v4368_v42  ;;  %v10838_v36 = vmax.f32 %v6480_v50, 0.0  ;;  %v2617_v57 = vadd.f32 %v6677_v23, %v1849_v18  ;;  %v1851_v5 = vadd.f32 %v1339_v20, %v5807_v40  ;;  %v1859_v21 = vadd.f32 %v6580_v27, %v10839_v43  ;;  %v6733_v50 = vpop.permute.xlu1 %1020  ;;  %v10851_v58 = vld [vmem:[#allocation152_spill] sm:$0xff] }
 0x162   :  { %v4242_v51 = vpack.c.bf16 %v3121_v14, %v10835_v44  ;;  %v4370_v46 = vpack.c.bf16 %v3123_v29, %v10836_v13  ;;  %v4244_v9 = vpack.c.bf16 %v3120_v32, %v10837_v22  ;;  %v3137_v12 = vmax.f32 %v2625_v41, 0.0  ;;  %10842 = vst [vmem:[#allocation93_spill] sm:$0xff] %v6733_v50  ;;  %v10847_v32 = vld [vmem:[#allocation151_spill] sm:$0xff]  ;;  %v10850_v22 = vld [vmem:[#allocation6_spill] sm:$0xff] }
 0x163   :  { %v4372_v33 = vpack.c.bf16 %v3122_v2, %v10838_v36  ;;  %v1336_v53 = vmul.f32 %v5435_v26, %v6675_v35  ;;  %v1856_v24 = vadd.f32 %v6584_v0, %v10840_v17  ;;  %v3129_v34 = vmax.f32 %v2617_v57, 0.0  ;;  %v10849_v44 = vld [vmem:[#allocation99_spill] sm:$0xff] }
 0x164   :  { %4243 = vmatprep.subr.bf16.mxu0 %v4242_v51  ;;  %4371 = vmatprep.subr.bf16.mxu1 %v4370_v46  ;;  %v2619_v4 = vadd.f32 %v6677_v23, %v1851_v5  ;;  %v1338_v40 = vmul.f32 %v10669_v11, %v6675_v35  ;;  %v1858_v25 = vadd.f32 %v10844_v30, %v10843_v15  ;;  %v10852_v5 = vld [vmem:[#allocation100_spill] sm:$0xff]  ;;  %v4842_v17 = vld [vmem:[%s10039_s1 + $0x110] sm:$0xff] }
 0x165   :  { %4245 = vmatpush1.bf16.msra.mxu0 %v4244_v9  ;;  %v2627_v27 = vadd.f32 %v6705_v31, %v1859_v21  ;;  %v1848_v1 = vadd.f32 %v1336_v53, %v10845_v38  ;;  %v2624_v0 = vadd.f32 %v6705_v31, %v1856_v24  ;;  %v1353_v62 = vmul.f32 %v5417_v49, %v6642_v60  ;;  %v6758_v18 = vpop.permute.xlu1 %2333  ;;  %v79_v21 = vld [vmem:[%s10039_s1 + $0x1c8] sm:$0xff] }
 0x166   :  { %4373 = vmatpush1.bf16.msra.mxu1 %v4372_v33  ;;  %4796 = vset.pattern.permute.xlu1 %v10536_v28  ;;  %v4246_v45 = vpack.c.bf16 %v3137_v12, %v3129_v34  ;;  %v3131_v16 = vmax.f32 %v2619_v4, 0.0  ;;  %v1850_v10 = vadd.f32 %v1338_v40, %v10846_v59  ;;  %v2626_v7 = vadd.f32 %v6705_v31, %v1858_v25  ;;  %v6779_v40 = vpop.permute.xlu0 %1016  ;;  %v10854_v25 = vld [vmem:[#allocation155_spill] sm:$0xff] }
 0x167   :  { %v3139_v63 = vmax.f32 %v2627_v27, 0.0  ;;  %1104 = vperm.xlu1 %4796, %v4841_v55   ;;  %v2616_v6 = vadd.f32 %v6677_v23, %v1848_v1  ;;  %v3136_v56 = vmax.f32 %v2624_v0, 0.0  ;;  %v1361_v19 = vmul.f32 %v5417_v49, %v6731_v3  ;;  %10848 = vst [vmem:[#allocation94_spill] sm:$0xff] %v6758_v18  ;;  %2509 = vperm.xlu0 %4829, %v79_v21   ;;  %v10857_v55 = vld [vmem:[#allocation156_spill] sm:$0xff] }
 0x168   :  { %4247 = vmatprep.subr.bf16.mxu0 %v4246_v45  ;;  %v2618_v14 = vadd.f32 %v6677_v23, %v1850_v10  ;;  %v3138_v29 = vmax.f32 %v2626_v7, 0.0  ;;  %v1865_v20 = vadd.f32 %v1353_v62, %v10847_v32  ;;  %v1355_v42 = vmul.f32 %v5431_v48, %v6642_v60  ;;  %10853 = vst [vmem:[#allocation95_spill] sm:$0xff] %v6779_v40  ;;  %v10856_v62 = vld [vmem:[#allocation101_spill] sm:$0xff]  ;;  %v10859_v32 = vld [vmem:[#allocation179_spill] sm:$0xff]  ;;  %v10918_v23 = vld [vmem:[#allocation68_spill] sm:$0xff] }
 0x169   :  { %v4374_v2 = vpack.c.bf16 %v3139_v63, %v3131_v16  ;;  %v3128_v41 = vmax.f32 %v2616_v6, 0.0  ;;  %v1873_v51 = vadd.f32 %v1361_v19, %v10849_v44  ;;  %v1363_v13 = vmul.f32 %v5431_v48, %v6731_v3  ;;  %v6785_v1 = vpop.permute.xlu1 %1024  ;;  %v10858_v19 = vld [vmem:[#allocation104_spill] sm:$0xff]  ;;  %v10860_v44 = vld [vmem:[#allocation103_spill] sm:$0xff] }
 0x16a   :  { %v3130_v46 = vmax.f32 %v2618_v14, 0.0  ;;  %v2633_v9 = vadd.f32 %v10850_v22, %v1865_v20  ;;  %v1867_v36 = vadd.f32 %v1355_v42, %v10851_v58  ;;  %v1352_v33 = vmul.f32 %v5435_v26, %v6642_v60  ;;  %10855 = vst [vmem:[#allocation96_spill] sm:$0xff] %v6785_v1 }
 0x16b   :  { %4375 = vmatprep.subr.bf16.mxu1 %v4374_v2  ;;  %v4248_v57 = vpack.c.bf16 %v3136_v56, %v3128_v41  ;;  %4797 = vset.pattern.permute.xlu1 %v10521_v8  ;;  %v2641_v12 = vadd.f32 %v6758_v18, %v1873_v51  ;;  %v1875_v43 = vadd.f32 %v1363_v13, %v10852_v5  ;;  %v10861_v51 = vld [vmem:[#allocation66_spill] sm:$0xff] }
 0x16c   :  { %v4376_v53 = vpack.c.bf16 %v3138_v29, %v3130_v46  ;;  %2417 = vperm.xlu1 %4797, %v4842_v17   ;;  %v3145_v24 = vmax.f32 %v2633_v9, 0.0  ;;  %v2635_v34 = vadd.f32 %v10850_v22, %v1867_v36  ;;  %v1360_v4 = vmul.f32 %v5435_v26, %v6731_v3 }
 0x16d   :  { %4249 = vmatpush1.bf16.msra.mxu0 %v4248_v57  ;;  %v3153_v15 = vmax.f32 %v2641_v12, 0.0  ;;  %v2643_v30 = vadd.f32 %v6758_v18, %v1875_v43  ;;  %v1864_v27 = vadd.f32 %v1352_v33, %v10854_v25  ;;  %v1354_v38 = vmul.f32 %v10669_v11, %v6642_v60  ;;  %v6810_v36 = vpop.permute.xlu1 %2337  ;;  %v10863_v33 = vld [vmem:[#allocation105_spill] sm:$0xff]  ;;  %v10864_v12 = vld [vmem:[#allocation180_spill] sm:$0xff] }
 0x16e   :  { %4377 = vmatpush1.bf16.msra.mxu1 %v4376_v53  ;;  %v3147_v0 = vmax.f32 %v2635_v34, 0.0  ;;  %v1872_v45 = vadd.f32 %v1360_v4, %v10856_v62  ;;  %v1362_v16 = vmul.f32 %v10669_v11, %v6731_v3  ;;  %v1369_v59 = vmul.f32 %v5417_v49, %v6779_v40  ;;  %10862 = vst [vmem:[#allocation97_spill] sm:$0xff] %v6810_v36  ;;  %v6823_v4 = vld [vmem:[%s10039_s1 + $0x138] sm:$0xff]  ;;  %v6831_v62 = vpop.permute.xlu0 %1028 }
 0x16f   :  { %v4250_v10 = vpack.c.bf16 %v3153_v15, %v3145_v24  ;;  %v3155_v7 = vmax.f32 %v2643_v30, 0.0  ;;  %v2632_v63 = vadd.f32 %v10850_v22, %v1864_v27  ;;  %v1866_v6 = vadd.f32 %v1354_v38, %v10857_v55  ;;  %v10865_v15 = vld [vmem:[#allocation106_spill] sm:$0xff]  ;;  %v10866_v27 = vld [vmem:[#allocation181_spill] sm:$0xff]  ;;  %10867 = vst [vmem:[#allocation98_spill] sm:$0xff] %v6831_v62 }
 0x170   :  { %2421 = vperm.xlu1 %4797, %v6690_v54   ;;  %v2640_v56 = vadd.f32 %v6758_v18, %v1872_v45  ;;  %v1874_v14 = vadd.f32 %v1362_v16, %v10858_v19  ;;  %v1377_v29 = vmul.f32 %v5417_v49, %v6733_v50  ;;  %v1881_v20 = vadd.f32 %v1369_v59, %v10859_v32  ;;  %v10868_v16 = vld [vmem:[#allocation107_spill] sm:$0xff]  ;;  %v10870_v19 = vld [vmem:[#allocation182_spill] sm:$0xff] }
 0x171   :  { %4251 = vmatprep.subr.bf16.mxu0 %v4250_v10  ;;  %v4378_v42 = vpack.c.bf16 %v3155_v7, %v3147_v0  ;;  %v2634_v2 = vadd.f32 %v10850_v22, %v1866_v6  ;;  %v1371_v41 = vmul.f32 %v5431_v48, %v6779_v40  ;;  %v6805_v13 = vmul.f32 %v10861_v51, %v10860_v44 }
 0x172   :  { %v3144_v54 = vmax.f32 %v2632_v63, 0.0  ;;  %v3152_v46 = vmax.f32 %v2640_v56, 0.0  ;;  %v2642_v9 = vadd.f32 %v6758_v18, %v1874_v14  ;;  %v1379_v58 = vmul.f32 %v5431_v48, %v6733_v50  ;;  %v6838_v63 = vpop.permute.xlu1 %2341 }
 0x173   :  { %4379 = vmatprep.subr.bf16.mxu1 %v4378_v42  ;;  %v1889_v57 = vadd.f32 %v1377_v29, %v10863_v33  ;;  %v1883_v5 = vadd.f32 %v1371_v41, %v10864_v12  ;;  %v1368_v43 = vmul.f32 %v5435_v26, %v6779_v40  ;;  %v1376_v21 = vmul.f32 %v5435_v26, %v6733_v50  ;;  %v10871_v42 = vld [vmem:[#allocation110_spill] sm:$0xff] }
 0x174   :  { %v4252_v53 = vpack.c.bf16 %v3152_v46, %v3144_v54  ;;  %v3146_v17 = vmax.f32 %v2634_v2, 0.0  ;;  %v3154_v24 = vmax.f32 %v2642_v9, 0.0  ;;  %4798 = vset.pattern.permute.xlu1 %v10536_v28  ;;  %v2649_v34 = vadd.f32 %v6810_v36, %v1881_v20  ;;  %10869 = vst [vmem:[#allocation109_spill] sm:$0xff] %v6838_v63  ;;  %v10872_v9 = vld [vmem:[#allocation191_spill] sm:$0xff]  ;;  %v4844_v33 = vld [vmem:[%s10039_s1 + $0x128] sm:$0xff] }
 0x175   :  { %1116 = vperm.xlu1 %4798, %v6823_v4   ;;  %v1891_v30 = vadd.f32 %v1379_v58, %v10865_v15  ;;  %v2651_v25 = vadd.f32 %v6810_v36, %v1883_v5  ;;  %v1880_v38 = vadd.f32 %v1368_v43, %v10866_v27  ;;  %v1370_v0 = vmul.f32 %v10669_v11, %v6779_v40 }
 0x176   :  { %4253 = vmatpush1.bf16.msra.mxu0 %v4252_v53  ;;  %v4380_v45 = vpack.c.bf16 %v3154_v24, %v3146_v17  ;;  %v1888_v59 = vadd.f32 %v1376_v21, %v10868_v16  ;;  %v1378_v10 = vmul.f32 %v10669_v11, %v6733_v50  ;;  %v1385_v7 = vmul.f32 %v5417_v49, %v6785_v1  ;;  %v10873_v24 = vld [vmem:[#allocation67_spill] sm:$0xff]  ;;  %v6863_v15 = vpop.permute.xlu1 %1036 }
 0x177   :  { %v3161_v55 = vmax.f32 %v2649_v34, 0.0  ;;  %v3163_v6 = vmax.f32 %v2651_v25, 0.0  ;;  %v2648_v56 = vadd.f32 %v6810_v36, %v1880_v38  ;;  %v1882_v14 = vadd.f32 %v1370_v0, %v10870_v19  ;;  %10874 = vst [vmem:[#allocation150_spill] sm:$0xff] %v6863_v15  ;;  %v10875_v0 = vld [vmem:[#allocation111_spill] sm:$0xff] }
 0x178   :  { %4381 = vmatpush1.bf16.msra.mxu1 %v4380_v45  ;;  %v2657_v29 = vadd.f32 %v6838_v63, %v1889_v57  ;;  %v2659_v32 = vadd.f32 %v6838_v63, %v1891_v30  ;;  %v2656_v20 = vadd.f32 %v6838_v63, %v1888_v59  ;;  %v1890_v2 = vadd.f32 %v1378_v10, %v10871_v42  ;;  %v10876_v16 = vld [vmem:[#allocation211_spill] sm:$0xff]  ;;  %v10877_v10 = vld [vmem:[#allocation8_spill] sm:$0xff] }
 0x179   :  { %4799 = vset.pattern.permute.xlu1 %v10521_v8  ;;  %v3160_v41 = vmax.f32 %v2648_v56, 0.0  ;;  %v2650_v54 = vadd.f32 %v6810_v36, %v1882_v14  ;;  %v1393_v46 = vmul.f32 %v5417_v49, %v6831_v62  ;;  %v1897_v58 = vadd.f32 %v1385_v7, %v10872_v9 }
 0x17a   :  { %2429 = vperm.xlu1 %4799, %v4844_v33   ;;  %v3169_v57 = vmax.f32 %v2657_v29, 0.0  ;;  %v3171_v12 = vmax.f32 %v2659_v32, 0.0  ;;  %v3168_v5 = vmax.f32 %v2656_v20, 0.0  ;;  %v2658_v43 = vadd.f32 %v6838_v63, %v1890_v2  ;;  %v4845_v29 = vld [vmem:[%s10039_s1 + $0x140] sm:$0xff]  ;;  %v10879_v20 = vld [vmem:[#allocation194_spill] sm:$0xff] }
 0x17b   :  { %v3162_v21 = vmax.f32 %v2650_v54, 0.0  ;;  %v1387_v53 = vmul.f32 %v5431_v48, %v6785_v1  ;;  %v1395_v17 = vmul.f32 %v5431_v48, %v6831_v62  ;;  %v6861_v34 = vmul.f32 %v10873_v24, %v10860_v44  ;;  %v10901_v44 = vld [vmem:[#allocation210_spill] sm:$0xff] }
 0x17c   :  { %v4254_v30 = vpack.c.bf16 %v3169_v57, %v3161_v55  ;;  %v4382_v25 = vpack.c.bf16 %v3171_v12, %v3163_v6  ;;  %v4256_v27 = vpack.c.bf16 %v3168_v5, %v3160_v41  ;;  %v3170_v38 = vmax.f32 %v2658_v43, 0.0  ;;  %v6875_v6 = vpop.permute.xlu0 %1032  ;;  %v10880_v41 = vld [vmem:[#allocation112_spill] sm:$0xff]  ;;  %v6890_v12 = vpop.permute.xlu1 %2349 }
 0x17d   :  { %v1905_v45 = vadd.f32 %v1393_v46, %v10875_v0  ;;  %v2665_v59 = vadd.f32 %v10876_v16, %v1897_v58  ;;  %v1899_v7 = vadd.f32 %v1387_v53, %v10877_v10  ;;  %v1384_v56 = vmul.f32 %v5435_v26, %v6785_v1  ;;  %10878 = vst [vmem:[#allocation154_spill] sm:$0xff] %v6875_v6  ;;  %v10881_v46 = vld [vmem:[#allocation113_spill] sm:$0xff]  ;;  %v81_v57 = vld [vmem:[%s10039_s1 + $0x1d8] sm:$0xff]  ;;  %v10885_v53 = vld [vmem:[#allocation115_spill] sm:$0xff] }
 0x17e   :  { %4800 = vset.pattern.permute.xlu1 %v10536_v28  ;;  %4255 = vmatprep.subr.bf16.mxu0 %v4254_v30  ;;  %v4384_v19 = vpack.c.bf16 %v3170_v38, %v3162_v21  ;;  %v1392_v14 = vmul.f32 %v5435_v26, %v6831_v62  ;;  %v1386_v55 = vmul.f32 %v10669_v11, %v6785_v1  ;;  %v10882_v58 = vld [vmem:[#allocation69_spill] sm:$0xff]  ;;  %v10884_v43 = vld [vmem:[#allocation116_spill] sm:$0xff]  ;;  %v10886_v30 = vld [vmem:[#allocation62_spill] sm:$0xff] }
 0x17f   :  { %4383 = vmatprep.subr.bf16.mxu1 %v4382_v25  ;;  %1120 = vperm.xlu1 %4800, %v4845_v29   ;;  %v2667_v32 = vadd.f32 %v10876_v16, %v1899_v7  ;;  %v1896_v42 = vadd.f32 %v1384_v56, %v10879_v20  ;;  %v1394_v2 = vmul.f32 %v10669_v11, %v6831_v62  ;;  %v3177_v56 = vmax.f32 %v2665_v59, 0.0  ;;  %v10907_v62 = vld [vmem:[#allocation120_spill] sm:$0xff] }
 0x180   :  { %4257 = vmatpush1.bf16.msra.mxu0 %v4256_v27  ;;  %4385 = vmatpush1.bf16.msra.mxu1 %v4384_v19  ;;  %v1907_v54 = vadd.f32 %v1395_v17, %v10880_v41  ;;  %v1904_v9 = vadd.f32 %v1392_v14, %v10881_v46  ;;  %v1898_v33 = vadd.f32 %v1386_v55, %v10882_v58  ;;  %v10888_v17 = vld [vmem:[#allocation65_spill] sm:$0xff]  ;;  %v6915_v41 = vpop.permute.xlu0 %1044 }
 0x181   :  { %10883 = vst [vmem:[#allocation151_spill] sm:$0xff] %v6890_v12  ;;  %v2664_v5 = vadd.f32 %v10876_v16, %v1896_v42  ;;  %v1906_v21 = vadd.f32 %v1394_v2, %v10884_v43  ;;  %2517 = vperm.xlu0 %4829, %v81_v57   ;;  %v6896_v25 = vmul.f32 %v10886_v30, %v10885_v53  ;;  %v3179_v19 = vmax.f32 %v2667_v32, 0.0 }
 0x182   :  { %v6900_v27 = vmul.f32 %v10888_v17, %v10885_v53  ;;  %v2673_v38 = vadd.f32 %v6890_v12, %v1905_v45  ;;  %v2675_v0 = vadd.f32 %v6890_v12, %v1907_v54  ;;  %v2672_v10 = vadd.f32 %v6890_v12, %v1904_v9  ;;  %v4846_v45 = vld [vmem:[%s10039_s1 + $0x130] sm:$0xff]  ;;  %10891 = vst [vmem:[#allocation155_spill] sm:$0xff] %v6915_v41  ;;  %v6923_v9 = vpop.permute.xlu1 %1040 }
 0x183   :  { %10887 = vst [vmem:[#allocation99_spill] sm:$0xff] %v6896_v25  ;;  %v2666_v7 = vadd.f32 %v10876_v16, %v1898_v33  ;;  %4801 = vset.pattern.permute.xlu1 %v10521_v8  ;;  %v2674_v14 = vadd.f32 %v6890_v12, %v1906_v21  ;;  %v6910_v55 = vmul.f32 %v10861_v51, %v10885_v53  ;;  %v3176_v42 = vmax.f32 %v2664_v5, 0.0  ;;  %v10906_v12 = vld [vmem:[#allocation119_spill] sm:$0xff] }
 0x184   :  { %10889 = vst [vmem:[#allocation152_spill] sm:$0xff] %v6900_v27  ;;  %2433 = vperm.xlu1 %4801, %v4846_v45   ;;  %v3185_v29 = vmax.f32 %v2673_v38, 0.0  ;;  %v3187_v20 = vmax.f32 %v2675_v0, 0.0  ;;  %v3184_v2 = vmax.f32 %v2672_v10, 0.0  ;;  %v1401_v32 = vmul.f32 %v5417_v49, %v6875_v6  ;;  %10893 = vst [vmem:[#allocation156_spill] sm:$0xff] %v6923_v9  ;;  %v10894_v38 = vld [vmem:[#allocation129_spill] sm:$0xff] }
 0x185   :  { %10890 = vst [vmem:[#allocation100_spill] sm:$0xff] %v6910_v55  ;;  %v3178_v54 = vmax.f32 %v2666_v7, 0.0  ;;  %v3186_v59 = vmax.f32 %v2674_v14, 0.0  ;;  %v6921_v46 = vmul.f32 %v10873_v24, %v10885_v53  ;;  %v1403_v5 = vmul.f32 %v5431_v48, %v6875_v6 }
 0x186   :  { %v4258_v58 = vpack.c.bf16 %v3185_v29, %v3177_v56  ;;  %v4386_v33 = vpack.c.bf16 %v3187_v20, %v3179_v19  ;;  %v4260_v57 = vpack.c.bf16 %v3184_v2, %v3176_v42  ;;  %v1400_v21 = vmul.f32 %v5435_v26, %v6875_v6  ;;  %v10896_v20 = vld [vmem:[#allocation205_spill] sm:$0xff]  ;;  %v10897_v2 = vld [vmem:[#allocation206_spill] sm:$0xff] }
 0x187   :  { %10892 = vst [vmem:[#allocation101_spill] sm:$0xff] %v6921_v46  ;;  %v4388_v43 = vpack.c.bf16 %v3186_v59, %v3178_v54  ;;  %v6931_v0 = vmul.f32 %v10886_v30, %v10894_v38  ;;  %v6935_v10 = vmul.f32 %v10888_v17, %v10894_v38  ;;  %v1409_v7 = vmul.f32 %v5417_v49, %v6863_v15  ;;  %v10960_v46 = vld [vmem:[#allocation217_spill] sm:$0xff] }
 0x188   :  { %2437 = vperm.xlu1 %4801, %v6823_v4   ;;  %4259 = vmatprep.subr.bf16.mxu0 %v4258_v58  ;;  %v1402_v56 = vmul.f32 %v10669_v11, %v6875_v6  ;;  %v6944_v19 = vmul.f32 %v10861_v51, %v10894_v38  ;;  %v1411_v14 = vmul.f32 %v5431_v48, %v6863_v15  ;;  %v10895_v4 = vld [vmem:[#allocation145_spill] sm:$0xff] }
 0x189   :  { %4387 = vmatprep.subr.bf16.mxu1 %v4386_v33  ;;  %4261 = vmatpush1.bf16.msra.mxu0 %v4260_v57  ;;  %v6950_v45 = vmul.f32 %v10873_v24, %v10894_v38  ;;  %v6954_v29 = vmul.f32 %v10886_v30, %v10895_v4  ;;  %v1913_v42 = vadd.f32 %v1401_v32, %v10896_v20  ;;  %v6962_v33 = vpop.permute.xlu0 %1048  ;;  %v6964_v57 = vpop.permute.xlu1 %2353  ;;  %v10900_v38 = vld [vmem:[#allocation209_spill] sm:$0xff]  ;;  %v10950_v30 = vld [vmem:[#allocation214_spill] sm:$0xff] }
 0x18a   :  { %4389 = vmatpush1.bf16.msra.mxu1 %v4388_v43  ;;  %v1915_v54 = vadd.f32 %v1403_v5, %v10897_v2  ;;  %v1408_v59 = vmul.f32 %v5435_v26, %v6863_v15  ;;  %v1410_v58 = vmul.f32 %v10669_v11, %v6863_v15  ;;  %10898 = vst [vmem:[#allocation104_spill] sm:$0xff] %v6962_v33  ;;  %10899 = vst [vmem:[#allocation179_spill] sm:$0xff] %v6964_v57  ;;  %v10902_v5 = vld [vmem:[#allocation117_spill] sm:$0xff] }
 0x18b   :  { %v1912_v53 = vadd.f32 %v1400_v21, %v10900_v38  ;;  %v1914_v6 = vadd.f32 %v1402_v56, %v10901_v44  ;;  %v1417_v43 = vmul.f32 %v5417_v49, %v6923_v9  ;;  %v1419_v32 = vmul.f32 %v5431_v48, %v6923_v9  ;;  %v6986_v44 = vld [vmem:[%s10039_s1 + $0x158] sm:$0xff]  ;;  %v10905_v38 = vld [vmem:[#allocation118_spill] sm:$0xff] }
 0x18c   :  { %4802 = vset.pattern.permute.xlu1 %v10536_v28  ;;  %v1921_v20 = vadd.f32 %v1409_v7, %v10902_v5  ;;  %v2681_v2 = vadd.f32 %v6964_v57, %v1913_v42  ;;  %v6977_v15 = vmul.f32 %v10888_v17, %v10895_v4  ;;  %v6981_v21 = vmul.f32 %v10861_v51, %v10895_v4 }
 0x18d   :  { %1132 = vperm.xlu1 %4802, %v6986_v44   ;;  %v1923_v56 = vadd.f32 %v1411_v14, %v10905_v38  ;;  %v2683_v7 = vadd.f32 %v6964_v57, %v1915_v54  ;;  %v2680_v42 = vadd.f32 %v6964_v57, %v1912_v53  ;;  %v2682_v5 = vadd.f32 %v6964_v57, %v1914_v6  ;;  %v6999_v50 = vpop.permute.xlu1 %2357  ;;  %v10909_v14 = vld [vmem:[#allocation77_spill] sm:$0xff]  ;;  %v10910_v54 = vld [vmem:[#allocation76_spill] sm:$0xff] }
 0x18e   :  { %10903 = vst [vmem:[#allocation105_spill] sm:$0xff] %v6977_v15  ;;  %10904 = vst [vmem:[#allocation180_spill] sm:$0xff] %v6981_v21  ;;  %v1920_v16 = vadd.f32 %v1408_v59, %v10906_v12  ;;  %v1922_v1 = vadd.f32 %v1410_v58, %v10907_v62  ;;  %v1425_v63 = vmul.f32 %v5417_v49, %v6915_v41  ;;  %v3193_v40 = vmax.f32 %v2681_v2, 0.0  ;;  %v7009_v58 = vpop.permute.xlu0 %1060  ;;  %v11021_v21 = vld [vmem:[#allocation246_spill] sm:$0xff]  ;;  %v11023_v15 = vld [vmem:[#allocation247_spill] sm:$0xff] }
 0x18f   :  { %v1427_v36 = vmul.f32 %v5431_v48, %v6915_v41  ;;  %10908 = vst [vmem:[#allocation106_spill] sm:$0xff] %v6999_v50  ;;  %v1929_v38 = vadd.f32 %v1417_v43, %v10909_v14  ;;  %v1931_v18 = vadd.f32 %v1419_v32, %v10910_v54  ;;  %v1416_v6 = vmul.f32 %v5435_v26, %v6923_v9 }
 0x190   :  { %v2689_v12 = vadd.f32 %v6999_v50, %v1921_v20  ;;  %v2691_v62 = vadd.f32 %v6999_v50, %v1923_v56  ;;  %v2688_v53 = vadd.f32 %v6999_v50, %v1920_v16  ;;  %v2690_v59 = vadd.f32 %v6999_v50, %v1922_v1  ;;  %10911 = vst [vmem:[#allocation181_spill] sm:$0xff] %v7009_v58  ;;  %v83_v20 = vld [vmem:[%s10039_s1 + $0x1e8] sm:$0xff] }
 0x191   :  { %4803 = vset.pattern.permute.xlu1 %v10521_v8  ;;  %v3195_v2 = vmax.f32 %v2683_v7, 0.0  ;;  %v3192_v57 = vmax.f32 %v2680_v42, 0.0  ;;  %v3194_v43 = vmax.f32 %v2682_v5, 0.0  ;;  %v1418_v32 = vmul.f32 %v10669_v11, %v6923_v9  ;;  %v4848_v16 = vld [vmem:[%s10039_s1 + $0x148] sm:$0xff]  ;;  %2525 = vperm.xlu0 %4829, %v83_v20   ;;  %v10912_v42 = vld [vmem:[#allocation9_spill] sm:$0xff]  ;;  %v7026_v3 = vpop.permute.xlu1 %1052  ;;  %v10917_v20 = vld [vmem:[#allocation16_spill] sm:$0xff] }
 0x192   :  { %2445 = vperm.xlu1 %4803, %v4848_v16   ;;  %v3201_v1 = vmax.f32 %v2689_v12, 0.0  ;;  %v3203_v56 = vmax.f32 %v2691_v62, 0.0  ;;  %v3200_v14 = vmax.f32 %v2688_v53, 0.0  ;;  %v3202_v54 = vmax.f32 %v2690_v59, 0.0  ;;  %v10913_v50 = vld [vmem:[#allocation78_spill] sm:$0xff]  ;;  %10914 = vst [vmem:[#allocation107_spill] sm:$0xff] %v7026_v3 }
 0x193   :  { %v1424_v7 = vmul.f32 %v5435_v26, %v6915_v41  ;;  %v1928_v5 = vadd.f32 %v1416_v6, %v10912_v42  ;;  %v1426_v9 = vmul.f32 %v10669_v11, %v6915_v41  ;;  %v1930_v22 = vadd.f32 %v1418_v32, %v10913_v50  ;;  %v10915_v62 = vld [vmem:[#allocation73_spill] sm:$0xff]  ;;  %v10920_v42 = vld [vmem:[#allocation18_spill] sm:$0xff] }
 0x194   :  { %v4262_v60 = vpack.c.bf16 %v3201_v1, %v3193_v40  ;;  %v4390_v31 = vpack.c.bf16 %v3203_v56, %v3195_v2  ;;  %v4264_v16 = vpack.c.bf16 %v3200_v14, %v3192_v57  ;;  %v4392_v12 = vpack.c.bf16 %v3202_v54, %v3194_v43  ;;  %v10922_v50 = vld [vmem:[#allocation121_spill] sm:$0xff]  ;;  %v10923_v57 = vld [vmem:[#allocation58_spill] sm:$0xff]  ;;  %v7051_v43 = vpop.permute.xlu0 %1064  ;;  %v10928_v54 = vld [vmem:[#allocation124_spill] sm:$0xff] }
 0x195   :  { %v2697_v53 = vadd.f32 %v10915_v62, %v1929_v38  ;;  %v7031_v59 = vmul.f32 %v10873_v24, %v10895_v4  ;;  %v7035_v6 = vmul.f32 %v10918_v23, %v10917_v20  ;;  %v7039_v41 = vmul.f32 %v10918_v23, %v10920_v42  ;;  %10926 = vst [vmem:[#allocation194_spill] sm:$0xff] %v7051_v43  ;;  %v4849_v32 = vld [vmem:[%s10039_s1 + $0x160] sm:$0xff]  ;;  %v10927_v56 = vld [vmem:[#allocation122_spill] sm:$0xff] }
 0x196   :  { %4804 = vset.pattern.permute.xlu1 %v10536_v28  ;;  %4263 = vmatprep.subr.bf16.mxu0 %v4262_v60  ;;  %v1937_v40 = vadd.f32 %v1425_v63, %v10922_v50  ;;  %v7045_v38 = vmul.f32 %v10923_v57, %v10917_v20  ;;  %v7049_v2 = vmul.f32 %v10923_v57, %v10920_v42  ;;  %v10929_v4 = vld [vmem:[#allocation125_spill] sm:$0xff] }
 0x197   :  { %10916 = vst [vmem:[#allocation182_spill] sm:$0xff] %v7031_v59  ;;  %10919 = vst [vmem:[#allocation110_spill] sm:$0xff] %v7035_v6  ;;  %4391 = vmatprep.subr.bf16.mxu1 %v4390_v31  ;;  %1136 = vperm.xlu1 %4804, %v4849_v32   ;;  %v2699_v60 = vadd.f32 %v10915_v62, %v1931_v18  ;;  %v2696_v63 = vadd.f32 %v10915_v62, %v1928_v5  ;;  %v7062_v31 = vpop.permute.xlu1 %2365  ;;  %v3209_v37 = vmax.f32 %v2697_v53, 0.0  ;;  %v11019_v59 = vld [vmem:[#allocation170_spill] sm:$0xff] }
 0x198   :  { %10921 = vst [vmem:[#allocation191_spill] sm:$0xff] %v7039_v41  ;;  %10924 = vst [vmem:[#allocation111_spill] sm:$0xff] %v7045_v38  ;;  %v2698_v1 = vadd.f32 %v10915_v62, %v1930_v22  ;;  %4265 = vmatpush1.bf16.msra.mxu0 %v4264_v16  ;;  %4393 = vmatpush1.bf16.msra.mxu1 %v4392_v12  ;;  %v1939_v14 = vadd.f32 %v1427_v36, %v10927_v56  ;;  %v10934_v22 = vld [vmem:[#allocation15_spill] sm:$0xff] }
 0x199   :  { %10925 = vst [vmem:[#allocation8_spill] sm:$0xff] %v7049_v2  ;;  %v1936_v50 = vadd.f32 %v1424_v7, %v10928_v54  ;;  %v1938_v35 = vadd.f32 %v1426_v9, %v10929_v4  ;;  %10930 = vst [vmem:[#allocation112_spill] sm:$0xff] %v7062_v31  ;;  %v7066_v32 = vmul.f32 %v10931_v52, %v10917_v20  ;;  %v3211_v16 = vmax.f32 %v2699_v60, 0.0  ;;  %v10979_v2 = vld [vmem:[#allocation142_spill] sm:$0xff]  ;;  %v10980_v41 = vld [vmem:[#allocation143_spill] sm:$0xff] }
 0x19a   :  { %v7070_v18 = vmul.f32 %v10931_v52, %v10920_v42  ;;  %v7074_v5 = vmul.f32 %v10934_v22, %v10917_v20  ;;  %v2705_v36 = vadd.f32 %v7062_v31, %v1937_v40  ;;  %v2707_v7 = vadd.f32 %v7062_v31, %v1939_v14  ;;  %v4850_v20 = vld [vmem:[%s10039_s1 + $0x150] sm:$0xff] }
 0x19b   :  { %10932 = vst [vmem:[#allocation113_spill] sm:$0xff] %v7066_v32  ;;  %v2704_v9 = vadd.f32 %v7062_v31, %v1936_v50  ;;  %v2706_v4 = vadd.f32 %v7062_v31, %v1938_v35  ;;  %4805 = vset.pattern.permute.xlu1 %v10521_v8  ;;  %v3208_v12 = vmax.f32 %v2696_v63, 0.0  ;;  %v3210_v53 = vmax.f32 %v2698_v1, 0.0  ;;  %v7086_v50 = vpop.permute.xlu0 %1076  ;;  %v7096_v31 = vpop.permute.xlu1 %1056 }
 0x19c   :  { %10933 = vst [vmem:[#allocation69_spill] sm:$0xff] %v7070_v18  ;;  %10935 = vst [vmem:[#allocation116_spill] sm:$0xff] %v7074_v5  ;;  %v1433_v56 = vmul.f32 %v5417_v49, %v6962_v33  ;;  %2449 = vperm.xlu1 %4805, %v4850_v20   ;;  %v3217_v40 = vmax.f32 %v2705_v36, 0.0  ;;  %v3219_v54 = vmax.f32 %v2707_v7, 0.0  ;;  %v1441_v35 = vmul.f32 %v5417_v49, %v7026_v3  ;;  %v10968_v18 = vld [vmem:[#allocation219_spill] sm:$0xff] }
 0x19d   :  { %v3216_v14 = vmax.f32 %v2704_v9, 0.0  ;;  %v3218_v62 = vmax.f32 %v2706_v4, 0.0  ;;  %10936 = vst [vmem:[#allocation205_spill] sm:$0xff] %v7086_v50  ;;  %v1435_v60 = vmul.f32 %v5431_v48, %v6962_v33  ;;  %v1432_v63 = vmul.f32 %v5435_v26, %v6962_v33  ;;  %10937 = vst [vmem:[#allocation206_spill] sm:$0xff] %v7096_v31 }
 0x19e   :  { %v1434_v1 = vmul.f32 %v10669_v11, %v6962_v33  ;;  %v4266_v36 = vpack.c.bf16 %v3217_v40, %v3209_v37  ;;  %v4394_v7 = vpack.c.bf16 %v3219_v54, %v3211_v16  ;;  %v7100_v20 = vmul.f32 %v10934_v22, %v10920_v42  ;;  %v10943_v16 = vld [vmem:[#allocation79_spill] sm:$0xff] }
 0x19f   :  { %v4268_v9 = vpack.c.bf16 %v3216_v14, %v3208_v12  ;;  %v4396_v4 = vpack.c.bf16 %v3218_v62, %v3210_v53  ;;  %v7104_v24 = vmul.f32 %v10918_v23, %v10939_v39  ;;  %v7108_v51 = vmul.f32 %v10923_v57, %v10939_v39  ;;  %v10944_v53 = vld [vmem:[#allocation83_spill] sm:$0xff]  ;;  %v10946_v14 = vld [vmem:[#allocation13_spill] sm:$0xff] }
 0x1a0   :  { %10938 = vst [vmem:[#allocation209_spill] sm:$0xff] %v7100_v20  ;;  %v7112_v33 = vmul.f32 %v10931_v52, %v10939_v39  ;;  %2453 = vperm.xlu1 %4805, %v6986_v44   ;;  %4267 = vmatprep.subr.bf16.mxu0 %v4266_v36  ;;  %v1443_v37 = vmul.f32 %v5431_v48, %v7026_v3  ;;  %v10945_v54 = vld [vmem:[#allocation127_spill] sm:$0xff]  ;;  %v10948_v44 = vld [vmem:[#allocation126_spill] sm:$0xff]  ;;  %v10949_v39 = vld [vmem:[#allocation213_spill] sm:$0xff] }
 0x1a1   :  { %10940 = vst [vmem:[#allocation210_spill] sm:$0xff] %v7104_v24  ;;  %10941 = vst [vmem:[#allocation117_spill] sm:$0xff] %v7108_v51  ;;  %v1440_v62 = vmul.f32 %v5435_v26, %v7026_v3  ;;  %v1442_v42 = vmul.f32 %v10669_v11, %v7026_v3  ;;  %4395 = vmatprep.subr.bf16.mxu1 %v4394_v7  ;;  %4269 = vmatpush1.bf16.msra.mxu0 %v4268_v9  ;;  %v7132_v7 = vpop.permute.xlu0 %1080  ;;  %v7134_v9 = vpop.permute.xlu1 %2369  ;;  %v10959_v24 = vld [vmem:[#allocation216_spill] sm:$0xff] }
 0x1a2   :  { %10942 = vst [vmem:[#allocation118_spill] sm:$0xff] %v7112_v33  ;;  %v1945_v12 = vadd.f32 %v1433_v56, %v10943_v16  ;;  %v1947_v40 = vadd.f32 %v1435_v60, %v10944_v53  ;;  %v7125_v61 = vadd.f32 %v10946_v14, %v10945_v54  ;;  %4397 = vmatpush1.bf16.msra.mxu1 %v4396_v4  ;;  %10951 = vst [vmem:[#allocation120_spill] sm:$0xff] %v7132_v7  ;;  %v10955_v16 = vld [vmem:[#allocation132_spill] sm:$0xff] }
 0x1a3   :  { %v1953_v36 = vadd.f32 %v1441_v35, %v10948_v44  ;;  %v1944_v17 = vadd.f32 %v1432_v63, %v10949_v39  ;;  %v1946_v33 = vadd.f32 %v1434_v1, %v10950_v30  ;;  %v1457_v3 = vmul.f32 %v5417_v49, %v7009_v58  ;;  %10952 = vst [vmem:[#allocation77_spill] sm:$0xff] %v7134_v9  ;;  %v10953_v30 = vld [vmem:[#allocation130_spill] sm:$0xff]  ;;  %v10954_v1 = vld [vmem:[#allocation131_spill] sm:$0xff]  ;;  %v7153_v14 = vld [vmem:[%s10039_s1 + $0x178] sm:$0xff] }
 0x1a4   :  { %10947 = vst [vmem:[#allocation119_spill] sm:$0xff] %v7125_v61  ;;  %v1449_v56 = vmul.f32 %v5417_v49, %v7096_v31  ;;  %v1451_v60 = vmul.f32 %v5431_v48, %v7096_v31  ;;  %v1448_v35 = vmul.f32 %v5435_v26, %v7096_v31  ;;  %v1450_v39 = vmul.f32 %v10669_v11, %v7096_v31  ;;  %v10967_v20 = vld [vmem:[#allocation136_spill] sm:$0xff]  ;;  %v11003_v61 = vld [vmem:[#allocation158_spill] sm:$0xff] }
 0x1a5   :  { %4806 = vset.pattern.permute.xlu1 %v10536_v28  ;;  %v1955_v63 = vadd.f32 %v1443_v37, %v10953_v30  ;;  %v1952_v4 = vadd.f32 %v1440_v62, %v10954_v1  ;;  %v1954_v53 = vadd.f32 %v1442_v42, %v10955_v16  ;;  %v1459_v54 = vmul.f32 %v5431_v48, %v7009_v58  ;;  %v10956_v30 = vld [vmem:[#allocation133_spill] sm:$0xff]  ;;  %v7169_v47 = vpop.permute.xlu1 %2373  ;;  %v7179_v25 = vpop.permute.xlu0 %1092 }
 0x1a6   :  { %1148 = vperm.xlu1 %4806, %v7153_v14   ;;  %v2713_v44 = vadd.f32 %v7134_v9, %v1945_v12  ;;  %v2715_v31 = vadd.f32 %v7134_v9, %v1947_v40  ;;  %v2712_v37 = vadd.f32 %v7134_v9, %v1944_v17  ;;  %v2714_v62 = vadd.f32 %v7134_v9, %v1946_v33  ;;  %v10958_v12 = vld [vmem:[#allocation215_spill] sm:$0xff]  ;;  %v10961_v9 = vld [vmem:[#allocation218_spill] sm:$0xff] }
 0x1a7   :  { %v7161_v42 = vadd.f32 %v1457_v3, %v10956_v30  ;;  %v1456_v1 = vmul.f32 %v5435_v26, %v7009_v58  ;;  %v1458_v16 = vmul.f32 %v10669_v11, %v7009_v58  ;;  %v1465_v51 = vmul.f32 %v5417_v49, %v7051_v43  ;;  %10957 = vst [vmem:[#allocation76_spill] sm:$0xff] %v7169_v47 }
 0x1a8   :  { %v1961_v40 = vadd.f32 %v1449_v56, %v10958_v12  ;;  %v1963_v17 = vadd.f32 %v1451_v60, %v10959_v24  ;;  %v1960_v33 = vadd.f32 %v1448_v35, %v10960_v46  ;;  %v1962_v3 = vadd.f32 %v1450_v39, %v10961_v9  ;;  %10962 = vst [vmem:[#allocation9_spill] sm:$0xff] %v7179_v25  ;;  %v4852_v46 = vld [vmem:[%s10039_s1 + $0x168] sm:$0xff]  ;;  %v10963_v39 = vld [vmem:[#allocation81_spill] sm:$0xff] }
 0x1a9   :  { %v2721_v30 = vadd.f32 %v7169_v47, %v1953_v36  ;;  %v2723_v55 = vadd.f32 %v7169_v47, %v1955_v63  ;;  %v2720_v27 = vadd.f32 %v7169_v47, %v1952_v4  ;;  %v2722_v58 = vadd.f32 %v7169_v47, %v1954_v53  ;;  %v10964_v4 = vld [vmem:[#allocation134_spill] sm:$0xff] }
 0x1aa   :  { %4808 = vset.pattern.permute.xlu1 %v10521_v8  ;;  %v3225_v23 = vmax.f32 %v2713_v44, 0.0  ;;  %v3227_v56 = vmax.f32 %v2715_v31, 0.0  ;;  %v3224_v12 = vmax.f32 %v2712_v37, 0.0  ;;  %v3226_v24 = vmax.f32 %v2714_v62, 0.0  ;;  %v7194_v44 = vld [vmem:[%s10040_s2] sm:$0xf]  ;;  %v7196_v37 = vpop.permute.xlu1 %1068 }
 0x1ab   :  { %2461 = vperm.xlu1 %4808, %v4852_v46   ;;  %v3233_v36 = vmax.f32 %v2721_v30, 0.0  ;;  %v3235_v9 = vmax.f32 %v2723_v55, 0.0  ;;  %v3232_v60 = vmax.f32 %v2720_v27, 0.0  ;;  %v3234_v35 = vmax.f32 %v2722_v58, 0.0  ;;  %10965 = vst [vmem:[#allocation78_spill] sm:$0xff] %v7196_v37 }
 0x1ac   :  { %v2729_v63 = vadd.f32 %v10963_v39, %v1961_v40  ;;  %v1971_v53 = vadd.f32 %v1459_v54, %v10964_v4  ;;  %v1467_v47 = vmul.f32 %v5431_v48, %v7051_v43  ;;  %v1464_v31 = vmul.f32 %v5435_v26, %v7051_v43  ;;  %v10966_v54 = vld [vmem:[#allocation135_spill] sm:$0xff] }
 0x1ad   :  { %v4270_v55 = vpack.c.bf16 %v3233_v36, %v3225_v23  ;;  %v4398_v27 = vpack.c.bf16 %v3235_v9, %v3227_v56  ;;  %v4272_v58 = vpack.c.bf16 %v3232_v60, %v3224_v12  ;;  %v4400_v62 = vpack.c.bf16 %v3234_v35, %v3226_v24  ;;  %v10969_v23 = vld [vmem:[#allocation55_spill] sm:$0xff]  ;;  %v7211_v12 = vpop.permute.xlu0 %1096 }
 0x1ae   :  { %v2731_v40 = vadd.f32 %v10963_v39, %v1963_v17  ;;  %v1968_v30 = vadd.f32 %v1456_v1, %v10966_v54  ;;  %v2728_v46 = vadd.f32 %v10963_v39, %v1960_v33  ;;  %v2730_v4 = vadd.f32 %v10963_v39, %v1962_v3  ;;  %10971 = vst [vmem:[#allocation18_spill] sm:$0xff] %v7211_v12  ;;  %v4853_v1 = vld [vmem:[%s10039_s1 + $0x180] sm:$0xff]  ;;  %v10972_v17 = vld [vmem:[#allocation7_spill] sm:$0xff]  ;;  %v10973_v3 = vld [vmem:[#allocation220_spill] sm:$0xff] }
 0x1af   :  { %4809 = vset.pattern.permute.xlu1 %v10536_v28  ;;  %4271 = vmatprep.subr.bf16.mxu0 %v4270_v55  ;;  %v1970_v5 = vadd.f32 %v1458_v16, %v10967_v20  ;;  %v7205_v32 = vadd.f32 %v1465_v51, %v10968_v18  ;;  %v7209_v56 = vrot.slane %v7194_v44, %v10969_v23  ;;  %v3241_v18 = vmax.f32 %v2729_v63, 0.0  ;;  %v10978_v39 = vld [vmem:[#allocation141_spill] sm:$0xff] }
 0x1b0   :  { %4399 = vmatprep.subr.bf16.mxu1 %v4398_v27  ;;  %1152 = vperm.xlu1 %4809, %v4853_v1   ;;  %v7217_v33 = vadd.f32 %v1467_v47, %v10972_v17  ;;  %v7220_v20 = vadd.f32 %v1464_v31, %v10973_v3  ;;  %v1466_v51 = vmul.f32 %v10669_v11, %v7051_v43  ;;  %v7230_v47 = vpop.permute.xlu1 %2381  ;;  %v3243_v9 = vmax.f32 %v2731_v40, 0.0 }
 0x1b1   :  { %10970 = vst [vmem:[#allocation16_spill] sm:$0xff] %v7209_v56  ;;  %4273 = vmatpush1.bf16.msra.mxu0 %v4272_v58  ;;  %4401 = vmatpush1.bf16.msra.mxu1 %v4400_v62  ;;  %v1489_v16 = vmul.f32 %v5417_v49, %v7086_v50  ;;  %v1491_v24 = vmul.f32 %v5431_v48, %v7086_v50  ;;  %10974 = vst [vmem:[#allocation121_spill] sm:$0xff] %v7230_v47  ;;  %v3240_v60 = vmax.f32 %v2728_v46, 0.0  ;;  %v7253_v23 = vpop.permute.xlu0 %1108 }
 0x1b2   :  { %v1488_v36 = vmul.f32 %v5435_v26, %v7086_v50  ;;  %v3242_v35 = vmax.f32 %v2730_v4, 0.0  ;;  %v1490_v31 = vmul.f32 %v10669_v11, %v7086_v50  ;;  %3648 = vmatprep.mubr.f32.mxu0 %v7209_v56  ;;  %3790 = vmatprep.mubr.f32.mxu1 %v7209_v56  ;;  %v2737_v63 = vadd.f32 %v7230_v47, %v7161_v42 }
 0x1b3   :  { %v2739_v55 = vadd.f32 %v7230_v47, %v1971_v53  ;;  %v2736_v27 = vadd.f32 %v7230_v47, %v1968_v30  ;;  %v2738_v58 = vadd.f32 %v7230_v47, %v1970_v5  ;;  %v1473_v62 = vmul.f32 %v5417_v49, %v7196_v37  ;;  %v4854_v53 = vld [vmem:[%s10039_s1 + $0x170] sm:$0xff]  ;;  %10975 = vst [vmem:[#allocation122_spill] sm:$0xff] %v7253_v23 }
 0x1b4   :  { %4810 = vset.pattern.permute.xlu1 %v10521_v8  ;;  %v1497_v40 = vmul.f32 %v5417_v49, %v7132_v7  ;;  %v1499_v54 = vmul.f32 %v5431_v48, %v7132_v7  ;;  %v1496_v42 = vmul.f32 %v5435_v26, %v7132_v7  ;;  %v3249_v5 = vmax.f32 %v2737_v63, 0.0  ;;  %v7263_v43 = vpop.permute.xlu1 %1072 }
 0x1b5   :  { %2465 = vperm.xlu1 %4810, %v4854_v53   ;;  %v3251_v30 = vmax.f32 %v2739_v55, 0.0  ;;  %v3248_v46 = vmax.f32 %v2736_v27, 0.0  ;;  %v3250_v4 = vmax.f32 %v2738_v58, 0.0  ;;  %v1475_v1 = vmul.f32 %v5431_v48, %v7196_v37  ;;  %10976 = vst [vmem:[#allocation124_spill] sm:$0xff] %v7263_v43  ;;  %v10977_v53 = vld [vmem:[#allocation221_spill] sm:$0xff] }
 0x1b6   :  { %v1472_v17 = vmul.f32 %v5435_v26, %v7196_v37  ;;  %v1474_v3 = vmul.f32 %v10669_v11, %v7196_v37  ;;  %v1498_v50 = vmul.f32 %v10669_v11, %v7132_v7  ;;  %v4274_v63 = vpack.c.bf16 %v3249_v5, %v3241_v18  ;;  %v10981_v7 = vld [vmem:[#allocation144_spill] sm:$0xff]  ;;  %v10982_v18 = vld [vmem:[#allocation229_spill] sm:$0xff] }
 0x1b7   :  { %v4402_v55 = vpack.c.bf16 %v3251_v30, %v3243_v9  ;;  %v4276_v27 = vpack.c.bf16 %v3248_v46, %v3240_v60  ;;  %v4404_v58 = vpack.c.bf16 %v3250_v4, %v3242_v35  ;;  %v1978_v47 = vadd.f32 %v1466_v51, %v10977_v53  ;;  %v10987_v60 = vld [vmem:[#allocation139_spill] sm:$0xff]  ;;  %v10989_v5 = vld [vmem:[#allocation232_spill] sm:$0xff]  ;;  %v7297_v46 = vpop.permute.xlu0 %1112 }
 0x1b8   :  { %v7267_v56 = vadd.f32 %v1489_v16, %v10978_v39  ;;  %v7270_v38 = vadd.f32 %v1491_v24, %v10979_v2  ;;  %v7273_v6 = vadd.f32 %v1488_v36, %v10980_v41  ;;  %4275 = vmatprep.subr.bf16.mxu0 %v4274_v63  ;;  %v7277_v37 = vadd.f32 %v1490_v31, %v10981_v7  ;;  %v10983_v39 = vld [vmem:[#allocation137_spill] sm:$0xff]  ;;  %v10984_v16 = vld [vmem:[#allocation230_spill] sm:$0xff]  ;;  %v10985_v41 = vld [vmem:[#allocation231_spill] sm:$0xff]  ;;  %v7299_v4 = vpop.permute.xlu1 %2385 }
 0x1b9   :  { %2469 = vperm.xlu1 %4810, %v7153_v14   ;;  %v7280_v9 = vadd.f32 %v1497_v40, %v10982_v18  ;;  %v1521_v51 = vmul.f32 %v5417_v49, %v7179_v25  ;;  %4403 = vmatprep.subr.bf16.mxu1 %v4402_v55  ;;  %v1985_v2 = vadd.f32 %v1473_v62, %v10983_v39  ;;  %v10986_v14 = vld [vmem:[#allocation138_spill] sm:$0xff]  ;;  %v10988_v31 = vld [vmem:[#allocation140_spill] sm:$0xff] }
 0x1ba   :  { %4277 = vmatpush1.bf16.msra.mxu0 %v4276_v27  ;;  %v7286_v24 = vadd.f32 %v1499_v54, %v10984_v16  ;;  %v7289_v36 = vadd.f32 %v1496_v42, %v10985_v41  ;;  %4405 = vmatpush1.bf16.msra.mxu1 %v4404_v58  ;;  %v1987_v7 = vadd.f32 %v1475_v1, %v10986_v14  ;;  %v10993_v63 = vld [vmem:[#allocation60_spill] sm:$0xff] }
 0x1bb   :  { %v1984_v35 = vadd.f32 %v1472_v17, %v10987_v60  ;;  %v1986_v40 = vadd.f32 %v1474_v3, %v10988_v31  ;;  %v7295_v30 = vadd.f32 %v1498_v50, %v10989_v5  ;;  %10990 = vst [vmem:[#allocation125_spill] sm:$0xff] %v7297_v46  ;;  %10991 = vst [vmem:[#allocation79_spill] sm:$0xff] %v7299_v4  ;;  %v10992_v50 = vld [vmem:[#allocation157_spill] sm:$0xff]  ;;  %v4855_v58 = vld [vmem:[%s10039_s1 + $0x198] sm:$0xff]  ;;  %v7349_v22 = vpop.permute.xlu0 %1124 }
 0x1bc   :  { %v1481_v62 = vmul.f32 %v5417_v49, %v7263_v43  ;;  %v1483_v54 = vmul.f32 %v5431_v48, %v7263_v43  ;;  %v1480_v42 = vmul.f32 %v5435_v26, %v7263_v43  ;;  %v1482_v1 = vmul.f32 %v10669_v11, %v7263_v43  ;;  %v7339_v14 = vpop.permute.xlu1 %2389  ;;  %v10997_v31 = vld [vmem:[#allocation225_spill] sm:$0xff]  ;;  %v10998_v5 = vld [vmem:[#allocation226_spill] sm:$0xff]  ;;  %11000 = vst [vmem:[#allocation13_spill] sm:$0xff] %v7349_v22 }
 0x1bd   :  { %4811 = vset.pattern.permute.xlu1 %v10536_v28  ;;  %v7311_v17 = vadd.f32 %v1521_v51, %v10992_v50  ;;  %v1523_v3 = vmul.f32 %v5431_v48, %v7179_v25  ;;  %v7317_v55 = vrot.slane %v7194_v44, %v10993_v63  ;;  %v1520_v27 = vmul.f32 %v5435_v26, %v7179_v25  ;;  %v10999_v50 = vld [vmem:[#allocation227_spill] sm:$0xff] }
 0x1be   :  { %1164 = vperm.xlu1 %4811, %v4855_v58   ;;  %v2745_v53 = vadd.f32 %v7299_v4, %v7205_v32  ;;  %v2747_v18 = vadd.f32 %v7299_v4, %v7217_v33  ;;  %v2744_v51 = vadd.f32 %v7299_v4, %v7220_v20  ;;  %v2746_v44 = vadd.f32 %v7299_v4, %v1978_v47  ;;  %v10996_v33 = vld [vmem:[#allocation224_spill] sm:$0xff] }
 0x1bf   :  { %10994 = vst [vmem:[#allocation83_spill] sm:$0xff] %v7317_v55  ;;  %v1522_v39 = vmul.f32 %v10669_v11, %v7179_v25  ;;  %v1529_v16 = vmul.f32 %v5417_v49, %v7211_v12  ;;  %v1531_v41 = vmul.f32 %v5431_v48, %v7211_v12  ;;  %v1528_v32 = vmul.f32 %v5435_v26, %v7211_v12 }
 0x1c0   :  { %10995 = vst [vmem:[#allocation127_spill] sm:$0xff] %v7339_v14  ;;  %v1993_v60 = vadd.f32 %v1481_v62, %v10996_v33  ;;  %v1995_v20 = vadd.f32 %v1483_v54, %v10997_v31  ;;  %v1992_v47 = vadd.f32 %v1480_v42, %v10998_v5  ;;  %v1994_v63 = vadd.f32 %v1482_v1, %v10999_v50  ;;  %v4856_v42 = vld [vmem:[%s10039_s1 + $0x188] sm:$0xff] }
 0x1c1   :  { %v2753_v58 = vadd.f32 %v7339_v14, %v1985_v2  ;;  %v2755_v25 = vadd.f32 %v7339_v14, %v1987_v7  ;;  %v2752_v43 = vadd.f32 %v7339_v14, %v1984_v35  ;;  %v2754_v4 = vadd.f32 %v7339_v14, %v1986_v40  ;;  %v11001_v35 = vld [vmem:[#allocation223_spill] sm:$0xff] }
 0x1c2   :  { %4812 = vset.pattern.permute.xlu1 %v10521_v8  ;;  %v3257_v52 = vmax.f32 %v2745_v53, 0.0  ;;  %v3259_v62 = vmax.f32 %v2747_v18, 0.0  ;;  %v3256_v33 = vmax.f32 %v2744_v51, 0.0  ;;  %v3258_v54 = vmax.f32 %v2746_v44, 0.0  ;;  %v7359_v18 = vpop.permute.xlu1 %1084 }
 0x1c3   :  { %2477 = vperm.xlu1 %4812, %v4856_v42   ;;  %v3265_v2 = vmax.f32 %v2753_v58, 0.0  ;;  %v3267_v1 = vmax.f32 %v2755_v25, 0.0  ;;  %v3264_v7 = vmax.f32 %v2752_v43, 0.0  ;;  %v3266_v31 = vmax.f32 %v2754_v4, 0.0  ;;  %11002 = vst [vmem:[#allocation126_spill] sm:$0xff] %v7359_v18  ;;  %v11004_v25 = vld [vmem:[#allocation159_spill] sm:$0xff] }
 0x1c4   :  { %v2761_v5 = vadd.f32 %v11001_v35, %v1993_v60  ;;  %v2763_v40 = vadd.f32 %v11001_v35, %v1995_v20  ;;  %v2760_v50 = vadd.f32 %v11001_v35, %v1992_v47  ;;  %v2762_v53 = vadd.f32 %v11001_v35, %v1994_v63  ;;  %v11006_v47 = vld [vmem:[#allocation160_spill] sm:$0xff]  ;;  %v11007_v63 = vld [vmem:[#allocation237_spill] sm:$0xff] }
 0x1c5   :  { %v4278_v51 = vpack.c.bf16 %v3265_v2, %v3257_v52  ;;  %v4406_v44 = vpack.c.bf16 %v3267_v1, %v3259_v62  ;;  %v4280_v14 = vpack.c.bf16 %v3264_v7, %v3256_v33  ;;  %v4408_v57 = vpack.c.bf16 %v3266_v31, %v3258_v54  ;;  %v4857_v62 = vld [vmem:[%s10039_s1 + $0x1a8] sm:$0xff]  ;;  %v11010_v33 = vld [vmem:[#allocation239_spill] sm:$0xff]  ;;  %v11018_v35 = vld [vmem:[#allocation169_spill] sm:$0xff] }
 0x1c6   :  { %v7362_v42 = vadd.f32 %v1523_v3, %v11003_v61  ;;  %v7365_v43 = vadd.f32 %v1520_v27, %v11004_v25  ;;  %v1530_v4 = vmul.f32 %v10669_v11, %v7211_v12  ;;  %v1553_v60 = vmul.f32 %v5417_v49, %v7253_v23  ;;  %v11008_v61 = vld [vmem:[#allocation238_spill] sm:$0xff]  ;;  %v7381_v27 = vpop.permute.xlu0 %1128  ;;  %v11013_v25 = vld [vmem:[#allocation165_spill] sm:$0xff] }
 0x1c7   :  { %v11005_v20 = vmov 0   ;;  %4279 = vmatprep.subr.bf16.mxu0 %v4278_v51  ;;  %v7373_v52 = vadd.f32 %v1522_v39, %v11006_v47  ;;  %v7376_v58 = vadd.f32 %v1529_v16, %v11007_v63  ;;  %v7379_v3 = vadd.f32 %v1531_v41, %v11008_v61  ;;  %11009 = vst [vmem:[#allocation213_spill] sm:$0xff] %v7381_v27  ;;  %v7393_v31 = vpop.permute.xlu1 %2397  ;;  %v11012_v51 = vld [vmem:[#allocation240_spill] sm:$0xff] }
 0x1c8   :  { %4813 = vset.pattern.permute.xlu1 %v11005_v20  ;;  %4407 = vmatprep.subr.bf16.mxu1 %v4406_v44  ;;  %v7387_v54 = vadd.f32 %v1528_v32, %v11010_v33  ;;  %v1555_v39 = vmul.f32 %v5431_v48, %v7253_v23  ;;  %v1552_v16 = vmul.f32 %v5435_v26, %v7253_v23  ;;  %v3273_v41 = vmax.f32 %v2761_v5, 0.0 }
 0x1c9   :  { %353 = vperm.xlu1 %4813, %v4857_v62   ;;  %4281 = vmatpush1.bf16.msra.mxu0 %v4280_v14  ;;  %v3275_v2 = vmax.f32 %v2763_v40, 0.0  ;;  %v3272_v1 = vmax.f32 %v2760_v50, 0.0  ;;  %v3274_v7 = vmax.f32 %v2762_v53, 0.0  ;;  %11011 = vst [vmem:[#allocation214_spill] sm:$0xff] %v7393_v31  ;;  %v7396_v44 = vadd.f32 %v1530_v4, %v11012_v51 }
 0x1ca   :  { %4409 = vmatpush1.bf16.msra.mxu1 %v4408_v57  ;;  %v7399_v32 = vadd.f32 %v1553_v60, %v11013_v25  ;;  %v1554_v47 = vmul.f32 %v10669_v11, %v7253_v23  ;;  %v1561_v63 = vmul.f32 %v5417_v49, %v7297_v46  ;;  %v2769_v57 = vadd.f32 %v7393_v31, %v7267_v56 }
 0x1cb   :  { %v2771_v14 = vadd.f32 %v7393_v31, %v7270_v38  ;;  %v2768_v5 = vadd.f32 %v7393_v31, %v7273_v6  ;;  %v2770_v40 = vadd.f32 %v7393_v31, %v7277_v37  ;;  %v1505_v50 = vmul.f32 %v5417_v49, %v7359_v18  ;;  %v7422_v37 = vpop.permute.xlu0 %1140 }
 0x1cc   :  { %11014 = vst [vmem:[#allocation130_spill] sm:$0xff] %v7399_v32  ;;  %v1507_v53 = vmul.f32 %v5431_v48, %v7359_v18  ;;  %v1563_v56 = vmul.f32 %v5431_v48, %v7297_v46  ;;  %v1560_v38 = vmul.f32 %v5435_v26, %v7297_v46  ;;  %v3281_v4 = vmax.f32 %v2769_v57, 0.0  ;;  %11015 = vst [vmem:[#allocation131_spill] sm:$0xff] %v7422_v37  ;;  %v7432_v12 = vpop.permute.xlu1 %1088 }
 0x1cd   :  { %4814 = vset.pattern.permute.xlu1 %v10536_v28  ;;  %v3283_v6 = vmax.f32 %v2771_v14, 0.0  ;;  %v3280_v60 = vmax.f32 %v2768_v5, 0.0  ;;  %v3282_v61 = vmax.f32 %v2770_v40, 0.0  ;;  %v1504_v33 = vmul.f32 %v5435_v26, %v7359_v18  ;;  %11016 = vst [vmem:[#allocation132_spill] sm:$0xff] %v7432_v12  ;;  %v11017_v40 = vld [vmem:[#allocation168_spill] sm:$0xff] }
 0x1ce   :  { %1172 = vperm.xlu1 %4814, %v4857_v62   ;;  %v1506_v51 = vmul.f32 %v10669_v11, %v7359_v18  ;;  %v1562_v25 = vmul.f32 %v10669_v11, %v7297_v46  ;;  %v1585_v23 = vmul.f32 %v5417_v49, %v7349_v22  ;;  %v4282_v62 = vpack.c.bf16 %v3281_v4, %v3273_v41 }
 0x1cf   :  { %v4410_v57 = vpack.c.bf16 %v3283_v6, %v3275_v2  ;;  %v4284_v14 = vpack.c.bf16 %v3280_v60, %v3272_v1  ;;  %v4412_v5 = vpack.c.bf16 %v3282_v61, %v3274_v7  ;;  %v7435_v31 = vadd.f32 %v1555_v39, %v11017_v40  ;;  %v11025_v2 = vld [vmem:[#allocation248_spill] sm:$0xff]  ;;  %v11033_v6 = vld [vmem:[#allocation175_spill] sm:$0xff]  ;;  %v7468_v61 = vpop.permute.xlu0 %1144 }
 0x1d0   :  { %v7438_v32 = vadd.f32 %v1552_v16, %v11018_v35  ;;  %v7441_v18 = vadd.f32 %v1554_v47, %v11019_v59  ;;  %v7444_v46 = vadd.f32 %v1561_v63, %v11021_v21  ;;  %4283 = vmatprep.subr.bf16.mxu0 %v4282_v62  ;;  %v7448_v41 = vadd.f32 %v1563_v56, %v11023_v15  ;;  %v4858_v59 = vld [vmem:[%s10039_s1 + $0x190] sm:$0xff]  ;;  %v11027_v21 = vld [vmem:[#allocation146_spill] sm:$0xff]  ;;  %v11029_v47 = vld [vmem:[#allocation148_spill] sm:$0xff] }
 0x1d1   :  { %v7451_v1 = vadd.f32 %v1560_v38, %v11025_v2  ;;  %v1587_v39 = vmul.f32 %v5431_v48, %v7349_v22  ;;  %4411 = vmatprep.subr.bf16.mxu1 %v4410_v57  ;;  %v2017_v35 = vadd.f32 %v1505_v50, %v11027_v21  ;;  %v11028_v16 = vld [vmem:[#allocation147_spill] sm:$0xff]  ;;  %v2016_v63 = vadd.f32 %v1504_v33, %v11029_v47  ;;  %v11030_v15 = vld [vmem:[#allocation153_spill] sm:$0xff]  ;;  %v11031_v38 = vld [vmem:[#allocation250_spill] sm:$0xff]  ;;  %v7470_v62 = vpop.permute.xlu1 %2401 }
 0x1d2   :  { %11020 = vst [vmem:[#allocation133_spill] sm:$0xff] %v7441_v18  ;;  %11022 = vst [vmem:[#allocation215_spill] sm:$0xff] %v7444_v46  ;;  %4815 = vset.pattern.permute.xlu1 %v10521_v8  ;;  %v2019_v7 = vadd.f32 %v1507_v53, %v11028_v16  ;;  %4285 = vmatpush1.bf16.msra.mxu0 %v4284_v14  ;;  %v2018_v56 = vadd.f32 %v1506_v51, %v11030_v15  ;;  %v7501_v21 = vld [vmem:[%s10039_s1 + $0x1b0] sm:$0xff]  ;;  %v11040_v47 = vld [vmem:[#allocation233_spill] sm:$0xff] }
 0x1d3   :  { %11024 = vst [vmem:[#allocation216_spill] sm:$0xff] %v7448_v41  ;;  %11026 = vst [vmem:[#allocation217_spill] sm:$0xff] %v7451_v1  ;;  %2481 = vperm.xlu1 %4815, %v4858_v59   ;;  %4413 = vmatpush1.bf16.msra.mxu1 %v4412_v5  ;;  %v7463_v4 = vadd.f32 %v1562_v25, %v11031_v38  ;;  %v7466_v60 = vadd.f32 %v1585_v23, %v11033_v6  ;;  %v11037_v25 = vld [vmem:[#allocation176_spill] sm:$0xff]  ;;  %v11041_v38 = vld [vmem:[#allocation234_spill] sm:$0xff]  ;;  %v7522_v1 = vpop.permute.xlu0 %1156 }
 0x1d4   :  { %11035 = vst [vmem:[#allocation135_spill] sm:$0xff] %v7468_v61  ;;  %11036 = vst [vmem:[#allocation136_spill] sm:$0xff] %v7470_v62  ;;  %v1513_v50 = vmul.f32 %v5417_v49, %v7432_v12  ;;  %v1515_v53 = vmul.f32 %v5431_v48, %v7432_v12  ;;  %v1512_v33 = vmul.f32 %v5435_v26, %v7432_v12 }
 0x1d5   :  { %11032 = vst [vmem:[#allocation218_spill] sm:$0xff] %v7463_v4  ;;  %11034 = vst [vmem:[#allocation134_spill] sm:$0xff] %v7466_v60  ;;  %v1514_v51 = vmul.f32 %v10669_v11, %v7432_v12  ;;  %v7481_v57 = vadd.f32 %v1587_v39, %v11037_v25  ;;  %v1584_v23 = vmul.f32 %v5435_v26, %v7349_v22  ;;  %v11042_v25 = vld [vmem:[#allocation235_spill] sm:$0xff]  ;;  %v11043_v12 = vld [vmem:[#allocation236_spill] sm:$0xff] }
 0x1d6   :  { %v1586_v14 = vmul.f32 %v10669_v11, %v7349_v22  ;;  %v1593_v5 = vmul.f32 %v5417_v49, %v7381_v27  ;;  %v2777_v40 = vadd.f32 %v7470_v62, %v7280_v9  ;;  %v2779_v2 = vadd.f32 %v7470_v62, %v7286_v24  ;;  %11044 = vst [vmem:[#allocation7_spill] sm:$0xff] %v7522_v1 }
 0x1d7   :  { %11038 = vst [vmem:[#allocation219_spill] sm:$0xff] %v7481_v57  ;;  %4816 = vset.pattern.permute.xlu1 %v11005_v20  ;;  %v2776_v39 = vadd.f32 %v7470_v62, %v7289_v36  ;;  %v2778_v59 = vadd.f32 %v7470_v62, %v7295_v30  ;;  %v1595_v16 = vmul.f32 %v5431_v48, %v7381_v27  ;;  %v7512_v30 = vpop.permute.xlu1 %2405 }
 0x1d8   :  { %358 = vperm.xlu1 %4816, %v7501_v21   ;;  %v1592_v9 = vmul.f32 %v5435_v26, %v7381_v27  ;;  %v1594_v24 = vmul.f32 %v10669_v11, %v7381_v27  ;;  %v1617_v36 = vmul.f32 %v5417_v49, %v7422_v37  ;;  %11039 = vst [vmem:[#allocation55_spill] sm:$0xff] %v7512_v30  ;;  %v3289_v41 = vmax.f32 %v2777_v40, 0.0 }
 0x1d9   :  { %v2025_v15 = vadd.f32 %v1513_v50, %v11040_v47  ;;  %v2027_v6 = vadd.f32 %v1515_v53, %v11041_v38  ;;  %v2024_v22 = vadd.f32 %v1512_v33, %v11042_v25  ;;  %v2026_v62 = vadd.f32 %v1514_v51, %v11043_v12  ;;  %v4860_v53 = vld [vmem:[%s10039_s1 + $0x1b8] sm:$0xff] }
 0x1da   :  { %v2785_v57 = vadd.f32 %v7512_v30, %v2017_v35  ;;  %v2787_v60 = vadd.f32 %v7512_v30, %v2019_v7  ;;  %v2784_v4 = vadd.f32 %v7512_v30, %v2016_v63  ;;  %v2786_v27 = vadd.f32 %v7512_v30, %v2018_v56  ;;  %v11045_v7 = vld [vmem:[#allocation11_spill] sm:$0xff]  ;;  %v11047_v30 = vld [vmem:[#allocation177_spill] sm:$0xff] }
 0x1db   :  { %v3291_v46 = vmax.f32 %v2779_v2, 0.0  ;;  %v3288_v18 = vmax.f32 %v2776_v39, 0.0  ;;  %v3290_v50 = vmax.f32 %v2778_v59, 0.0  ;;  %v2793_v47 = vadd.f32 %v11045_v7, %v2025_v15  ;;  %v7532_v2 = vpop.permute.xlu1 %1100  ;;  %v11049_v15 = vld [vmem:[#allocation255_spill] sm:$0xff] }
 0x1dc   :  { %363 = vperm.xlu1 %4816, %v4860_v53   ;;  %v3297_v12 = vmax.f32 %v2785_v57, 0.0  ;;  %v3299_v33 = vmax.f32 %v2787_v60, 0.0  ;;  %v3296_v35 = vmax.f32 %v2784_v4, 0.0  ;;  %v3298_v51 = vmax.f32 %v2786_v27, 0.0  ;;  %11046 = vst [vmem:[#allocation220_spill] sm:$0xff] %v7532_v2  ;;  %v11048_v4 = vld [vmem:[#allocation178_spill] sm:$0xff] }
 0x1dd   :  { %v2795_v63 = vadd.f32 %v11045_v7, %v2027_v6  ;;  %v2792_v56 = vadd.f32 %v11045_v7, %v2024_v22  ;;  %v1619_v40 = vmul.f32 %v5431_v48, %v7422_v37  ;;  %v7535_v57 = vadd.f32 %v1584_v23, %v11047_v30  ;;  %v11051_v23 = vld [vmem:[#allocation257_spill] sm:$0xff] }
 0x1de   :  { %v4286_v39 = vpack.c.bf16 %v3297_v12, %v3289_v41  ;;  %v4414_v59 = vpack.c.bf16 %v3299_v33, %v3291_v46  ;;  %v4288_v38 = vpack.c.bf16 %v3296_v35, %v3288_v18  ;;  %v4416_v25 = vpack.c.bf16 %v3298_v51, %v3290_v50  ;;  %v11050_v46 = vld [vmem:[#allocation256_spill] sm:$0xff]  ;;  %v11053_v50 = vld [vmem:[#allocation259_spill] sm:$0xff]  ;;  %v11054_v33 = vld [vmem:[#allocation189_spill] sm:$0xff] }
 0x1df   :  { %v7538_v27 = vadd.f32 %v1586_v14, %v11048_v4  ;;  %v1616_v60 = vmul.f32 %v5435_v26, %v7422_v37  ;;  %v1618_v22 = vmul.f32 %v10669_v11, %v7422_v37  ;;  %v7546_v41 = vadd.f32 %v1593_v5, %v11049_v15  ;;  %v7554_v14 = vpop.permute.xlu0 %1160  ;;  %v7566_v4 = vpop.permute.xlu1 %2413  ;;  %v11065_v37 = vld [vmem:[#allocation265_spill] sm:$0xff] }
 0x1e0   :  { %4817 = vset.pattern.permute.xlu1 %v10536_v28  ;;  %4287 = vmatprep.subr.bf16.mxu0 %v4286_v39  ;;  %v7549_v18 = vadd.f32 %v1595_v16, %v11050_v46  ;;  %v7552_v30 = vadd.f32 %v1592_v9, %v11051_v23  ;;  %11052 = vst [vmem:[#allocation221_spill] sm:$0xff] %v7554_v14  ;;  %v3305_v5 = vmax.f32 %v2793_v47, 0.0  ;;  %v3307_v16 = vmax.f32 %v2795_v63, 0.0  ;;  %v11055_v39 = vld [vmem:[#allocation190_spill] sm:$0xff] }
 0x1e1   :  { %4415 = vmatprep.subr.bf16.mxu1 %v4414_v59  ;;  %1180 = vperm.xlu1 %4817, %v4860_v53   ;;  %v2794_v6 = vadd.f32 %v11045_v7, %v2026_v62  ;;  %v7558_v12 = vadd.f32 %v1594_v24, %v11053_v50  ;;  %v7561_v35 = vadd.f32 %v1617_v36, %v11054_v33  ;;  %v3304_v51 = vmax.f32 %v2792_v56, 0.0  ;;  %v11057_v59 = vld [vmem:[#allocation192_spill] sm:$0xff]  ;;  %v11059_v62 = vld [vmem:[#allocation193_spill] sm:$0xff] }
 0x1e2   :  { %4289 = vmatpush1.bf16.msra.mxu0 %v4288_v38  ;;  %4417 = vmatpush1.bf16.msra.mxu1 %v4416_v25  ;;  %v7564_v9 = vadd.f32 %v1619_v40, %v11055_v39  ;;  %11056 = vst [vmem:[#allocation141_spill] sm:$0xff] %v7566_v4  ;;  %v7569_v53 = vadd.f32 %v1616_v60, %v11057_v59 }
 0x1e3   :  { %v7572_v15 = vadd.f32 %v1618_v22, %v11059_v62  ;;  %v1625_v24 = vmul.f32 %v5417_v49, %v7468_v61  ;;  %v1627_v36 = vmul.f32 %v5431_v48, %v7468_v61  ;;  %v2801_v47 = vadd.f32 %v7566_v4, %v7311_v17  ;;  %v7598_v23 = vpop.permute.xlu0 %1168 }
 0x1e4   :  { %11058 = vst [vmem:[#allocation142_spill] sm:$0xff] %v7569_v53  ;;  %v2803_v63 = vadd.f32 %v7566_v4, %v7362_v42  ;;  %v2800_v56 = vadd.f32 %v7566_v4, %v7365_v43  ;;  %v2802_v40 = vadd.f32 %v7566_v4, %v7373_v52  ;;  %v3306_v38 = vmax.f32 %v2794_v6, 0.0  ;;  %v4861_v43 = vld [vmem:[%s10039_s1 + $0x1a0] sm:$0xff]  ;;  %11061 = vst [vmem:[#allocation144_spill] sm:$0xff] %v7598_v23 }
 0x1e5   :  { %11060 = vst [vmem:[#allocation143_spill] sm:$0xff] %v7572_v15  ;;  %4818 = vset.pattern.permute.xlu1 %v10521_v8  ;;  %3649 = vmatmul.mubr.f32.vlgmr.msra.gmra.mrb[0].mxu0 %v7317_v55  ;;  %v1537_v25 = vmul.f32 %v5417_v49, %v7532_v2  ;;  %v1624_v17 = vmul.f32 %v5435_v26, %v7468_v61  ;;  %v3313_v52 = vmax.f32 %v2801_v47, 0.0  ;;  %v11067_v4 = vld [vmem:[#allocation161_spill] sm:$0xff] }
 0x1e6   :  { %v1626_v42 = vmul.f32 %v10669_v11, %v7468_v61  ;;  %2489 = vperm.xlu1 %4818, %v4861_v43   ;;  %v3315_v60 = vmax.f32 %v2803_v63, 0.0  ;;  %v3312_v22 = vmax.f32 %v2800_v56, 0.0  ;;  %3791 = vmatmul.mubr.f32.vlgmr.msra.gmra.mrb[0].mxu1 %v7317_v55  ;;  %v3314_v46 = vmax.f32 %v2802_v40, 0.0  ;;  %v7608_v59 = vpop.permute.xlu1 %1104  ;;  %v11063_v43 = vld [vmem:[#allocation264_spill] sm:$0xff] }
 0x1e7   :  { %v1539_v6 = vmul.f32 %v5431_v48, %v7532_v2  ;;  %v1536_v50 = vmul.f32 %v5435_v26, %v7532_v2  ;;  %v1538_v33 = vmul.f32 %v10669_v11, %v7532_v2  ;;  %v1649_v39 = vmul.f32 %v5417_v49, %v7522_v1  ;;  %11062 = vst [vmem:[#allocation229_spill] sm:$0xff] %v7608_v59 }
 0x1e8   :  { %v4290_v62 = vpack.c.bf16 %v3313_v52, %v3305_v5  ;;  %v4418_v47 = vpack.c.bf16 %v3315_v60, %v3307_v16  ;;  %v4292_v63 = vpack.c.bf16 %v3312_v22, %v3304_v51  ;;  %v4420_v56 = vpack.c.bf16 %v3314_v46, %v3306_v38  ;;  %v11071_v38 = vld [vmem:[#allocation163_spill] sm:$0xff]  ;;  %v11072_v60 = vld [vmem:[#allocation164_spill] sm:$0xff] }
 0x1e9   :  { %v1545_v40 = vmul.f32 %v5417_v49, %v7608_v59  ;;  %v7613_v61 = vadd.f32 %v1625_v24, %v11063_v43  ;;  %v7616_v55 = vadd.f32 %v1627_v36, %v11065_v37  ;;  %v1651_v2 = vmul.f32 %v5431_v48, %v7522_v1  ;;  %v7631_v37 = vld [vmem:[%s10039_s1 + $0x1c0] sm:$0xff]  ;;  %v11070_v24 = vld [vmem:[#allocation162_spill] sm:$0xff]  ;;  %v11077_v46 = vld [vmem:[#allocation243_spill] sm:$0xff] }
 0x1ea   :  { %4819 = vset.pattern.permute.xlu1 %v11005_v20  ;;  %4291 = vmatprep.subr.bf16.mxu0 %v4290_v62  ;;  %v2049_v5 = vadd.f32 %v1537_v25, %v11067_v4  ;;  %v7623_v16 = vadd.f32 %v1624_v17, %v6805_v13  ;;  %v7626_v51 = vadd.f32 %v1626_v42, %v6861_v34  ;;  %v7637_v25 = vpop.permute.xlu0 %1176  ;;  %v11074_v17 = vld [vmem:[#allocation12_spill] sm:$0xff] }
 0x1eb   :  { %11064 = vst [vmem:[#allocation137_spill] sm:$0xff] %v7613_v61  ;;  %11066 = vst [vmem:[#allocation230_spill] sm:$0xff] %v7616_v55  ;;  %4419 = vmatprep.subr.bf16.mxu1 %v4418_v47  ;;  %368 = vperm.xlu1 %4819, %v7631_v37   ;;  %v2051_v36 = vadd.f32 %v1539_v6, %v11070_v24  ;;  %v2048_v52 = vadd.f32 %v1536_v50, %v11071_v38  ;;  %v7646_v22 = vpop.permute.xlu1 %2417 }
 0x1ec   :  { %11068 = vst [vmem:[#allocation231_spill] sm:$0xff] %v7623_v16  ;;  %11069 = vst [vmem:[#allocation138_spill] sm:$0xff] %v7626_v51  ;;  %v2050_v4 = vadd.f32 %v1538_v33, %v11072_v60  ;;  %4293 = vmatpush1.bf16.msra.mxu0 %v4292_v63  ;;  %4421 = vmatpush1.bf16.msra.mxu1 %v4420_v56  ;;  %v1547_v13 = vmul.f32 %v5431_v48, %v7608_v59  ;;  %v11078_v33 = vld [vmem:[#allocation200_spill] sm:$0xff] }
 0x1ed   :  { %11073 = vst [vmem:[#allocation139_spill] sm:$0xff] %v7637_v25  ;;  %v1544_v34 = vmul.f32 %v5435_v26, %v7608_v59  ;;  %v7644_v42 = vadd.f32 %v1649_v39, %v11074_v17  ;;  %11076 = vst [vmem:[#allocation232_spill] sm:$0xff] %v7646_v22  ;;  %v2057_v6 = vadd.f32 %v1545_v40, %v11077_v46  ;;  %v11080_v17 = vld [vmem:[#allocation244_spill] sm:$0xff] }
 0x1ee   :  { %v1546_v50 = vmul.f32 %v10669_v11, %v7608_v59  ;;  %v7652_v62 = vadd.f32 %v1651_v2, %v11078_v33  ;;  %v1648_v47 = vmul.f32 %v5435_v26, %v7522_v1  ;;  %v1650_v63 = vmul.f32 %v10669_v11, %v7522_v1  ;;  %v4863_v2 = vld [vmem:[%s10039_s1 + $0x1c8] sm:$0xff]  ;;  %v11081_v33 = vld [vmem:[#allocation245_spill] sm:$0xff]  ;;  %v7687_v51 = vpop.permute.xlu0 %1184 }
 0x1ef   :  { %11075 = vst [vmem:[#allocation140_spill] sm:$0xff] %v7644_v42  ;;  %v1657_v39 = vmul.f32 %v5417_v49, %v7554_v14  ;;  %v1659_v56 = vmul.f32 %v5431_v48, %v7554_v14  ;;  %v1656_v40 = vmul.f32 %v5435_v26, %v7554_v14  ;;  %373 = vperm.xlu1 %4819, %v4863_v2   ;;  %v11084_v42 = vld [vmem:[#allocation90_spill] sm:$0xff]  ;;  %11085 = vst [vmem:[#allocation224_spill] sm:$0xff] %v7687_v51 }
 0x1f0   :  { %11079 = vst [vmem:[#allocation157_spill] sm:$0xff] %v7652_v62  ;;  %v2809_v43 = vadd.f32 %v7646_v22, %v7376_v58  ;;  %v2811_v24 = vadd.f32 %v7646_v22, %v7379_v3  ;;  %v2808_v38 = vadd.f32 %v7646_v22, %v7387_v54  ;;  %v2810_v60 = vadd.f32 %v7646_v22, %v7396_v44  ;;  %v7681_v58 = vpop.permute.xlu1 %2421  ;;  %v11083_v62 = vld [vmem:[#allocation10_spill] sm:$0xff] }
 0x1f1   :  { %v2059_v46 = vadd.f32 %v1547_v13, %v11080_v17  ;;  %v2056_v1 = vadd.f32 %v1544_v34, %v11081_v33  ;;  %v1658_v59 = vmul.f32 %v10669_v11, %v7554_v14  ;;  %v1673_v7 = vmul.f32 %v5417_v49, %v7598_v23  ;;  %11082 = vst [vmem:[#allocation60_spill] sm:$0xff] %v7681_v58 }
 0x1f2   :  { %v7684_v3 = vadd.f32 %v11083_v62, %v2057_v6  ;;  %v2058_v54 = vadd.f32 %v1546_v50, %v11084_v42  ;;  %v1675_v44 = vmul.f32 %v5431_v48, %v7598_v23  ;;  %v1672_v13 = vmul.f32 %v5435_v26, %v7598_v23 }
 0x1f3   :  { %v2817_v34 = vadd.f32 %v7681_v58, %v2049_v5  ;;  %v2819_v17 = vadd.f32 %v7681_v58, %v2051_v36  ;;  %v2816_v33 = vadd.f32 %v7681_v58, %v2048_v52  ;;  %v2818_v14 = vadd.f32 %v7681_v58, %v2050_v4  ;;  %4820 = vset.pattern.permute.xlu1 %v10536_v28  ;;  %v11131_v58 = vld [vmem:[#allocation252_spill] sm:$0xff] }
 0x1f4   :  { %v3321_v6 = vmax.f32 %v2809_v43, 0.0  ;;  %v3323_v42 = vmax.f32 %v2811_v24, 0.0  ;;  %v3320_v50 = vmax.f32 %v2808_v38, 0.0  ;;  %v3322_v22 = vmax.f32 %v2810_v60, 0.0  ;;  %1188 = vperm.xlu1 %4820, %v4863_v2   ;;  %v7703_v4 = vpop.permute.xlu1 %1116  ;;  %v7705_v2 = vpop.permute.xlu0 %1192 }
 0x1f5   :  { %v3329_v16 = vmax.f32 %v2817_v34, 0.0  ;;  %v3331_v55 = vmax.f32 %v2819_v17, 0.0  ;;  %v3328_v61 = vmax.f32 %v2816_v33, 0.0  ;;  %v3330_v15 = vmax.f32 %v2818_v14, 0.0  ;;  %11086 = vst [vmem:[#allocation225_spill] sm:$0xff] %v7703_v4  ;;  %11087 = vst [vmem:[#allocation226_spill] sm:$0xff] %v7705_v2 }
 0x1f6   :  { %v2827_v53 = vadd.f32 %v11083_v62, %v2059_v46  ;;  %v2824_v5 = vadd.f32 %v11083_v62, %v2056_v1  ;;  %v2826_v36 = vadd.f32 %v11083_v62, %v2058_v54  ;;  %v1674_v52 = vmul.f32 %v10669_v11, %v7598_v23  ;;  %v11088_v34 = vld [vmem:[#allocation201_spill] sm:$0xff]  ;;  %v11089_v14 = vld [vmem:[#allocation71_spill] sm:$0xff] }
 0x1f7   :  { %v4294_v43 = vpack.c.bf16 %v3329_v16, %v3321_v6  ;;  %v4422_v24 = vpack.c.bf16 %v3331_v55, %v3323_v42  ;;  %v4296_v38 = vpack.c.bf16 %v3328_v61, %v3320_v50  ;;  %v4424_v60 = vpack.c.bf16 %v3330_v15, %v3322_v22  ;;  %v11095_v22 = vld [vmem:[#allocation105_spill] sm:$0xff] }
 0x1f8   :  { %v7708_v17 = vadd.f32 %v1648_v47, %v11088_v34  ;;  %v7711_v46 = vadd.f32 %v1650_v63, %v11089_v14  ;;  %v7714_v1 = vadd.f32 %v1657_v39, %v6931_v0  ;;  %v7717_v54 = vadd.f32 %v1659_v56, %v6935_v10  ;;  %4821 = vset.pattern.permute.xlu1 %v10521_v8  ;;  %v11097_v63 = vld [vmem:[#allocation180_spill] sm:$0xff]  ;;  %v11099_v56 = vld [vmem:[#allocation182_spill] sm:$0xff]  ;;  %v11109_v42 = vld [vmem:[#allocation133_spill] sm:$0xff] }
 0x1f9   :  { %4295 = vmatprep.subr.bf16.mxu0 %v4294_v43  ;;  %v3337_v55 = vmax.f32 %v7684_v3, 0.0  ;;  %v7722_v61 = vadd.f32 %v1656_v40, %v6944_v19  ;;  %v7725_v15 = vadd.f32 %v1658_v59, %v6950_v45  ;;  %v7728_v16 = vadd.f32 %v1673_v7, %v6954_v29  ;;  %4423 = vmatprep.subr.bf16.mxu1 %v4422_v24  ;;  %v7748_v7 = vpop.permute.xlu1 %2429  ;;  %v7781_v43 = vpop.permute.xlu0 %1200 }
 0x1fa   :  { %11090 = vst [vmem:[#allocation227_spill] sm:$0xff] %v7714_v1  ;;  %11091 = vst [vmem:[#allocation158_spill] sm:$0xff] %v7717_v54  ;;  %2497 = vperm.xlu1 %4821, %v7501_v21   ;;  %v3339_v0 = vmax.f32 %v2827_v53, 0.0  ;;  %v3336_v10 = vmax.f32 %v2824_v5, 0.0  ;;  %v7732_v47 = vadd.f32 %v1675_v44, %v11095_v22  ;;  %v7735_v39 = vadd.f32 %v1672_v13, %v11097_v63  ;;  %v11108_v44 = vld [vmem:[#allocation130_spill] sm:$0xff] }
 0x1fb   :  { %11092 = vst [vmem:[#allocation159_spill] sm:$0xff] %v7722_v61  ;;  %11093 = vst [vmem:[#allocation160_spill] sm:$0xff] %v7725_v15  ;;  %4297 = vmatpush1.bf16.msra.mxu0 %v4296_v38  ;;  %4425 = vmatpush1.bf16.msra.mxu1 %v4424_v60  ;;  %v3338_v19 = vmax.f32 %v2826_v36, 0.0  ;;  %v7738_v45 = vadd.f32 %v1674_v52, %v11099_v56  ;;  %v7742_v29 = vmul.f32 %v5417_v49, %v7637_v25 }
 0x1fc   :  { %11094 = vst [vmem:[#allocation237_spill] sm:$0xff] %v7728_v16  ;;  %11096 = vst [vmem:[#allocation238_spill] sm:$0xff] %v7732_v47  ;;  %v7746_v21 = vmul.f32 %v5431_v48, %v7637_v25  ;;  %v7752_v53 = vmul.f32 %v5435_v26, %v7637_v25  ;;  %v7756_v59 = vmul.f32 %v10669_v11, %v7637_v25 }
 0x1fd   :  { %11098 = vst [vmem:[#allocation239_spill] sm:$0xff] %v7735_v39  ;;  %11100 = vst [vmem:[#allocation240_spill] sm:$0xff] %v7738_v45  ;;  %v7760_v40 = vmul.f32 %v5417_v49, %v7687_v51  ;;  %v7764_v3 = vmul.f32 %v5431_v48, %v7687_v51  ;;  %v2833_v13 = vadd.f32 %v7748_v7, %v11108_v44  ;;  %v11146_v39 = vld [vmem:[#allocation19_spill] sm:$0xff] }
 0x1fe   :  { %11101 = vst [vmem:[#allocation165_spill] sm:$0xff] %v7742_v29  ;;  %11102 = vst [vmem:[#allocation168_spill] sm:$0xff] %v7746_v21  ;;  %v2835_v33 = vadd.f32 %v7748_v7, %v7435_v31  ;;  %v2832_v6 = vadd.f32 %v7748_v7, %v7438_v32  ;;  %v2834_v50 = vadd.f32 %v7748_v7, %v11109_v42  ;;  %4822 = vset.pattern.permute.xlu1 %v11005_v20  ;;  %v7790_v32 = vld [vmem:[%s10039_s1 + $0x1d0] sm:$0xff]  ;;  %v7807_v44 = vpop.permute.xlu1 %1120 }
 0x1ff   :  { %11103 = vst [vmem:[#allocation169_spill] sm:$0xff] %v7748_v7  ;;  %11104 = vst [vmem:[#allocation170_spill] sm:$0xff] %v7752_v53  ;;  %v1569_v5 = vmul.f32 %v5417_v49, %v7703_v4  ;;  %v1571_v36 = vmul.f32 %v5431_v48, %v7703_v4  ;;  %v1568_v52 = vmul.f32 %v5435_v26, %v7703_v4  ;;  %378 = vperm.xlu1 %4822, %v7790_v32   ;;  %v4865_v7 = vld [vmem:[%s10039_s1 + $0x1d8] sm:$0xff] }
 0x200   :  { %11105 = vst [vmem:[#allocation246_spill] sm:$0xff] %v7756_v59  ;;  %11106 = vst [vmem:[#allocation247_spill] sm:$0xff] %v7760_v40  ;;  %v7785_v31 = vmul.f32 %v5435_v26, %v7687_v51  ;;  %v3345_v24 = vmax.f32 %v2833_v13, 0.0  ;;  %v3347_v38 = vmax.f32 %v2835_v33, 0.0  ;;  %v3344_v60 = vmax.f32 %v2832_v6, 0.0 }
 0x201   :  { %11107 = vst [vmem:[#allocation248_spill] sm:$0xff] %v7764_v3  ;;  %11110 = vst [vmem:[#allocation146_spill] sm:$0xff] %v7781_v43  ;;  %v3346_v34 = vmax.f32 %v2834_v50, 0.0  ;;  %v1570_v14 = vmul.f32 %v10669_v11, %v7703_v4  ;;  %v7797_v22 = vmul.f32 %v10669_v11, %v7687_v51  ;;  %v7801_v63 = vmul.f32 %v5417_v49, %v7705_v2  ;;  %v11116_v50 = vld [vmem:[#allocation171_spill] sm:$0xff]  ;;  %v11143_v3 = vld [vmem:[#allocation58_spill] sm:$0xff] }
 0x202   :  { %11111 = vst [vmem:[#allocation147_spill] sm:$0xff] %v7785_v31  ;;  %v7805_v56 = vmul.f32 %v5431_v48, %v7705_v2  ;;  %11115 = vst [vmem:[#allocation175_spill] sm:$0xff] %v7807_v44  ;;  %v4298_v13 = vpack.c.bf16 %v3345_v24, %v3337_v55  ;;  %v4426_v33 = vpack.c.bf16 %v3347_v38, %v3339_v0  ;;  %v11118_v55 = vld [vmem:[#allocation172_spill] sm:$0xff]  ;;  %v11121_v24 = vld [vmem:[#allocation123_spill] sm:$0xff] }
 0x203   :  { %11112 = vst [vmem:[#allocation148_spill] sm:$0xff] %v7797_v22  ;;  %11113 = vst [vmem:[#allocation153_spill] sm:$0xff] %v7801_v63  ;;  %v4300_v6 = vpack.c.bf16 %v3344_v60, %v3336_v10  ;;  %v4428_v42 = vpack.c.bf16 %v3346_v34, %v3338_v19  ;;  %v2081_v25 = vadd.f32 %v1569_v5, %v11116_v50  ;;  %383 = vperm.xlu1 %4822, %v4865_v7   ;;  %v11119_v10 = vld [vmem:[#allocation173_spill] sm:$0xff]  ;;  %v11120_v5 = vld [vmem:[#allocation266_spill] sm:$0xff]  ;;  %v7826_v50 = vpop.permute.xlu0 %1208 }
 0x204   :  { %11114 = vst [vmem:[#allocation250_spill] sm:$0xff] %v7805_v56  ;;  %v1577_v51 = vmul.f32 %v5417_v49, %v7807_v44  ;;  %v1579_v23 = vmul.f32 %v5431_v48, %v7807_v44  ;;  %v7816_v4 = vmul.f32 %v5435_v26, %v7705_v2  ;;  %4299 = vmatprep.subr.bf16.mxu0 %v4298_v13  ;;  %v11122_v60 = vld [vmem:[#allocation174_spill] sm:$0xff]  ;;  %11123 = vst [vmem:[#allocation233_spill] sm:$0xff] %v7826_v50  ;;  %v11142_v31 = vld [vmem:[#allocation17_spill] sm:$0xff] }
 0x205   :  { %v2083_v0 = vadd.f32 %v1571_v36, %v11118_v55  ;;  %v2080_v19 = vadd.f32 %v1568_v52, %v11119_v10  ;;  %v1269_v38 = vmul.f32 %v11121_v24, %v11120_v5  ;;  %4427 = vmatprep.subr.bf16.mxu1 %v4426_v33  ;;  %4301 = vmatpush1.bf16.msra.mxu0 %v4300_v6  ;;  %v7847_v33 = vld [vmem:[%s10038_s0 + $0x1] ss:$2 sm:$0xff]  ;;  %v11127_v6 = vld [vmem:[#allocation52_spill] sm:$0xff] }
 0x206   :  { %11117 = vst [vmem:[#allocation176_spill] sm:$0xff] %v7816_v4  ;;  %v2082_v34 = vadd.f32 %v1570_v14, %v11122_v60  ;;  %v7830_v62 = vmul.f32 %v10669_v11, %v7705_v2  ;;  %v7834_v13 = vmul.f32 %v5417_v49, %v7781_v43  ;;  %4429 = vmatpush1.bf16.msra.mxu1 %v4428_v42  ;;  %v11128_v55 = vsub.s32 7, %v11127_v6  ;;  %v7854_v42 = vpop.permute.xlu1 %2433  ;;  %v11130_v60 = vld [vmem:[#allocation251_spill] sm:$0xff]  ;;  %v11141_v22 = vld [vmem:[#allocation218_spill] sm:$0xff] }
 0x207   :  { %v1576_v36 = vmul.f32 %v5435_v26, %v7807_v44  ;;  %v1578_v52 = vmul.f32 %v10669_v11, %v7807_v44  ;;  %v7842_v14 = vmul.f32 %v5431_v48, %v7781_v43  ;;  %11129 = vst [vmem:[#allocation177_spill] sm:$0xff] %v7854_v42  ;;  %v2089_v2 = vadd.f32 %v1577_v51, %v11130_v60  ;;  %v11136_v51 = vld [vmem:[#allocation202_spill] sm:$0xff] }
 0x208   :  { %11124 = vst [vmem:[#allocation234_spill] sm:$0xff] %v7830_v62  ;;  %11125 = vst [vmem:[#allocation235_spill] sm:$0xff] %v7834_v13  ;;  %v7852_v10 = vrot.slane %v7847_v33, %v11128_v55  ;;  %v2091_v44 = vadd.f32 %v1579_v23, %v11131_v58  ;;  %v7860_v13 = vmul.f32 %v5435_v26, %v7781_v43  ;;  %4823 = vset.pattern.permute.xlu1 %v10536_v28  ;;  %v11134_v62 = vld [vmem:[#allocation215_spill] sm:$0xff] }
 0x209   :  { %11126 = vst [vmem:[#allocation236_spill] sm:$0xff] %v7842_v14  ;;  %v7864_v14 = vmul.f32 %v10669_v11, %v7781_v43  ;;  %v2841_v55 = vadd.f32 %v7854_v42, %v11134_v62  ;;  %v7871_v4 = vmul.f32 %v5417_v49, %v7826_v50  ;;  %v1781_v60 = vadd.f32 %v1269_v38, %v11136_v51  ;;  %v11137_v23 = vld [vmem:[#allocation119_spill] sm:$0xff]  ;;  %v11145_v38 = vld [vmem:[#allocation254_spill] sm:$0xff] }
 0x20a   :  { %11132 = vst [vmem:[#allocation178_spill] sm:$0xff] %v7860_v13  ;;  %v11138_v58 = vld [vmem:[#allocation167_spill] sm:$0xff]  ;;  %1196 = vperm.xlu1 %4823, %v4865_v7   ;;  %v11139_v13 = vld [vmem:[#allocation216_spill] sm:$0xff]  ;;  %v2842_v62 = vadd.f32 %v7854_v42, %v11141_v22  ;;  %v454_v40 = vmul.f32 %v11143_v3, %v11142_v31  ;;  %v2090_v51 = vadd.f32 %v1578_v52, %v11145_v38  ;;  %v11147_v7 = vld [vmem:[#allocation149_spill] sm:$0xff]  ;;  %v11150_v21 = vsub.s32 4, %v11127_v6 }
 0x20b   :  { %11133 = vst [vmem:[#allocation255_spill] sm:$0xff] %v7864_v14  ;;  %11135 = vst [vmem:[#allocation256_spill] sm:$0xff] %v7871_v4  ;;  %v7876_v56 = vadd.f32 %v11138_v58, %v11137_v23  ;;  %v2843_v43 = vadd.f32 %v7854_v42, %v11139_v13  ;;  %v11140_v14 = vld [vmem:[#allocation217_spill] sm:$0xff]  ;;  %v462_v23 = vmul.f32 %v11143_v3, %v11146_v39  ;;  %v7892_v13 = vpop.permute.xlu1 %2437  ;;  %v3353_v16 = vmax.f32 %v2841_v55, 0.0 }
 0x20c   :  { %v2840_v63 = vadd.f32 %v7854_v42, %v11140_v14  ;;  %v11144_v4 = vld [vmem:[#allocation253_spill] sm:$0xff]  ;;  %v1263_v47 = vmul.f32 %v7852_v10, %v11147_v7  ;;  %11148 = vst [vmem:[#allocation257_spill] sm:$0xff] %v7892_v13  ;;  %v11149_v14 = vld [vmem:[#allocation242_spill] sm:$0xff]  ;;  %v2851_v52 = vadd.f32 %v7892_v13, %v2083_v0  ;;  %v2848_v38 = vadd.f32 %v7892_v13, %v2080_v19 }
 0x20d   :  { %v2088_v45 = vadd.f32 %v1576_v36, %v11144_v4  ;;  %v7895_v59 = vadd.f32 %v11149_v14, %v2089_v2  ;;  %v7898_v22 = vadd.f32 %v11149_v14, %v2091_v44  ;;  %v1271_v4 = vmul.f32 %v7852_v10, %v11120_v5 }
 0x20e   :  { %v2849_v36 = vadd.f32 %v7892_v13, %v2081_v25  ;;  %v2850_v42 = vadd.f32 %v7892_v13, %v2082_v34  ;;  %4824 = vset.pattern.permute.xlu1 %v10521_v8  ;;  %v3355_v55 = vmax.f32 %v2843_v43, 0.0  ;;  %v3352_v53 = vmax.f32 %v2840_v63, 0.0 }
 0x20f   :  { %v3354_v2 = vmax.f32 %v2842_v62, 0.0  ;;  %v7910_v44 = vrot.slane %v7847_v33, %v11150_v21  ;;  %2505 = vperm.xlu1 %4824, %v7631_v37   ;;  %v3363_v25 = vmax.f32 %v2851_v52, 0.0  ;;  %v3360_v15 = vmax.f32 %v2848_v38, 0.0  ;;  %v7915_v43 = vpop.permute.xlu1 %1132 }
 0x210   :  { %v3361_v29 = vmax.f32 %v2849_v36, 0.0  ;;  %v3362_v0 = vmax.f32 %v2850_v42, 0.0  ;;  %v2856_v19 = vadd.f32 %v11149_v14, %v2088_v45  ;;  %v2858_v34 = vadd.f32 %v11149_v14, %v2090_v51  ;;  %11151 = vst [vmem:[#allocation259_spill] sm:$0xff] %v7915_v43  ;;  %v11154_v45 = vld [vmem:[#allocation80_spill] sm:$0xff]  ;;  %v7943_v51 = vld [vmem:[%s10039_s1 + $0x1e0] sm:$0xff] }
 0x211   :  { %v1775_v13 = vadd.f32 %v1263_v47, %v454_v40  ;;  %v1783_v61 = vadd.f32 %v1271_v4, %v462_v23  ;;  %v4430_v62 = vpack.c.bf16 %v3363_v25, %v3355_v55  ;;  %v4304_v54 = vpack.c.bf16 %v3360_v15, %v3352_v53 }
 0x212   :  { %v4302_v63 = vpack.c.bf16 %v3361_v29, %v3353_v16  ;;  %v4432_v1 = vpack.c.bf16 %v3362_v0, %v3354_v2  ;;  %v7919_v21 = vmul.f32 %v5431_v48, %v7826_v50  ;;  %v7923_v37 = vmul.f32 %v5435_v26, %v7826_v50  ;;  %v11156_v16 = vld [vmem:[#allocation197_spill] sm:$0xff]  ;;  %v11157_v2 = vld [vmem:[#allocation15_spill] sm:$0xff] }
 0x213   :  { %v451_v42 = vmul.f32 %v11154_v45, %v11142_v31  ;;  %v1260_v47 = vmul.f32 %v7910_v44, %v11147_v7  ;;  %4825 = vset.pattern.permute.xlu1 %v11005_v20  ;;  %v7932_v15 = vmul.f32 %v10669_v11, %v7826_v50  ;;  %v7935_v29 = vadd.f32 %v11156_v16, %v1781_v60  ;;  %v7958_v0 = vpop.permute.xlu1 %2445 }
 0x214   :  { %11152 = vst [vmem:[#allocation189_spill] sm:$0xff] %v7919_v21  ;;  %11153 = vst [vmem:[#allocation190_spill] sm:$0xff] %v7923_v37  ;;  %4303 = vmatprep.subr.bf16.mxu0 %v4302_v63  ;;  %v459_v40 = vmul.f32 %v11154_v45, %v11146_v39  ;;  %4431 = vmatprep.subr.bf16.mxu1 %v4430_v62  ;;  %v3369_v23 = vmax.f32 %v7895_v59, 0.0  ;;  %v3371_v4 = vmax.f32 %v7898_v22, 0.0  ;;  %v3368_v36 = vmax.f32 %v2856_v19, 0.0  ;;  %v11160_v19 = vld [vmem:[#allocation134_spill] sm:$0xff] }
 0x215   :  { %11155 = vst [vmem:[#allocation192_spill] sm:$0xff] %v7932_v15  ;;  %388 = vperm.xlu1 %4825, %v7943_v51   ;;  %v1268_v60 = vmul.f32 %v7910_v44, %v11120_v5  ;;  %4305 = vmatpush1.bf16.msra.mxu0 %v4304_v54  ;;  %v3370_v52 = vmax.f32 %v2858_v34, 0.0  ;;  %v7951_v38 = vadd.f32 %v11138_v58, %v1775_v13  ;;  %11158 = vst [vmem:[#allocation193_spill] sm:$0xff] %v7958_v0  ;;  %v11161_v34 = vld [vmem:[#allocation219_spill] sm:$0xff] }
 0x216   :  { %4433 = vmatpush1.bf16.msra.mxu1 %v4432_v1  ;;  %v7954_v55 = vadd.f32 %v11156_v16, %v1783_v61  ;;  %v453_v25 = vmul.f32 %v11157_v2, %v11142_v31  ;;  %v1601_v59 = vmul.f32 %v5417_v49, %v7915_v43  ;;  %v1772_v22 = vadd.f32 %v1260_v47, %v451_v42 }
 0x217   :  { %v461_v54 = vmul.f32 %v11157_v2, %v11146_v39  ;;  %v11159_v1 = vsub.s32 6, %v11127_v6  ;;  %v2865_v61 = vadd.f32 %v7958_v0, %v11160_v19  ;;  %v2867_v31 = vadd.f32 %v7958_v0, %v11161_v34  ;;  %v4868_v39 = vld [vmem:[%s10039_s1 + $0x1e8] sm:$0xff]  ;;  %v7993_v14 = vpop.permute.xlu1 %1136 }
 0x218   :  { %v2864_v63 = vadd.f32 %v7958_v0, %v7535_v57  ;;  %v2866_v62 = vadd.f32 %v7958_v0, %v7538_v27  ;;  %v1600_v42 = vmul.f32 %v5435_v26, %v7915_v43  ;;  %v1780_v47 = vadd.f32 %v1268_v60, %v459_v40  ;;  %11162 = vst [vmem:[#allocation264_spill] sm:$0xff] %v7993_v14 }
 0x219   :  { %v7967_v13 = vrot.slane %v7847_v33, %v11159_v1  ;;  %393 = vperm.xlu1 %4825, %v4868_v39   ;;  %v1603_v33 = vmul.f32 %v5431_v48, %v7915_v43  ;;  %v3377_v19 = vmax.f32 %v2865_v61, 0.0  ;;  %v3379_v57 = vmax.f32 %v2867_v31, 0.0 }
 0x21a   :  { %v3376_v34 = vmax.f32 %v2864_v63, 0.0  ;;  %v3378_v53 = vmax.f32 %v2866_v62, 0.0  ;;  %v1602_v27 = vmul.f32 %v10669_v11, %v7915_v43  ;;  %v7989_v6 = vadd.f32 %v11138_v58, %v1772_v22  ;;  %v11165_v63 = vld [vmem:[#allocation185_spill] sm:$0xff] }
 0x21b   :  { %v1270_v1 = vmul.f32 %v7967_v13, %v11120_v5  ;;  %v1262_v50 = vmul.f32 %v7967_v13, %v11147_v7  ;;  %v4306_v40 = vpack.c.bf16 %v3377_v19, %v3369_v23  ;;  %v4434_v60 = vpack.c.bf16 %v3379_v57, %v3371_v4  ;;  %v11163_v4 = vld [vmem:[#allocation166_spill] sm:$0xff]  ;;  %v8021_v37 = vpop.permute.xlu1 %2449 }
 0x21c   :  { %v4308_v15 = vpack.c.bf16 %v3376_v34, %v3368_v36  ;;  %v4436_v5 = vpack.c.bf16 %v3378_v53, %v3370_v52  ;;  %v1609_v61 = vmul.f32 %v5417_v49, %v7993_v14  ;;  %v1611_v31 = vmul.f32 %v5431_v48, %v7993_v14  ;;  %v11164_v52 = vld [vmem:[#allocation183_spill] sm:$0xff]  ;;  %11169 = vst [vmem:[#allocation265_spill] sm:$0xff] %v8021_v37 }
 0x21d   :  { %v1782_v0 = vadd.f32 %v1270_v1, %v461_v54  ;;  %4826 = vset.pattern.permute.xlu1 %v10536_v28  ;;  %v1608_v22 = vmul.f32 %v5435_v26, %v7993_v14  ;;  %v1610_v7 = vmul.f32 %v10669_v11, %v7993_v14  ;;  %4307 = vmatprep.subr.bf16.mxu0 %v4306_v40  ;;  %v11166_v1 = vld [vmem:[#allocation186_spill] sm:$0xff]  ;;  %v11167_v34 = vld [vmem:[#allocation187_spill] sm:$0xff]  ;;  %v11168_v40 = vld [vmem:[#allocation260_spill] sm:$0xff] }
 0x21e   :  { %1204 = vperm.xlu1 %4826, %v4868_v39   ;;  %v8006_v53 = vadd.f32 %v11156_v16, %v1780_v47  ;;  %v1277_v36 = vmul.f32 %v11121_v24, %v11163_v4  ;;  %v1285_v54 = vmul.f32 %v11121_v24, %v11164_v52  ;;  %4435 = vmatprep.subr.bf16.mxu1 %v4434_v60  ;;  %v11173_v39 = vld [vmem:[#allocation263_spill] sm:$0xff] }
 0x21f   :  { %4309 = vmatpush1.bf16.msra.mxu0 %v4308_v15  ;;  %v2113_v62 = vadd.f32 %v1601_v59, %v11165_v63  ;;  %v2115_v19 = vadd.f32 %v1603_v33, %v11166_v1  ;;  %4437 = vmatpush1.bf16.msra.mxu1 %v4436_v5  ;;  %v2112_v47 = vadd.f32 %v1600_v42, %v11167_v34  ;;  %v11170_v15 = vld [vmem:[#allocation188_spill] sm:$0xff]  ;;  %v11171_v59 = vld [vmem:[#allocation261_spill] sm:$0xff]  ;;  %v11172_v33 = vld [vmem:[#allocation262_spill] sm:$0xff]  ;;  %v3052_v42 = vmax.f32 %v7989_v6, 0.0 }
 0x220   :  { %v2121_v23 = vadd.f32 %v1609_v61, %v11168_v40  ;;  %v1774_v14 = vadd.f32 %v1262_v50, %v453_v25  ;;  %v8019_v43 = vadd.f32 %v11156_v16, %v1782_v0  ;;  %v2114_v60 = vadd.f32 %v1602_v27, %v11170_v15  ;;  %v11174_v50 = vld [vmem:[#allocation110_spill] sm:$0xff]  ;;  %v11175_v16 = vld [vmem:[#allocation191_spill] sm:$0xff] }
 0x221   :  { %v2123_v63 = vadd.f32 %v1611_v31, %v11171_v59  ;;  %v2120_v1 = vadd.f32 %v1608_v22, %v11172_v33  ;;  %v2122_v21 = vadd.f32 %v1610_v7, %v11173_v39  ;;  %v3060_v5 = vmax.f32 %v8006_v53, 0.0  ;;  %v11176_v22 = vld [vmem:[#allocation249_spill] sm:$0xff]  ;;  %v8047_v39 = vpop.permute.xlu1 %2453 }
 0x222   :  { %4827 = vset.pattern.permute.xlu1 %v10521_v8  ;;  %v1789_v25 = vadd.f32 %v1277_v36, %v11174_v50  ;;  %v1797_v0 = vadd.f32 %v1285_v54, %v11175_v16  ;;  %v2873_v27 = vadd.f32 %v8021_v37, %v7546_v41  ;;  %v2875_v61 = vadd.f32 %v8021_v37, %v7549_v18 }
 0x223   :  { %2513 = vperm.xlu1 %4827, %v7790_v32   ;;  %v2872_v31 = vadd.f32 %v8021_v37, %v7552_v30  ;;  %v2874_v6 = vadd.f32 %v8021_v37, %v7558_v12  ;;  %v8042_v7 = vadd.f32 %v11176_v22, %v2121_v23  ;;  %v2542_v53 = vadd.f32 %v11138_v58, %v1774_v14  ;;  %v11177_v32 = vld [vmem:[#allocation14_spill] sm:$0xff]  ;;  %v11179_v12 = vld [vmem:[#allocation212_spill] sm:$0xff] }
 0x224   :  { %v3062_v36 = vmax.f32 %v8019_v43, 0.0  ;;  %v2557_v54 = vadd.f32 %v11177_v32, %v1789_v25  ;;  %11178 = vst [vmem:[#allocation161_spill] sm:$0xff] %v8047_v39  ;;  %v8050_v41 = vadd.f32 %v11176_v22, %v2123_v63  ;;  %v8053_v18 = vadd.f32 %v11176_v22, %v2120_v1  ;;  %v11254_v37 = vld [vmem:[#allocation22_spill] sm:$0xff] }
 0x225   :  { %v8056_v30 = vadd.f32 %v11176_v22, %v2122_v21  ;;  %v2565_v23 = vadd.f32 %v11179_v12, %v1797_v0  ;;  %v2881_v34 = vadd.f32 %v8047_v39, %v2113_v62  ;;  %v2883_v58 = vadd.f32 %v8047_v39, %v2115_v19  ;;  %v8067_v21 = vld [vmem:[%s10039_s1 + $0x1f0] sm:$0xff]  ;;  %v8081_v16 = vpop.permute.xlu1 %1148 }
 0x226   :  { %v2880_v14 = vadd.f32 %v8047_v39, %v2112_v47  ;;  %v2882_v43 = vadd.f32 %v8047_v39, %v2114_v60  ;;  %v3385_v40 = vmax.f32 %v2873_v27, 0.0  ;;  %v3387_v15 = vmax.f32 %v2875_v61, 0.0  ;;  %v8073_v47 = vld [vmem:[%s10039_s1 + $0x1f8] sm:$0xff]  ;;  %11180 = vst [vmem:[#allocation162_spill] sm:$0xff] %v8081_v16 }
 0x227   :  { %4828 = vset.pattern.permute.xlu1 %v11005_v20  ;;  %v3384_v59 = vmax.f32 %v2872_v31, 0.0  ;;  %v3386_v63 = vmax.f32 %v2874_v6, 0.0  ;;  %v3393_v62 = vmax.f32 %v2881_v34, 0.0  ;;  %v3395_v33 = vmax.f32 %v2883_v58, 0.0 }
 0x228   :  { %398 = vperm.xlu1 %4828, %v8067_v21   ;;  %v3392_v19 = vmax.f32 %v2880_v14, 0.0  ;;  %v3394_v1 = vmax.f32 %v2882_v43, 0.0  ;;  %v3077_v20 = vmax.f32 %v2565_v23, 0.0  ;;  %v1279_v60 = vmul.f32 %v7852_v10, %v11163_v4 }
 0x229   :  { %v1287_v50 = vmul.f32 %v7852_v10, %v11164_v52  ;;  %v1276_v25 = vmul.f32 %v7910_v44, %v11163_v4  ;;  %v4310_v0 = vpack.c.bf16 %v3393_v62, %v3385_v40  ;;  %v4438_v27 = vpack.c.bf16 %v3395_v33, %v3387_v15 }
 0x22a   :  { %v4312_v61 = vpack.c.bf16 %v3392_v19, %v3384_v59  ;;  %v4440_v31 = vpack.c.bf16 %v3394_v1, %v3386_v63  ;;  %v11181_v6 = vmax.f32 %v7876_v56, 0.0  ;;  %v11182_v34 = vmax.f32 %v7935_v29, 0.0  ;;  %v8113_v19 = vpop.permute.xlu1 %2461 }
 0x22b   :  { %v3054_v58 = vmax.f32 %v2542_v53, 0.0  ;;  %v3069_v14 = vmax.f32 %v2557_v54, 0.0  ;;  %v1284_v43 = vmul.f32 %v7910_v44, %v11164_v52  ;;  %4311 = vmatprep.subr.bf16.mxu0 %v4310_v0  ;;  %v3401_v57 = vmax.f32 %v8042_v7, 0.0  ;;  %4439 = vmatprep.subr.bf16.mxu1 %v4438_v27  ;;  %v11189_v7 = vld [vmem:[#allocation111_spill] sm:$0xff]  ;;  %11192 = vst [vmem:[#allocation200_spill] sm:$0xff] %v8113_v19 }
 0x22c   :  { %v8087_v23 = vpack.c.bf16 %v11182_v34, %v11181_v6  ;;  %403 = vperm.xlu1 %4828, %v8073_v47   ;;  %v3403_v40 = vmax.f32 %v8050_v41, 0.0  ;;  %v11183_v15 = vmax.f32 %v7951_v38, 0.0  ;;  %v11184_v56 = vmax.f32 %v7954_v55, 0.0  ;;  %4313 = vmatpush1.bf16.msra.mxu0 %v4312_v61  ;;  %v11190_v41 = vld [vmem:[#allocation8_spill] sm:$0xff]  ;;  %v11195_v27 = vld [vmem:[#allocation143_spill] sm:$0xff] }
 0x22d   :  { %v8100_v29 = vpack.c.bf16 %v3060_v5, %v3052_v42  ;;  %v3400_v53 = vmax.f32 %v8053_v18, 0.0  ;;  %v3402_v54 = vmax.f32 %v8056_v30, 0.0  ;;  %v8104_v63 = vpack.c.bf16 %v3062_v36, %v3054_v58  ;;  %4441 = vmatpush1.bf16.msra.mxu1 %v4440_v31  ;;  %v11191_v42 = vld [vmem:[#allocation113_spill] sm:$0xff] }
 0x22e   :  { %v8098_v59 = vpack.c.bf16 %v11184_v56, %v11183_v15  ;;  %v8106_v62 = vpack.c.bf16 %v3077_v20, %v3069_v14  ;;  %v1633_v38 = vmul.f32 %v5417_v49, %v8081_v16  ;;  %v1791_v55 = vadd.f32 %v1279_v60, %v11189_v7  ;;  %v11193_v30 = vld [vmem:[#allocation69_spill] sm:$0xff]  ;;  %v11196_v14 = vld [vmem:[#allocation196_spill] sm:$0xff] }
 0x22f   :  { %11186 = vst [vmem:[#allocation164_spill] sm:$0xff] %v8100_v29  ;;  %11187 = vst [vmem:[#allocation12_spill] sm:$0xff] %v8104_v63  ;;  %v1799_v33 = vadd.f32 %v1287_v50, %v11190_v41  ;;  %v1788_v5 = vadd.f32 %v1276_v25, %v11191_v42  ;;  %v1635_v18 = vmul.f32 %v5431_v48, %v8081_v16  ;;  %v11194_v25 = vld [vmem:[#allocation142_spill] sm:$0xff]  ;;  %v11197_v7 = vld [vmem:[#allocation116_spill] sm:$0xff]  ;;  %v8142_v42 = vpop.permute.xlu1 %1152 }
 0x230   :  { %11185 = vst [vmem:[#allocation163_spill] sm:$0xff] %v8098_v59  ;;  %11188 = vst [vmem:[#allocation243_spill] sm:$0xff] %v8106_v62  ;;  %v1632_v36 = vmul.f32 %v5435_v26, %v8081_v16  ;;  %v1796_v1 = vadd.f32 %v1284_v43, %v11193_v30  ;;  %v1278_v20 = vmul.f32 %v7967_v13, %v11163_v4  ;;  %4830 = vset.pattern.permute.xlu1 %v10536_v28 }
 0x231   :  { %v2897_v60 = vadd.f32 %v8113_v19, %v7561_v35  ;;  %v2899_v50 = vadd.f32 %v8113_v19, %v7564_v9  ;;  %v2896_v0 = vadd.f32 %v8113_v19, %v11194_v25  ;;  %v2898_v61 = vadd.f32 %v8113_v19, %v11195_v27  ;;  %1212 = vperm.xlu1 %4830, %v8073_v47  }
 0x232   :  { %v1634_v31 = vmul.f32 %v10669_v11, %v8081_v16  ;;  %v2567_v4 = vadd.f32 %v11179_v12, %v1799_v33  ;;  %v2564_v28 = vadd.f32 %v11179_v12, %v1796_v1  ;;  %v1286_v35 = vmul.f32 %v7967_v13, %v11164_v52  ;;  %11198 = vst [vmem:[#allocation244_spill] sm:$0xff] %v8142_v42  ;;  %v11199_v52 = vld [vmem:[#allocation70_spill] sm:$0xff] }
 0x233   :  { %v3409_v6 = vmax.f32 %v2897_v60, 0.0  ;;  %v3411_v9 = vmax.f32 %v2899_v50, 0.0  ;;  %v3408_v34 = vmax.f32 %v2896_v0, 0.0  ;;  %v3410_v58 = vmax.f32 %v2898_v61, 0.0  ;;  %v11202_v0 = vld [vmem:[#allocation68_spill] sm:$0xff] }
 0x234   :  { %v2145_v43 = vadd.f32 %v1633_v38, %v11196_v14  ;;  %v2559_v15 = vadd.f32 %v11177_v32, %v1791_v55  ;;  %v2556_v56 = vadd.f32 %v11177_v32, %v1788_v5  ;;  %v1790_v41 = vadd.f32 %v1278_v20, %v11197_v7  ;;  %v11201_v20 = vld [vmem:[#allocation21_spill] sm:$0xff]  ;;  %v11203_v61 = vld [vmem:[#allocation208_spill] sm:$0xff]  ;;  %v11208_v14 = vld [vmem:[#allocation198_spill] sm:$0xff] }
 0x235   :  { %v4314_v33 = vpack.c.bf16 %v3409_v6, %v3401_v57  ;;  %v4442_v30 = vpack.c.bf16 %v3411_v9, %v3403_v40  ;;  %v4316_v1 = vpack.c.bf16 %v3408_v34, %v3400_v53  ;;  %v4444_v25 = vpack.c.bf16 %v3410_v58, %v3402_v54  ;;  %4831 = vset.pattern.permute.xlu1 %v10521_v8  ;;  %v11200_v53 = vld [vmem:[#allocation209_spill] sm:$0xff]  ;;  %v8169_v34 = vpop.permute.xlu0 %2473  ;;  %v8171_v58 = vpop.permute.xlu1 %2465 }
 0x236   :  { %v2147_v60 = vadd.f32 %v1635_v18, %v11199_v52  ;;  %v1641_v50 = vmul.f32 %v5417_v49, %v8142_v42  ;;  %v1643_v38 = vmul.f32 %v5431_v48, %v8142_v42  ;;  %v1640_v55 = vmul.f32 %v5435_v26, %v8142_v42  ;;  %2521 = vperm.xlu1 %4831, %v7943_v51   ;;  %v11204_v51 = vld [vmem:[#allocation99_spill] sm:$0xff] }
 0x237   :  { %4315 = vmatprep.subr.bf16.mxu0 %v4314_v33  ;;  %v3079_v57 = vmax.f32 %v2567_v4, 0.0  ;;  %v3076_v40 = vmax.f32 %v2564_v28, 0.0  ;;  %v1798_v54 = vadd.f32 %v1286_v35, %v11200_v53  ;;  %v8155_v8 = vadd.f32 %v11177_v32, %v1790_v41  ;;  %4443 = vmatprep.subr.bf16.mxu1 %v4442_v30  ;;  %v11205_v32 = vld [vmem:[#allocation108_spill] sm:$0xff]  ;;  %11206 = vst [vmem:[#allocation245_spill] sm:$0xff] %v8169_v34 }
 0x238   :  { %4317 = vmatpush1.bf16.msra.mxu0 %v4316_v1  ;;  %v3071_v5 = vmax.f32 %v2559_v15, 0.0  ;;  %v3068_v18 = vmax.f32 %v2556_v56, 0.0  ;;  %v484_v27 = vmul.f32 %v11202_v0, %v11201_v20  ;;  %v1293_v6 = vmul.f32 %v11121_v24, %v11203_v61  ;;  %4445 = vmatpush1.bf16.msra.mxu1 %v4444_v25  ;;  %11207 = vst [vmem:[#allocation90_spill] sm:$0xff] %v8171_v58  ;;  %v11209_v56 = vld [vmem:[#allocation199_spill] sm:$0xff]  ;;  %v11210_v41 = vld [vmem:[#allocation152_spill] sm:$0xff]  ;;  %v11212_v25 = vld [vmem:[#allocation137_spill] sm:$0xff] }
 0x239   :  { %v2153_v9 = vadd.f32 %v1641_v50, %v11204_v51  ;;  %v1642_v4 = vmul.f32 %v10669_v11, %v8142_v42  ;;  %v8165_v28 = vadd.f32 %v11179_v12, %v1798_v54  ;;  %v1301_v35 = vmul.f32 %v11121_v24, %v11205_v32  ;;  %v11211_v30 = vld [vmem:[#allocation100_spill] sm:$0xff]  ;;  %v11215_v54 = vld [vmem:[#allocation230_spill] sm:$0xff]  ;;  %v11216_v51 = vld [vmem:[#allocation231_spill] sm:$0xff] }
 0x23a   :  { %v2144_v15 = vadd.f32 %v1632_v36, %v11208_v14  ;;  %v2146_v7 = vadd.f32 %v1634_v31, %v11209_v56  ;;  %v2155_v33 = vadd.f32 %v1643_v38, %v11210_v41  ;;  %v2152_v1 = vadd.f32 %v1640_v55, %v11211_v30  ;;  %2529 = vperm.xlu1 %4831, %v8067_v21   ;;  %v11217_v38 = vld [vmem:[#allocation138_spill] sm:$0xff]  ;;  %v11218_v56 = vld [vmem:[#allocation101_spill] sm:$0xff]  ;;  %v8197_v41 = vpop.permute.xlu1 %2469  ;;  %v11221_v53 = vld [vmem:[#allocation184_spill] sm:$0xff] }
 0x23b   :  { %v2905_v12 = vadd.f32 %v8171_v58, %v11212_v25  ;;  %v8180_v52 = vpack.c.bf16 %v3079_v57, %v3071_v5  ;;  %v8182_v50 = vpack.c.bf16 %v3076_v40, %v3068_v18  ;;  %v2907_v36 = vadd.f32 %v8171_v58, %v11215_v54  ;;  %v11219_v5 = vld [vmem:[#allocation210_spill] sm:$0xff]  ;;  %11220 = vst [vmem:[#allocation105_spill] sm:$0xff] %v8197_v41  ;;  %v11222_v42 = vld [vmem:[#allocation228_spill] sm:$0xff] }
 0x23c   :  { %v2904_v31 = vadd.f32 %v8171_v58, %v11216_v51  ;;  %v2906_v55 = vadd.f32 %v8171_v58, %v11217_v38  ;;  %v1805_v14 = vadd.f32 %v1293_v6, %v484_v27  ;;  %v8192_v21 = vadd.f32 %v8169_v34, %v2153_v9  ;;  %v11235_v58 = vld [vmem:[#allocation118_spill] sm:$0xff] }
 0x23d   :  { %11213 = vst [vmem:[#allocation201_spill] sm:$0xff] %v8180_v52  ;;  %11214 = vst [vmem:[#allocation71_spill] sm:$0xff] %v8182_v50  ;;  %v2154_v57 = vadd.f32 %v1642_v4, %v11218_v56  ;;  %v1813_v18 = vadd.f32 %v1301_v35, %v11219_v5  ;;  %v3417_v30 = vmax.f32 %v2905_v12, 0.0  ;;  %v8200_v25 = vadd.f32 %v8169_v34, %v2155_v33 }
 0x23e   :  { %v8203_v54 = vadd.f32 %v8169_v34, %v2152_v1  ;;  %v486_v27 = vmul.f32 %v11143_v3, %v11201_v20  ;;  %2533 = vperm.xlu1 %4831, %v8073_v47   ;;  %v2913_v6 = vadd.f32 %v8197_v41, %v2145_v43  ;;  %v2915_v9 = vadd.f32 %v8197_v41, %v2147_v60 }
 0x23f   :  { %v2912_v4 = vadd.f32 %v8197_v41, %v2144_v15  ;;  %v2914_v35 = vadd.f32 %v8197_v41, %v2146_v7  ;;  %v3419_v12 = vmax.f32 %v2907_v36, 0.0  ;;  %v3416_v51 = vmax.f32 %v2904_v31, 0.0  ;;  %v8219_v7 = vpop.permute.xlu1 %1164 }
 0x240   :  { %v3418_v33 = vmax.f32 %v2906_v55, 0.0  ;;  %v1295_v1 = vmul.f32 %v7852_v10, %v11203_v61  ;;  %v3425_v38 = vmax.f32 %v2913_v6, 0.0  ;;  %v3427_v56 = vmax.f32 %v2915_v9, 0.0  ;;  %11223 = vst [vmem:[#allocation180_spill] sm:$0xff] %v8219_v7 }
 0x241   :  { %v3424_v5 = vmax.f32 %v2912_v4, 0.0  ;;  %v3426_v40 = vmax.f32 %v2914_v35, 0.0  ;;  %v2922_v47 = vadd.f32 %v8169_v34, %v2154_v57  ;;  %v2573_v43 = vadd.f32 %v11221_v53, %v1805_v14  ;;  %v8235_v34 = vpop.permute.xlu0 %2485 }
 0x242   :  { %v2581_v60 = vadd.f32 %v11222_v42, %v1813_v18  ;;  %v1303_v15 = vmul.f32 %v7852_v10, %v11205_v32  ;;  %v4318_v36 = vpack.c.bf16 %v3425_v38, %v3417_v30  ;;  %v4446_v31 = vpack.c.bf16 %v3427_v56, %v3419_v12  ;;  %v11224_v12 = vld [vmem:[#allocation203_spill] sm:$0xff]  ;;  %v11226_v56 = vld [vmem:[#allocation117_spill] sm:$0xff]  ;;  %11227 = vst [vmem:[#allocation182_spill] sm:$0xff] %v8235_v34 }
 0x243   :  { %v4320_v55 = vpack.c.bf16 %v3424_v5, %v3416_v51  ;;  %v4448_v41 = vpack.c.bf16 %v3426_v40, %v3418_v33  ;;  %v1665_v6 = vmul.f32 %v5417_v49, %v8219_v7  ;;  %v1667_v9 = vmul.f32 %v5431_v48, %v8219_v7  ;;  %v11225_v33 = vld [vmem:[#allocation72_spill] sm:$0xff] }
 0x244   :  { %v1664_v14 = vmul.f32 %v5435_v26, %v8219_v7  ;;  %v1666_v57 = vmul.f32 %v10669_v11, %v8219_v7  ;;  %4319 = vmatprep.subr.bf16.mxu0 %v4318_v36  ;;  %4447 = vmatprep.subr.bf16.mxu1 %v4446_v31  ;;  %v3433_v18 = vmax.f32 %v8192_v21, 0.0  ;;  %v3435_v30 = vmax.f32 %v8200_v25, 0.0  ;;  %v4870_v21 = vld [vmem:[%s10040_s2] sm:$0xf]  ;;  %v11228_v36 = vld [vmem:[#allocation59_spill] sm:$0xff] }
 0x245   :  { %v3432_v40 = vmax.f32 %v8203_v54, 0.0  ;;  %v1807_v4 = vadd.f32 %v1295_v1, %v486_v27  ;;  %4321 = vmatpush1.bf16.msra.mxu0 %v4320_v55  ;;  %4449 = vmatpush1.bf16.msra.mxu1 %v4448_v41  ;;  %v3434_v35 = vmax.f32 %v2922_v47, 0.0  ;;  %v2177_v51 = vadd.f32 %v1665_v6, %v11224_v12  ;;  %v8245_v1 = vpop.permute.xlu1 %2477  ;;  %v11231_v47 = vld [vmem:[#allocation204_spill] sm:$0xff]  ;;  %v11232_v55 = vld [vmem:[#allocation207_spill] sm:$0xff] }
 0x246   :  { %v2179_v38 = vadd.f32 %v1667_v9, %v11225_v33  ;;  %v1815_v5 = vadd.f32 %v1303_v15, %v11226_v56  ;;  %v8241_v25 = vrot.slane %v4870_v21, %v11228_v36  ;;  %v3085_v54 = vmax.f32 %v2573_v43, 0.0  ;;  %11230 = vst [vmem:[#allocation133_spill] sm:$0xff] %v8245_v1  ;;  %v11233_v12 = vld [vmem:[#allocation140_spill] sm:$0xff]  ;;  %v11234_v43 = vld [vmem:[#allocation157_spill] sm:$0xff] }
 0x247   :  { %v3093_v27 = vmax.f32 %v2581_v60, 0.0  ;;  %v483_v41 = vmul.f32 %v11154_v45, %v11201_v20  ;;  %v2176_v31 = vadd.f32 %v1664_v14, %v11231_v47  ;;  %v2178_v15 = vadd.f32 %v1666_v57, %v11232_v55 }
 0x248   :  { %11229 = vst [vmem:[#allocation130_spill] sm:$0xff] %v8241_v25  ;;  %v1292_v6 = vmul.f32 %v7910_v44, %v11203_v61  ;;  %v1300_v9 = vmul.f32 %v7910_v44, %v11205_v32  ;;  %v2929_v33 = vadd.f32 %v8245_v1, %v11233_v12  ;;  %v2931_v60 = vadd.f32 %v8245_v1, %v11234_v43 }
 0x249   :  { %v2928_v56 = vadd.f32 %v8245_v1, %v7708_v17  ;;  %v2930_v14 = vadd.f32 %v8245_v1, %v7711_v46  ;;  %3719 = vmatprep.mubr.f32.mxu0 %v8241_v25  ;;  %v8263_v57 = vadd.f32 %v8235_v34, %v2177_v51  ;;  %v8266_v36 = vadd.f32 %v8235_v34, %v2179_v38  ;;  %v8278_v16 = vpop.permute.xlu1 %353 }
 0x24a   :  { %3861 = vmatprep.mubr.f32.mxu1 %v8241_v25  ;;  %v2575_v47 = vadd.f32 %v11221_v53, %v1807_v4  ;;  %v2583_v55 = vadd.f32 %v11222_v42, %v1815_v5  ;;  %v3441_v12 = vmax.f32 %v2929_v33, 0.0  ;;  %v3443_v43 = vmax.f32 %v2931_v60, 0.0  ;;  %11236 = vst [vmem:[#allocation171_spill] sm:$0xff] %v8278_v16  ;;  %v11237_v5 = vld [vmem:[#allocation61_spill] sm:$0xff] }
 0x24b   :  { %v3440_v17 = vmax.f32 %v2928_v56, 0.0  ;;  %v3442_v7 = vmax.f32 %v2930_v14, 0.0  ;;  %v8272_v46 = vadd.f32 %v8235_v34, %v2176_v31  ;;  %v8275_v1 = vadd.f32 %v8235_v34, %v2178_v15  ;;  %v11247_v14 = vld [vmem:[#allocation23_spill] sm:$0xff] }
 0x24c   :  { %v1804_v51 = vadd.f32 %v1292_v6, %v483_v41  ;;  %v1812_v38 = vadd.f32 %v1300_v9, %v11235_v58  ;;  %v4322_v19 = vpack.c.bf16 %v3441_v12, %v3433_v18  ;;  %v4450_v22 = vpack.c.bf16 %v3443_v43, %v3435_v30 }
 0x24d   :  { %v4324_v4 = vpack.c.bf16 %v3440_v17, %v3432_v40  ;;  %v4452_v39 = vpack.c.bf16 %v3442_v7, %v3434_v35  ;;  %v8281_v33 = vrot.slane %v4870_v21, %v11237_v5  ;;  %v11239_v60 = vmax.f32 %v8155_v8, 0.0  ;;  %v11243_v40 = vld [vmem:[#allocation62_spill] sm:$0xff]  ;;  %v8311_v6 = vpop.permute.xlu1 %1172 }
 0x24e   :  { %v11240_v31 = vmax.f32 %v8165_v28, 0.0  ;;  %v8289_v15 = vpack.c.bf16 %v3093_v27, %v3085_v54  ;;  %v3087_v41 = vmax.f32 %v2575_v47, 0.0  ;;  %4323 = vmatprep.subr.bf16.mxu0 %v4322_v19  ;;  %4451 = vmatprep.subr.bf16.mxu1 %v4450_v22  ;;  %v3457_v58 = vmax.f32 %v8263_v57, 0.0  ;;  %v11244_v19 = vld [vmem:[#allocation65_spill] sm:$0xff]  ;;  %11246 = vst [vmem:[#allocation123_spill] sm:$0xff] %v8311_v6 }
 0x24f   :  { %11238 = vst [vmem:[#allocation172_spill] sm:$0xff] %v8281_v33  ;;  %v3459_v18 = vmax.f32 %v8266_v36, 0.0  ;;  %v3095_v30 = vmax.f32 %v2583_v55, 0.0  ;;  %v485_v7 = vmul.f32 %v11157_v2, %v11201_v20  ;;  %4325 = vmatpush1.bf16.msra.mxu0 %v4324_v4  ;;  %4453 = vmatpush1.bf16.msra.mxu1 %v4452_v39  ;;  %v3456_v8 = vmax.f32 %v8272_v46, 0.0  ;;  %v11245_v39 = vld [vmem:[#allocation20_spill] sm:$0xff]  ;;  %v11248_v57 = vld [vmem:[#allocation269_spill] sm:$0xff] }
 0x250   :  { %v8287_v56 = vpack.c.bf16 %v11240_v31, %v11239_v60  ;;  %11242 = vst [vmem:[#allocation266_spill] sm:$0xff] %v8289_v15  ;;  %v3458_v28 = vmax.f32 %v8275_v1, 0.0  ;;  %v872_v35 = vmul.f32 %v11243_v40, %v8278_v16  ;;  %v1294_v22 = vmul.f32 %v7967_v13, %v11203_v61  ;;  %v11250_v46 = vld [vmem:[#allocation67_spill] sm:$0xff]  ;;  %v11252_v31 = vld [vmem:[#allocation222_spill] sm:$0xff] }
 0x251   :  { %v874_v21 = vmul.f32 %v11244_v19, %v8278_v16  ;;  %v8304_v54 = vadd.f32 %v11221_v53, %v1804_v51  ;;  %v8307_v20 = vadd.f32 %v11222_v42, %v1812_v38  ;;  %v493_v27 = vmul.f32 %v11157_v2, %v11245_v39  ;;  %v8335_v39 = vpop.permute.xlu0 %2493 }
 0x252   :  { %11241 = vst [vmem:[#allocation173_spill] sm:$0xff] %v8287_v56  ;;  %v1302_v1 = vmul.f32 %v7967_v13, %v11205_v32  ;;  %v1806_v9 = vadd.f32 %v1294_v22, %v485_v7  ;;  %v500_v61 = vmul.f32 %v11202_v0, %v11247_v14  ;;  %v1309_v36 = vmul.f32 %v11121_v24, %v11248_v57  ;;  %v11249_v32 = vld [vmem:[#allocation66_spill] sm:$0xff] }
 0x253   :  { %v1681_v47 = vmul.f32 %v5417_v49, %v8311_v6  ;;  %v1683_v55 = vmul.f32 %v5431_v48, %v8311_v6  ;;  %v1680_v12 = vmul.f32 %v5435_v26, %v8311_v6  ;;  %v1682_v43 = vmul.f32 %v10669_v11, %v8311_v6  ;;  %11253 = vst [vmem:[#allocation251_spill] sm:$0xff] %v8335_v39 }
 0x254   :  { %v871_v17 = vmul.f32 %v11249_v32, %v8278_v16  ;;  %v873_v51 = vmul.f32 %v11250_v46, %v8278_v16  ;;  %v8331_v38 = vpack.c.bf16 %v3095_v30, %v3087_v41  ;;  %v1814_v4 = vadd.f32 %v1302_v1, %v493_v27  ;;  %v8343_v30 = vpop.permute.xlu1 %2481  ;;  %v11259_v16 = vld [vmem:[#allocation160_spill] sm:$0xff] }
 0x255   :  { %v2193_v5 = vadd.f32 %v1681_v47, %v872_v35  ;;  %v2195_v60 = vadd.f32 %v1683_v55, %v874_v21  ;;  %v1317_v7 = vmul.f32 %v11121_v24, %v11252_v31  ;;  %v1821_v22 = vadd.f32 %v1309_v36, %v500_v61  ;;  %11255 = vst [vmem:[#allocation252_spill] sm:$0xff] %v8343_v30  ;;  %v11256_v61 = vld [vmem:[#allocation227_spill] sm:$0xff] }
 0x256   :  { %11251 = vst [vmem:[#allocation174_spill] sm:$0xff] %v8331_v38  ;;  %v3084_v34 = vmax.f32 %v8304_v54, 0.0  ;;  %v3092_v6 = vmax.f32 %v8307_v20, 0.0  ;;  %v508_v25 = vmul.f32 %v11202_v0, %v11254_v37  ;;  %v510_v41 = vmul.f32 %v11143_v3, %v11254_v37  ;;  %v11257_v54 = vld [vmem:[#allocation158_spill] sm:$0xff]  ;;  %v11258_v47 = vld [vmem:[#allocation159_spill] sm:$0xff] }
 0x257   :  { %v2192_v35 = vadd.f32 %v1680_v12, %v871_v17  ;;  %v2194_v21 = vadd.f32 %v1682_v43, %v873_v51  ;;  %v2574_v27 = vadd.f32 %v11221_v53, %v1806_v9  ;;  %v2582_v1 = vadd.f32 %v11222_v42, %v1814_v4  ;;  %v11260_v42 = vld [vmem:[#allocation89_spill] sm:$0xff] }
 0x258   :  { %v2937_v36 = vadd.f32 %v8343_v30, %v11256_v61  ;;  %v2939_v20 = vadd.f32 %v8343_v30, %v11257_v54  ;;  %v2936_v55 = vadd.f32 %v8343_v30, %v11258_v47  ;;  %v2938_v38 = vadd.f32 %v8343_v30, %v11259_v16  ;;  %v8370_v47 = vpop.permute.xlu1 %358 }
 0x259   :  { %v8356_v15 = vadd.f32 %v8335_v39, %v2193_v5  ;;  %v8359_v12 = vadd.f32 %v8335_v39, %v2195_v60  ;;  %v1829_v53 = vadd.f32 %v1317_v7, %v508_v25  ;;  %v2589_v9 = vadd.f32 %v11260_v42, %v1821_v22  ;;  %11261 = vst [vmem:[#allocation215_spill] sm:$0xff] %v8370_v47 }
 0x25a   :  { %v3449_v43 = vmax.f32 %v2937_v36, 0.0  ;;  %v3451_v17 = vmax.f32 %v2939_v20, 0.0  ;;  %v3448_v51 = vmax.f32 %v2936_v55, 0.0  ;;  %v3450_v4 = vmax.f32 %v2938_v38, 0.0 }
 0x25b   :  { %v8363_v61 = vadd.f32 %v8335_v39, %v2192_v35  ;;  %v8366_v54 = vadd.f32 %v8335_v39, %v2194_v21  ;;  %v3094_v16 = vmax.f32 %v2582_v1, 0.0  ;;  %v502_v5 = vmul.f32 %v11143_v3, %v11247_v14  ;;  %v11262_v21 = vld [vmem:[#allocation258_spill] sm:$0xff] }
 0x25c   :  { %v4326_v60 = vpack.c.bf16 %v3457_v58, %v3449_v43  ;;  %v4454_v25 = vpack.c.bf16 %v3459_v18, %v3451_v17  ;;  %v4328_v7 = vpack.c.bf16 %v3456_v8, %v3448_v51  ;;  %v4456_v22 = vpack.c.bf16 %v3458_v28, %v3450_v4  ;;  %v8389_v17 = vpop.permute.xlu1 %363 }
 0x25d   :  { %v880_v36 = vmul.f32 %v11243_v40, %v8370_v47  ;;  %v882_v38 = vmul.f32 %v11244_v19, %v8370_v47  ;;  %v879_v35 = vmul.f32 %v11249_v32, %v8370_v47  ;;  %v2597_v1 = vadd.f32 %v11262_v21, %v1829_v53  ;;  %11264 = vst [vmem:[#allocation119_spill] sm:$0xff] %v8389_v17 }
 0x25e   :  { %4327 = vmatprep.subr.bf16.mxu0 %v4326_v60  ;;  %4455 = vmatprep.subr.bf16.mxu1 %v4454_v25  ;;  %v881_v20 = vmul.f32 %v11250_v46, %v8370_v47  ;;  %v3086_v58 = vmax.f32 %v2574_v27, 0.0  ;;  %v1311_v18 = vmul.f32 %v7852_v10, %v11248_v57  ;;  %v1319_v8 = vmul.f32 %v7852_v10, %v11252_v31  ;;  %v11266_v25 = vld [vmem:[#allocation165_spill] sm:$0xff] }
 0x25f   :  { %4329 = vmatpush1.bf16.msra.mxu0 %v4328_v7  ;;  %4457 = vmatpush1.bf16.msra.mxu1 %v4456_v22  ;;  %v8387_v43 = vpack.c.bf16 %v3092_v6, %v3084_v34  ;;  %v3101_v53 = vmax.f32 %v2589_v9, 0.0  ;;  %v8396_v47 = vadd.f32 %v11266_v25, %v880_v36  ;;  %v11267_v7 = vld [vmem:[#allocation168_spill] sm:$0xff]  ;;  %v3109_v28 = vmax.f32 %v2597_v1, 0.0  ;;  %v11268_v34 = vld [vmem:[#allocation170_spill] sm:$0xff] }
 0x260   :  { %v8393_v4 = vpack.c.bf16 %v3094_v16, %v3086_v58  ;;  %v1823_v60 = vadd.f32 %v1311_v18, %v502_v5  ;;  %v8399_v22 = vadd.f32 %v11267_v7, %v882_v38  ;;  %v1831_v55 = vadd.f32 %v1319_v8, %v510_v41  ;;  %v11269_v9 = vld [vmem:[#allocation246_spill] sm:$0xff]  ;;  %v8425_v18 = vpop.permute.xlu1 %1180 }
 0x261   :  { %11263 = vst [vmem:[#allocation202_spill] sm:$0xff] %v8387_v43  ;;  %v8402_v6 = vadd.f32 %v11268_v34, %v879_v35  ;;  %v8405_v39 = vadd.f32 %v11269_v9, %v881_v20  ;;  %v499_v16 = vmul.f32 %v11154_v45, %v11247_v14  ;;  %v888_v5 = vmul.f32 %v11243_v40, %v8389_v17  ;;  %v11274_v43 = vld [vmem:[#allocation25_spill] sm:$0xff] }
 0x262   :  { %11265 = vst [vmem:[#allocation167_spill] sm:$0xff] %v8393_v4  ;;  %v2591_v51 = vadd.f32 %v11260_v42, %v1823_v60  ;;  %v8412_v36 = vpack.c.bf16 %v3109_v28, %v3101_v53  ;;  %v2599_v38 = vadd.f32 %v11262_v21, %v1831_v55  ;;  %v1308_v41 = vmul.f32 %v7910_v44, %v11248_v57 }
 0x263   :  { %v890_v35 = vmul.f32 %v11244_v19, %v8389_v17  ;;  %v1316_v1 = vmul.f32 %v7910_v44, %v11252_v31  ;;  %v501_v20 = vmul.f32 %v11157_v2, %v11247_v14  ;;  %v1310_v58 = vmul.f32 %v7967_v13, %v11248_v57  ;;  %11271 = vst [vmem:[#allocation217_spill] sm:$0xff] %v8425_v18 }
 0x264   :  { %11270 = vst [vmem:[#allocation216_spill] sm:$0xff] %v8412_v36  ;;  %v887_v8 = vmul.f32 %v11249_v32, %v8389_v17  ;;  %v3103_v28 = vmax.f32 %v2591_v51, 0.0  ;;  %v507_v55 = vmul.f32 %v11154_v45, %v11254_v37  ;;  %v1820_v53 = vadd.f32 %v1308_v41, %v499_v16  ;;  %v8444_v36 = vpop.permute.xlu0 %2501 }
 0x265   :  { %v1697_v60 = vmul.f32 %v5417_v49, %v8425_v18  ;;  %v1699_v25 = vmul.f32 %v5431_v48, %v8425_v18  ;;  %v1696_v14 = vmul.f32 %v5435_v26, %v8425_v18  ;;  %v1698_v57 = vmul.f32 %v10669_v11, %v8425_v18  ;;  %11272 = vst [vmem:[#allocation218_spill] sm:$0xff] %v8444_v36  ;;  %v8454_v56 = vpop.permute.xlu1 %2489 }
 0x266   :  { %v889_v7 = vmul.f32 %v11250_v46, %v8389_v17  ;;  %v3111_v51 = vmax.f32 %v2599_v38, 0.0  ;;  %v2588_v34 = vadd.f32 %v11260_v42, %v1820_v53  ;;  %v1318_v9 = vmul.f32 %v7967_v13, %v11252_v31  ;;  %v11275_v38 = vld [vmem:[#allocation24_spill] sm:$0xff]  ;;  %11276 = vst [vmem:[#allocation58_spill] sm:$0xff] %v8454_v56 }
 0x267   :  { %v2209_v16 = vadd.f32 %v1697_v60, %v888_v5  ;;  %v2211_v41 = vadd.f32 %v1699_v25, %v890_v35  ;;  %v1828_v27 = vadd.f32 %v1316_v1, %v507_v55  ;;  %v1822_v30 = vadd.f32 %v1310_v58, %v501_v20  ;;  %v11277_v20 = vld [vmem:[#allocation237_spill] sm:$0xff]  ;;  %v11280_v25 = vld [vmem:[#allocation240_spill] sm:$0xff] }
 0x268   :  { %v8446_v4 = vpack.c.bf16 %v3111_v51, %v3103_v28  ;;  %v509_v18 = vmul.f32 %v11157_v2, %v11254_v37  ;;  %v516_v17 = vmul.f32 %v11202_v0, %v11274_v43  ;;  %v524_v53 = vmul.f32 %v11202_v0, %v11275_v38  ;;  %v11278_v28 = vld [vmem:[#allocation238_spill] sm:$0xff]  ;;  %v11279_v37 = vld [vmem:[#allocation239_spill] sm:$0xff]  ;;  %v8561_v63 = vpop.permute.xlu0 %2509 }
 0x269   :  { %v2208_v31 = vadd.f32 %v1696_v14, %v887_v8  ;;  %v2210_v5 = vadd.f32 %v1698_v57, %v889_v7  ;;  %v2596_v35 = vadd.f32 %v11262_v21, %v1828_v27  ;;  %v3100_v1 = vmax.f32 %v2588_v34, 0.0  ;;  %11298 = vst [vmem:[#allocation197_spill] sm:$0xff] %v8561_v63 }
 0x26a   :  { %11273 = vst [vmem:[#allocation17_spill] sm:$0xff] %v8446_v4  ;;  %v2953_v58 = vadd.f32 %v8454_v56, %v11277_v20  ;;  %v2955_v55 = vadd.f32 %v8454_v56, %v11278_v28  ;;  %v2952_v60 = vadd.f32 %v8454_v56, %v11279_v37  ;;  %v2954_v51 = vadd.f32 %v8454_v56, %v11280_v25 }
 0x26b   :  { %v8466_v4 = vadd.f32 %v8444_v36, %v2209_v16  ;;  %v8469_v8 = vadd.f32 %v8444_v36, %v2211_v41  ;;  %v1830_v27 = vadd.f32 %v1318_v9, %v509_v18  ;;  %v2590_v14 = vadd.f32 %v11260_v42, %v1822_v30  ;;  %v11281_v16 = vld [vmem:[#allocation241_spill] sm:$0xff]  ;;  %v8481_v41 = vpop.permute.xlu1 %368 }
 0x26c   :  { %v3465_v57 = vmax.f32 %v2953_v58, 0.0  ;;  %v3467_v7 = vmax.f32 %v2955_v55, 0.0  ;;  %v3464_v34 = vmax.f32 %v2952_v60, 0.0  ;;  %v3466_v20 = vmax.f32 %v2954_v51, 0.0  ;;  %11282 = vst [vmem:[#allocation253_spill] sm:$0xff] %v8481_v41 }
 0x26d   :  { %v8473_v28 = vadd.f32 %v8444_v36, %v2208_v31  ;;  %v8476_v37 = vadd.f32 %v8444_v36, %v2210_v5  ;;  %v2598_v25 = vadd.f32 %v11262_v21, %v1830_v27  ;;  %v1325_v56 = vmul.f32 %v11121_v24, %v11281_v16  ;;  %v11287_v27 = vld [vmem:[#allocation82_spill] sm:$0xff] }
 0x26e   :  { %v11283_v18 = vmax.f32 %v8356_v15, 0.0  ;;  %v11284_v42 = vmax.f32 %v8359_v12, 0.0  ;;  %v11285_v58 = vmax.f32 %v8363_v61, 0.0  ;;  %v11286_v55 = vmax.f32 %v8366_v54, 0.0 }
 0x26f   :  { %v896_v21 = vmul.f32 %v11243_v40, %v8481_v41  ;;  %v898_v60 = vmul.f32 %v11244_v19, %v8481_v41  ;;  %v895_v51 = vmul.f32 %v11249_v32, %v8481_v41  ;;  %v897_v15 = vmul.f32 %v11250_v46, %v8481_v41 }
 0x270   :  { %v4330_v30 = vpack.c.bf16 %v11283_v18, %v3465_v57  ;;  %v4458_v9 = vpack.c.bf16 %v11284_v42, %v3467_v7  ;;  %v4332_v31 = vpack.c.bf16 %v11285_v58, %v3464_v34  ;;  %v4460_v5 = vpack.c.bf16 %v11286_v55, %v3466_v20  ;;  %v8505_v42 = vpop.permute.xlu1 %373  ;;  %v11291_v58 = vld [vmem:[#allocation248_spill] sm:$0xff]  ;;  %v11292_v55 = vld [vmem:[#allocation147_spill] sm:$0xff] }
 0x271   :  { %v3108_v12 = vmax.f32 %v2596_v35, 0.0  ;;  %v3102_v61 = vmax.f32 %v2590_v14, 0.0  ;;  %v1333_v54 = vmul.f32 %v11121_v24, %v11287_v27  ;;  %v1837_v57 = vadd.f32 %v1325_v56, %v516_v17  ;;  %11288 = vst [vmem:[#allocation254_spill] sm:$0xff] %v8505_v42  ;;  %v11290_v56 = vld [vmem:[#allocation247_spill] sm:$0xff]  ;;  %v11293_v20 = vld [vmem:[#allocation148_spill] sm:$0xff] }
 0x272   :  { %4331 = vmatprep.subr.bf16.mxu0 %v4330_v30  ;;  %4459 = vmatprep.subr.bf16.mxu1 %v4458_v9  ;;  %v3110_v35 = vmax.f32 %v2598_v25, 0.0  ;;  %v518_v9 = vmul.f32 %v11143_v3, %v11274_v43  ;;  %v8512_v17 = vadd.f32 %v11290_v56, %v896_v21  ;;  %v8521_v18 = vadd.f32 %v11293_v20, %v897_v15 }
 0x273   :  { %4333 = vmatpush1.bf16.msra.mxu0 %v4332_v31  ;;  %4461 = vmatpush1.bf16.msra.mxu1 %v4460_v5  ;;  %v8507_v30 = vpack.c.bf16 %v3108_v12, %v3100_v1  ;;  %v1845_v14 = vadd.f32 %v1333_v54, %v524_v53  ;;  %v8515_v31 = vadd.f32 %v11291_v58, %v898_v60  ;;  %v11295_v1 = vld [vmem:[#allocation195_spill] sm:$0xff]  ;;  %v11296_v53 = vld [vmem:[#allocation268_spill] sm:$0xff] }
 0x274   :  { %v8518_v5 = vadd.f32 %v11292_v55, %v895_v51  ;;  %v8523_v34 = vpack.c.bf16 %v3110_v35, %v3102_v61  ;;  %v2605_v25 = vadd.f32 %v11295_v1, %v1837_v57  ;;  %v1327_v54 = vmul.f32 %v7852_v10, %v11281_v16 }
 0x275   :  { %11289 = vst [vmem:[#allocation19_spill] sm:$0xff] %v8507_v30  ;;  %v2613_v12 = vadd.f32 %v11296_v53, %v1845_v14  ;;  %v904_v21 = vmul.f32 %v11243_v40, %v8505_v42  ;;  %v906_v60 = vmul.f32 %v11244_v19, %v8505_v42  ;;  %v526_v51 = vmul.f32 %v11143_v3, %v11275_v38  ;;  %v8543_v14 = vpop.permute.xlu1 %1188 }
 0x276   :  { %11294 = vst [vmem:[#allocation149_spill] sm:$0xff] %v8523_v34  ;;  %v1335_v15 = vmul.f32 %v7852_v10, %v11287_v27  ;;  %v1839_v61 = vadd.f32 %v1327_v54, %v518_v9  ;;  %v515_v57 = vmul.f32 %v11154_v45, %v11274_v43  ;;  %v1324_v20 = vmul.f32 %v7910_v44, %v11281_v16 }
 0x277   :  { %v1332_v35 = vmul.f32 %v7910_v44, %v11287_v27  ;;  %11297 = vst [vmem:[#allocation80_spill] sm:$0xff] %v8543_v14  ;;  %v903_v56 = vmul.f32 %v11249_v32, %v8505_v42  ;;  %v3125_v58 = vmax.f32 %v2613_v12, 0.0  ;;  %v523_v7 = vmul.f32 %v11154_v45, %v11275_v38 }
 0x278   :  { %v1847_v55 = vadd.f32 %v1335_v15, %v526_v51  ;;  %v1713_v9 = vmul.f32 %v5417_v49, %v8543_v14  ;;  %v1715_v54 = vmul.f32 %v5431_v48, %v8543_v14  ;;  %v1712_v41 = vmul.f32 %v5435_v26, %v8543_v14 }
 0x279   :  { %v1714_v36 = vmul.f32 %v10669_v11, %v8543_v14  ;;  %v905_v34 = vmul.f32 %v11250_v46, %v8505_v42  ;;  %v3117_v12 = vmax.f32 %v2605_v25, 0.0  ;;  %v2607_v51 = vadd.f32 %v11295_v1, %v1839_v61  ;;  %v8571_v61 = vpop.permute.xlu1 %2497 }
 0x27a   :  { %v1844_v15 = vadd.f32 %v1332_v35, %v523_v7  ;;  %v2225_v30 = vadd.f32 %v1713_v9, %v904_v21  ;;  %v2227_v50 = vadd.f32 %v1715_v54, %v906_v60  ;;  %v2615_v52 = vadd.f32 %v11296_v53, %v1847_v55  ;;  %11300 = vst [vmem:[#allocation134_spill] sm:$0xff] %v8571_v61 }
 0x27b   :  { %v1836_v62 = vadd.f32 %v1324_v20, %v515_v57  ;;  %v8563_v29 = vpack.c.bf16 %v3125_v58, %v3117_v12  ;;  %v517_v33 = vmul.f32 %v11157_v2, %v11274_v43  ;;  %v525_v14 = vmul.f32 %v11157_v2, %v11275_v38 }
 0x27c   :  { %v1326_v25 = vmul.f32 %v7967_v13, %v11281_v16  ;;  %v2224_v7 = vadd.f32 %v1712_v41, %v903_v56  ;;  %v2226_v21 = vadd.f32 %v1714_v36, %v905_v34  ;;  %v3119_v60 = vmax.f32 %v2607_v51, 0.0 }
 0x27d   :  { %11299 = vst [vmem:[#allocation15_spill] sm:$0xff] %v8563_v29  ;;  %v2612_v57 = vadd.f32 %v11296_v53, %v1844_v15  ;;  %v2969_v20 = vadd.f32 %v8571_v61, %v8396_v47  ;;  %v2971_v35 = vadd.f32 %v8571_v61, %v8399_v22  ;;  %v2968_v43 = vadd.f32 %v8571_v61, %v8402_v6 }
 0x27e   :  { %v2970_v38 = vadd.f32 %v8571_v61, %v8405_v39  ;;  %v8583_v16 = vadd.f32 %v8561_v63, %v2225_v30  ;;  %v8586_v36 = vadd.f32 %v8561_v63, %v2227_v50  ;;  %v3127_v41 = vmax.f32 %v2615_v52, 0.0  ;;  %v8597_v9 = vpop.permute.xlu1 %378 }
 0x27f   :  { %v2604_v34 = vadd.f32 %v11295_v1, %v1836_v62  ;;  %v3481_v56 = vmax.f32 %v2969_v20, 0.0  ;;  %v3483_v47 = vmax.f32 %v2971_v35, 0.0  ;;  %v3480_v58 = vmax.f32 %v2968_v43, 0.0  ;;  %11301 = vst [vmem:[#allocation219_spill] sm:$0xff] %v8597_v9 }
 0x280   :  { %v3482_v55 = vmax.f32 %v2970_v38, 0.0  ;;  %v8590_v22 = vadd.f32 %v8561_v63, %v2224_v7  ;;  %v8593_v6 = vadd.f32 %v8561_v63, %v2226_v21  ;;  %v3124_v39 = vmax.f32 %v2612_v57, 0.0 }
 0x281   :  { %v1334_v30 = vmul.f32 %v7967_v13, %v11287_v27  ;;  %v11302_v52 = vmax.f32 %v8466_v4, 0.0  ;;  %v11303_v62 = vmax.f32 %v8469_v8, 0.0  ;;  %v11304_v12 = vmax.f32 %v8473_v28, 0.0 }
 0x282   :  { %v11305_v15 = vmax.f32 %v8476_v37, 0.0  ;;  %v912_v21 = vmul.f32 %v11243_v40, %v8597_v9  ;;  %v914_v27 = vmul.f32 %v11244_v19, %v8597_v9  ;;  %v911_v57 = vmul.f32 %v11249_v32, %v8597_v9 }
 0x283   :  { %v4334_v50 = vpack.c.bf16 %v11302_v52, %v3481_v56  ;;  %v4462_v54 = vpack.c.bf16 %v11303_v62, %v3483_v47  ;;  %v4336_v51 = vpack.c.bf16 %v11304_v12, %v3480_v58  ;;  %v913_v4 = vmul.f32 %v11250_v46, %v8597_v9  ;;  %v8621_v47 = vpop.permute.xlu1 %383  ;;  %v11308_v58 = vld [vmem:[#allocation153_spill] sm:$0xff] }
 0x284   :  { %v4464_v7 = vpack.c.bf16 %v11305_v15, %v3482_v55  ;;  %v3116_v28 = vmax.f32 %v2604_v34, 0.0  ;;  %v1838_v20 = vadd.f32 %v1326_v25, %v517_v33  ;;  %v1846_v37 = vadd.f32 %v1334_v30, %v525_v14  ;;  %11307 = vst [vmem:[#allocation183_spill] sm:$0xff] %v8621_v47  ;;  %v11310_v14 = vld [vmem:[#allocation27_spill] sm:$0xff]  ;;  %v11311_v34 = vld [vmem:[#allocation250_spill] sm:$0xff] }
 0x285   :  { %4335 = vmatprep.subr.bf16.mxu0 %v4334_v50  ;;  %4463 = vmatprep.subr.bf16.mxu1 %v4462_v54  ;;  %v8619_v56 = vpack.c.bf16 %v3127_v41, %v3119_v60  ;;  %v8624_v55 = vadd.f32 %v11308_v58, %v912_v21  ;;  %v532_v25 = vmul.f32 %v11202_v0, %v11310_v14  ;;  %v11312_v50 = vld [vmem:[#allocation176_spill] sm:$0xff]  ;;  %v11313_v60 = vld [vmem:[#allocation234_spill] sm:$0xff] }
 0x286   :  { %4337 = vmatpush1.bf16.msra.mxu0 %v4336_v51  ;;  %4465 = vmatpush1.bf16.msra.mxu1 %v4464_v7  ;;  %v8626_v52 = vpack.c.bf16 %v3124_v39, %v3116_v28  ;;  %v2606_v33 = vadd.f32 %v11295_v1, %v1838_v20  ;;  %v8632_v30 = vadd.f32 %v11311_v34, %v914_v27  ;;  %v11314_v51 = vld [vmem:[#allocation85_spill] sm:$0xff]  ;;  %v11315_v7 = vld [vmem:[#allocation26_spill] sm:$0xff]  ;;  %v11316_v27 = vld [vmem:[#allocation267_spill] sm:$0xff] }
 0x287   :  { %11306 = vst [vmem:[#allocation166_spill] sm:$0xff] %v8619_v56  ;;  %v8635_v62 = vadd.f32 %v11312_v50, %v911_v57  ;;  %v8638_v41 = vadd.f32 %v11313_v60, %v913_v4  ;;  %v2614_v54 = vadd.f32 %v11296_v53, %v1846_v37  ;;  %v920_v39 = vmul.f32 %v11243_v40, %v8621_v47 }
 0x288   :  { %11309 = vst [vmem:[#allocation185_spill] sm:$0xff] %v8626_v52  ;;  %v922_v1 = vmul.f32 %v11244_v19, %v8621_v47  ;;  %v919_v12 = vmul.f32 %v11249_v32, %v8621_v47  ;;  %v1341_v15 = vmul.f32 %v11121_v24, %v11314_v51  ;;  %v540_v21 = vmul.f32 %v11202_v0, %v11315_v7 }
 0x289   :  { %v1349_v57 = vmul.f32 %v11121_v24, %v11316_v27  ;;  %v534_v53 = vmul.f32 %v11143_v3, %v11310_v14  ;;  %v1343_v4 = vmul.f32 %v7852_v10, %v11314_v51  ;;  %v921_v28 = vmul.f32 %v11250_v46, %v8621_v47  ;;  %v8661_v34 = vpop.permute.xlu1 %1196 }
 0x28a   :  { %v3118_v20 = vmax.f32 %v2606_v33, 0.0  ;;  %v1853_v37 = vadd.f32 %v1341_v15, %v532_v25  ;;  %v1351_v58 = vmul.f32 %v7852_v10, %v11316_v27  ;;  %11317 = vst [vmem:[#allocation186_spill] sm:$0xff] %v8661_v34  ;;  %v3126_v50 = vmax.f32 %v2614_v54, 0.0  ;;  %v8673_v15 = vpop.permute.xlu0 %2517  ;;  %v11319_v54 = vld [vmem:[#allocation86_spill] sm:$0xff] }
 0x28b   :  { %v1861_v60 = vadd.f32 %v1349_v57, %v540_v21  ;;  %v542_v38 = vmul.f32 %v11143_v3, %v11315_v7  ;;  %v1855_v43 = vadd.f32 %v1343_v4, %v534_v53  ;;  %v1729_v35 = vmul.f32 %v5417_v49, %v8661_v34  ;;  %11318 = vst [vmem:[#allocation187_spill] sm:$0xff] %v8673_v15  ;;  %v11320_v57 = vld [vmem:[#allocation91_spill] sm:$0xff] }
 0x28c   :  { %v1731_v8 = vmul.f32 %v5431_v48, %v8661_v34  ;;  %v1728_v33 = vmul.f32 %v5435_v26, %v8661_v34  ;;  %v1730_v25 = vmul.f32 %v10669_v11, %v8661_v34  ;;  %v2621_v21 = vadd.f32 %v11319_v54, %v1853_v37 }
 0x28d   :  { %v2629_v47 = vadd.f32 %v11320_v57, %v1861_v60  ;;  %v1863_v9 = vadd.f32 %v1351_v58, %v542_v38  ;;  %v2623_v53 = vadd.f32 %v11319_v54, %v1855_v43  ;;  %v2241_v4 = vadd.f32 %v1729_v35, %v920_v39 }
 0x28e   :  { %v2243_v63 = vadd.f32 %v1731_v8, %v922_v1  ;;  %v2240_v42 = vadd.f32 %v1728_v33, %v919_v12  ;;  %v2242_v61 = vadd.f32 %v1730_v25, %v921_v28  ;;  %v8678_v52 = vpack.c.bf16 %v3126_v50, %v3118_v20  ;;  %v8686_v29 = vpop.permute.xlu1 %2505 }
 0x28f   :  { %v531_v56 = vmul.f32 %v11154_v45, %v11310_v14  ;;  %v539_v34 = vmul.f32 %v11154_v45, %v11315_v7  ;;  %v1340_v37 = vmul.f32 %v7910_v44, %v11314_v51  ;;  %11322 = vst [vmem:[#allocation188_spill] sm:$0xff] %v8686_v29  ;;  %v8689_v38 = vadd.f32 %v8673_v15, %v2241_v4 }
 0x290   :  { %11321 = vst [vmem:[#allocation260_spill] sm:$0xff] %v8678_v52  ;;  %v3133_v35 = vmax.f32 %v2621_v21, 0.0  ;;  %v3141_v8 = vmax.f32 %v2629_v47, 0.0  ;;  %v2631_v43 = vadd.f32 %v11320_v57, %v1863_v9  ;;  %v2985_v39 = vadd.f32 %v8686_v29, %v8512_v17 }
 0x291   :  { %v2987_v1 = vadd.f32 %v8686_v29, %v8515_v31  ;;  %v2984_v12 = vadd.f32 %v8686_v29, %v8518_v5  ;;  %v2986_v28 = vadd.f32 %v8686_v29, %v8521_v18  ;;  %v8701_v20 = vadd.f32 %v8673_v15, %v2243_v63 }
 0x292   :  { %v8704_v58 = vadd.f32 %v8673_v15, %v2240_v42  ;;  %v8707_v9 = vadd.f32 %v8673_v15, %v2242_v61  ;;  %v3135_v47 = vmax.f32 %v2623_v53, 0.0  ;;  %v3497_v17 = vmax.f32 %v2985_v39, 0.0 }
 0x293   :  { %v3499_v50 = vmax.f32 %v2987_v1, 0.0  ;;  %v3496_v60 = vmax.f32 %v2984_v12, 0.0  ;;  %v3498_v31 = vmax.f32 %v2986_v28, 0.0  ;;  %v3143_v5 = vmax.f32 %v2631_v43, 0.0 }
 0x294   :  { %v1348_v18 = vmul.f32 %v7910_v44, %v11316_v27  ;;  %v1852_v25 = vadd.f32 %v1340_v37, %v531_v56  ;;  %v8712_v63 = vpop.permute.xlu1 %388  ;;  %v11324_v42 = vmax.f32 %v8583_v16, 0.0  ;;  %v11325_v61 = vmax.f32 %v8586_v36, 0.0 }
 0x295   :  { %11323 = vst [vmem:[#allocation261_spill] sm:$0xff] %v8712_v63  ;;  %v11326_v53 = vmax.f32 %v8590_v22, 0.0  ;;  %v11327_v1 = vmax.f32 %v8593_v6, 0.0  ;;  %v928_v43 = vmul.f32 %v11243_v40, %v8712_v63  ;;  %v930_v56 = vmul.f32 %v11244_v19, %v8712_v63 }
 0x296   :  { %v4338_v21 = vpack.c.bf16 %v11324_v42, %v3497_v17  ;;  %v4466_v4 = vpack.c.bf16 %v11325_v61, %v3499_v50  ;;  %v927_v37 = vmul.f32 %v11249_v32, %v8712_v63  ;;  %v929_v16 = vmul.f32 %v11250_v46, %v8712_v63  ;;  %v11328_v50 = vld [vmem:[#allocation235_spill] sm:$0xff]  ;;  %v11332_v61 = vld [vmem:[#allocation236_spill] sm:$0xff] }
 0x297   :  { %v4340_v39 = vpack.c.bf16 %v11326_v53, %v3496_v60  ;;  %v4468_v12 = vpack.c.bf16 %v11327_v1, %v3498_v31  ;;  %v1860_v6 = vadd.f32 %v1348_v18, %v539_v34  ;;  %v2620_v28 = vadd.f32 %v11319_v54, %v1852_v25  ;;  %v11333_v53 = vld [vmem:[#allocation178_spill] sm:$0xff] }
 0x298   :  { %4339 = vmatprep.subr.bf16.mxu0 %v4338_v21  ;;  %4467 = vmatprep.subr.bf16.mxu1 %v4466_v4  ;;  %v8735_v60 = vadd.f32 %v11328_v50, %v928_v43  ;;  %v8737_v31 = vpack.c.bf16 %v3141_v8, %v3133_v35  ;;  %v8739_v42 = vpack.c.bf16 %v3143_v5, %v3135_v47  ;;  %v8741_v21 = vpop.permute.xlu1 %393  ;;  %v11334_v8 = vld [vmem:[#allocation255_spill] sm:$0xff] }
 0x299   :  { %4341 = vmatpush1.bf16.msra.mxu0 %v4340_v39  ;;  %4469 = vmatpush1.bf16.msra.mxu1 %v4468_v12  ;;  %11331 = vst [vmem:[#allocation110_spill] sm:$0xff] %v8741_v21  ;;  %v8744_v4 = vadd.f32 %v11332_v61, %v930_v56  ;;  %v8747_v34 = vadd.f32 %v11333_v53, %v927_v37  ;;  %v3132_v5 = vmax.f32 %v2620_v28, 0.0  ;;  %v11335_v56 = vld [vmem:[#allocation29_spill] sm:$0xff]  ;;  %v11337_v61 = vld [vmem:[#allocation84_spill] sm:$0xff] }
 0x29a   :  { %11329 = vst [vmem:[#allocation262_spill] sm:$0xff] %v8737_v31  ;;  %11330 = vst [vmem:[#allocation263_spill] sm:$0xff] %v8739_v42  ;;  %v2628_v18 = vadd.f32 %v11320_v57, %v1860_v6  ;;  %v533_v25 = vmul.f32 %v11157_v2, %v11310_v14  ;;  %v936_v39 = vmul.f32 %v11243_v40, %v8741_v21  ;;  %v11336_v6 = vld [vmem:[#allocation28_spill] sm:$0xff] }
 0x29b   :  { %v938_v35 = vmul.f32 %v11244_v19, %v8741_v21  ;;  %v8757_v47 = vadd.f32 %v11334_v8, %v929_v16  ;;  %v541_v12 = vmul.f32 %v11157_v2, %v11315_v7  ;;  %v1342_v43 = vmul.f32 %v7967_v13, %v11314_v51  ;;  %v11338_v28 = vld [vmem:[#allocation92_spill] sm:$0xff] }
 0x29c   :  { %v3140_v1 = vmax.f32 %v2628_v18, 0.0  ;;  %v1350_v14 = vmul.f32 %v7967_v13, %v11316_v27  ;;  %v548_v37 = vmul.f32 %v11202_v0, %v11335_v56  ;;  %v556_v50 = vmul.f32 %v11202_v0, %v11336_v6 }
 0x29d   :  { %v1357_v16 = vmul.f32 %v11121_v24, %v11337_v61  ;;  %v1365_v53 = vmul.f32 %v11121_v24, %v11338_v28  ;;  %v935_v7 = vmul.f32 %v11249_v32, %v8741_v21  ;;  %v937_v51 = vmul.f32 %v11250_v46, %v8741_v21  ;;  %v8779_v8 = vpop.permute.xlu1 %1204 }
 0x29e   :  { %v8777_v18 = vpack.c.bf16 %v3140_v1, %v3132_v5  ;;  %v1854_v27 = vadd.f32 %v1342_v43, %v533_v25  ;;  %11340 = vst [vmem:[#allocation14_spill] sm:$0xff] %v8779_v8  ;;  %v1862_v17 = vadd.f32 %v1350_v14, %v541_v12  ;;  %v550_v33 = vmul.f32 %v11143_v3, %v11335_v56  ;;  %v8791_v5 = vpop.permute.xlu0 %2525  ;;  %v11341_v43 = vld [vmem:[#allocation6_spill] sm:$0xff] }
 0x29f   :  { %v1869_v22 = vadd.f32 %v1357_v16, %v548_v37  ;;  %v1877_v36 = vadd.f32 %v1365_v53, %v556_v50  ;;  %v1745_v63 = vmul.f32 %v5417_v49, %v8779_v8  ;;  %v1747_v15 = vmul.f32 %v5431_v48, %v8779_v8  ;;  %v11342_v37 = vld [vmem:[#allocation94_spill] sm:$0xff] }
 0x2a0   :  { %11339 = vst [vmem:[#allocation191_spill] sm:$0xff] %v8777_v18  ;;  %v1744_v21 = vmul.f32 %v5435_v26, %v8779_v8  ;;  %v1746_v25 = vmul.f32 %v10669_v11, %v8779_v8  ;;  %v2622_v1 = vadd.f32 %v11319_v54, %v1854_v27  ;;  %v2630_v12 = vadd.f32 %v11320_v57, %v1862_v17 }
 0x2a1   :  { %v2637_v14 = vadd.f32 %v11341_v43, %v1869_v22  ;;  %v2645_v50 = vadd.f32 %v11342_v37, %v1877_v36  ;;  %v2257_v16 = vadd.f32 %v1745_v63, %v936_v39  ;;  %v2259_v53 = vadd.f32 %v1747_v15, %v938_v35 }
 0x2a2   :  { %v2256_v29 = vadd.f32 %v1744_v21, %v935_v7  ;;  %v2258_v18 = vadd.f32 %v1746_v25, %v937_v51  ;;  %v3134_v42 = vmax.f32 %v2622_v1, 0.0  ;;  %v3142_v31 = vmax.f32 %v2630_v12, 0.0  ;;  %v8801_v59 = vpop.permute.xlu1 %2513 }
 0x2a3   :  { %v558_v52 = vmul.f32 %v11143_v3, %v11336_v6  ;;  %v1359_v8 = vmul.f32 %v7852_v10, %v11337_v61  ;;  %v8804_v54 = vadd.f32 %v8791_v5, %v2257_v16  ;;  %v8807_v57 = vadd.f32 %v8791_v5, %v2259_v53 }
 0x2a4   :  { %v3149_v63 = vmax.f32 %v2637_v14, 0.0  ;;  %v3157_v15 = vmax.f32 %v2645_v50, 0.0  ;;  %v3001_v36 = vadd.f32 %v8801_v59, %v8624_v55  ;;  %v3003_v22 = vadd.f32 %v8801_v59, %v8632_v30 }
 0x2a5   :  { %v3000_v17 = vadd.f32 %v8801_v59, %v8635_v62  ;;  %v3002_v21 = vadd.f32 %v8801_v59, %v8638_v41  ;;  %v8820_v7 = vadd.f32 %v8791_v5, %v2256_v29  ;;  %v8823_v51 = vadd.f32 %v8791_v5, %v2258_v18 }
 0x2a6   :  { %v3513_v55 = vmax.f32 %v3001_v36, 0.0  ;;  %v3515_v27 = vmax.f32 %v3003_v22, 0.0  ;;  %v8825_v1 = vpack.c.bf16 %v3142_v31, %v3134_v42  ;;  %v8827_v62 = vpack.c.bf16 %v3157_v15, %v3149_v63  ;;  %v11356_v22 = vld [vmem:[#allocation93_spill] sm:$0xff] }
 0x2a7   :  { %v3512_v25 = vmax.f32 %v3000_v17, 0.0  ;;  %v3514_v30 = vmax.f32 %v3002_v21, 0.0  ;;  %v1367_v41 = vmul.f32 %v7852_v10, %v11338_v28  ;;  %v1871_v12 = vadd.f32 %v1359_v8, %v550_v33  ;;  %v8831_v14 = vpop.permute.xlu1 %398  ;;  %v11348_v17 = vld [vmem:[#allocation256_spill] sm:$0xff] }
 0x2a8   :  { %11343 = vst [vmem:[#allocation212_spill] sm:$0xff] %v8831_v14  ;;  %v11344_v29 = vmax.f32 %v8689_v38, 0.0  ;;  %v11345_v18 = vmax.f32 %v8701_v20, 0.0  ;;  %v11346_v53 = vmax.f32 %v8704_v58, 0.0  ;;  %v11347_v31 = vmax.f32 %v8707_v9, 0.0 }
 0x2a9   :  { %v944_v63 = vmul.f32 %v11243_v40, %v8831_v14  ;;  %v946_v33 = vmul.f32 %v11244_v19, %v8831_v14  ;;  %v943_v8 = vmul.f32 %v11249_v32, %v8831_v14  ;;  %v945_v38 = vmul.f32 %v11250_v46, %v8831_v14 }
 0x2aa   :  { %v4342_v50 = vpack.c.bf16 %v11344_v29, %v3513_v55  ;;  %v4470_v16 = vpack.c.bf16 %v11345_v18, %v3515_v27  ;;  %v4344_v36 = vpack.c.bf16 %v11346_v53, %v3512_v25  ;;  %v4472_v42 = vpack.c.bf16 %v11347_v31, %v3514_v30  ;;  %v11349_v55 = vld [vmem:[#allocation189_spill] sm:$0xff]  ;;  %v11350_v25 = vld [vmem:[#allocation190_spill] sm:$0xff] }
 0x2ab   :  { %v1879_v58 = vadd.f32 %v1367_v41, %v558_v52  ;;  %v2639_v9 = vadd.f32 %v11341_v43, %v1871_v12  ;;  %v547_v15 = vmul.f32 %v11154_v45, %v11335_v56  ;;  %v8855_v21 = vadd.f32 %v11348_v17, %v944_v63  ;;  %v8863_v29 = vpop.permute.xlu1 %403  ;;  %v11352_v52 = vld [vmem:[#allocation192_spill] sm:$0xff] }
 0x2ac   :  { %4343 = vmatprep.subr.bf16.mxu0 %v4342_v50  ;;  %4471 = vmatprep.subr.bf16.mxu1 %v4470_v16  ;;  %v8858_v27 = vadd.f32 %v11349_v55, %v946_v33  ;;  %v8861_v30 = vadd.f32 %v11350_v25, %v943_v8  ;;  %11351 = vst [vmem:[#allocation111_spill] sm:$0xff] %v8863_v29  ;;  %v11354_v55 = vld [vmem:[#allocation30_spill] sm:$0xff] }
 0x2ad   :  { %4345 = vmatpush1.bf16.msra.mxu0 %v4344_v36  ;;  %4473 = vmatpush1.bf16.msra.mxu1 %v4472_v42  ;;  %v8866_v41 = vadd.f32 %v11352_v52, %v945_v38  ;;  %v2647_v12 = vadd.f32 %v11342_v37, %v1879_v58  ;;  %v3151_v50 = vmax.f32 %v2639_v9, 0.0  ;;  %v555_v18 = vmul.f32 %v11154_v45, %v11336_v6 }
 0x2ae   :  { %v952_v16 = vmul.f32 %v11243_v40, %v8863_v29  ;;  %v954_v53 = vmul.f32 %v11244_v19, %v8863_v29  ;;  %v951_v36 = vmul.f32 %v11249_v32, %v8863_v29  ;;  %v953_v31 = vmul.f32 %v11250_v46, %v8863_v29  ;;  %v11353_v46 = vld [vmem:[#allocation31_spill] sm:$0xff] }
 0x2af   :  { %v3159_v42 = vmax.f32 %v2647_v12, 0.0  ;;  %v1356_v63 = vmul.f32 %v7910_v44, %v11337_v61  ;;  %v1364_v33 = vmul.f32 %v7910_v44, %v11338_v28  ;;  %v549_v8 = vmul.f32 %v11157_v2, %v11335_v56  ;;  %v11355_v12 = vld [vmem:[#allocation95_spill] sm:$0xff] }
 0x2b0   :  { %v557_v40 = vmul.f32 %v11157_v2, %v11336_v6  ;;  %v1358_v19 = vmul.f32 %v7967_v13, %v11337_v61  ;;  %v1366_v32 = vmul.f32 %v7967_v13, %v11338_v28  ;;  %v564_v38 = vmul.f32 %v11202_v0, %v11353_v46  ;;  %v8897_v56 = vpop.permute.xlu1 %1212 }
 0x2b1   :  { %v8893_v58 = vpack.c.bf16 %v3159_v42, %v3151_v50  ;;  %v1868_v9 = vadd.f32 %v1356_v63, %v547_v15  ;;  %v1876_v17 = vadd.f32 %v1364_v33, %v555_v18  ;;  %v572_v25 = vmul.f32 %v11202_v0, %v11354_v55 }
 0x2b2   :  { %v1870_v52 = vadd.f32 %v1358_v19, %v549_v8  ;;  %v1878_v6 = vadd.f32 %v1366_v32, %v557_v40  ;;  %v1373_v61 = vmul.f32 %v11121_v24, %v11355_v12  ;;  %v1381_v28 = vmul.f32 %v11121_v24, %v11356_v22 }
 0x2b3   :  { %v1761_v20 = vmul.f32 %v5417_v49, %v8897_v56  ;;  %v1763_v15 = vmul.f32 %v5431_v48, %v8897_v56  ;;  %v1760_v50 = vmul.f32 %v5435_v26, %v8897_v56  ;;  %v1762_v18 = vmul.f32 %v10669_v11, %v8897_v56 }
 0x2b4   :  { %v2636_v42 = vadd.f32 %v11341_v43, %v1868_v9  ;;  %v2644_v63 = vadd.f32 %v11342_v37, %v1876_v17  ;;  %v2638_v33 = vadd.f32 %v11341_v43, %v1870_v52  ;;  %v2646_v8 = vadd.f32 %v11342_v37, %v1878_v6 }
 0x2b5   :  { %v2273_v40 = vadd.f32 %v1761_v20, %v952_v16  ;;  %v2275_v19 = vadd.f32 %v1763_v15, %v954_v53  ;;  %v2272_v49 = vadd.f32 %v1760_v50, %v951_v36  ;;  %v2274_v32 = vadd.f32 %v1762_v18, %v953_v31  ;;  %v8915_v26 = vpop.permute.xlu1 %2521 }
 0x2b6   :  { %v3148_v35 = vmax.f32 %v2636_v42, 0.0  ;;  %v3156_v48 = vmax.f32 %v2644_v63, 0.0  ;;  %v3150_v39 = vmax.f32 %v2638_v33, 0.0  ;;  %v3158_v29 = vmax.f32 %v2646_v8, 0.0 }
 0x2b7   :  { %v1885_v14 = vadd.f32 %v1373_v61, %v564_v38  ;;  %v1893_v11 = vadd.f32 %v1381_v28, %v572_v25  ;;  %v566_v9 = vmul.f32 %v11143_v3, %v11353_v46  ;;  %v574_v43 = vmul.f32 %v11143_v3, %v11354_v55  ;;  %v11357_v38 = vld [vmem:[#allocation97_spill] sm:$0xff] }
 0x2b8   :  { %v3017_v37 = vadd.f32 %v8915_v26, %v8735_v60  ;;  %v3019_v20 = vadd.f32 %v8915_v26, %v8744_v4  ;;  %v3016_v16 = vadd.f32 %v8915_v26, %v8747_v34  ;;  %v3018_v53 = vadd.f32 %v8915_v26, %v8757_v47  ;;  %v11358_v25 = vld [vmem:[#allocation109_spill] sm:$0xff] }
 0x2b9   :  { %v8929_v36 = vpack.c.bf16 %v3156_v48, %v3148_v35  ;;  %v8931_v31 = vpack.c.bf16 %v3158_v29, %v3150_v39  ;;  %v2653_v17 = vadd.f32 %v11357_v38, %v1885_v14  ;;  %v2661_v52 = vadd.f32 %v11358_v25, %v1893_v11  ;;  %v8935_v15 = vpop.permute.xlu1 %2529 }
 0x2ba   :  { %v3529_v6 = vmax.f32 %v3017_v37, 0.0  ;;  %v3531_v61 = vmax.f32 %v3019_v20, 0.0  ;;  %v3528_v60 = vmax.f32 %v3016_v16, 0.0  ;;  %v3530_v28 = vmax.f32 %v3018_v53, 0.0 }
 0x2bb   :  { %v3165_v4 = vmax.f32 %v2653_v17, 0.0  ;;  %v3173_v50 = vmax.f32 %v2661_v52, 0.0  ;;  %v1375_v34 = vmul.f32 %v7852_v10, %v11355_v12  ;;  %v1383_v47 = vmul.f32 %v7852_v10, %v11356_v22 }
 0x2bc   :  { %v11359_v39 = vmax.f32 %v8804_v54, 0.0  ;;  %v11360_v14 = vmax.f32 %v8807_v57, 0.0  ;;  %v11361_v18 = vmax.f32 %v8820_v7, 0.0  ;;  %v11362_v63 = vmax.f32 %v8823_v51, 0.0 }
 0x2bd   :  { %v3033_v8 = vadd.f32 %v8935_v15, %v8855_v21  ;;  %v3035_v48 = vadd.f32 %v8935_v15, %v8858_v27  ;;  %v3032_v11 = vadd.f32 %v8935_v15, %v8861_v30  ;;  %v3034_v54 = vadd.f32 %v8935_v15, %v8866_v41  ;;  %v8959_v51 = vpop.permute.xlu1 %2533 }
 0x2be   :  { %v4346_v35 = vpack.c.bf16 %v11359_v39, %v3529_v6  ;;  %v4474_v29 = vpack.c.bf16 %v11360_v14, %v3531_v61  ;;  %v4348_v42 = vpack.c.bf16 %v11361_v18, %v3528_v60  ;;  %v4476_v33 = vpack.c.bf16 %v11362_v63, %v3530_v28 }
 0x2bf   :  { %v8957_v57 = vpack.c.bf16 %v3173_v50, %v3165_v4  ;;  %v1887_v7 = vadd.f32 %v1375_v34, %v566_v9  ;;  %v1895_v37 = vadd.f32 %v1383_v47, %v574_v43  ;;  %v3545_v21 = vmax.f32 %v3033_v8, 0.0 }
 0x2c0   :  { %4347 = vmatprep.subr.bf16.mxu0 %v4346_v35  ;;  %4475 = vmatprep.subr.bf16.mxu1 %v4474_v29  ;;  %v3547_v20 = vmax.f32 %v3035_v48, 0.0  ;;  %v3544_v16 = vmax.f32 %v3032_v11, 0.0  ;;  %v3546_v27 = vmax.f32 %v3034_v54, 0.0  ;;  %v3041_v53 = vadd.f32 %v8959_v51, %v2273_v40  ;;  %v11363_v11 = vld [vmem:[#allocation33_spill] sm:$0xff]  ;;  %v11364_v54 = vld [vmem:[#allocation163_spill] sm:$0xff] }
 0x2c1   :  { %4349 = vmatpush1.bf16.msra.mxu0 %v4348_v42  ;;  %4477 = vmatpush1.bf16.msra.mxu1 %v4476_v33  ;;  %v3043_v30 = vadd.f32 %v8959_v51, %v2275_v19  ;;  %v3040_v41 = vadd.f32 %v8959_v51, %v2272_v49  ;;  %v3042_v17 = vadd.f32 %v8959_v51, %v2274_v32 }
 0x2c2   :  { %v2655_v52 = vadd.f32 %v11357_v38, %v1887_v7  ;;  %v2663_v9 = vadd.f32 %v11358_v25, %v1895_v37  ;;  %v563_v43 = vmul.f32 %v11154_v45, %v11353_v46  ;;  %v571_v6 = vmul.f32 %v11154_v45, %v11354_v55  ;;  %v11365_v37 = vld [vmem:[#allocation32_spill] sm:$0xff] }
 0x2c3   :  { %v3553_v61 = vmax.f32 %v3041_v53, 0.0  ;;  %v3555_v60 = vmax.f32 %v3043_v30, 0.0  ;;  %v3552_v28 = vmax.f32 %v3040_v41, 0.0  ;;  %v3554_v40 = vmax.f32 %v3042_v17, 0.0  ;;  %v11368_v30 = vld [vmem:[#allocation172_spill] sm:$0xff] }
 0x2c4   :  { %v3167_v4 = vmax.f32 %v2655_v52, 0.0  ;;  %v3175_v19 = vmax.f32 %v2663_v9, 0.0  ;;  %v1372_v49 = vmul.f32 %v7910_v44, %v11355_v12  ;;  %v1380_v32 = vmul.f32 %v7910_v44, %v11356_v22  ;;  %v11369_v52 = vld [vmem:[#allocation164_spill] sm:$0xff] }
 0x2c5   :  { %v4350_v50 = vpack.c.bf16 %v3553_v61, %v3545_v21  ;;  %v4478_v34 = vpack.c.bf16 %v3555_v60, %v3547_v20  ;;  %v4352_v47 = vpack.c.bf16 %v3552_v28, %v3544_v16  ;;  %v4480_v39 = vpack.c.bf16 %v3554_v40, %v3546_v27  ;;  %v11366_v20 = vld [vmem:[#allocation96_spill] sm:$0xff]  ;;  %v11367_v27 = vld [vmem:[#allocation98_spill] sm:$0xff]  ;;  %v11371_v60 = vld [vmem:[#allocation243_spill] sm:$0xff] }
 0x2c6   :  { %v8975_v35 = vpack.c.bf16 %v3175_v19, %v3167_v4  ;;  %v1884_v14 = vadd.f32 %v1372_v49, %v563_v43  ;;  %v1892_v29 = vadd.f32 %v1380_v32, %v571_v6  ;;  %v565_v18 = vmul.f32 %v11157_v2, %v11353_v46  ;;  %v11370_v9 = vld [vmem:[#allocation12_spill] sm:$0xff]  ;;  %v11372_v28 = vld [vmem:[#allocation201_spill] sm:$0xff]  ;;  %v11373_v19 = vld [vmem:[#allocation211_spill] sm:$0xff] }
 0x2c7   :  { %4351 = vmatprep.subr.bf16.mxu0 %v4350_v50  ;;  %4479 = vmatprep.subr.bf16.mxu1 %v4478_v34  ;;  %v573_v42 = vmul.f32 %v11157_v2, %v11354_v55  ;;  %v1374_v63 = vmul.f32 %v7967_v13, %v11355_v12  ;;  %v1382_v33 = vmul.f32 %v7967_v13, %v11356_v22  ;;  %v11374_v32 = vld [vmem:[#allocation151_spill] sm:$0xff] }
 0x2c8   :  { %4353 = vmatpush1.bf16.msra.mxu0 %v4352_v47  ;;  %4481 = vmatpush1.bf16.msra.mxu1 %v4480_v39  ;;  %v2652_v8 = vadd.f32 %v11357_v38, %v1884_v14  ;;  %v2660_v48 = vadd.f32 %v11358_v25, %v1892_v29  ;;  %v580_v46 = vmul.f32 %v11202_v0, %v11363_v11  ;;  %v11375_v39 = vld [vmem:[#allocation16_spill] sm:$0xff] }
 0x2c9   :  { %4483 = vmatprep.subr.bf16.mxu0 %v8087_v23  ;;  %4611 = vmatprep.subr.bf16.mxu1 %v11364_v54  ;;  %v1886_v55 = vadd.f32 %v1374_v63, %v565_v18  ;;  %v1894_v7 = vadd.f32 %v1382_v33, %v573_v42  ;;  %v588_v12 = vmul.f32 %v11202_v0, %v11365_v37  ;;  %v11376_v63 = vld [vmem:[#allocation71_spill] sm:$0xff]  ;;  %v11377_v33 = vld [vmem:[#allocation173_spill] sm:$0xff] }
 0x2ca   :  { %v3164_v21 = vmax.f32 %v2652_v8, 0.0  ;;  %v3172_v22 = vmax.f32 %v2660_v48, 0.0  ;;  %v1389_v16 = vmul.f32 %v11121_v24, %v11366_v20  ;;  %v1397_v53 = vmul.f32 %v11121_v24, %v11367_v27 }
 0x2cb   :  { %3720 = vmatmul.mubr.f32.vlgmr.msra.gmra.mrb[0].mxu0 %v11368_v30  ;;  %3862 = vmatmul.mubr.f32.vlgmr.msra.gmra.mrb[0].mxu1 %v11368_v30  ;;  %v2654_v23 = vadd.f32 %v11357_v38, %v1886_v55  ;;  %v2662_v41 = vadd.f32 %v11358_v25, %v1894_v7  ;;  %v582_v17 = vmul.f32 %v11143_v3, %v11363_v11  ;;  %v11378_v55 = vld [vmem:[#allocation266_spill] sm:$0xff] }
 0x2cc   :  { %4485 = vmatpush1.bf16.msra.mxu0 %v11369_v52  ;;  %4613 = vmatpush1.bf16.msra.mxu1 %v11370_v9  ;;  %v9005_v43 = vpack.c.bf16 %v3172_v22, %v3164_v21  ;;  %v1901_v6 = vadd.f32 %v1389_v16, %v580_v46  ;;  %v1909_v61 = vadd.f32 %v1397_v53, %v588_v12  ;;  %v11379_v7 = vld [vmem:[#allocation174_spill] sm:$0xff] }
 0x2cd   :  { %4487 = vmatprep.subr.bf16.mxu0 %v11371_v60  ;;  %4615 = vmatprep.subr.bf16.mxu1 %v11372_v28  ;;  %v3166_v40 = vmax.f32 %v2654_v23, 0.0  ;;  %v3174_v4 = vmax.f32 %v2662_v41, 0.0  ;;  %v590_v38 = vmul.f32 %v11143_v3, %v11365_v37  ;;  %v1391_v25 = vmul.f32 %v7852_v10, %v11366_v20 }
 0x2ce   :  { %v2669_v49 = vadd.f32 %v11373_v19, %v1901_v6  ;;  %v2677_v50 = vadd.f32 %v11374_v32, %v1909_v61  ;;  %v1399_v34 = vmul.f32 %v7852_v10, %v11367_v27  ;;  %v579_v47 = vmul.f32 %v11154_v45, %v11363_v11  ;;  %3932 = vmatprep.mubr.f32.mxu0 %v11375_v39  ;;  %v11380_v61 = vld [vmem:[#allocation202_spill] sm:$0xff] }
 0x2cf   :  { %v9020_v14 = vpack.c.bf16 %v3174_v4, %v3166_v40  ;;  %v1903_v29 = vadd.f32 %v1391_v25, %v582_v17  ;;  %v587_v18 = vmul.f32 %v11154_v45, %v11365_v37  ;;  %v1388_v42 = vmul.f32 %v7910_v44, %v11366_v20  ;;  %4074 = vmatprep.mubr.f32.mxu1 %v11375_v39  ;;  %v11382_v40 = vld [vmem:[#allocation35_spill] sm:$0xff]  ;;  %v11384_v25 = vld [vmem:[#allocation216_spill] sm:$0xff] }
 0x2d0   :  { %4489 = vmatpush1.bf16.msra.mxu0 %v11376_v63  ;;  %4617 = vmatpush1.bf16.msra.mxu1 %v11377_v33  ;;  %v3181_v8 = vmax.f32 %v2669_v49, 0.0  ;;  %v3189_v48 = vmax.f32 %v2677_v50, 0.0  ;;  %v1911_v46 = vadd.f32 %v1399_v34, %v590_v38  ;;  %v1396_v54 = vmul.f32 %v7910_v44, %v11367_v27  ;;  %v11385_v49 = vld [vmem:[#allocation17_spill] sm:$0xff]  ;;  %v11386_v34 = vld [vmem:[#allocation154_spill] sm:$0xff] }
 0x2d1   :  { %4491 = vmatprep.subr.bf16.mxu0 %v11378_v55  ;;  %4619 = vmatprep.subr.bf16.mxu1 %v11379_v7  ;;  %v2671_v12 = vadd.f32 %v11373_v19, %v1903_v29  ;;  %v1900_v21 = vadd.f32 %v1388_v42, %v579_v47  ;;  %v581_v22 = vmul.f32 %v11157_v2, %v11363_v11  ;;  %v11381_v11 = vld [vmem:[#allocation167_spill] sm:$0xff]  ;;  %v11389_v55 = vld [vmem:[#allocation149_spill] sm:$0xff] }
 0x2d2   :  { %v9036_v16 = vpack.c.bf16 %v3189_v48, %v3181_v8  ;;  %v2679_v53 = vadd.f32 %v11374_v32, %v1911_v46  ;;  %v1908_v23 = vadd.f32 %v1396_v54, %v587_v18  ;;  %v589_v41 = vmul.f32 %v11157_v2, %v11365_v37  ;;  %v11383_v37 = vld [vmem:[#allocation34_spill] sm:$0xff]  ;;  %v11388_v54 = vld [vmem:[#allocation19_spill] sm:$0xff] }
 0x2d3   :  { %v3183_v17 = vmax.f32 %v2671_v12, 0.0  ;;  %v2668_v52 = vadd.f32 %v11373_v19, %v1900_v21  ;;  %v1390_v9 = vmul.f32 %v7967_v13, %v11366_v20  ;;  %v1398_v6 = vmul.f32 %v7967_v13, %v11367_v27  ;;  %v11387_v18 = vld [vmem:[#allocation150_spill] sm:$0xff] }
 0x2d4   :  { %4493 = vmatpush1.bf16.msra.mxu0 %v11380_v61  ;;  %4621 = vmatpush1.bf16.msra.mxu1 %v11381_v11  ;;  %v3191_v60 = vmax.f32 %v2679_v53, 0.0  ;;  %v2676_v28 = vadd.f32 %v11374_v32, %v1908_v23  ;;  %v596_v4 = vmul.f32 %v11202_v0, %v11382_v40  ;;  %v604_v38 = vmul.f32 %v11202_v0, %v11383_v37  ;;  %v11391_v53 = vld [vmem:[#allocation166_spill] sm:$0xff]  ;;  %v11392_v23 = vld [vmem:[#allocation179_spill] sm:$0xff] }
 0x2d5   :  { %4495 = vmatprep.subr.bf16.mxu0 %v11384_v25  ;;  %4623 = vmatprep.subr.bf16.mxu1 %v11385_v49  ;;  %v3180_v20 = vmax.f32 %v2668_v52, 0.0  ;;  %v1902_v50 = vadd.f32 %v1390_v9, %v581_v22  ;;  %v1910_v27 = vadd.f32 %v1398_v6, %v589_v41  ;;  %v1405_v47 = vmul.f32 %v11121_v24, %v11386_v34  ;;  %v11390_v22 = vld [vmem:[#allocation15_spill] sm:$0xff]  ;;  %v11393_v52 = vld [vmem:[#allocation106_spill] sm:$0xff]  ;;  %v11394_v25 = vld [vmem:[#allocation185_spill] sm:$0xff] }
 0x2d6   :  { %v9057_v39 = vpack.c.bf16 %v3191_v60, %v3183_v17  ;;  %v3188_v29 = vmax.f32 %v2676_v28, 0.0  ;;  %v1413_v42 = vmul.f32 %v11121_v24, %v11387_v18  ;;  %v598_v63 = vmul.f32 %v11143_v3, %v11382_v40  ;;  %v11395_v49 = vld [vmem:[#allocation260_spill] sm:$0xff] }
 0x2d7   :  { %v2670_v33 = vadd.f32 %v11373_v19, %v1902_v50  ;;  %v2678_v8 = vadd.f32 %v11374_v32, %v1910_v27  ;;  %v1917_v48 = vadd.f32 %v1405_v47, %v596_v4  ;;  %v606_v46 = vmul.f32 %v11143_v3, %v11383_v37 }
 0x2d8   :  { %4497 = vmatpush1.bf16.msra.mxu0 %v11388_v54  ;;  %4625 = vmatpush1.bf16.msra.mxu1 %v11389_v55  ;;  %v9069_v7 = vpack.c.bf16 %v3188_v29, %v3180_v20  ;;  %v1925_v12 = vadd.f32 %v1413_v42, %v604_v38  ;;  %v1407_v21 = vmul.f32 %v7852_v10, %v11386_v34  ;;  %v11396_v29 = vld [vmem:[#allocation262_spill] sm:$0xff]  ;;  %v11397_v42 = vld [vmem:[#allocation263_spill] sm:$0xff] }
 0x2d9   :  { %4499 = vmatprep.subr.bf16.mxu0 %v11390_v22  ;;  %4627 = vmatprep.subr.bf16.mxu1 %v11391_v53  ;;  %v3182_v19 = vmax.f32 %v2670_v33, 0.0  ;;  %v3190_v32 = vmax.f32 %v2678_v8, 0.0  ;;  %v2685_v41 = vadd.f32 %v11392_v23, %v1917_v48  ;;  %v1415_v17 = vmul.f32 %v7852_v10, %v11387_v18  ;;  %v11398_v22 = vld [vmem:[#allocation37_spill] sm:$0xff] }
 0x2da   :  { %v2693_v9 = vadd.f32 %v11393_v52, %v1925_v12  ;;  %v1919_v6 = vadd.f32 %v1407_v21, %v598_v63  ;;  %v595_v61 = vmul.f32 %v11154_v45, %v11382_v40  ;;  %v603_v11 = vmul.f32 %v11154_v45, %v11383_v37 }
 0x2db   :  { %v9083_v60 = vpack.c.bf16 %v3190_v32, %v3182_v19  ;;  %v3197_v28 = vmax.f32 %v2685_v41, 0.0  ;;  %v1927_v4 = vadd.f32 %v1415_v17, %v606_v46  ;;  %v1404_v38 = vmul.f32 %v7910_v44, %v11386_v34  ;;  %v11399_v19 = vld [vmem:[#allocation191_spill] sm:$0xff]  ;;  %v11400_v41 = vld [vmem:[#allocation36_spill] sm:$0xff] }
 0x2dc   :  { %4501 = vmatpush1.bf16.msra.mxu0 %v11394_v25  ;;  %4629 = vmatpush1.bf16.msra.mxu1 %v11395_v49  ;;  %v3205_v20 = vmax.f32 %v2693_v9, 0.0  ;;  %v2687_v50 = vadd.f32 %v11392_v23, %v1919_v6  ;;  %v1412_v27 = vmul.f32 %v7910_v44, %v11387_v18  ;;  %v597_v47 = vmul.f32 %v11157_v2, %v11382_v40  ;;  %v11401_v6 = vld [vmem:[#allocation156_spill] sm:$0xff] }
 0x2dd   :  { %4503 = vmatprep.subr.bf16.mxu0 %v11396_v29  ;;  %4631 = vmatprep.subr.bf16.mxu1 %v11397_v42  ;;  %v2695_v63 = vadd.f32 %v11393_v52, %v1927_v4  ;;  %v1916_v33 = vadd.f32 %v1404_v38, %v595_v61  ;;  %v605_v8 = vmul.f32 %v11157_v2, %v11383_v37 }
 0x2de   :  { %v9099_v48 = vpack.c.bf16 %v3205_v20, %v3197_v28  ;;  %v3199_v46 = vmax.f32 %v2687_v50, 0.0  ;;  %v1924_v54 = vadd.f32 %v1412_v27, %v603_v11  ;;  %v1406_v55 = vmul.f32 %v7967_v13, %v11386_v34 }
 0x2df   :  { %v3207_v12 = vmax.f32 %v2695_v63, 0.0  ;;  %v2684_v40 = vadd.f32 %v11392_v23, %v1916_v33  ;;  %v1414_v21 = vmul.f32 %v7967_v13, %v11387_v18  ;;  %v612_v53 = vmul.f32 %v11202_v0, %v11398_v22 }
 0x2e0   :  { %4505 = vmatpush1.bf16.msra.mxu0 %v11399_v19  ;;  %4633 = vmatpush1.bf16.msra.mxu1 %v8825_v1  ;;  %v2692_v37 = vadd.f32 %v11393_v52, %v1924_v54  ;;  %v1918_v32 = vadd.f32 %v1406_v55, %v597_v47  ;;  %v620_v17 = vmul.f32 %v11202_v0, %v11400_v41  ;;  %v11402_v1 = vld [vmem:[#allocation155_spill] sm:$0xff]  ;;  %v11403_v47 = vld [vmem:[#allocation73_spill] sm:$0xff] }
 0x2e1   :  { %4507 = vmatprep.subr.bf16.mxu0 %v8827_v62  ;;  %4635 = vmatprep.subr.bf16.mxu1 %v8893_v58  ;;  %v4646_v34 = vpack.c.bf16 %v3207_v12, %v3199_v46  ;;  %v3196_v9 = vmax.f32 %v2684_v40, 0.0  ;;  %v1926_v18 = vadd.f32 %v1414_v21, %v605_v8  ;;  %v1421_v61 = vmul.f32 %v11121_v24, %v11401_v6 }
 0x2e2   :  { %v3204_v11 = vmax.f32 %v2692_v37, 0.0  ;;  %v2686_v28 = vadd.f32 %v11392_v23, %v1918_v32  ;;  %v1429_v4 = vmul.f32 %v11121_v24, %v11402_v1  ;;  %v614_v38 = vmul.f32 %v11143_v3, %v11398_v22 }
 0x2e3   :  { %v2694_v25 = vadd.f32 %v11393_v52, %v1926_v18  ;;  %v1933_v62 = vadd.f32 %v1421_v61, %v612_v53  ;;  %v622_v58 = vmul.f32 %v11143_v3, %v11400_v41  ;;  %v1423_v49 = vmul.f32 %v7852_v10, %v11401_v6  ;;  %v11405_v61 = vld [vmem:[#allocation39_spill] sm:$0xff] }
 0x2e4   :  { %4509 = vmatpush1.bf16.msra.mxu0 %v8929_v36  ;;  %4637 = vmatpush1.bf16.msra.mxu1 %v8931_v31  ;;  %v4520_v23 = vpack.c.bf16 %v3204_v11, %v3196_v9  ;;  %v3198_v20 = vmax.f32 %v2686_v28, 0.0  ;;  %v1941_v50 = vadd.f32 %v1429_v4, %v620_v17  ;;  %v1431_v27 = vmul.f32 %v7852_v10, %v11402_v1  ;;  %v11404_v36 = vld [vmem:[#allocation112_spill] sm:$0xff]  ;;  %v11406_v11 = vld [vmem:[#allocation38_spill] sm:$0xff] }
 0x2e5   :  { %4511 = vmatprep.subr.bf16.mxu0 %v8957_v57  ;;  %4639 = vmatprep.subr.bf16.mxu1 %v8975_v35  ;;  %v3206_v52 = vmax.f32 %v2694_v25, 0.0  ;;  %v2701_v29 = vadd.f32 %v11403_v47, %v1933_v62  ;;  %v1935_v42 = vadd.f32 %v1423_v49, %v614_v38  ;;  %v611_v63 = vmul.f32 %v11154_v45, %v11398_v22  ;;  %v11407_v38 = vld [vmem:[#allocation104_spill] sm:$0xff] }
 0x2e6   :  { %v2709_v33 = vadd.f32 %v11404_v36, %v1941_v50  ;;  %v1943_v31 = vadd.f32 %v1431_v27, %v622_v58  ;;  %v619_v8 = vmul.f32 %v11154_v45, %v11400_v41  ;;  %v1420_v46 = vmul.f32 %v7910_v44, %v11401_v6  ;;  %v11408_v58 = vld [vmem:[#allocation107_spill] sm:$0xff] }
 0x2e7   :  { %v4648_v54 = vpack.c.bf16 %v3206_v52, %v3198_v20  ;;  %v3213_v57 = vmax.f32 %v2701_v29, 0.0  ;;  %v2703_v35 = vadd.f32 %v11403_v47, %v1935_v42  ;;  %v1428_v55 = vmul.f32 %v7910_v44, %v11402_v1  ;;  %v11409_v42 = vld [vmem:[#allocation77_spill] sm:$0xff] }
 0x2e8   :  { %4513 = vmatpush1.bf16.msra.mxu0 %v9005_v43  ;;  %4641 = vmatpush1.bf16.msra.mxu1 %v9020_v14  ;;  %v3221_v12 = vmax.f32 %v2709_v33, 0.0  ;;  %v2711_v40 = vadd.f32 %v11404_v36, %v1943_v31  ;;  %v1932_v21 = vadd.f32 %v1420_v46, %v611_v63  ;;  %v613_v53 = vmul.f32 %v11157_v2, %v11398_v22  ;;  %v11410_v31 = vld [vmem:[#allocation76_spill] sm:$0xff] }
 0x2e9   :  { %4515 = vmatprep.subr.bf16.mxu0 %v9036_v16  ;;  %4643 = vmatprep.subr.bf16.mxu1 %v9057_v39  ;;  %v3215_v19 = vmax.f32 %v2703_v35, 0.0  ;;  %v1940_v37 = vadd.f32 %v1428_v55, %v619_v8  ;;  %v621_v32 = vmul.f32 %v11157_v2, %v11400_v41  ;;  %v1422_v43 = vmul.f32 %v7967_v13, %v11401_v6 }
 0x2ea   :  { %v4522_v14 = vpack.c.bf16 %v3221_v12, %v3213_v57  ;;  %v3223_v17 = vmax.f32 %v2711_v40, 0.0  ;;  %v2700_v9 = vadd.f32 %v11403_v47, %v1932_v21  ;;  %v1430_v18 = vmul.f32 %v7967_v13, %v11402_v1 }
 0x2eb   :  { %v2708_v22 = vadd.f32 %v11404_v36, %v1940_v37  ;;  %v1934_v16 = vadd.f32 %v1422_v43, %v613_v53  ;;  %v628_v39 = vmul.f32 %v11202_v0, %v11405_v61  ;;  %v636_v28 = vmul.f32 %v11202_v0, %v11406_v11 }
 0x2ec   :  { %4517 = vmatpush1.bf16.msra.mxu0 %v9069_v7  ;;  %4645 = vmatpush1.bf16.msra.mxu1 %v9083_v60  ;;  %v4650_v41 = vpack.c.bf16 %v3223_v17, %v3215_v19  ;;  %v3212_v6 = vmax.f32 %v2700_v9, 0.0  ;;  %v1942_v4 = vadd.f32 %v1430_v18, %v621_v32  ;;  %v1437_v25 = vmul.f32 %v11121_v24, %v11407_v38 }
 0x2ed   :  { %4519 = vmatprep.subr.bf16.mxu0 %v9099_v48  ;;  %4647 = vmatprep.subr.bf16.mxu1 %v4646_v34  ;;  %v3220_v1 = vmax.f32 %v2708_v22, 0.0  ;;  %v2702_v62 = vadd.f32 %v11403_v47, %v1934_v16  ;;  %v1445_v49 = vmul.f32 %v11121_v24, %v11408_v58  ;;  %v630_v7 = vmul.f32 %v11143_v3, %v11405_v61 }
 0x2ee   :  { %v2710_v60 = vadd.f32 %v11404_v36, %v1942_v4  ;;  %v1949_v20 = vadd.f32 %v1437_v25, %v628_v39  ;;  %v638_v50 = vmul.f32 %v11143_v3, %v11406_v11  ;;  %v1439_v27 = vmul.f32 %v7852_v10, %v11407_v38 }
 0x2ef   :  { %v4524_v48 = vpack.c.bf16 %v3220_v1, %v3212_v6  ;;  %v3214_v34 = vmax.f32 %v2702_v62, 0.0  ;;  %v1957_v52 = vadd.f32 %v1445_v49, %v636_v28  ;;  %v1447_v47 = vmul.f32 %v7852_v10, %v11408_v58  ;;  %v11412_v28 = vld [vmem:[#allocation40_spill] sm:$0xff] }
 0x2f0   :  { %4521 = vmatpush1.bf16.msra.mxu0 %v4520_v23  ;;  %4649 = vmatpush1.bf16.msra.mxu1 %v4648_v54  ;;  %v3222_v29 = vmax.f32 %v2710_v60, 0.0  ;;  %v2717_v63 = vadd.f32 %v11409_v42, %v1949_v20  ;;  %v1951_v33 = vadd.f32 %v1439_v27, %v630_v7  ;;  %v627_v36 = vmul.f32 %v11154_v45, %v11405_v61 }
 0x2f1   :  { %4523 = vmatprep.subr.bf16.mxu0 %v4522_v14  ;;  %4651 = vmatprep.subr.bf16.mxu1 %v4650_v41  ;;  %v2725_v8 = vadd.f32 %v11410_v31, %v1957_v52  ;;  %v1959_v46 = vadd.f32 %v1447_v47, %v638_v50  ;;  %v635_v57 = vmul.f32 %v11154_v45, %v11406_v11 }
 0x2f2   :  { %v4652_v35 = vpack.c.bf16 %v3222_v29, %v3214_v34  ;;  %v3229_v55 = vmax.f32 %v2717_v63, 0.0  ;;  %v2719_v23 = vadd.f32 %v11409_v42, %v1951_v33  ;;  %v1436_v54 = vmul.f32 %v7910_v44, %v11407_v38  ;;  %v11415_v63 = vld [vmem:[#allocation81_spill] sm:$0xff] }
 0x2f3   :  { %v3237_v12 = vmax.f32 %v2725_v8, 0.0  ;;  %v2727_v40 = vadd.f32 %v11410_v31, %v1959_v46  ;;  %v1444_v21 = vmul.f32 %v7910_v44, %v11408_v58  ;;  %v629_v53 = vmul.f32 %v11157_v2, %v11405_v61  ;;  %v11411_v61 = vld [vmem:[#allocation41_spill] sm:$0xff] }
 0x2f4   :  { %4525 = vmatpush1.bf16.msra.mxu0 %v4524_v48  ;;  %4653 = vmatpush1.bf16.msra.mxu1 %v4652_v35  ;;  %v3231_v19 = vmax.f32 %v2719_v23, 0.0  ;;  %v1948_v37 = vadd.f32 %v1436_v54, %v627_v36  ;;  %v637_v32 = vmul.f32 %v11157_v2, %v11406_v11  ;;  %v1438_v43 = vmul.f32 %v7967_v13, %v11407_v38  ;;  %v11413_v38 = vld [vmem:[#allocation206_spill] sm:$0xff] }
 0x2f5   :  { %v4526_v14 = vpack.c.bf16 %v3237_v12, %v3229_v55  ;;  %v3239_v17 = vmax.f32 %v2727_v40, 0.0  ;;  %v1956_v9 = vadd.f32 %v1444_v21, %v635_v57  ;;  %v1446_v18 = vmul.f32 %v7967_v13, %v11408_v58  ;;  %v11414_v58 = vld [vmem:[#allocation181_spill] sm:$0xff] }
 0x2f6   :  { %v2716_v22 = vadd.f32 %v11409_v42, %v1948_v37  ;;  %v1950_v16 = vadd.f32 %v1438_v43, %v629_v53  ;;  %v644_v39 = vmul.f32 %v11202_v0, %v11411_v61  ;;  %v652_v41 = vmul.f32 %v11202_v0, %v11412_v28 }
 0x2f7   :  { %4527 = vmatprep.subr.bf16.mxu0 %v4526_v14  ;;  %v4654_v11 = vpack.c.bf16 %v3239_v17, %v3231_v19  ;;  %v2724_v6 = vadd.f32 %v11410_v31, %v1956_v9  ;;  %v1958_v4 = vadd.f32 %v1446_v18, %v637_v32  ;;  %v1453_v25 = vmul.f32 %v11121_v24, %v11413_v38 }
 0x2f8   :  { %v3228_v1 = vmax.f32 %v2716_v22, 0.0  ;;  %v2718_v62 = vadd.f32 %v11409_v42, %v1950_v16  ;;  %v1461_v49 = vmul.f32 %v11121_v24, %v11414_v58  ;;  %v646_v7 = vmul.f32 %v11143_v3, %v11411_v61 }
 0x2f9   :  { %4655 = vmatprep.subr.bf16.mxu1 %v4654_v11  ;;  %v3236_v60 = vmax.f32 %v2724_v6, 0.0  ;;  %v2726_v20 = vadd.f32 %v11410_v31, %v1958_v4  ;;  %v1965_v50 = vadd.f32 %v1453_v25, %v644_v39  ;;  %v654_v27 = vmul.f32 %v11143_v3, %v11412_v28  ;;  %v11416_v31 = vld [vmem:[#allocation121_spill] sm:$0xff]  ;;  %v11418_v4 = vld [vmem:[#allocation42_spill] sm:$0xff] }
 0x2fa   :  { %v3230_v48 = vmax.f32 %v2718_v62, 0.0  ;;  %v1973_v34 = vadd.f32 %v1461_v49, %v652_v41  ;;  %v1455_v52 = vmul.f32 %v7852_v10, %v11413_v38  ;;  %v1463_v47 = vmul.f32 %v7852_v10, %v11414_v58  ;;  %v11417_v41 = vld [vmem:[#allocation43_spill] sm:$0xff]  ;;  %v11419_v25 = vld [vmem:[#allocation194_spill] sm:$0xff] }
 0x2fb   :  { %v4528_v29 = vpack.c.bf16 %v3236_v60, %v3228_v1  ;;  %v3238_v42 = vmax.f32 %v2726_v20, 0.0  ;;  %v2733_v33 = vadd.f32 %v11415_v63, %v1965_v50  ;;  %v643_v36 = vmul.f32 %v11154_v45, %v11411_v61 }
 0x2fc   :  { %v2741_v8 = vadd.f32 %v11416_v31, %v1973_v34  ;;  %v1967_v46 = vadd.f32 %v1455_v52, %v646_v7  ;;  %v1975_v57 = vadd.f32 %v1463_v47, %v654_v27  ;;  %v651_v35 = vmul.f32 %v11154_v45, %v11412_v28  ;;  %v11420_v7 = vld [vmem:[#allocation78_spill] sm:$0xff] }
 0x2fd   :  { %4529 = vmatpush1.bf16.msra.mxu0 %v4528_v29  ;;  %v4656_v55 = vpack.c.bf16 %v3238_v42, %v3230_v48  ;;  %v3245_v23 = vmax.f32 %v2733_v33, 0.0  ;;  %v1452_v54 = vmul.f32 %v7910_v44, %v11413_v38  ;;  %v1460_v12 = vmul.f32 %v7910_v44, %v11414_v58 }
 0x2fe   :  { %v3253_v40 = vmax.f32 %v2741_v8, 0.0  ;;  %v2735_v21 = vadd.f32 %v11415_v63, %v1967_v46  ;;  %v2743_v53 = vadd.f32 %v11416_v31, %v1975_v57  ;;  %v645_v19 = vmul.f32 %v11157_v2, %v11411_v61  ;;  %v11422_v8 = vld [vmem:[#allocation127_spill] sm:$0xff] }
 0x2ff   :  { %4657 = vmatpush1.bf16.msra.mxu1 %v4656_v55  ;;  %v1964_v37 = vadd.f32 %v1452_v54, %v643_v36  ;;  %v1972_v32 = vadd.f32 %v1460_v12, %v651_v35  ;;  %v653_v43 = vmul.f32 %v11157_v2, %v11412_v28  ;;  %v1454_v14 = vmul.f32 %v7967_v13, %v11413_v38 }
 0x300   :  { %v4530_v17 = vpack.c.bf16 %v3253_v40, %v3245_v23  ;;  %v3247_v9 = vmax.f32 %v2735_v21, 0.0  ;;  %v3255_v18 = vmax.f32 %v2743_v53, 0.0  ;;  %v1462_v22 = vmul.f32 %v7967_v13, %v11414_v58 }
 0x301   :  { %v2732_v16 = vadd.f32 %v11415_v63, %v1964_v37  ;;  %v2740_v39 = vadd.f32 %v11416_v31, %v1972_v32  ;;  %v1966_v61 = vadd.f32 %v1454_v14, %v645_v19  ;;  %v660_v11 = vmul.f32 %v11202_v0, %v11417_v41 }
 0x302   :  { %4531 = vmatprep.subr.bf16.mxu0 %v4530_v17  ;;  %v4658_v6 = vpack.c.bf16 %v3255_v18, %v3247_v9  ;;  %v1974_v28 = vadd.f32 %v1462_v22, %v653_v43  ;;  %v668_v38 = vmul.f32 %v11202_v0, %v11418_v4  ;;  %v1469_v1 = vmul.f32 %v11121_v24, %v11419_v25 }
 0x303   :  { %v3244_v62 = vmax.f32 %v2732_v16, 0.0  ;;  %v3252_v49 = vmax.f32 %v2740_v39, 0.0  ;;  %v2734_v58 = vadd.f32 %v11415_v63, %v1966_v61  ;;  %v1477_v60 = vmul.f32 %v11121_v24, %v11420_v7  ;;  %v11421_v63 = vld [vmem:[#allocation79_spill] sm:$0xff] }
 0x304   :  { %4659 = vmatprep.subr.bf16.mxu1 %v4658_v6  ;;  %v2742_v20 = vadd.f32 %v11416_v31, %v1974_v28  ;;  %v1981_v50 = vadd.f32 %v1469_v1, %v660_v11  ;;  %v662_v27 = vmul.f32 %v11143_v3, %v11417_v41  ;;  %v670_v48 = vmul.f32 %v11143_v3, %v11418_v4  ;;  %v11423_v11 = vld [vmem:[#allocation45_spill] sm:$0xff]  ;;  %v11425_v1 = vld [vmem:[#allocation124_spill] sm:$0xff] }
 0x305   :  { %v4532_v34 = vpack.c.bf16 %v3252_v49, %v3244_v62  ;;  %v3246_v52 = vmax.f32 %v2734_v58, 0.0  ;;  %v1989_v47 = vadd.f32 %v1477_v60, %v668_v38  ;;  %v1471_v29 = vmul.f32 %v7852_v10, %v11419_v25  ;;  %v11424_v38 = vld [vmem:[#allocation44_spill] sm:$0xff]  ;;  %v11426_v60 = vld [vmem:[#allocation205_spill] sm:$0xff] }
 0x306   :  { %v3254_v42 = vmax.f32 %v2742_v20, 0.0  ;;  %v2749_v33 = vadd.f32 %v11421_v63, %v1981_v50  ;;  %v1479_v36 = vmul.f32 %v7852_v10, %v11420_v7  ;;  %v659_v31 = vmul.f32 %v11154_v45, %v11417_v41 }
 0x307   :  { %4533 = vmatpush1.bf16.msra.mxu0 %v4532_v34  ;;  %v2757_v46 = vadd.f32 %v11422_v8, %v1989_v47  ;;  %v1983_v57 = vadd.f32 %v1471_v29, %v662_v27  ;;  %v667_v35 = vmul.f32 %v11154_v45, %v11418_v4  ;;  %v1468_v55 = vmul.f32 %v7910_v44, %v11419_v25 }
 0x308   :  { %v4660_v23 = vpack.c.bf16 %v3254_v42, %v3246_v52  ;;  %v3261_v54 = vmax.f32 %v2749_v33, 0.0  ;;  %v1991_v12 = vadd.f32 %v1479_v36, %v670_v48  ;;  %v1476_v40 = vmul.f32 %v7910_v44, %v11420_v7  ;;  %v11427_v33 = vld [vmem:[#allocation223_spill] sm:$0xff] }
 0x309   :  { %v3269_v21 = vmax.f32 %v2757_v46, 0.0  ;;  %v2751_v53 = vadd.f32 %v11421_v63, %v1983_v57  ;;  %v1980_v19 = vadd.f32 %v1468_v55, %v659_v31  ;;  %v661_v37 = vmul.f32 %v11157_v2, %v11417_v41  ;;  %v11428_v46 = vld [vmem:[#allocation214_spill] sm:$0xff] }
 0x30a   :  { %4661 = vmatpush1.bf16.msra.mxu1 %v4660_v23  ;;  %v2759_v32 = vadd.f32 %v11422_v8, %v1991_v12  ;;  %v1988_v43 = vadd.f32 %v1476_v40, %v667_v35  ;;  %v669_v14 = vmul.f32 %v11157_v2, %v11418_v4  ;;  %v1470_v17 = vmul.f32 %v7967_v13, %v11419_v25 }
 0x30b   :  { %v4534_v9 = vpack.c.bf16 %v3269_v21, %v3261_v54  ;;  %v3263_v18 = vmax.f32 %v2751_v53, 0.0  ;;  %v2748_v22 = vadd.f32 %v11421_v63, %v1980_v19  ;;  %v1478_v16 = vmul.f32 %v7967_v13, %v11420_v7 }
 0x30c   :  { %v3271_v39 = vmax.f32 %v2759_v32, 0.0  ;;  %v2756_v61 = vadd.f32 %v11422_v8, %v1988_v43  ;;  %v1982_v41 = vadd.f32 %v1470_v17, %v661_v37  ;;  %v676_v6 = vmul.f32 %v11202_v0, %v11423_v11 }
 0x30d   :  { %4535 = vmatprep.subr.bf16.mxu0 %v4534_v9  ;;  %v3260_v28 = vmax.f32 %v2748_v22, 0.0  ;;  %v1990_v4 = vadd.f32 %v1478_v16, %v669_v14  ;;  %v684_v25 = vmul.f32 %v11202_v0, %v11424_v38  ;;  %v1485_v62 = vmul.f32 %v11121_v24, %v11425_v1 }
 0x30e   :  { %v4662_v49 = vpack.c.bf16 %v3271_v39, %v3263_v18  ;;  %v3268_v58 = vmax.f32 %v2756_v61, 0.0  ;;  %v2750_v7 = vadd.f32 %v11421_v63, %v1982_v41  ;;  %v1493_v20 = vmul.f32 %v11121_v24, %v11426_v60 }
 0x30f   :  { %v2758_v50 = vadd.f32 %v11422_v8, %v1990_v4  ;;  %v1997_v27 = vadd.f32 %v1485_v62, %v676_v6  ;;  %v678_v48 = vmul.f32 %v11143_v3, %v11423_v11  ;;  %v686_v34 = vmul.f32 %v11143_v3, %v11424_v38  ;;  %v11429_v6 = vld [vmem:[#allocation47_spill] sm:$0xff]  ;;  %v11431_v62 = vld [vmem:[#allocation120_spill] sm:$0xff] }
 0x310   :  { %4663 = vmatprep.subr.bf16.mxu1 %v4662_v49  ;;  %v4536_v52 = vpack.c.bf16 %v3268_v58, %v3260_v28  ;;  %v3262_v47 = vmax.f32 %v2750_v7, 0.0  ;;  %v2005_v29 = vadd.f32 %v1493_v20, %v684_v25  ;;  %v1487_v42 = vmul.f32 %v7852_v10, %v11425_v1  ;;  %v11430_v25 = vld [vmem:[#allocation46_spill] sm:$0xff] }
 0x311   :  { %v3270_v63 = vmax.f32 %v2758_v50, 0.0  ;;  %v2765_v36 = vadd.f32 %v11427_v33, %v1997_v27  ;;  %v1495_v31 = vmul.f32 %v7852_v10, %v11426_v60  ;;  %v675_v8 = vmul.f32 %v11154_v45, %v11423_v11  ;;  %v11432_v20 = vld [vmem:[#allocation126_spill] sm:$0xff] }
 0x312   :  { %4537 = vmatpush1.bf16.msra.mxu0 %v4536_v52  ;;  %v2773_v57 = vadd.f32 %v11428_v46, %v2005_v29  ;;  %v1999_v35 = vadd.f32 %v1487_v42, %v678_v48  ;;  %v683_v55 = vmul.f32 %v11154_v45, %v11424_v38  ;;  %v1484_v23 = vmul.f32 %v7910_v44, %v11425_v1 }
 0x313   :  { %v4664_v54 = vpack.c.bf16 %v3270_v63, %v3262_v47  ;;  %v3277_v12 = vmax.f32 %v2765_v36, 0.0  ;;  %v2007_v40 = vadd.f32 %v1495_v31, %v686_v34  ;;  %v1492_v21 = vmul.f32 %v7910_v44, %v11426_v60  ;;  %v11433_v36 = vld [vmem:[#allocation136_spill] sm:$0xff] }
 0x314   :  { %v3285_v53 = vmax.f32 %v2773_v57, 0.0  ;;  %v2767_v19 = vadd.f32 %v11427_v33, %v1999_v35  ;;  %v1996_v37 = vadd.f32 %v1484_v23, %v675_v8  ;;  %v677_v32 = vmul.f32 %v11157_v2, %v11423_v11  ;;  %v11434_v57 = vld [vmem:[#allocation55_spill] sm:$0xff] }
 0x315   :  { %4665 = vmatpush1.bf16.msra.mxu1 %v4664_v54  ;;  %v2775_v43 = vadd.f32 %v11428_v46, %v2007_v40  ;;  %v2004_v14 = vadd.f32 %v1492_v21, %v683_v55  ;;  %v685_v17 = vmul.f32 %v11157_v2, %v11424_v38  ;;  %v1486_v9 = vmul.f32 %v7967_v13, %v11425_v1 }
 0x316   :  { %v4538_v18 = vpack.c.bf16 %v3285_v53, %v3277_v12  ;;  %v3279_v22 = vmax.f32 %v2767_v19, 0.0  ;;  %v2764_v16 = vadd.f32 %v11427_v33, %v1996_v37  ;;  %v1494_v39 = vmul.f32 %v7967_v13, %v11426_v60 }
 0x317   :  { %v3287_v61 = vmax.f32 %v2775_v43, 0.0  ;;  %v2772_v41 = vadd.f32 %v11428_v46, %v2004_v14  ;;  %v1998_v11 = vadd.f32 %v1486_v9, %v677_v32  ;;  %v692_v28 = vmul.f32 %v11202_v0, %v11429_v6 }
 0x318   :  { %4539 = vmatprep.subr.bf16.mxu0 %v4538_v18  ;;  %v3276_v4 = vmax.f32 %v2764_v16, 0.0  ;;  %v2006_v38 = vadd.f32 %v1494_v39, %v685_v17  ;;  %v700_v1 = vmul.f32 %v11202_v0, %v11430_v25  ;;  %v1501_v49 = vmul.f32 %v11121_v24, %v11431_v62 }
 0x319   :  { %v4666_v58 = vpack.c.bf16 %v3287_v61, %v3279_v22  ;;  %v3284_v7 = vmax.f32 %v2772_v41, 0.0  ;;  %v2766_v60 = vadd.f32 %v11427_v33, %v1998_v11  ;;  %v1509_v50 = vmul.f32 %v11121_v24, %v11432_v20 }
 0x31a   :  { %v2774_v27 = vadd.f32 %v11428_v46, %v2006_v38  ;;  %v2013_v48 = vadd.f32 %v1501_v49, %v692_v28  ;;  %v694_v34 = vmul.f32 %v11143_v3, %v11429_v6  ;;  %v702_v52 = vmul.f32 %v11143_v3, %v11430_v25  ;;  %v11435_v28 = vld [vmem:[#allocation49_spill] sm:$0xff]  ;;  %v11437_v49 = vld [vmem:[#allocation132_spill] sm:$0xff] }
 0x31b   :  { %4667 = vmatprep.subr.bf16.mxu1 %v4666_v58  ;;  %v4540_v47 = vpack.c.bf16 %v3284_v7, %v3276_v4  ;;  %v3278_v29 = vmax.f32 %v2766_v60, 0.0  ;;  %v2021_v42 = vadd.f32 %v1509_v50, %v700_v1  ;;  %v1503_v63 = vmul.f32 %v7852_v10, %v11431_v62  ;;  %v11436_v1 = vld [vmem:[#allocation48_spill] sm:$0xff]  ;;  %v11438_v50 = vld [vmem:[#allocation9_spill] sm:$0xff] }
 0x31c   :  { %v3286_v33 = vmax.f32 %v2774_v27, 0.0  ;;  %v2781_v31 = vadd.f32 %v11433_v36, %v2013_v48  ;;  %v1511_v8 = vmul.f32 %v7852_v10, %v11432_v20  ;;  %v691_v46 = vmul.f32 %v11154_v45, %v11429_v6 }
 0x31d   :  { %4541 = vmatpush1.bf16.msra.mxu0 %v4540_v47  ;;  %v2789_v35 = vadd.f32 %v11434_v57, %v2021_v42  ;;  %v2015_v55 = vadd.f32 %v1503_v63, %v694_v34  ;;  %v699_v23 = vmul.f32 %v11154_v45, %v11430_v25  ;;  %v1500_v54 = vmul.f32 %v7910_v44, %v11431_v62 }
 0x31e   :  { %v4668_v12 = vpack.c.bf16 %v3286_v33, %v3278_v29  ;;  %v3293_v40 = vmax.f32 %v2781_v31, 0.0  ;;  %v2023_v21 = vadd.f32 %v1511_v8, %v702_v52  ;;  %v1508_v53 = vmul.f32 %v7910_v44, %v11432_v20  ;;  %v11439_v31 = vld [vmem:[#allocation11_spill] sm:$0xff] }
 0x31f   :  { %v3301_v19 = vmax.f32 %v2789_v35, 0.0  ;;  %v2783_v37 = vadd.f32 %v11433_v36, %v2015_v55  ;;  %v2012_v32 = vadd.f32 %v1500_v54, %v691_v46  ;;  %v693_v43 = vmul.f32 %v11157_v2, %v11429_v6  ;;  %v11440_v35 = vld [vmem:[#allocation141_spill] sm:$0xff] }
 0x320   :  { %4669 = vmatpush1.bf16.msra.mxu1 %v4668_v12  ;;  %v2791_v14 = vadd.f32 %v11434_v57, %v2023_v21  ;;  %v2020_v17 = vadd.f32 %v1508_v53, %v699_v23  ;;  %v701_v9 = vmul.f32 %v11157_v2, %v11430_v25  ;;  %v1502_v18 = vmul.f32 %v7967_v13, %v11431_v62 }
 0x321   :  { %v4542_v22 = vpack.c.bf16 %v3301_v19, %v3293_v40  ;;  %v3295_v16 = vmax.f32 %v2783_v37, 0.0  ;;  %v2780_v39 = vadd.f32 %v11433_v36, %v2012_v32  ;;  %v1510_v61 = vmul.f32 %v7967_v13, %v11432_v20 }
 0x322   :  { %v3303_v41 = vmax.f32 %v2791_v14, 0.0  ;;  %v2788_v11 = vadd.f32 %v11434_v57, %v2020_v17  ;;  %v2014_v6 = vadd.f32 %v1502_v18, %v693_v43  ;;  %v708_v4 = vmul.f32 %v11202_v0, %v11435_v28 }
 0x323   :  { %4543 = vmatprep.subr.bf16.mxu0 %v4542_v22  ;;  %v3292_v38 = vmax.f32 %v2780_v39, 0.0  ;;  %v2022_v25 = vadd.f32 %v1510_v61, %v701_v9  ;;  %v716_v62 = vmul.f32 %v11202_v0, %v11436_v1  ;;  %v1517_v58 = vmul.f32 %v11121_v24, %v11437_v49  ;;  %v11441_v9 = vld [vmem:[#allocation83_spill] sm:$0xff] }
 0x324   :  { %v4670_v7 = vpack.c.bf16 %v3303_v41, %v3295_v16  ;;  %v3300_v60 = vmax.f32 %v2788_v11, 0.0  ;;  %v2782_v20 = vadd.f32 %v11433_v36, %v2014_v6  ;;  %v1525_v27 = vmul.f32 %v11121_v24, %v11438_v50  ;;  %v11442_v11 = vld [vmem:[#allocation130_spill] sm:$0xff] }
 0x325   :  { %v2790_v48 = vadd.f32 %v11434_v57, %v2022_v25  ;;  %v2029_v34 = vadd.f32 %v1517_v58, %v708_v4  ;;  %v710_v52 = vmul.f32 %v11143_v3, %v11435_v28  ;;  %v718_v47 = vmul.f32 %v11143_v3, %v11436_v1  ;;  %v11444_v58 = vld [vmem:[#allocation50_spill] sm:$0xff] }
 0x326   :  { %4671 = vmatprep.subr.bf16.mxu1 %v4670_v7  ;;  %v4544_v29 = vpack.c.bf16 %v3300_v60, %v3292_v38  ;;  %v3294_v42 = vmax.f32 %v2782_v20, 0.0  ;;  %v2037_v63 = vadd.f32 %v1525_v27, %v716_v62  ;;  %v1519_v33 = vmul.f32 %v7852_v10, %v11437_v49  ;;  %v11443_v38 = vld [vmem:[#allocation51_spill] sm:$0xff] }
 0x327   :  { %v3302_v36 = vmax.f32 %v2790_v48, 0.0  ;;  %v2797_v8 = vadd.f32 %v11439_v31, %v2029_v34  ;;  %v1527_v46 = vmul.f32 %v7852_v10, %v11438_v50  ;;  %v707_v57 = vmul.f32 %v11154_v45, %v11435_v28  ;;  %v11446_v34 = vld [vmem:[#allocation220_spill] sm:$0xff] }
 0x328   :  { %4545 = vmatpush1.bf16.msra.mxu0 %v4544_v29  ;;  %v2805_v55 = vadd.f32 %v11440_v35, %v2037_v63  ;;  %v2031_v23 = vadd.f32 %v1519_v33, %v710_v52  ;;  %v715_v54 = vmul.f32 %v11154_v45, %v11436_v1  ;;  %v1516_v12 = vmul.f32 %v7910_v44, %v11437_v49 }
 0x329   :  { %v4672_v40 = vpack.c.bf16 %v3302_v36, %v3294_v42  ;;  %v3309_v21 = vmax.f32 %v2797_v8, 0.0  ;;  %v2039_v53 = vadd.f32 %v1527_v46, %v718_v47  ;;  %v1524_v19 = vmul.f32 %v7910_v44, %v11438_v50 }
 0x32a   :  { %v3317_v37 = vmax.f32 %v2805_v55, 0.0  ;;  %v2799_v32 = vadd.f32 %v11439_v31, %v2031_v23  ;;  %v2028_v43 = vadd.f32 %v1516_v12, %v707_v57  ;;  %v709_v14 = vmul.f32 %v11157_v2, %v11435_v28  ;;  %v11447_v57 = vld [vmem:[#allocation232_spill] sm:$0xff] }
 0x32b   :  { %4673 = vmatpush1.bf16.msra.mxu1 %v4672_v40  ;;  %v2807_v17 = vadd.f32 %v11440_v35, %v2039_v53  ;;  %3933 = vmatmul.mubr.f32.vlgmr.msra.gmra.mrb[2].mxu0 %v11441_v9  ;;  %v2036_v18 = vadd.f32 %v1524_v19, %v715_v54  ;;  %v717_v22 = vmul.f32 %v11157_v2, %v11436_v1  ;;  %v11448_v12 = vld [vmem:[#allocation60_spill] sm:$0xff] }
 0x32c   :  { %v4546_v16 = vpack.c.bf16 %v3317_v37, %v3309_v21  ;;  %v3311_v39 = vmax.f32 %v2799_v32, 0.0  ;;  %v2796_v61 = vadd.f32 %v11439_v31, %v2028_v43  ;;  %v1518_v41 = vmul.f32 %v7967_v13, %v11437_v49  ;;  %4003 = vmatprep.mubr.f32.mxu0 %v11442_v11  ;;  %v11445_v49 = vld [vmem:[#allocation18_spill] sm:$0xff] }
 0x32d   :  { %v3319_v6 = vmax.f32 %v2807_v17, 0.0  ;;  %v2804_v28 = vadd.f32 %v11440_v35, %v2036_v18  ;;  %v1526_v4 = vmul.f32 %v7967_v13, %v11438_v50  ;;  %v724_v25 = vmul.f32 %v11202_v0, %v11443_v38 }
 0x32e   :  { %4547 = vmatprep.subr.bf16.mxu0 %v4546_v16  ;;  %v3308_v1 = vmax.f32 %v2796_v61, 0.0  ;;  %4075 = vmatmul.mubr.f32.vlgmr.msra.gmra.mrb[2].mxu1 %v11441_v9  ;;  %v2030_v62 = vadd.f32 %v1518_v41, %v709_v14  ;;  %v732_v7 = vmul.f32 %v11202_v0, %v11444_v58  ;;  %v1533_v60 = vmul.f32 %v11121_v24, %v11445_v49 }
 0x32f   :  { %v4674_v20 = vpack.c.bf16 %v3319_v6, %v3311_v39  ;;  %v3316_v27 = vmax.f32 %v2804_v28, 0.0  ;;  %v2038_v48 = vadd.f32 %v1526_v4, %v717_v22  ;;  %v1541_v50 = vmul.f32 %v11121_v24, %v11446_v34  ;;  %4145 = vmatprep.mubr.f32.mxu1 %v11442_v11 }
 0x330   :  { %v2798_v52 = vadd.f32 %v11439_v31, %v2030_v62  ;;  %v2045_v47 = vadd.f32 %v1533_v60, %v724_v25  ;;  %v726_v29 = vmul.f32 %v11143_v3, %v11443_v38  ;;  %v734_v42 = vmul.f32 %v11143_v3, %v11444_v58  ;;  %v11449_v25 = vld [vmem:[#allocation54_spill] sm:$0xff] }
 0x331   :  { %4675 = vmatprep.subr.bf16.mxu1 %v4674_v20  ;;  %v4548_v63 = vpack.c.bf16 %v3316_v27, %v3308_v1  ;;  %v2806_v33 = vadd.f32 %v11440_v35, %v2038_v48  ;;  %v2053_v36 = vadd.f32 %v1541_v50, %v732_v7  ;;  %v1535_v8 = vmul.f32 %v7852_v10, %v11445_v49  ;;  %v11450_v7 = vld [vmem:[#allocation53_spill] sm:$0xff]  ;;  %v11452_v50 = vld [vmem:[#allocation122_spill] sm:$0xff] }
 0x332   :  { %v3310_v46 = vmax.f32 %v2798_v52, 0.0  ;;  %v2813_v55 = vadd.f32 %v11447_v57, %v2045_v47  ;;  %v1543_v31 = vmul.f32 %v7852_v10, %v11446_v34  ;;  %v723_v23 = vmul.f32 %v11154_v45, %v11443_v38  ;;  %v11451_v20 = vld [vmem:[#allocation229_spill] sm:$0xff] }
 0x333   :  { %4549 = vmatpush1.bf16.msra.mxu0 %v4548_v63  ;;  %v3318_v54 = vmax.f32 %v2806_v33, 0.0  ;;  %v2821_v40 = vadd.f32 %v11448_v12, %v2053_v36  ;;  %v2047_v21 = vadd.f32 %v1535_v8, %v726_v29  ;;  %v731_v35 = vmul.f32 %v11154_v45, %v11444_v58 }
 0x334   :  { %v3325_v53 = vmax.f32 %v2813_v55, 0.0  ;;  %v2055_v19 = vadd.f32 %v1543_v31, %v734_v42  ;;  %v1532_v37 = vmul.f32 %v7910_v44, %v11445_v49  ;;  %v1540_v32 = vmul.f32 %v7910_v44, %v11446_v34 }
 0x335   :  { %v4676_v43 = vpack.c.bf16 %v3318_v54, %v3310_v46  ;;  %v3333_v14 = vmax.f32 %v2821_v40, 0.0  ;;  %v2815_v17 = vadd.f32 %v11447_v57, %v2047_v21  ;;  %v725_v9 = vmul.f32 %v11157_v2, %v11443_v38 }
 0x336   :  { %v2823_v18 = vadd.f32 %v11448_v12, %v2055_v19  ;;  %v2044_v22 = vadd.f32 %v1532_v37, %v723_v23  ;;  %v2052_v16 = vadd.f32 %v1540_v32, %v731_v35  ;;  %v733_v39 = vmul.f32 %v11157_v2, %v11444_v58  ;;  %v11453_v23 = vld [vmem:[#allocation10_spill] sm:$0xff] }
 0x337   :  { %4677 = vmatpush1.bf16.msra.mxu1 %v4676_v43  ;;  %v4550_v61 = vpack.c.bf16 %v3333_v14, %v3325_v53  ;;  %v3327_v41 = vmax.f32 %v2815_v17, 0.0  ;;  %v1534_v11 = vmul.f32 %v7967_v13, %v11445_v49  ;;  %v1542_v6 = vmul.f32 %v7967_v13, %v11446_v34 }
 0x338   :  { %v3335_v28 = vmax.f32 %v2823_v18, 0.0  ;;  %v2812_v4 = vadd.f32 %v11447_v57, %v2044_v22  ;;  %v2820_v38 = vadd.f32 %v11448_v12, %v2052_v16  ;;  %v740_v1 = vmul.f32 %v11202_v0, %v11449_v25 }
 0x339   :  { %4551 = vmatprep.subr.bf16.mxu0 %v4550_v61  ;;  %v2046_v62 = vadd.f32 %v1534_v11, %v725_v9  ;;  %v2054_v58 = vadd.f32 %v1542_v6, %v733_v39  ;;  %v748_v60 = vmul.f32 %v11202_v0, %v11450_v7  ;;  %v1549_v49 = vmul.f32 %v11121_v24, %v11451_v20 }
 0x33a   :  { %v4678_v27 = vpack.c.bf16 %v3335_v28, %v3327_v41  ;;  %v3324_v48 = vmax.f32 %v2812_v4, 0.0  ;;  %v3332_v34 = vmax.f32 %v2820_v38, 0.0  ;;  %v1557_v52 = vmul.f32 %v11121_v24, %v11452_v50 }
 0x33b   :  { %v2814_v47 = vadd.f32 %v11447_v57, %v2046_v62  ;;  %v2822_v29 = vadd.f32 %v11448_v12, %v2054_v58  ;;  %v2061_v42 = vadd.f32 %v1549_v49, %v740_v1  ;;  %v742_v63 = vmul.f32 %v11143_v3, %v11449_v25  ;;  %v11454_v12 = vld [vmem:[#allocation169_spill] sm:$0xff] }
 0x33c   :  { %4679 = vmatprep.subr.bf16.mxu1 %v4678_v27  ;;  %v4552_v33 = vpack.c.bf16 %v3332_v34, %v3324_v48  ;;  %v2069_v36 = vadd.f32 %v1557_v52, %v748_v60  ;;  %v750_v8 = vmul.f32 %v11143_v3, %v11450_v7  ;;  %v1551_v46 = vmul.f32 %v7852_v10, %v11451_v20  ;;  %v11455_v1 = vld [vmem:[#allocation57_spill] sm:$0xff]  ;;  %v11456_v60 = vld [vmem:[#allocation56_spill] sm:$0xff] }
 0x33d   :  { %v3326_v55 = vmax.f32 %v2814_v47, 0.0  ;;  %v3334_v31 = vmax.f32 %v2822_v29, 0.0  ;;  %v2829_v54 = vadd.f32 %v11453_v23, %v2061_v42  ;;  %v1559_v57 = vmul.f32 %v7852_v10, %v11452_v50  ;;  %v11457_v49 = vld [vmem:[#allocation125_spill] sm:$0xff] }
 0x33e   :  { %4553 = vmatpush1.bf16.msra.mxu0 %v4552_v33  ;;  %v2837_v40 = vadd.f32 %v11454_v12, %v2069_v36  ;;  %v2063_v21 = vadd.f32 %v1551_v46, %v742_v63  ;;  %v739_v35 = vmul.f32 %v11154_v45, %v11449_v25  ;;  %v747_v53 = vmul.f32 %v11154_v45, %v11450_v7  ;;  %v11458_v52 = vld [vmem:[#allocation225_spill] sm:$0xff] }
 0x33f   :  { %v4680_v19 = vpack.c.bf16 %v3334_v31, %v3326_v55  ;;  %v3341_v37 = vmax.f32 %v2829_v54, 0.0  ;;  %v2071_v32 = vadd.f32 %v1559_v57, %v750_v8  ;;  %v1548_v43 = vmul.f32 %v7910_v44, %v11451_v20  ;;  %v11459_v54 = vld [vmem:[#allocation177_spill] sm:$0xff] }
 0x340   :  { %v3349_v14 = vmax.f32 %v2837_v40, 0.0  ;;  %v2831_v17 = vadd.f32 %v11453_v23, %v2063_v21  ;;  %v1556_v9 = vmul.f32 %v7910_v44, %v11452_v50  ;;  %v741_v18 = vmul.f32 %v11157_v2, %v11449_v25  ;;  %v11460_v40 = vld [vmem:[#allocation257_spill] sm:$0xff] }
 0x341   :  { %4681 = vmatpush1.bf16.msra.mxu1 %v4680_v19  ;;  %v2839_v22 = vadd.f32 %v11454_v12, %v2071_v32  ;;  %v2060_v16 = vadd.f32 %v1548_v43, %v739_v35  ;;  %v749_v39 = vmul.f32 %v11157_v2, %v11450_v7  ;;  %v1550_v61 = vmul.f32 %v7967_v13, %v11451_v20 }
 0x342   :  { %v4554_v41 = vpack.c.bf16 %v3349_v14, %v3341_v37  ;;  %v3343_v11 = vmax.f32 %v2831_v17, 0.0  ;;  %v2068_v6 = vadd.f32 %v1556_v9, %v747_v53  ;;  %v1558_v28 = vmul.f32 %v7967_v13, %v11452_v50 }
 0x343   :  { %v3351_v4 = vmax.f32 %v2839_v22, 0.0  ;;  %v2828_v38 = vadd.f32 %v11453_v23, %v2060_v16  ;;  %v2062_v25 = vadd.f32 %v1550_v61, %v741_v18  ;;  %v756_v62 = vmul.f32 %v11202_v0, %v11455_v1 }
 0x344   :  { %4555 = vmatprep.subr.bf16.mxu0 %v4554_v41  ;;  %v2836_v58 = vadd.f32 %v11454_v12, %v2068_v6  ;;  %v2070_v7 = vadd.f32 %v1558_v28, %v749_v39  ;;  %v764_v20 = vmul.f32 %v11202_v0, %v11456_v60  ;;  %v1565_v27 = vmul.f32 %v11121_v24, %v11457_v49 }
 0x345   :  { %v4682_v48 = vpack.c.bf16 %v3351_v4, %v3343_v11  ;;  %v3340_v34 = vmax.f32 %v2828_v38, 0.0  ;;  %v2830_v50 = vadd.f32 %v11453_v23, %v2062_v25  ;;  %v1573_v47 = vmul.f32 %v11121_v24, %v11458_v52 }
 0x346   :  { %v3348_v29 = vmax.f32 %v2836_v58, 0.0  ;;  %v2838_v42 = vadd.f32 %v11454_v12, %v2070_v7  ;;  %v2077_v63 = vadd.f32 %v1565_v27, %v756_v62  ;;  %v758_v33 = vmul.f32 %v11143_v3, %v11455_v1  ;;  %v11461_v62 = vld [vmem:[#allocation64_spill] sm:$0xff]  ;;  %v11463_v27 = vld [vmem:[#allocation175_spill] sm:$0xff] }
 0x347   :  { %4683 = vmatprep.subr.bf16.mxu1 %v4682_v48  ;;  %v3342_v36 = vmax.f32 %v2830_v50, 0.0  ;;  %v2085_v8 = vadd.f32 %v1573_v47, %v764_v20  ;;  %v766_v46 = vmul.f32 %v11143_v3, %v11456_v60  ;;  %v1567_v55 = vmul.f32 %v7852_v10, %v11457_v49  ;;  %v11462_v20 = vld [vmem:[#allocation63_spill] sm:$0xff]  ;;  %v11464_v47 = vld [vmem:[#allocation13_spill] sm:$0xff] }
 0x348   :  { %v4556_v31 = vpack.c.bf16 %v3348_v29, %v3340_v34  ;;  %v3350_v23 = vmax.f32 %v2838_v42, 0.0  ;;  %v2845_v57 = vadd.f32 %v11459_v54, %v2077_v63  ;;  %v1575_v12 = vmul.f32 %v7852_v10, %v11458_v52 }
 0x349   :  { %v2853_v21 = vadd.f32 %v11460_v40, %v2085_v8  ;;  %v2079_v35 = vadd.f32 %v1567_v55, %v758_v33  ;;  %v755_v53 = vmul.f32 %v11154_v45, %v11455_v1  ;;  %v763_v19 = vmul.f32 %v11154_v45, %v11456_v60 }
 0x34a   :  { %4557 = vmatpush1.bf16.msra.mxu0 %v4556_v31  ;;  %v4684_v37 = vpack.c.bf16 %v3350_v23, %v3342_v36  ;;  %v3357_v32 = vmax.f32 %v2845_v57, 0.0  ;;  %v2087_v43 = vadd.f32 %v1575_v12, %v766_v46  ;;  %v1564_v14 = vmul.f32 %v7910_v44, %v11457_v49  ;;  %v11465_v57 = vld [vmem:[#allocation242_spill] sm:$0xff] }
 0x34b   :  { %v3365_v17 = vmax.f32 %v2853_v21, 0.0  ;;  %v2847_v9 = vadd.f32 %v11459_v54, %v2079_v35  ;;  %v1572_v18 = vmul.f32 %v7910_v44, %v11458_v52  ;;  %v757_v22 = vmul.f32 %v11157_v2, %v11455_v1  ;;  %v11466_v21 = vld [vmem:[#allocation193_spill] sm:$0xff] }
 0x34c   :  { %4685 = vmatpush1.bf16.msra.mxu1 %v4684_v37  ;;  %v2855_v16 = vadd.f32 %v11460_v40, %v2087_v43  ;;  %v2076_v39 = vadd.f32 %v1564_v14, %v755_v53  ;;  %v765_v61 = vmul.f32 %v11157_v2, %v11456_v60  ;;  %v1566_v41 = vmul.f32 %v7967_v13, %v11457_v49 }
 0x34d   :  { %v4558_v11 = vpack.c.bf16 %v3365_v17, %v3357_v32  ;;  %v3359_v6 = vmax.f32 %v2847_v9, 0.0  ;;  %v2084_v28 = vadd.f32 %v1572_v18, %v763_v19  ;;  %v1574_v4 = vmul.f32 %v7967_v13, %v11458_v52 }
 0x34e   :  { %v3367_v38 = vmax.f32 %v2855_v16, 0.0  ;;  %v2844_v25 = vadd.f32 %v11459_v54, %v2076_v39  ;;  %v2078_v1 = vadd.f32 %v1566_v41, %v757_v22  ;;  %v772_v58 = vmul.f32 %v11202_v0, %v11461_v62 }
 0x34f   :  { %4559 = vmatprep.subr.bf16.mxu0 %v4558_v11  ;;  %v2852_v7 = vadd.f32 %v11460_v40, %v2084_v28  ;;  %v2086_v60 = vadd.f32 %v1574_v4, %v765_v61  ;;  %v780_v49 = vmul.f32 %v11202_v0, %v11462_v20  ;;  %v1581_v48 = vmul.f32 %v11121_v24, %v11463_v27 }
 0x350   :  { %v4686_v34 = vpack.c.bf16 %v3367_v38, %v3359_v6  ;;  %v3356_v50 = vmax.f32 %v2844_v25, 0.0  ;;  %v2846_v52 = vadd.f32 %v11459_v54, %v2078_v1  ;;  %v1589_v29 = vmul.f32 %v11121_v24, %v11464_v47 }
 0x351   :  { %v3364_v42 = vmax.f32 %v2852_v7, 0.0  ;;  %v2854_v63 = vadd.f32 %v11460_v40, %v2086_v60  ;;  %v2093_v33 = vadd.f32 %v1581_v48, %v772_v58  ;;  %v774_v36 = vmul.f32 %v11143_v3, %v11461_v62  ;;  %v11467_v58 = vld [vmem:[#allocation75_spill] sm:$0xff]  ;;  %v11469_v48 = vld [vmem:[#allocation213_spill] sm:$0xff] }
 0x352   :  { %4687 = vmatprep.subr.bf16.mxu1 %v4686_v34  ;;  %v3358_v8 = vmax.f32 %v2846_v52, 0.0  ;;  %v2101_v46 = vadd.f32 %v1589_v29, %v780_v49  ;;  %v782_v55 = vmul.f32 %v11143_v3, %v11462_v20  ;;  %v1583_v31 = vmul.f32 %v7852_v10, %v11463_v27  ;;  %v11468_v49 = vld [vmem:[#allocation74_spill] sm:$0xff]  ;;  %v11470_v29 = vld [vmem:[#allocation259_spill] sm:$0xff] }
 0x353   :  { %v4560_v23 = vpack.c.bf16 %v3364_v42, %v3356_v50  ;;  %v3366_v54 = vmax.f32 %v2854_v63, 0.0  ;;  %v2861_v12 = vadd.f32 %v11465_v57, %v2093_v33  ;;  %v1591_v40 = vmul.f32 %v7852_v10, %v11464_v47 }
 0x354   :  { %v2869_v35 = vadd.f32 %v11466_v21, %v2101_v46  ;;  %v2095_v53 = vadd.f32 %v1583_v31, %v774_v36  ;;  %v771_v19 = vmul.f32 %v11154_v45, %v11461_v62  ;;  %v779_v37 = vmul.f32 %v11154_v45, %v11462_v20 }
 0x355   :  { %4561 = vmatpush1.bf16.msra.mxu0 %v4560_v23  ;;  %v4688_v32 = vpack.c.bf16 %v3366_v54, %v3358_v8  ;;  %v3373_v43 = vmax.f32 %v2861_v12, 0.0  ;;  %v2103_v14 = vadd.f32 %v1591_v40, %v782_v55  ;;  %v1580_v17 = vmul.f32 %v7910_v44, %v11463_v27  ;;  %v11471_v12 = vld [vmem:[#allocation265_spill] sm:$0xff] }
 0x356   :  { %v3381_v9 = vmax.f32 %v2869_v35, 0.0  ;;  %v2863_v18 = vadd.f32 %v11465_v57, %v2095_v53  ;;  %v1588_v22 = vmul.f32 %v7910_v44, %v11464_v47  ;;  %v773_v16 = vmul.f32 %v11157_v2, %v11461_v62  ;;  %v11472_v35 = vld [vmem:[#allocation161_spill] sm:$0xff] }
 0x357   :  { %4689 = vmatpush1.bf16.msra.mxu1 %v4688_v32  ;;  %v2871_v39 = vadd.f32 %v11466_v21, %v2103_v14  ;;  %v2092_v61 = vadd.f32 %v1580_v17, %v771_v19  ;;  %v781_v41 = vmul.f32 %v11157_v2, %v11462_v20  ;;  %v1582_v11 = vmul.f32 %v7967_v13, %v11463_v27 }
 0x358   :  { %v4562_v6 = vpack.c.bf16 %v3381_v9, %v3373_v43  ;;  %v3375_v28 = vmax.f32 %v2863_v18, 0.0  ;;  %v2100_v4 = vadd.f32 %v1588_v22, %v779_v37  ;;  %v1590_v38 = vmul.f32 %v7967_v13, %v11464_v47 }
 0x359   :  { %v3383_v25 = vmax.f32 %v2871_v39, 0.0  ;;  %v2860_v1 = vadd.f32 %v11465_v57, %v2092_v61  ;;  %v2094_v62 = vadd.f32 %v1582_v11, %v773_v16  ;;  %v788_v7 = vmul.f32 %v11202_v0, %v11467_v58 }
 0x35a   :  { %4563 = vmatprep.subr.bf16.mxu0 %v4562_v6  ;;  %v2868_v60 = vadd.f32 %v11466_v21, %v2100_v4  ;;  %v2102_v20 = vadd.f32 %v1590_v38, %v781_v41  ;;  %v796_v27 = vmul.f32 %v11202_v0, %v11468_v49  ;;  %v1597_v34 = vmul.f32 %v11121_v24, %v11469_v48 }
 0x35b   :  { %v4690_v50 = vpack.c.bf16 %v3383_v25, %v3375_v28  ;;  %v3372_v52 = vmax.f32 %v2860_v1, 0.0  ;;  %v2862_v47 = vadd.f32 %v11465_v57, %v2094_v62  ;;  %v1605_v42 = vmul.f32 %v11121_v24, %v11470_v29 }
 0x35c   :  { %v3380_v63 = vmax.f32 %v2868_v60, 0.0  ;;  %v2870_v33 = vadd.f32 %v11466_v21, %v2102_v20  ;;  %v2109_v36 = vadd.f32 %v1597_v34, %v788_v7  ;;  %v790_v8 = vmul.f32 %v11143_v3, %v11467_v58  ;;  %v11473_v7 = vld [vmem:[#allocation88_spill] sm:$0xff] }
 0x35d   :  { %4691 = vmatprep.subr.bf16.mxu1 %v4690_v50  ;;  %v3374_v46 = vmax.f32 %v2862_v47, 0.0  ;;  %v2117_v55 = vadd.f32 %v1605_v42, %v796_v27  ;;  %v798_v31 = vmul.f32 %v11143_v3, %v11468_v49  ;;  %v1599_v23 = vmul.f32 %v7852_v10, %v11469_v48  ;;  %v11474_v27 = vld [vmem:[#allocation87_spill] sm:$0xff]  ;;  %v11475_v34 = vld [vmem:[#allocation264_spill] sm:$0xff] }
 0x35e   :  { %v4564_v54 = vpack.c.bf16 %v3380_v63, %v3372_v52  ;;  %v3382_v57 = vmax.f32 %v2870_v33, 0.0  ;;  %v2877_v40 = vadd.f32 %v11471_v12, %v2109_v36  ;;  %v1607_v21 = vmul.f32 %v7852_v10, %v11470_v29  ;;  %v11476_v42 = vld [vmem:[#allocation131_spill] sm:$0xff] }
 0x35f   :  { %v2885_v53 = vadd.f32 %v11472_v35, %v2117_v55  ;;  %v2111_v19 = vadd.f32 %v1599_v23, %v790_v8  ;;  %v787_v37 = vmul.f32 %v11154_v45, %v11467_v58  ;;  %v795_v32 = vmul.f32 %v11154_v45, %v11468_v49 }
 0x360   :  { %4565 = vmatpush1.bf16.msra.mxu0 %v4564_v54  ;;  %v4692_v43 = vpack.c.bf16 %v3382_v57, %v3374_v46  ;;  %v3389_v14 = vmax.f32 %v2877_v40, 0.0  ;;  %v2119_v17 = vadd.f32 %v1607_v21, %v798_v31  ;;  %v1596_v9 = vmul.f32 %v7910_v44, %v11469_v48  ;;  %v11477_v40 = vld [vmem:[#allocation249_spill] sm:$0xff] }
 0x361   :  { %v3397_v18 = vmax.f32 %v2885_v53, 0.0  ;;  %v2879_v22 = vadd.f32 %v11471_v12, %v2111_v19  ;;  %v1604_v16 = vmul.f32 %v7910_v44, %v11470_v29  ;;  %v789_v39 = vmul.f32 %v11157_v2, %v11467_v58  ;;  %v11478_v53 = vld [vmem:[#allocation200_spill] sm:$0xff] }
 0x362   :  { %4693 = vmatpush1.bf16.msra.mxu1 %v4692_v43  ;;  %v2887_v61 = vadd.f32 %v11472_v35, %v2119_v17  ;;  %v2108_v41 = vadd.f32 %v1596_v9, %v787_v37  ;;  %v797_v11 = vmul.f32 %v11157_v2, %v11468_v49  ;;  %v1598_v6 = vmul.f32 %v7967_v13, %v11469_v48 }
 0x363   :  { %v4566_v28 = vpack.c.bf16 %v3397_v18, %v3389_v14  ;;  %v3391_v4 = vmax.f32 %v2879_v22, 0.0  ;;  %v2116_v38 = vadd.f32 %v1604_v16, %v795_v32  ;;  %v1606_v25 = vmul.f32 %v7967_v13, %v11470_v29 }
 0x364   :  { %v3399_v1 = vmax.f32 %v2887_v61, 0.0  ;;  %v2876_v62 = vadd.f32 %v11471_v12, %v2108_v41  ;;  %v2110_v58 = vadd.f32 %v1598_v6, %v789_v39  ;;  %v804_v60 = vmul.f32 %v11202_v0, %v11473_v7 }
 0x365   :  { %4567 = vmatprep.subr.bf16.mxu0 %v4566_v28  ;;  %v2884_v20 = vadd.f32 %v11472_v35, %v2116_v38  ;;  %v2118_v49 = vadd.f32 %v1606_v25, %v797_v11  ;;  %v812_v48 = vmul.f32 %v11202_v0, %v11474_v27  ;;  %v1613_v50 = vmul.f32 %v11121_v24, %v11475_v34 }
 0x366   :  { %v4694_v52 = vpack.c.bf16 %v3399_v1, %v3391_v4  ;;  %v3388_v47 = vmax.f32 %v2876_v62, 0.0  ;;  %v2878_v29 = vadd.f32 %v11471_v12, %v2110_v58  ;;  %v1621_v63 = vmul.f32 %v11121_v24, %v11476_v42 }
 0x367   :  { %v3396_v33 = vmax.f32 %v2884_v20, 0.0  ;;  %v2886_v36 = vadd.f32 %v11472_v35, %v2118_v49  ;;  %v2125_v8 = vadd.f32 %v1613_v50, %v804_v60  ;;  %v806_v46 = vmul.f32 %v11143_v3, %v11473_v7  ;;  %v11479_v60 = vld [vmem:[#allocation103_spill] sm:$0xff] }
 0x368   :  { %4695 = vmatprep.subr.bf16.mxu1 %v4694_v52  ;;  %v3390_v55 = vmax.f32 %v2878_v29, 0.0  ;;  %v2133_v31 = vadd.f32 %v1621_v63, %v812_v48  ;;  %v814_v23 = vmul.f32 %v11143_v3, %v11474_v27  ;;  %v1615_v54 = vmul.f32 %v7852_v10, %v11475_v34  ;;  %v11480_v48 = vld [vmem:[#allocation102_spill] sm:$0xff]  ;;  %v11481_v50 = vld [vmem:[#allocation135_spill] sm:$0xff] }
 0x369   :  { %v4568_v57 = vpack.c.bf16 %v3396_v33, %v3388_v47  ;;  %v3398_v12 = vmax.f32 %v2886_v36, 0.0  ;;  %v2893_v21 = vadd.f32 %v11477_v40, %v2125_v8  ;;  %v1623_v35 = vmul.f32 %v7852_v10, %v11476_v42  ;;  %v11482_v63 = vld [vmem:[#allocation162_spill] sm:$0xff] }
 0x36a   :  { %v2901_v19 = vadd.f32 %v11478_v53, %v2133_v31  ;;  %v2127_v37 = vadd.f32 %v1615_v54, %v806_v46  ;;  %v803_v32 = vmul.f32 %v11154_v45, %v11473_v7  ;;  %v811_v43 = vmul.f32 %v11154_v45, %v11474_v27 }
 0x36b   :  { %4569 = vmatpush1.bf16.msra.mxu0 %v4568_v57  ;;  %v4696_v14 = vpack.c.bf16 %v3398_v12, %v3390_v55  ;;  %v3405_v17 = vmax.f32 %v2893_v21, 0.0  ;;  %v2135_v9 = vadd.f32 %v1623_v35, %v814_v23  ;;  %v1612_v18 = vmul.f32 %v7910_v44, %v11475_v34  ;;  %v11483_v21 = vld [vmem:[#allocation90_spill] sm:$0xff] }
 0x36c   :  { %v3413_v22 = vmax.f32 %v2901_v19, 0.0  ;;  %v2895_v16 = vadd.f32 %v11477_v40, %v2127_v37  ;;  %v1620_v39 = vmul.f32 %v7910_v44, %v11476_v42  ;;  %v805_v61 = vmul.f32 %v11157_v2, %v11473_v7  ;;  %v11484_v19 = vld [vmem:[#allocation105_spill] sm:$0xff] }
 0x36d   :  { %4697 = vmatpush1.bf16.msra.mxu1 %v4696_v14  ;;  %v2903_v41 = vadd.f32 %v11478_v53, %v2135_v9  ;;  %v2124_v11 = vadd.f32 %v1612_v18, %v803_v32  ;;  %v813_v6 = vmul.f32 %v11157_v2, %v11474_v27  ;;  %v1614_v28 = vmul.f32 %v7967_v13, %v11475_v34 }
 0x36e   :  { %v4570_v4 = vpack.c.bf16 %v3413_v22, %v3405_v17  ;;  %v3407_v38 = vmax.f32 %v2895_v16, 0.0  ;;  %v2132_v25 = vadd.f32 %v1620_v39, %v811_v43  ;;  %v1622_v1 = vmul.f32 %v7967_v13, %v11476_v42 }
 0x36f   :  { %v3415_v62 = vmax.f32 %v2903_v41, 0.0  ;;  %v2892_v58 = vadd.f32 %v11477_v40, %v2124_v11  ;;  %v2126_v7 = vadd.f32 %v1614_v28, %v805_v61  ;;  %v820_v20 = vmul.f32 %v11202_v0, %v11479_v60 }
 0x370   :  { %4571 = vmatprep.subr.bf16.mxu0 %v4570_v4  ;;  %v2900_v49 = vadd.f32 %v11478_v53, %v2132_v25  ;;  %v2134_v27 = vadd.f32 %v1622_v1, %v813_v6  ;;  %v828_v34 = vmul.f32 %v11202_v0, %v11480_v48  ;;  %v1629_v52 = vmul.f32 %v11121_v24, %v11481_v50 }
 0x371   :  { %v4698_v47 = vpack.c.bf16 %v3415_v62, %v3407_v38  ;;  %v3404_v29 = vmax.f32 %v2892_v58, 0.0  ;;  %v2894_v42 = vadd.f32 %v11477_v40, %v2126_v7  ;;  %v1637_v33 = vmul.f32 %v11121_v24, %v11482_v63 }
 0x372   :  { %v3412_v36 = vmax.f32 %v2900_v49, 0.0  ;;  %v2902_v8 = vadd.f32 %v11478_v53, %v2134_v27  ;;  %v2141_v46 = vadd.f32 %v1629_v52, %v820_v20  ;;  %v822_v55 = vmul.f32 %v11143_v3, %v11479_v60  ;;  %v11485_v20 = vld [vmem:[#allocation115_spill] sm:$0xff]  ;;  %v11487_v52 = vld [vmem:[#allocation244_spill] sm:$0xff] }
 0x373   :  { %4699 = vmatprep.subr.bf16.mxu1 %v4698_v47  ;;  %v3406_v31 = vmax.f32 %v2894_v42, 0.0  ;;  %v2149_v23 = vadd.f32 %v1637_v33, %v828_v34  ;;  %v830_v54 = vmul.f32 %v11143_v3, %v11480_v48  ;;  %v1631_v57 = vmul.f32 %v7852_v10, %v11481_v50  ;;  %v11486_v34 = vld [vmem:[#allocation114_spill] sm:$0xff]  ;;  %v11488_v33 = vld [vmem:[#allocation7_spill] sm:$0xff] }
 0x374   :  { %v4572_v12 = vpack.c.bf16 %v3412_v36, %v3404_v29  ;;  %v3414_v40 = vmax.f32 %v2902_v8, 0.0  ;;  %v2909_v35 = vadd.f32 %v11483_v21, %v2141_v46  ;;  %v1639_v53 = vmul.f32 %v7852_v10, %v11482_v63 }
 0x375   :  { %v2917_v37 = vadd.f32 %v11484_v19, %v2149_v23  ;;  %v2143_v32 = vadd.f32 %v1631_v57, %v822_v55  ;;  %v819_v43 = vmul.f32 %v11154_v45, %v11479_v60  ;;  %v827_v14 = vmul.f32 %v11154_v45, %v11480_v48 }
 0x376   :  { %4573 = vmatpush1.bf16.msra.mxu0 %v4572_v12  ;;  %v4700_v17 = vpack.c.bf16 %v3414_v40, %v3406_v31  ;;  %v3421_v9 = vmax.f32 %v2909_v35, 0.0  ;;  %v2151_v18 = vadd.f32 %v1639_v53, %v830_v54  ;;  %v1628_v22 = vmul.f32 %v7910_v44, %v11481_v50  ;;  %v11489_v35 = vld [vmem:[#allocation245_spill] sm:$0xff] }
 0x377   :  { %v3429_v16 = vmax.f32 %v2917_v37, 0.0  ;;  %v2911_v39 = vadd.f32 %v11483_v21, %v2143_v32  ;;  %v1636_v61 = vmul.f32 %v7910_v44, %v11482_v63  ;;  %v821_v41 = vmul.f32 %v11157_v2, %v11479_v60  ;;  %v11490_v37 = vld [vmem:[#allocation133_spill] sm:$0xff] }
 0x378   :  { %4701 = vmatpush1.bf16.msra.mxu1 %v4700_v17  ;;  %v2919_v11 = vadd.f32 %v11484_v19, %v2151_v18  ;;  %v2140_v6 = vadd.f32 %v1628_v22, %v819_v43  ;;  %v829_v28 = vmul.f32 %v11157_v2, %v11480_v48  ;;  %v1630_v4 = vmul.f32 %v7967_v13, %v11481_v50 }
 0x379   :  { %v4574_v38 = vpack.c.bf16 %v3429_v16, %v3421_v9  ;;  %v3423_v25 = vmax.f32 %v2911_v39, 0.0  ;;  %v2148_v1 = vadd.f32 %v1636_v61, %v827_v14  ;;  %v1638_v62 = vmul.f32 %v7967_v13, %v11482_v63 }
 0x37a   :  { %v3431_v58 = vmax.f32 %v2919_v11, 0.0  ;;  %v2908_v7 = vadd.f32 %v11483_v21, %v2140_v6  ;;  %v2142_v60 = vadd.f32 %v1630_v4, %v821_v41  ;;  %v836_v49 = vmul.f32 %v11202_v0, %v11485_v20 }
 0x37b   :  { %4575 = vmatprep.subr.bf16.mxu0 %v4574_v38  ;;  %v2916_v27 = vadd.f32 %v11484_v19, %v2148_v1  ;;  %v2150_v48 = vadd.f32 %v1638_v62, %v829_v28  ;;  %v844_v50 = vmul.f32 %v11202_v0, %v11486_v34  ;;  %v1645_v47 = vmul.f32 %v11121_v24, %v11487_v52 }
 0x37c   :  { %v4702_v29 = vpack.c.bf16 %v3431_v58, %v3423_v25  ;;  %v3420_v42 = vmax.f32 %v2908_v7, 0.0  ;;  %v2910_v63 = vadd.f32 %v11483_v21, %v2142_v60  ;;  %v1653_v36 = vmul.f32 %v11121_v24, %v11488_v33 }
 0x37d   :  { %v3428_v8 = vmax.f32 %v2916_v27, 0.0  ;;  %v2918_v46 = vadd.f32 %v11484_v19, %v2150_v48  ;;  %v2157_v55 = vadd.f32 %v1645_v47, %v836_v49  ;;  %v838_v31 = vmul.f32 %v11143_v3, %v11485_v20  ;;  %v11491_v49 = vld [vmem:[#allocation129_spill] sm:$0xff] }
 0x37e   :  { %4703 = vmatprep.subr.bf16.mxu1 %v4702_v29  ;;  %v3422_v23 = vmax.f32 %v2910_v63, 0.0  ;;  %v2165_v54 = vadd.f32 %v1653_v36, %v844_v50  ;;  %v846_v57 = vmul.f32 %v11143_v3, %v11486_v34  ;;  %v1647_v12 = vmul.f32 %v7852_v10, %v11487_v52  ;;  %v11492_v50 = vld [vmem:[#allocation128_spill] sm:$0xff]  ;;  %v11493_v47 = vld [vmem:[#allocation221_spill] sm:$0xff] }
 0x37f   :  { %v4576_v40 = vpack.c.bf16 %v3428_v8, %v3420_v42  ;;  %v3430_v21 = vmax.f32 %v2918_v46, 0.0  ;;  %v2925_v53 = vadd.f32 %v11489_v35, %v2157_v55  ;;  %v1655_v19 = vmul.f32 %v7852_v10, %v11488_v33  ;;  %v11494_v36 = vld [vmem:[#allocation180_spill] sm:$0xff] }
 0x380   :  { %v2933_v32 = vadd.f32 %v11490_v37, %v2165_v54  ;;  %v2159_v43 = vadd.f32 %v1647_v12, %v838_v31  ;;  %v835_v14 = vmul.f32 %v11154_v45, %v11485_v20  ;;  %v843_v17 = vmul.f32 %v11154_v45, %v11486_v34 }
 0x381   :  { %4577 = vmatpush1.bf16.msra.mxu0 %v4576_v40  ;;  %v4704_v9 = vpack.c.bf16 %v3430_v21, %v3422_v23  ;;  %v3437_v18 = vmax.f32 %v2925_v53, 0.0  ;;  %v2167_v22 = vadd.f32 %v1655_v19, %v846_v57  ;;  %v1644_v16 = vmul.f32 %v7910_v44, %v11487_v52  ;;  %v11495_v53 = vld [vmem:[#allocation252_spill] sm:$0xff] }
 0x382   :  { %v3445_v39 = vmax.f32 %v2933_v32, 0.0  ;;  %v2927_v61 = vadd.f32 %v11489_v35, %v2159_v43  ;;  %v1652_v41 = vmul.f32 %v7910_v44, %v11488_v33  ;;  %v837_v11 = vmul.f32 %v11157_v2, %v11485_v20  ;;  %v11496_v32 = vld [vmem:[#allocation182_spill] sm:$0xff] }
 0x383   :  { %4705 = vmatpush1.bf16.msra.mxu1 %v4704_v9  ;;  %v2935_v6 = vadd.f32 %v11490_v37, %v2167_v22  ;;  %v2156_v28 = vadd.f32 %v1644_v16, %v835_v14  ;;  %v845_v4 = vmul.f32 %v11157_v2, %v11486_v34  ;;  %v1646_v38 = vmul.f32 %v7967_v13, %v11487_v52 }
 0x384   :  { %v4578_v25 = vpack.c.bf16 %v3445_v39, %v3437_v18  ;;  %v3439_v1 = vmax.f32 %v2927_v61, 0.0  ;;  %v2164_v62 = vadd.f32 %v1652_v41, %v843_v17  ;;  %v1654_v58 = vmul.f32 %v7967_v13, %v11488_v33 }
 0x385   :  { %v3447_v7 = vmax.f32 %v2935_v6, 0.0  ;;  %v2924_v60 = vadd.f32 %v11489_v35, %v2156_v28  ;;  %v2158_v20 = vadd.f32 %v1646_v38, %v837_v11  ;;  %v852_v27 = vmul.f32 %v11202_v0, %v11491_v49 }
 0x386   :  { %4579 = vmatprep.subr.bf16.mxu0 %v4578_v25  ;;  %v2932_v48 = vadd.f32 %v11490_v37, %v2164_v62  ;;  %v2166_v34 = vadd.f32 %v1654_v58, %v845_v4  ;;  %v860_v52 = vmul.f32 %v11202_v0, %v11492_v50  ;;  %v1661_v29 = vmul.f32 %v11121_v24, %v11493_v47 }
 0x387   :  { %v4706_v42 = vpack.c.bf16 %v3447_v7, %v3439_v1  ;;  %v3436_v63 = vmax.f32 %v2924_v60, 0.0  ;;  %v2926_v33 = vadd.f32 %v11489_v35, %v2158_v20  ;;  %v1669_v8 = vmul.f32 %v11121_v24, %v11494_v36 }
 0x388   :  { %v3444_v46 = vmax.f32 %v2932_v48, 0.0  ;;  %v2934_v55 = vadd.f32 %v11490_v37, %v2166_v34  ;;  %v2173_v31 = vadd.f32 %v1661_v29, %v852_v27  ;;  %v854_v23 = vmul.f32 %v11143_v3, %v11491_v49  ;;  %v11497_v27 = vld [vmem:[#allocation145_spill] sm:$0xff]  ;;  %v11499_v29 = vld [vmem:[#allocation144_spill] sm:$0xff] }
 0x389   :  { %4707 = vmatprep.subr.bf16.mxu1 %v4706_v42  ;;  %v3438_v54 = vmax.f32 %v2926_v33, 0.0  ;;  %v2181_v57 = vadd.f32 %v1669_v8, %v860_v52  ;;  %v862_v12 = vmul.f32 %v11143_v3, %v11492_v50  ;;  %v1663_v40 = vmul.f32 %v7852_v10, %v11493_v47  ;;  %v11498_v52 = vld [vmem:[#allocation171_spill] sm:$0xff] }
 0x38a   :  { %v4580_v21 = vpack.c.bf16 %v3444_v46, %v3436_v63  ;;  %v3446_v35 = vmax.f32 %v2934_v55, 0.0  ;;  %v2941_v19 = vadd.f32 %v11495_v53, %v2173_v31  ;;  %v1671_v37 = vmul.f32 %v7852_v10, %v11494_v36  ;;  %v11500_v8 = vld [vmem:[#allocation123_spill] sm:$0xff] }
 0x38b   :  { %v2949_v43 = vadd.f32 %v11496_v32, %v2181_v57  ;;  %v2175_v14 = vadd.f32 %v1663_v40, %v854_v23  ;;  %v851_v17 = vmul.f32 %v11154_v45, %v11491_v49  ;;  %v859_v9 = vmul.f32 %v11154_v45, %v11492_v50 }
 0x38c   :  { %4581 = vmatpush1.bf16.msra.mxu0 %v4580_v21  ;;  %v4708_v18 = vpack.c.bf16 %v3446_v35, %v3438_v54  ;;  %v3453_v22 = vmax.f32 %v2941_v19, 0.0  ;;  %v2183_v16 = vadd.f32 %v1671_v37, %v862_v12  ;;  %v1660_v39 = vmul.f32 %v7910_v44, %v11493_v47  ;;  %v11501_v19 = vld [vmem:[#allocation58_spill] sm:$0xff] }
 0x38d   :  { %v3461_v61 = vmax.f32 %v2949_v43, 0.0  ;;  %v2943_v41 = vadd.f32 %v11495_v53, %v2175_v14  ;;  %v1668_v11 = vmul.f32 %v7910_v44, %v11494_v36  ;;  %v853_v6 = vmul.f32 %v11157_v2, %v11491_v49  ;;  %v11502_v43 = vld [vmem:[#allocation251_spill] sm:$0xff] }
 0x38e   :  { %4709 = vmatpush1.bf16.msra.mxu1 %v4708_v18  ;;  %v2951_v28 = vadd.f32 %v11496_v32, %v2183_v16  ;;  %v2172_v4 = vadd.f32 %v1660_v39, %v851_v17  ;;  %v861_v38 = vmul.f32 %v11157_v2, %v11492_v50  ;;  %v1662_v25 = vmul.f32 %v7967_v13, %v11493_v47 }
 0x38f   :  { %v4582_v1 = vpack.c.bf16 %v3461_v61, %v3453_v22  ;;  %v3455_v62 = vmax.f32 %v2943_v41, 0.0  ;;  %v2180_v58 = vadd.f32 %v1668_v11, %v859_v9  ;;  %v1670_v7 = vmul.f32 %v7967_v13, %v11494_v36 }
 0x390   :  { %v3463_v60 = vmax.f32 %v2951_v28, 0.0  ;;  %v2940_v20 = vadd.f32 %v11495_v53, %v2172_v4  ;;  %v2174_v49 = vadd.f32 %v1662_v25, %v853_v6  ;;  %v868_v48 = vmul.f32 %v11202_v0, %v11497_v27 }
 0x391   :  { %4583 = vmatprep.subr.bf16.mxu0 %v4582_v1  ;;  %v2948_v34 = vadd.f32 %v11496_v32, %v2180_v58  ;;  %v2182_v50 = vadd.f32 %v1670_v7, %v861_v38  ;;  %v876_v47 = vmul.f32 %v11202_v0, %v11498_v52  ;;  %v1677_v42 = vmul.f32 %v11121_v24, %v11499_v29 }
 0x392   :  { %v4710_v63 = vpack.c.bf16 %v3463_v60, %v3455_v62  ;;  %v3452_v33 = vmax.f32 %v2940_v20, 0.0  ;;  %v2942_v36 = vadd.f32 %v11495_v53, %v2174_v49  ;;  %v1685_v46 = vmul.f32 %v11121_v24, %v11500_v8 }
 0x393   :  { %v3460_v55 = vmax.f32 %v2948_v34, 0.0  ;;  %v2950_v31 = vadd.f32 %v11496_v32, %v2182_v50  ;;  %v2189_v23 = vadd.f32 %v1677_v42, %v868_v48  ;;  %v870_v54 = vmul.f32 %v11143_v3, %v11497_v27  ;;  %v11503_v48 = vld [vmem:[#allocation215_spill] sm:$0xff] }
 0x394   :  { %4711 = vmatprep.subr.bf16.mxu1 %v4710_v63  ;;  %v3454_v57 = vmax.f32 %v2942_v36, 0.0  ;;  %v2197_v12 = vadd.f32 %v1685_v46, %v876_v47  ;;  %v878_v40 = vmul.f32 %v11143_v3, %v11498_v52  ;;  %v1679_v21 = vmul.f32 %v7852_v10, %v11499_v29  ;;  %v11504_v47 = vld [vmem:[#allocation119_spill] sm:$0xff]  ;;  %v11506_v46 = vld [vmem:[#allocation217_spill] sm:$0xff] }
 0x395   :  { %v4584_v35 = vpack.c.bf16 %v3460_v55, %v3452_v33  ;;  %v3462_v53 = vmax.f32 %v2950_v31, 0.0  ;;  %v2957_v37 = vadd.f32 %v11501_v19, %v2189_v23  ;;  %v1687_v32 = vmul.f32 %v7852_v10, %v11500_v8  ;;  %v11505_v42 = vld [vmem:[#allocation139_spill] sm:$0xff] }
 0x396   :  { %v2965_v14 = vadd.f32 %v11502_v43, %v2197_v12  ;;  %v2191_v17 = vadd.f32 %v1679_v21, %v870_v54  ;;  %v867_v9 = vmul.f32 %v11154_v45, %v11497_v27  ;;  %v875_v18 = vmul.f32 %v11154_v45, %v11498_v52 }
 0x397   :  { %4585 = vmatpush1.bf16.msra.mxu0 %v4584_v35  ;;  %v4712_v22 = vpack.c.bf16 %v3462_v53, %v3454_v57  ;;  %v3469_v16 = vmax.f32 %v2957_v37, 0.0  ;;  %v2199_v39 = vadd.f32 %v1687_v32, %v878_v40  ;;  %v1676_v61 = vmul.f32 %v7910_v44, %v11499_v29 }
 0x398   :  { %v3477_v41 = vmax.f32 %v2965_v14, 0.0  ;;  %v2959_v11 = vadd.f32 %v11501_v19, %v2191_v17  ;;  %v1684_v6 = vmul.f32 %v7910_v44, %v11500_v8  ;;  %v869_v28 = vmul.f32 %v11157_v2, %v11497_v27  ;;  %v11507_v17 = vld [vmem:[#allocation134_spill] sm:$0xff] }
 0x399   :  { %4713 = vmatpush1.bf16.msra.mxu1 %v4712_v22  ;;  %v2967_v4 = vadd.f32 %v11502_v43, %v2199_v39  ;;  %v2188_v38 = vadd.f32 %v1676_v61, %v867_v9  ;;  %v877_v25 = vmul.f32 %v11157_v2, %v11498_v52  ;;  %v1678_v1 = vmul.f32 %v7967_v13, %v11499_v29  ;;  %v11508_v22 = vld [vmem:[#allocation218_spill] sm:$0xff] }
 0x39a   :  { %v4586_v62 = vpack.c.bf16 %v3477_v41, %v3469_v16  ;;  %v3471_v58 = vmax.f32 %v2959_v11, 0.0  ;;  %v2196_v7 = vadd.f32 %v1684_v6, %v875_v18  ;;  %v1686_v60 = vmul.f32 %v7967_v13, %v11500_v8 }
 0x39b   :  { %v3479_v20 = vmax.f32 %v2967_v4, 0.0  ;;  %v2956_v49 = vadd.f32 %v11501_v19, %v2188_v38  ;;  %v2190_v27 = vadd.f32 %v1678_v1, %v869_v28  ;;  %v884_v34 = vmul.f32 %v11202_v0, %v11503_v48 }
 0x39c   :  { %4587 = vmatprep.subr.bf16.mxu0 %v4586_v62  ;;  %v2964_v50 = vadd.f32 %v11502_v43, %v2196_v7  ;;  %v2198_v52 = vadd.f32 %v1686_v60, %v877_v25  ;;  %v892_v29 = vmul.f32 %v11202_v0, %v11504_v47  ;;  %v1693_v63 = vmul.f32 %v11121_v24, %v11505_v42 }
 0x39d   :  { %v4714_v33 = vpack.c.bf16 %v3479_v20, %v3471_v58  ;;  %v3468_v36 = vmax.f32 %v2956_v49, 0.0  ;;  %v2958_v8 = vadd.f32 %v11501_v19, %v2190_v27  ;;  %v1701_v55 = vmul.f32 %v11121_v24, %v11506_v46 }
 0x39e   :  { %v3476_v31 = vmax.f32 %v2964_v50, 0.0  ;;  %v2966_v23 = vadd.f32 %v11502_v43, %v2198_v52  ;;  %v2205_v54 = vadd.f32 %v1693_v63, %v884_v34  ;;  %v886_v57 = vmul.f32 %v11143_v3, %v11503_v48  ;;  %v9818_v12 = vpop.f32.mrb[0].mxu0  ;;  %v9820_v40 = vpop.f32.mrb[0].mxu1  ;;  %v11509_v63 = vld [vmem:[#allocation253_spill] sm:$0xff] }
 0x39f   :  { %4715 = vmatprep.subr.bf16.mxu1 %v4714_v33  ;;  %v3470_v21 = vmax.f32 %v2958_v8, 0.0  ;;  %v2213_v35 = vadd.f32 %v1701_v55, %v892_v29  ;;  %v894_v53 = vmul.f32 %v11143_v3, %v11504_v47  ;;  %v1695_v19 = vmul.f32 %v7852_v10, %v11505_v42  ;;  %v9826_v37 = vpop.f32.mrb[1].mxu0  ;;  %v9828_v32 = vpop.f32.mrb[1].mxu1  ;;  %v11510_v8 = vld [vmem:[#allocation254_spill] sm:$0xff]  ;;  %v11511_v55 = vld [vmem:[#allocation224_spill] sm:$0xff] }
 0x3a0   :  { %v4588_v43 = vpack.c.bf16 %v3476_v31, %v3468_v36  ;;  %v3478_v14 = vmax.f32 %v2966_v23, 0.0  ;;  %v2973_v9 = vadd.f32 %v11507_v17, %v2205_v54  ;;  %v1703_v18 = vmul.f32 %v7852_v10, %v11506_v46 }
 0x3a1   :  { %v2981_v16 = vadd.f32 %v11508_v22, %v2213_v35  ;;  %v2207_v39 = vadd.f32 %v1695_v19, %v886_v57  ;;  %v883_v61 = vmul.f32 %v11154_v45, %v11503_v48  ;;  %v891_v41 = vmul.f32 %v11154_v45, %v11504_v47  ;;  %v11512_v57 = vld [vmem:[#allocation80_spill] sm:$0xff] }
 0x3a2   :  { %4589 = vmatpush1.bf16.msra.mxu0 %v4588_v43  ;;  %v4716_v11 = vpack.c.bf16 %v3478_v14, %v3470_v21  ;;  %v3485_v6 = vmax.f32 %v2973_v9, 0.0  ;;  %v2215_v28 = vadd.f32 %v1703_v18, %v894_v53  ;;  %v1692_v4 = vmul.f32 %v7910_v44, %v11505_v42 }
 0x3a3   :  { %v3493_v38 = vmax.f32 %v2981_v16, 0.0  ;;  %v2975_v25 = vadd.f32 %v11507_v17, %v2207_v39  ;;  %v1700_v1 = vmul.f32 %v7910_v44, %v11506_v46  ;;  %v885_v62 = vmul.f32 %v11157_v2, %v11503_v48 }
 0x3a4   :  { %4717 = vmatpush1.bf16.msra.mxu1 %v4716_v11  ;;  %v2983_v58 = vadd.f32 %v11508_v22, %v2215_v28  ;;  %v2204_v7 = vadd.f32 %v1692_v4, %v883_v61  ;;  %v893_v60 = vmul.f32 %v11157_v2, %v11504_v47  ;;  %v1694_v20 = vmul.f32 %v7967_v13, %v11505_v42  ;;  %v11513_v61 = vld [vmem:[#allocation188_spill] sm:$0xff]  ;;  %v11514_v11 = vld [vmem:[#allocation197_spill] sm:$0xff] }
 0x3a5   :  { %v4590_v49 = vpack.c.bf16 %v3493_v38, %v3485_v6  ;;  %v3487_v27 = vmax.f32 %v2975_v25, 0.0  ;;  %v2212_v34 = vadd.f32 %v1700_v1, %v891_v41  ;;  %v1702_v50 = vmul.f32 %v7967_v13, %v11506_v46 }
 0x3a6   :  { %v3495_v52 = vmax.f32 %v2983_v58, 0.0  ;;  %v2972_v29 = vadd.f32 %v11507_v17, %v2204_v7  ;;  %v2206_v48 = vadd.f32 %v1694_v20, %v885_v62  ;;  %v900_v33 = vmul.f32 %v11202_v0, %v11509_v63 }
 0x3a7   :  { %4591 = vmatprep.subr.bf16.mxu0 %v4590_v49  ;;  %v2980_v36 = vadd.f32 %v11508_v22, %v2212_v34  ;;  %v2214_v47 = vadd.f32 %v1702_v50, %v893_v60  ;;  %v908_v42 = vmul.f32 %v11202_v0, %v11510_v8  ;;  %v1709_v31 = vmul.f32 %v11121_v24, %v11511_v55 }
 0x3a8   :  { %v4718_v23 = vpack.c.bf16 %v3495_v52, %v3487_v27  ;;  %v3484_v54 = vmax.f32 %v2972_v29, 0.0  ;;  %v2974_v46 = vadd.f32 %v11507_v17, %v2206_v48  ;;  %v1717_v21 = vmul.f32 %v11121_v24, %v11512_v57 }
 0x3a9   :  { %v3492_v35 = vmax.f32 %v2980_v36, 0.0  ;;  %v2982_v53 = vadd.f32 %v11508_v22, %v2214_v47  ;;  %v2221_v19 = vadd.f32 %v1709_v31, %v900_v33  ;;  %v902_v43 = vmul.f32 %v11143_v3, %v11509_v63  ;;  %v11515_v31 = vld [vmem:[#allocation219_spill] sm:$0xff] }
 0x3aa   :  { %4719 = vmatprep.subr.bf16.mxu1 %v4718_v23  ;;  %v3486_v14 = vmax.f32 %v2974_v46, 0.0  ;;  %v2229_v9 = vadd.f32 %v1717_v21, %v908_v42  ;;  %v910_v18 = vmul.f32 %v11143_v3, %v11510_v8  ;;  %v1711_v16 = vmul.f32 %v7852_v10, %v11511_v55  ;;  %v11516_v46 = vld [vmem:[#allocation183_spill] sm:$0xff]  ;;  %v11517_v21 = vld [vmem:[#allocation226_spill] sm:$0xff] }
 0x3ab   :  { %v4592_v17 = vpack.c.bf16 %v3492_v35, %v3484_v54  ;;  %v3494_v39 = vmax.f32 %v2982_v53, 0.0  ;;  %v2989_v41 = vadd.f32 %v11513_v61, %v2221_v19  ;;  %v1719_v22 = vmul.f32 %v7852_v10, %v11512_v57 }
 0x3ac   :  { %v2997_v6 = vadd.f32 %v11514_v11, %v2229_v9  ;;  %v2223_v28 = vadd.f32 %v1711_v16, %v902_v43  ;;  %v899_v4 = vmul.f32 %v11154_v45, %v11509_v63  ;;  %v907_v38 = vmul.f32 %v11154_v45, %v11510_v8  ;;  %v11518_v43 = vld [vmem:[#allocation186_spill] sm:$0xff] }
 0x3ad   :  { %4593 = vmatpush1.bf16.msra.mxu0 %v4592_v17  ;;  %v4720_v25 = vpack.c.bf16 %v3494_v39, %v3486_v14  ;;  %v3501_v1 = vmax.f32 %v2989_v41, 0.0  ;;  %v2231_v62 = vadd.f32 %v1719_v22, %v910_v18  ;;  %v1708_v58 = vmul.f32 %v7910_v44, %v11511_v55 }
 0x3ae   :  { %v3509_v7 = vmax.f32 %v2997_v6, 0.0  ;;  %v2991_v60 = vadd.f32 %v11513_v61, %v2223_v28  ;;  %v1716_v20 = vmul.f32 %v7910_v44, %v11512_v57  ;;  %v901_v49 = vmul.f32 %v11157_v2, %v11509_v63 }
 0x3af   :  { %4721 = vmatpush1.bf16.msra.mxu1 %v4720_v25  ;;  %v2999_v27 = vadd.f32 %v11514_v11, %v2231_v62  ;;  %v2220_v34 = vadd.f32 %v1708_v58, %v899_v4  ;;  %v909_v50 = vmul.f32 %v11157_v2, %v11510_v8  ;;  %v1710_v52 = vmul.f32 %v7967_v13, %v11511_v55 }
 0x3b0   :  { %v4594_v29 = vpack.c.bf16 %v3509_v7, %v3501_v1  ;;  %v3503_v48 = vmax.f32 %v2991_v60, 0.0  ;;  %v2228_v33 = vadd.f32 %v1716_v20, %v907_v38  ;;  %v1718_v36 = vmul.f32 %v7967_v13, %v11512_v57  ;;  %v11519_v38 = vld [vmem:[#allocation187_spill] sm:$0xff] }
 0x3b1   :  { %v3511_v47 = vmax.f32 %v2999_v27, 0.0  ;;  %v2988_v42 = vadd.f32 %v11513_v61, %v2220_v34  ;;  %v2222_v63 = vadd.f32 %v1710_v52, %v901_v49  ;;  %v916_v23 = vmul.f32 %v11202_v0, %v11515_v31 }
 0x3b2   :  { %4595 = vmatprep.subr.bf16.mxu0 %v4594_v29  ;;  %v2996_v54 = vadd.f32 %v11514_v11, %v2228_v33  ;;  %v2230_v8 = vadd.f32 %v1718_v36, %v909_v50  ;;  %v924_v55 = vmul.f32 %v11202_v0, %v11516_v46  ;;  %v1725_v35 = vmul.f32 %v11121_v24, %v11517_v21 }
 0x3b3   :  { %v4722_v53 = vpack.c.bf16 %v3511_v47, %v3503_v48  ;;  %v3500_v19 = vmax.f32 %v2988_v42, 0.0  ;;  %v2990_v57 = vadd.f32 %v11513_v61, %v2222_v63  ;;  %v1733_v14 = vmul.f32 %v11121_v24, %v11518_v43 }
 0x3b4   :  { %v3508_v9 = vmax.f32 %v2996_v54, 0.0  ;;  %v2998_v18 = vadd.f32 %v11514_v11, %v2230_v8  ;;  %v2237_v16 = vadd.f32 %v1725_v35, %v916_v23  ;;  %v918_v17 = vmul.f32 %v11143_v3, %v11515_v31 }
 0x3b5   :  { %4723 = vmatprep.subr.bf16.mxu1 %v4722_v53  ;;  %v3502_v39 = vmax.f32 %v2990_v57, 0.0  ;;  %v2245_v41 = vadd.f32 %v1733_v14, %v924_v55  ;;  %v926_v22 = vmul.f32 %v11143_v3, %v11516_v46  ;;  %v1727_v6 = vmul.f32 %v7852_v10, %v11517_v21  ;;  %v11520_v55 = vld [vmem:[#allocation261_spill] sm:$0xff]  ;;  %v11522_v57 = vld [vmem:[#allocation146_spill] sm:$0xff] }
 0x3b6   :  { %v4596_v61 = vpack.c.bf16 %v3508_v9, %v3500_v19  ;;  %v3510_v28 = vmax.f32 %v2998_v18, 0.0  ;;  %v3005_v4 = vadd.f32 %v8801_v59, %v2237_v16  ;;  %v1735_v11 = vmul.f32 %v7852_v10, %v11518_v43  ;;  %v11521_v19 = vld [vmem:[#allocation110_spill] sm:$0xff] }
 0x3b7   :  { %v3013_v25 = vadd.f32 %v11519_v38, %v2245_v41  ;;  %v2239_v1 = vadd.f32 %v1727_v6, %v918_v17  ;;  %v915_v62 = vmul.f32 %v11154_v45, %v11515_v31  ;;  %v923_v58 = vmul.f32 %v11154_v45, %v11516_v46  ;;  %v11523_v16 = vld [vmem:[#allocation14_spill] sm:$0xff] }
 0x3b8   :  { %4597 = vmatpush1.bf16.msra.mxu0 %v4596_v61  ;;  %v4724_v7 = vpack.c.bf16 %v3510_v28, %v3502_v39  ;;  %v3517_v60 = vmax.f32 %v3005_v4, 0.0  ;;  %v2247_v20 = vadd.f32 %v1735_v11, %v926_v22  ;;  %v1724_v49 = vmul.f32 %v7910_v44, %v11517_v21 }
 0x3b9   :  { %v3525_v27 = vmax.f32 %v3013_v25, 0.0  ;;  %v3007_v34 = vadd.f32 %v8801_v59, %v2239_v1  ;;  %v1732_v50 = vmul.f32 %v7910_v44, %v11518_v43  ;;  %v917_v52 = vmul.f32 %v11157_v2, %v11515_v31 }
 0x3ba   :  { %4725 = vmatpush1.bf16.msra.mxu1 %v4724_v7  ;;  %v3015_v29 = vadd.f32 %v11519_v38, %v2247_v20  ;;  %v2236_v48 = vadd.f32 %v1724_v49, %v915_v62  ;;  %v925_v33 = vmul.f32 %v11157_v2, %v11516_v46  ;;  %v1726_v36 = vmul.f32 %v7967_v13, %v11517_v21 }
 0x3bb   :  { %v4598_v47 = vpack.c.bf16 %v3525_v27, %v3517_v60  ;;  %v3519_v42 = vmax.f32 %v3007_v34, 0.0  ;;  %v2244_v63 = vadd.f32 %v1732_v50, %v923_v58  ;;  %v1734_v23 = vmul.f32 %v7967_v13, %v11518_v43 }
 0x3bc   :  { %v3527_v54 = vmax.f32 %v3015_v29, 0.0  ;;  %v3004_v8 = vadd.f32 %v8801_v59, %v2236_v48  ;;  %v2238_v31 = vadd.f32 %v1726_v36, %v917_v52  ;;  %v932_v35 = vmul.f32 %v11202_v0, %v11520_v55 }
 0x3bd   :  { %4599 = vmatprep.subr.bf16.mxu0 %v4598_v47  ;;  %v3012_v53 = vadd.f32 %v11519_v38, %v2244_v63  ;;  %v2246_v46 = vadd.f32 %v1734_v23, %v925_v33  ;;  %v940_v21 = vmul.f32 %v11202_v0, %v11521_v19  ;;  %v1741_v14 = vmul.f32 %v11121_v24, %v11522_v57 }
 0x3be   :  { %v4726_v9 = vpack.c.bf16 %v3527_v54, %v3519_v42  ;;  %v3516_v18 = vmax.f32 %v3004_v8, 0.0  ;;  %v3006_v43 = vadd.f32 %v8801_v59, %v2238_v31  ;;  %v1749_v17 = vmul.f32 %v11121_v24, %v11523_v16 }
 0x3bf   :  { %v3524_v39 = vmax.f32 %v3012_v53, 0.0  ;;  %v3014_v41 = vadd.f32 %v11519_v38, %v2246_v46  ;;  %v2253_v22 = vadd.f32 %v1741_v14, %v932_v35  ;;  %v934_v6 = vmul.f32 %v11143_v3, %v11520_v55  ;;  %v11524_v53 = vld [vmem:[#allocation212_spill] sm:$0xff]  ;;  %v11525_v14 = vld [vmem:[#allocation111_spill] sm:$0xff] }
 0x3c0   :  { %4727 = vmatprep.subr.bf16.mxu1 %v4726_v9  ;;  %v3518_v61 = vmax.f32 %v3006_v43, 0.0  ;;  %v2261_v28 = vadd.f32 %v1749_v17, %v940_v21  ;;  %v942_v4 = vmul.f32 %v11143_v3, %v11521_v19  ;;  %v1743_v11 = vmul.f32 %v7852_v10, %v11522_v57  ;;  %v11526_v9 = vld [vmem:[#allocation233_spill] sm:$0xff] }
 0x3c1   :  { %v4600_v59 = vpack.c.bf16 %v3524_v39, %v3516_v18  ;;  %v3526_v25 = vmax.f32 %v3014_v41, 0.0  ;;  %v3021_v1 = vadd.f32 %v8915_v26, %v2253_v22  ;;  %v1751_v38 = vmul.f32 %v7852_v10, %v11523_v16 }
 0x3c2   :  { %v3029_v62 = vadd.f32 %v8791_v5, %v2261_v28  ;;  %v2255_v58 = vadd.f32 %v1743_v11, %v934_v6  ;;  %v931_v7 = vmul.f32 %v11154_v45, %v11520_v55  ;;  %v939_v60 = vmul.f32 %v11154_v45, %v11521_v19 }
 0x3c3   :  { %4601 = vmatpush1.bf16.msra.mxu0 %v4600_v59  ;;  %v4728_v20 = vpack.c.bf16 %v3526_v25, %v3518_v61  ;;  %v3533_v49 = vmax.f32 %v3021_v1, 0.0  ;;  %v2263_v27 = vadd.f32 %v1751_v38, %v942_v4  ;;  %v1740_v34 = vmul.f32 %v7910_v44, %v11522_v57 }
 0x3c4   :  { %v3541_v50 = vmax.f32 %v3029_v62, 0.0  ;;  %v3023_v52 = vadd.f32 %v8915_v26, %v2255_v58  ;;  %v1748_v29 = vmul.f32 %v7910_v44, %v11523_v16  ;;  %v933_v48 = vmul.f32 %v11157_v2, %v11520_v55 }
 0x3c5   :  { %4729 = vmatpush1.bf16.msra.mxu1 %v4728_v20  ;;  %v3031_v33 = vadd.f32 %v8791_v5, %v2263_v27  ;;  %v2252_v36 = vadd.f32 %v1740_v34, %v931_v7  ;;  %v941_v47 = vmul.f32 %v11157_v2, %v11521_v19  ;;  %v1742_v42 = vmul.f32 %v7967_v13, %v11522_v57 }
 0x3c6   :  { %v4602_v63 = vpack.c.bf16 %v3541_v50, %v3533_v49  ;;  %v3535_v23 = vmax.f32 %v3023_v52, 0.0  ;;  %v2260_v54 = vadd.f32 %v1748_v29, %v939_v60  ;;  %v1750_v8 = vmul.f32 %v7967_v13, %v11523_v16 }
 0x3c7   :  { %v3543_v31 = vmax.f32 %v3031_v33, 0.0  ;;  %v3020_v35 = vadd.f32 %v8915_v26, %v2252_v36  ;;  %v2254_v55 = vadd.f32 %v1742_v42, %v933_v48  ;;  %v948_v46 = vmul.f32 %v11202_v0, %v11524_v53 }
 0x3c8   :  { %4603 = vmatprep.subr.bf16.mxu0 %v4602_v63  ;;  %v3028_v21 = vadd.f32 %v8791_v5, %v2260_v54  ;;  %v2262_v19 = vadd.f32 %v1750_v8, %v941_v47  ;;  %v956_v57 = vmul.f32 %v11202_v0, %v11525_v14  ;;  %v1757_v18 = vmul.f32 %v11121_v24, %v11526_v9 }
 0x3c9   :  { %v4730_v43 = vpack.c.bf16 %v3543_v31, %v3535_v23  ;;  %v3532_v17 = vmax.f32 %v3020_v35, 0.0  ;;  %v3022_v16 = vadd.f32 %v8915_v26, %v2254_v55  ;;  %v1765_v39 = vmul.f32 %v11121_v24, %v8897_v56 }
 0x3ca   :  { %v3540_v41 = vmax.f32 %v3028_v21, 0.0  ;;  %v3030_v22 = vadd.f32 %v8791_v5, %v2262_v19  ;;  %v2269_v6 = vadd.f32 %v1757_v18, %v948_v46  ;;  %v950_v61 = vmul.f32 %v11143_v3, %v11524_v53  ;;  %v11527_v18 = vld [vmem:[#allocation52_spill] sm:$0xff] }
 0x3cb   :  { %4731 = vmatprep.subr.bf16.mxu1 %v4730_v43  ;;  %v3534_v28 = vmax.f32 %v3022_v16, 0.0  ;;  %v2277_v0 = vadd.f32 %v1765_v39, %v956_v57  ;;  %v958_v4 = vmul.f32 %v11143_v3, %v11525_v14  ;;  %v1759_v11 = vmul.f32 %v7852_v10, %v11526_v9 }
 0x3cc   :  { %v4604_v26 = vpack.c.bf16 %v3540_v41, %v3532_v17  ;;  %v3542_v59 = vmax.f32 %v3030_v22, 0.0  ;;  %v3037_v24 = vadd.f32 %v8935_v15, %v2269_v6  ;;  %v1767_v5 = vmul.f32 %v7852_v10, %v8897_v56 }
 0x3cd   :  { %v3045_v25 = vadd.f32 %v8959_v51, %v2277_v0  ;;  %v2271_v1 = vadd.f32 %v1759_v11, %v950_v61  ;;  %v947_v38 = vmul.f32 %v11154_v45, %v11524_v53  ;;  %v955_v62 = vmul.f32 %v11154_v45, %v11525_v14 }
 0x3ce   :  { %4605 = vmatpush1.bf16.msra.mxu0 %v4604_v26  ;;  %v4732_v3 = vpack.c.bf16 %v3542_v59, %v3534_v28  ;;  %v3549_v58 = vmax.f32 %v3037_v24, 0.0  ;;  %v2279_v7 = vadd.f32 %v1767_v5, %v958_v4  ;;  %v1756_v60 = vmul.f32 %v7910_v44, %v11526_v9 }
 0x3cf   :  { %v3557_v20 = vmax.f32 %v3045_v25, 0.0  ;;  %v3039_v49 = vadd.f32 %v8935_v15, %v2271_v1  ;;  %v1764_v10 = vmul.f32 %v7910_v44, %v8897_v56  ;;  %v949_v27 = vmul.f32 %v11157_v2, %v11524_v53 }
 0x3d0   :  { %4733 = vmatpush1.bf16.msra.mxu1 %v4732_v3  ;;  %v3047_v34 = vadd.f32 %v8959_v51, %v2279_v7  ;;  %v2268_v45 = vadd.f32 %v1756_v60, %v947_v38  ;;  %v957_v50 = vmul.f32 %v11157_v2, %v11525_v14  ;;  %v1758_v52 = vmul.f32 %v7967_v13, %v11526_v9 }
 0x3d1   :  { %v4606_v29 = vpack.c.bf16 %v3557_v20, %v3549_v58  ;;  %v3551_v48 = vmax.f32 %v3039_v49, 0.0  ;;  %v2276_v33 = vadd.f32 %v1764_v10, %v955_v62  ;;  %v1766_v36 = vmul.f32 %v7967_v13, %v8897_v56 }
 0x3d2   :  { %v3559_v44 = vmax.f32 %v3047_v34, 0.0  ;;  %v3036_v47 = vadd.f32 %v8935_v15, %v2268_v45  ;;  %v2270_v42 = vadd.f32 %v1758_v52, %v949_v27  ;;  %v3562_v63 = vstv %s10041_s3  ;;  %s4899_s3 = smov [#allocation3]  }
 0x3d3   :  { %4607 = vmatprep.subr.bf16.mxu0 %v4606_v29  ;;  %v3044_v2 = vadd.f32 %v8959_v51, %v2276_v33  ;;  %v2278_v23 = vadd.f32 %v1766_v36, %v957_v50  ;;  %v4738_v54 = vadd.f32 %v9818_v12, %v3562_v63  ;;  %v4740_v8 = vadd.f32 %v9820_v40, %v3562_v63  ;;  %s4217_s18 = sshll.u32 %s4899_s3, 4  ;;  %s4218_s18 = int_to_ptr.vmem [resolvable:$true] %s4217_s18 }
 0x3d4   :  { %v4734_v31 = vpack.c.bf16 %v3559_v44, %v3551_v48  ;;  %v3038_v35 = vadd.f32 %v8935_v15, %v2270_v42  ;;  %v4739_v13 = vadd.f32 %v9826_v37, %v3562_v63  ;;  %v3548_v56 = vmax.f32 %v3036_v47, 0.0  ;;  %s4871_s19 = scalar_lea.vmem %s4218_s18, 128  ;;  %p4876_p1 = scmp.lt.s32.totalorder %s4218_s18, %s4218_s18 }
 0x3d5   :  { %v3556_v55 = vmax.f32 %v3044_v2, 0.0  ;;  %v3046_v53 = vadd.f32 %v8959_v51, %v2278_v23  ;;  %v4741_v46 = vadd.f32 %v9828_v32, %v3562_v63  ;;  %v4898_v15 = vmov 1966171168   ;;  %p4872_p0 = scmp.ne.s32.totalorder %s4218_s18, %s4871_s19  ;;  %p4877_p2 = scmp.lt.s32.totalorder %s4871_s19, %s4871_s19 }
 0x3d6   :  { %4735 = vmatprep.subr.bf16.mxu1 %v4734_v31  ;;  %v4160_v21 = vcombine.low %v4738_v54, %v4739_v13  ;;  %v3550_v14 = vmax.f32 %v3038_v35, 0.0  ;;  %v4165_v40 = vunpack.c.l.s4 %v4898_v15 }
 0x3d7   :  { %v4608_v19 = vpack.c.bf16 %v3556_v55, %v3548_v56  ;;  %v3558_v57 = vmax.f32 %v3046_v53, 0.0  ;;  %v4161_v9 = vcombine.low %v4740_v8, %v4741_v46  ;;  %p4878_p3 = por %p4877_p2, %p4876_p1 }
 0x3d8   :  { %v4166_v37 = vunpack.c.0.s8 %v4165_v40 }
 0x3d9   :  { %4609 = vmatpush1.bf16.msra.mxu0 %v4608_v19  ;;  %v4736_v12 = vpack.c.bf16 %v3558_v57, %v3550_v14  ;;  %p4879_p4 = pnand %p4878_p3, %p4872_p0 }
 0x3da   :  { %v4169_v51 = vsub.s32 %v4166_v37, %v11527_v18 }
 0x3db   :  { %4737 = vmatpush1.bf16.msra.mxu1 %v4736_v12 }
 0x3dc   :  { %4004 = vmatmul.mubr.f32.vlgmr.msra.gmra.mrb[2].mxu0 %v11368_v30  ;;  %v4170_v43 = vrot.slane %v4160_v21, %v4169_v51  ;;  %v4177_v32 = vrot.slane %v4161_v9, %v4169_v51 }
 0x3de   :  { %4146 = vmatmul.mubr.f32.vlgmr.msra.gmra.mrb[2].mxu1 %v11368_v30  ;;  %v4192_v17 = vcombine.low %v4170_v43, %v4177_v32 }
 0x3e0   :  { %v4200_v24 = vrot.slane %v4192_v17, %v4169_v51 }
 0x4af   :  { %v4005_v16 = vpop.f32.mrb[2].mxu0 }
 0x4b0   :  { %v4742_v39 = vadd.f32 %v4005_v16, %v3562_v63  ;;  %v4007_v41 = vpop.f32.mrb[3].mxu0 }
 0x4b1   :  { %v4147_v22 = vpop.f32.mrb[2].mxu1  ;;  %v4743_v6 = vadd.f32 %v4007_v41, %v3562_v63 }
 0x4b2   :  { %v4744_v61 = vadd.f32 %v4147_v22, %v3562_v63  ;;  %v4149_v28 = vpop.f32.mrb[3].mxu1 }
 0x4b3   :  { %v4162_v0 = vcombine.low %v4742_v39, %v4743_v6  ;;  %v4745_v4 = vadd.f32 %v4149_v28, %v3562_v63 }
 0x4b5   :  { %v4184_v11 = vrot.slane %v4162_v0, %v4169_v51  ;;  %v4163_v26 = vcombine.low %v4744_v61, %v4745_v4 }
 0x4b7   :  { %v4191_v30 = vrot.slane %v4163_v26, %v4169_v51 }
 0x4b9   :  { %v4193_v59 = vcombine.low %v4184_v11, %v4191_v30 }
 0x4bb   :  { %v4207_v5 = vrot.slane %v4193_v59, %v4169_v51 }
 0x4bd   :  { %v4208_v25 = vcombine.low %v4200_v24, %v4207_v5 }
 0x4bf   :  { %4210 = vst [vmem:[#allocation3] sm:$0xff] %v4208_v25 }
 0x4c0   :  { %4882 = shalt.err (!%p4879_p4)
}
 0x4c1   :  { %s4883_s22 = scalar_lea.hbm %s10042_s4, 128 }
 0x4c2   :  { %p4884_p5 = scmp.ne.s32.totalorder %s10042_s4, %s4883_s22  ;;  %p4887_p6 = scmp.lt.u32.totalorder %s4883_s22, %s10042_s4 }
 0x4c4   :  { %p4889_p7 = pnand %p4887_p6, %p4884_p5 }
 0x4c6   :  { %4892 = shalt.err (!%p4889_p7)
}
 0x4c7   :  { %4220 = dma.vmem_to_hbm [thread:$0]  %s4218_s18, 128, %s10042_s4, [#allocation4]  }
 0x4c8   :  { %4893 = dma.done.wait [#allocation4], 128  }
 0x4c9   :  { %4894 = vsyncadd [#allocation4], 4294967168 }
 0x4ca   :  { %4224 = vsyncpa [#allocation4], 1 }

</bundles_post_ra>
